<compile_context>
chip_gen: v6e
topology: v6e:2x2x1
jax: 0.10.0
libtpu: 0.0.40
codegen_flags: <defaults>
</compile_context>

<pallas_src>
import functools
import math

import jax
import jax.numpy as jnp
from jax.experimental import pallas as pl
from jax.experimental.pallas import tpu as pltpu

NUM_HEADS = 4          # hard-coded in the PyTorch module
LN_EPS = 1e-5


# ----------------------------------------------------------------------------
# Pallas kernels
# ----------------------------------------------------------------------------

def _sa_block_kernel(x_ref, ln1_g_ref, ln1_b_ref, w_in_ref, b_in_ref,
                     w_out_ref, b_out_ref, ln2_g_ref, ln2_b_ref,
                     w_ff1_ref, b_ff1_ref,
                     attn_ref, h1_ref, *, num_heads):
    """One batch element: LN1 -> MHA (all heads, full KV) -> +x -> LN2 -> FF1."""
    x = x_ref[0]                                      # (L, C) f32
    C = x.shape[-1]
    hd = C // num_heads

    # ---- LayerNorm 1 (f32 statistics) ----
    mu = jnp.mean(x, axis=-1, keepdims=True)
    var = jnp.mean(jnp.square(x - mu), axis=-1, keepdims=True)
    x_ln = (x - mu) * jax.lax.rsqrt(var + LN_EPS)
    x_ln = x_ln * ln1_g_ref[...] + ln1_b_ref[...]     # (1,C) broadcasts

    # ---- QKV projection on the MXU: bf16 inputs, f32 accumulation ----
    # (1/sqrt(hd) is pre-folded into the Q columns of w_in / b_in.)
    qkv = jnp.dot(x_ln.astype(jnp.bfloat16), w_in_ref[...],
                  preferred_element_type=jnp.float32) + b_in_ref[...]  # (L,3C)

    # ---- Multi-head attention: all heads this step, full-row KV ----
    head_outs = []
    for h in range(num_heads):
        q_h = qkv[:, h * hd:(h + 1) * hd].astype(jnp.bfloat16)          # (L,hd)
        k_h = qkv[:, C + h * hd:C + (h + 1) * hd].astype(jnp.bfloat16)
        v_h = qkv[:, 2 * C + h * hd:2 * C + (h + 1) * hd].astype(jnp.bfloat16)
        # scores = q_h @ k_h^T  (contract the head dim of both)
        s = jax.lax.dot_general(q_h, k_h, (((1,), (1,)), ((), ())),
                                preferred_element_type=jnp.float32)     # (L,L)
        m = jnp.max(s, axis=-1, keepdims=True)
        p = jnp.exp(s - m)
        l = jnp.sum(p, axis=-1, keepdims=True)
        p = p * pl.reciprocal(l, approx=True)          # EUP reciprocal
        head_outs.append(jnp.dot(p.astype(jnp.bfloat16), v_h,
                                 preferred_element_type=jnp.float32))   # (L,hd)
    o = jnp.concatenate(head_outs, axis=-1)            # (L, C), lane-dense

    # ---- Output projection + residual with the un-normalized input ----
    attn = jnp.dot(o.astype(jnp.bfloat16), w_out_ref[...],
                   preferred_element_type=jnp.float32)
    attn = attn + b_out_ref[...] + x                   # (L, C)
    attn_ref[...] = attn[None]

    # ---- LayerNorm 2 + first FF matmul (GELU happens outside, in f32) ----
    mu2 = jnp.mean(attn, axis=-1, keepdims=True)
    var2 = jnp.mean(jnp.square(attn - mu2), axis=-1, keepdims=True)
    h2 = (attn - mu2) * jax.lax.rsqrt(var2 + LN_EPS)
    h2 = h2 * ln2_g_ref[...] + ln2_b_ref[...]
    h1 = jnp.dot(h2.astype(jnp.bfloat16), w_ff1_ref[...],
                 preferred_element_type=jnp.float32) + b_ff1_ref[...]
    h1_ref[...] = h1[None]


def _ff2_residual_kernel(g_ref, attn_ref, w_ref, b_ref, o_ref):
    """out = gelu(h1) @ W2 + b2 + attention_value  (per batch element)."""
    y = jnp.dot(g_ref[0], w_ref[...], preferred_element_type=jnp.float32)
    o_ref[...] = (y + b_ref[...] + attn_ref[0])[None]


# ----------------------------------------------------------------------------
# Wrapper
# ----------------------------------------------------------------------------

def self_attention_forward(params, x_nchw):
    """x_nchw: (B, C, size, size) -> (B, C, size, size), PyTorch semantics."""
    B, C, H, W = x_nchw.shape
    L = H * W
    xs = jnp.transpose(x_nchw.reshape(B, C, L), (0, 2, 1)).astype(jnp.float32)

    vec_spec = pl.BlockSpec((1, C), lambda b: (0, 0))
    seq_spec = pl.BlockSpec((1, L, C), lambda b: (b, 0, 0))
    cparams = pltpu.CompilerParams(
        dimension_semantics=("parallel",),
        vmem_limit_bytes=32 * 1024 * 1024)

    attn, h1 = pl.pallas_call(
        functools.partial(_sa_block_kernel, num_heads=NUM_HEADS),
        out_shape=(jax.ShapeDtypeStruct((B, L, C), jnp.float32),
                   jax.ShapeDtypeStruct((B, L, C), jnp.float32)),
        grid=(B,),
        in_specs=[
            seq_spec,                                            # x
            vec_spec, vec_spec,                                  # ln1 g,b
            pl.BlockSpec((C, 3 * C), lambda b: (0, 0)),          # w_in (bf16)
            pl.BlockSpec((1, 3 * C), lambda b: (0, 0)),          # b_in
            pl.BlockSpec((C, C), lambda b: (0, 0)),              # w_out (bf16)
            vec_spec,                                            # b_out
            vec_spec, vec_spec,                                  # ln2 g,b
            pl.BlockSpec((C, C), lambda b: (0, 0)),              # w_ff1 (bf16)
            vec_spec,                                            # b_ff1
        ],
        out_specs=(seq_spec, seq_spec),
        compiler_params=cparams,
    )(xs, params['ln1_g'], params['ln1_b'], params['w_in'], params['b_in'],
      params['w_out'], params['b_out'], params['ln2_g'], params['ln2_b'],
      params['w_ff1'], params['b_ff1'])

    # TODO(synk): exact erf-GELU (nn.GELU default) stays in plain JAX between
    # the two kernels; fuse it in-kernel once Mosaic erf lowering is verified.
    g = jax.nn.gelu(h1, approximate=False).astype(jnp.bfloat16)

    out = pl.pallas_call(
        _ff2_residual_kernel,
        out_shape=jax.ShapeDtypeStruct((B, L, C), jnp.float32),
        grid=(B,),
        in_specs=[seq_spec,                                      # gelu(h1) bf16
                  seq_spec,                                      # attention_value
                  pl.BlockSpec((C, C), lambda b: (0, 0)),        # w_ff2 (bf16)
                  vec_spec],                                     # b_ff2
        out_specs=seq_spec,
        compiler_params=cparams,
    )(g, attn, params['w_ff2'], params['b_ff2'])

    return jnp.transpose(out, (0, 2, 1)).reshape(B, C, H, W)


# ----------------------------------------------------------------------------
# Deterministic synthetic parameters (shapes follow the PyTorch __init__)
# ----------------------------------------------------------------------------

def init_params(key, channels, num_heads=NUM_HEADS):
    C = channels
    hd = C // num_heads
    ks = jax.random.split(key, 8)

    def lin(k, cin, cout):
        return jax.random.normal(k, (cin, cout), jnp.float32) / math.sqrt(cin)

    w_in = lin(ks[0], C, 3 * C)
    b_in = jax.random.normal(ks[1], (3 * C,), jnp.float32) * 0.02
    # Fold the 1/sqrt(head_dim) attention scale into the Q projection.
    scale = 1.0 / math.sqrt(hd)
    w_in = w_in.at[:, :C].multiply(scale)
    b_in = b_in.at[:C].multiply(scale)

    return dict(
        ln1_g=jnp.ones((1, C), jnp.float32),
        ln1_b=jnp.zeros((1, C), jnp.float32),
        w_in=w_in.astype(jnp.bfloat16),
        b_in=b_in.reshape(1, 3 * C),
        w_out=lin(ks[2], C, C).astype(jnp.bfloat16),
        b_out=(jax.random.normal(ks[3], (1, C), jnp.float32) * 0.02),
        ln2_g=jnp.ones((1, C), jnp.float32),
        ln2_b=jnp.zeros((1, C), jnp.float32),
        w_ff1=lin(ks[4], C, C).astype(jnp.bfloat16),
        b_ff1=(jax.random.normal(ks[5], (1, C), jnp.float32) * 0.02),
        w_ff2=lin(ks[6], C, C).astype(jnp.bfloat16),
        b_ff2=(jax.random.normal(ks[7], (1, C), jnp.float32) * 0.02),
    )


# ----------------------------------------------------------------------------

if __name__ == "__main__":
    B, CHANNELS, SIZE = 2, 64, 16          # SelfAttention(channels=64, size=16)
    key = jax.random.PRNGKey(0)
    kx, kp = jax.random.split(key)
    x = jax.random.normal(kx, (B, CHANNELS, SIZE, SIZE), jnp.float32)
    params = init_params(kp, CHANNELS)

    fwd = jax.jit(self_attention_forward)
    out = fwd(params, x)
    out = jax.block_until_ready(out)

    assert out.shape == (B, CHANNELS, SIZE, SIZE), out.shape
    assert bool(jnp.all(jnp.isfinite(out)))
    print("KERNEL_OK")
</pallas_src>

<mosaic_0001>
module attributes {stable_mosaic.version = 11 : i64} {
  func.func @_sa_block_kernel(%arg0: i32, %arg1: memref<1x256x64xf32, #tpu.memory_space<vmem>>, %arg2: memref<1x64xf32, #tpu.memory_space<vmem>>, %arg3: memref<1x64xf32, #tpu.memory_space<vmem>>, %arg4: memref<64x192xbf16, #tpu.memory_space<vmem>>, %arg5: memref<1x192xf32, #tpu.memory_space<vmem>>, %arg6: memref<64x64xbf16, #tpu.memory_space<vmem>>, %arg7: memref<1x64xf32, #tpu.memory_space<vmem>>, %arg8: memref<1x64xf32, #tpu.memory_space<vmem>>, %arg9: memref<1x64xf32, #tpu.memory_space<vmem>>, %arg10: memref<64x64xbf16, #tpu.memory_space<vmem>>, %arg11: memref<1x64xf32, #tpu.memory_space<vmem>>, %arg12: memref<1x256x64xf32, #tpu.memory_space<vmem>>, %arg13: memref<1x256x64xf32, #tpu.memory_space<vmem>>) attributes {dimension_semantics = [#tpu.dimension_semantics<parallel>], iteration_bounds = array<i64: 2>, scalar_prefetch = 0 : i64, scratch_operands = 0 : i64, tpu.core_type = #tpu.core_type<tc>, window_params = [{transform_indices = @transform_0, window_bounds = array<i64: 1, 256, 64>}, {pipeline_mode = #tpu.pipeline_mode<synchronous>, transform_indices = @transform_1, window_bounds = array<i64: 1, 64>}, {pipeline_mode = #tpu.pipeline_mode<synchronous>, transform_indices = @transform_2, window_bounds = array<i64: 1, 64>}, {pipeline_mode = #tpu.pipeline_mode<synchronous>, transform_indices = @transform_3, window_bounds = array<i64: 64, 192>}, {pipeline_mode = #tpu.pipeline_mode<synchronous>, transform_indices = @transform_4, window_bounds = array<i64: 1, 192>}, {pipeline_mode = #tpu.pipeline_mode<synchronous>, transform_indices = @transform_5, window_bounds = array<i64: 64, 64>}, {pipeline_mode = #tpu.pipeline_mode<synchronous>, transform_indices = @transform_6, window_bounds = array<i64: 1, 64>}, {pipeline_mode = #tpu.pipeline_mode<synchronous>, transform_indices = @transform_7, window_bounds = array<i64: 1, 64>}, {pipeline_mode = #tpu.pipeline_mode<synchronous>, transform_indices = @transform_8, window_bounds = array<i64: 1, 64>}, {pipeline_mode = #tpu.pipeline_mode<synchronous>, transform_indices = @transform_9, window_bounds = array<i64: 64, 64>}, {pipeline_mode = #tpu.pipeline_mode<synchronous>, transform_indices = @transform_10, window_bounds = array<i64: 1, 64>}, {transform_indices = @transform_11, window_bounds = array<i64: 1, 256, 64>}, {transform_indices = @transform_12, window_bounds = array<i64: 1, 256, 64>}]} {
    %c0 = arith.constant 0 : index
    %c0_0 = arith.constant 0 : index
    %c0_1 = arith.constant 0 : index
    %0 = vector.load %arg1[%c0, %c0_0, %c0_1] : memref<1x256x64xf32, #tpu.memory_space<vmem>>, vector<1x256x64xf32>
    %1 = vector.shape_cast %0 : vector<1x256x64xf32> to vector<256x64xf32>
    %cst = arith.constant dense<0.000000e+00> : vector<256xf32>
    %2 = vector.multi_reduction <add>, %1, %cst [1] : vector<256x64xf32> to vector<256xf32>
    %3 = vector.shape_cast %2 : vector<256xf32> to vector<256x1xf32>
    %cst_2 = arith.constant 6.400000e+01 : f32
    %4 = vector.broadcast %cst_2 : f32 to vector<256x1xf32>
    %5 = arith.divf %3, %4 : vector<256x1xf32>
    %6 = vector.broadcast %5 : vector<256x1xf32> to vector<256x64xf32>
    %7 = arith.subf %1, %6 : vector<256x64xf32>
    %8 = arith.mulf %7, %7 : vector<256x64xf32>
    %cst_3 = arith.constant dense<0.000000e+00> : vector<256xf32>
    %9 = vector.multi_reduction <add>, %8, %cst_3 [1] : vector<256x64xf32> to vector<256xf32>
    %10 = vector.shape_cast %9 : vector<256xf32> to vector<256x1xf32>
    %cst_4 = arith.constant 6.400000e+01 : f32
    %11 = vector.broadcast %cst_4 : f32 to vector<256x1xf32>
    %12 = arith.divf %10, %11 : vector<256x1xf32>
    %13 = vector.broadcast %5 : vector<256x1xf32> to vector<256x64xf32>
    %14 = arith.subf %1, %13 : vector<256x64xf32>
    %cst_5 = arith.constant 9.99999974E-6 : f32
    %15 = vector.broadcast %cst_5 : f32 to vector<256x1xf32>
    %16 = arith.addf %12, %15 : vector<256x1xf32>
    %17 = math.rsqrt %16 : vector<256x1xf32>
    %18 = vector.broadcast %17 : vector<256x1xf32> to vector<256x64xf32>
    %19 = arith.mulf %14, %18 : vector<256x64xf32>
    %c0_6 = arith.constant 0 : index
    %c0_7 = arith.constant 0 : index
    %20 = vector.load %arg2[%c0_6, %c0_7] : memref<1x64xf32, #tpu.memory_space<vmem>>, vector<1x64xf32>
    %21 = vector.broadcast %20 : vector<1x64xf32> to vector<256x64xf32>
    %22 = arith.mulf %19, %21 : vector<256x64xf32>
    %c0_8 = arith.constant 0 : index
    %c0_9 = arith.constant 0 : index
    %23 = vector.load %arg3[%c0_8, %c0_9] : memref<1x64xf32, #tpu.memory_space<vmem>>, vector<1x64xf32>
    %24 = vector.broadcast %23 : vector<1x64xf32> to vector<256x64xf32>
    %25 = arith.addf %22, %24 : vector<256x64xf32>
    %26 = arith.truncf %25 : vector<256x64xf32> to vector<256x64xbf16>
    %c0_10 = arith.constant 0 : index
    %c0_11 = arith.constant 0 : index
    %27 = vector.load %arg4[%c0_10, %c0_11] : memref<64x192xbf16, #tpu.memory_space<vmem>>, vector<64x192xbf16>
    %cst_12 = arith.constant dense<0.000000e+00> : vector<256x192xf32>
    %28 = tpu.matmul %26, %27, %cst_12 {dimension_numbers = #tpu.dot_dimension_numbers<[1], [0], [0], [1], [0, 0, 1, 1], [], []>} : vector<256x64xbf16>, vector<64x192xbf16>, vector<256x192xf32> -> vector<256x192xf32>
    %c0_13 = arith.constant 0 : index
    %c0_14 = arith.constant 0 : index
    %29 = vector.load %arg5[%c0_13, %c0_14] : memref<1x192xf32, #tpu.memory_space<vmem>>, vector<1x192xf32>
    %30 = vector.broadcast %29 : vector<1x192xf32> to vector<256x192xf32>
    %31 = arith.addf %28, %30 : vector<256x192xf32>
    %32 = vector.extract_strided_slice %31 {offsets = [0, 0], sizes = [256, 16], strides = [1, 1]} : vector<256x192xf32> to vector<256x16xf32>
    %33 = arith.truncf %32 : vector<256x16xf32> to vector<256x16xbf16>
    %34 = vector.extract_strided_slice %31 {offsets = [0, 64], sizes = [256, 16], strides = [1, 1]} : vector<256x192xf32> to vector<256x16xf32>
    %35 = arith.truncf %34 : vector<256x16xf32> to vector<256x16xbf16>
    %36 = vector.extract_strided_slice %31 {offsets = [0, 128], sizes = [256, 16], strides = [1, 1]} : vector<256x192xf32> to vector<256x16xf32>
    %37 = arith.truncf %36 : vector<256x16xf32> to vector<256x16xbf16>
    %cst_15 = arith.constant dense<0.000000e+00> : vector<256x256xf32>
    %38 = tpu.matmul %33, %35, %cst_15 {dimension_numbers = #tpu.dot_dimension_numbers<[1], [1], [0], [0], [0, 0, 1, 0], [], []>} : vector<256x16xbf16>, vector<256x16xbf16>, vector<256x256xf32> -> vector<256x256xf32>
    %cst_16 = arith.constant dense<0xFF800000> : vector<256xf32>
    %39 = vector.multi_reduction <maximumf>, %38, %cst_16 [1] : vector<256x256xf32> to vector<256xf32>
    %40 = vector.shape_cast %39 : vector<256xf32> to vector<256x1xf32>
    %41 = vector.broadcast %40 : vector<256x1xf32> to vector<256x256xf32>
    %42 = arith.subf %38, %41 : vector<256x256xf32>
    %43 = math.exp %42 : vector<256x256xf32>
    %cst_17 = arith.constant dense<0.000000e+00> : vector<256xf32>
    %44 = vector.multi_reduction <add>, %43, %cst_17 [1] : vector<256x256xf32> to vector<256xf32>
    %45 = vector.shape_cast %44 : vector<256xf32> to vector<256x1xf32>
    %46 = tpu.reciprocal %45 {approx = true} : vector<256x1xf32> -> vector<256x1xf32>
    %47 = vector.broadcast %46 : vector<256x1xf32> to vector<256x256xf32>
    %48 = arith.mulf %43, %47 : vector<256x256xf32>
    %49 = arith.truncf %48 : vector<256x256xf32> to vector<256x256xbf16>
    %cst_18 = arith.constant dense<0.000000e+00> : vector<256x16xf32>
    %50 = tpu.matmul %49, %37, %cst_18 {dimension_numbers = #tpu.dot_dimension_numbers<[1], [0], [0], [1], [0, 0, 1, 1], [], []>} : vector<256x256xbf16>, vector<256x16xbf16>, vector<256x16xf32> -> vector<256x16xf32>
    %51 = vector.extract_strided_slice %31 {offsets = [0, 16], sizes = [256, 16], strides = [1, 1]} : vector<256x192xf32> to vector<256x16xf32>
    %52 = arith.truncf %51 : vector<256x16xf32> to vector<256x16xbf16>
    %53 = vector.extract_strided_slice %31 {offsets = [0, 80], sizes = [256, 16], strides = [1, 1]} : vector<256x192xf32> to vector<256x16xf32>
    %54 = arith.truncf %53 : vector<256x16xf32> to vector<256x16xbf16>
    %55 = vector.extract_strided_slice %31 {offsets = [0, 144], sizes = [256, 16], strides = [1, 1]} : vector<256x192xf32> to vector<256x16xf32>
    %56 = arith.truncf %55 : vector<256x16xf32> to vector<256x16xbf16>
    %cst_19 = arith.constant dense<0.000000e+00> : vector<256x256xf32>
    %57 = tpu.matmul %52, %54, %cst_19 {dimension_numbers = #tpu.dot_dimension_numbers<[1], [1], [0], [0], [0, 0, 1, 0], [], []>} : vector<256x16xbf16>, vector<256x16xbf16>, vector<256x256xf32> -> vector<256x256xf32>
    %cst_20 = arith.constant dense<0xFF800000> : vector<256xf32>
    %58 = vector.multi_reduction <maximumf>, %57, %cst_20 [1] : vector<256x256xf32> to vector<256xf32>
    %59 = vector.shape_cast %58 : vector<256xf32> to vector<256x1xf32>
    %60 = vector.broadcast %59 : vector<256x1xf32> to vector<256x256xf32>
    %61 = arith.subf %57, %60 : vector<256x256xf32>
    %62 = math.exp %61 : vector<256x256xf32>
    %cst_21 = arith.constant dense<0.000000e+00> : vector<256xf32>
    %63 = vector.multi_reduction <add>, %62, %cst_21 [1] : vector<256x256xf32> to vector<256xf32>
    %64 = vector.shape_cast %63 : vector<256xf32> to vector<256x1xf32>
    %65 = tpu.reciprocal %64 {approx = true} : vector<256x1xf32> -> vector<256x1xf32>
    %66 = vector.broadcast %65 : vector<256x1xf32> to vector<256x256xf32>
    %67 = arith.mulf %62, %66 : vector<256x256xf32>
    %68 = arith.truncf %67 : vector<256x256xf32> to vector<256x256xbf16>
    %cst_22 = arith.constant dense<0.000000e+00> : vector<256x16xf32>
    %69 = tpu.matmul %68, %56, %cst_22 {dimension_numbers = #tpu.dot_dimension_numbers<[1], [0], [0], [1], [0, 0, 1, 1], [], []>} : vector<256x256xbf16>, vector<256x16xbf16>, vector<256x16xf32> -> vector<256x16xf32>
    %70 = vector.extract_strided_slice %31 {offsets = [0, 32], sizes = [256, 16], strides = [1, 1]} : vector<256x192xf32> to vector<256x16xf32>
    %71 = arith.truncf %70 : vector<256x16xf32> to vector<256x16xbf16>
    %72 = vector.extract_strided_slice %31 {offsets = [0, 96], sizes = [256, 16], strides = [1, 1]} : vector<256x192xf32> to vector<256x16xf32>
    %73 = arith.truncf %72 : vector<256x16xf32> to vector<256x16xbf16>
    %74 = vector.extract_strided_slice %31 {offsets = [0, 160], sizes = [256, 16], strides = [1, 1]} : vector<256x192xf32> to vector<256x16xf32>
    %75 = arith.truncf %74 : vector<256x16xf32> to vector<256x16xbf16>
    %cst_23 = arith.constant dense<0.000000e+00> : vector<256x256xf32>
    %76 = tpu.matmul %71, %73, %cst_23 {dimension_numbers = #tpu.dot_dimension_numbers<[1], [1], [0], [0], [0, 0, 1, 0], [], []>} : vector<256x16xbf16>, vector<256x16xbf16>, vector<256x256xf32> -> vector<256x256xf32>
    %cst_24 = arith.constant dense<0xFF800000> : vector<256xf32>
    %77 = vector.multi_reduction <maximumf>, %76, %cst_24 [1] : vector<256x256xf32> to vector<256xf32>
    %78 = vector.shape_cast %77 : vector<256xf32> to vector<256x1xf32>
    %79 = vector.broadcast %78 : vector<256x1xf32> to vector<256x256xf32>
    %80 = arith.subf %76, %79 : vector<256x256xf32>
    %81 = math.exp %80 : vector<256x256xf32>
    %cst_25 = arith.constant dense<0.000000e+00> : vector<256xf32>
    %82 = vector.multi_reduction <add>, %81, %cst_25 [1] : vector<256x256xf32> to vector<256xf32>
    %83 = vector.shape_cast %82 : vector<256xf32> to vector<256x1xf32>
    %84 = tpu.reciprocal %83 {approx = true} : vector<256x1xf32> -> vector<256x1xf32>
    %85 = vector.broadcast %84 : vector<256x1xf32> to vector<256x256xf32>
    %86 = arith.mulf %81, %85 : vector<256x256xf32>
    %87 = arith.truncf %86 : vector<256x256xf32> to vector<256x256xbf16>
    %cst_26 = arith.constant dense<0.000000e+00> : vector<256x16xf32>
    %88 = tpu.matmul %87, %75, %cst_26 {dimension_numbers = #tpu.dot_dimension_numbers<[1], [0], [0], [1], [0, 0, 1, 1], [], []>} : vector<256x256xbf16>, vector<256x16xbf16>, vector<256x16xf32> -> vector<256x16xf32>
    %89 = vector.extract_strided_slice %31 {offsets = [0, 48], sizes = [256, 16], strides = [1, 1]} : vector<256x192xf32> to vector<256x16xf32>
    %90 = arith.truncf %89 : vector<256x16xf32> to vector<256x16xbf16>
    %91 = vector.extract_strided_slice %31 {offsets = [0, 112], sizes = [256, 16], strides = [1, 1]} : vector<256x192xf32> to vector<256x16xf32>
    %92 = arith.truncf %91 : vector<256x16xf32> to vector<256x16xbf16>
    %93 = vector.extract_strided_slice %31 {offsets = [0, 176], sizes = [256, 16], strides = [1, 1]} : vector<256x192xf32> to vector<256x16xf32>
    %94 = arith.truncf %93 : vector<256x16xf32> to vector<256x16xbf16>
    %cst_27 = arith.constant dense<0.000000e+00> : vector<256x256xf32>
    %95 = tpu.matmul %90, %92, %cst_27 {dimension_numbers = #tpu.dot_dimension_numbers<[1], [1], [0], [0], [0, 0, 1, 0], [], []>} : vector<256x16xbf16>, vector<256x16xbf16>, vector<256x256xf32> -> vector<256x256xf32>
    %cst_28 = arith.constant dense<0xFF800000> : vector<256xf32>
    %96 = vector.multi_reduction <maximumf>, %95, %cst_28 [1] : vector<256x256xf32> to vector<256xf32>
    %97 = vector.shape_cast %96 : vector<256xf32> to vector<256x1xf32>
    %98 = vector.broadcast %97 : vector<256x1xf32> to vector<256x256xf32>
    %99 = arith.subf %95, %98 : vector<256x256xf32>
    %100 = math.exp %99 : vector<256x256xf32>
    %cst_29 = arith.constant dense<0.000000e+00> : vector<256xf32>
    %101 = vector.multi_reduction <add>, %100, %cst_29 [1] : vector<256x256xf32> to vector<256xf32>
    %102 = vector.shape_cast %101 : vector<256xf32> to vector<256x1xf32>
    %103 = tpu.reciprocal %102 {approx = true} : vector<256x1xf32> -> vector<256x1xf32>
    %104 = vector.broadcast %103 : vector<256x1xf32> to vector<256x256xf32>
    %105 = arith.mulf %100, %104 : vector<256x256xf32>
    %106 = arith.truncf %105 : vector<256x256xf32> to vector<256x256xbf16>
    %cst_30 = arith.constant dense<0.000000e+00> : vector<256x16xf32>
    %107 = tpu.matmul %106, %94, %cst_30 {dimension_numbers = #tpu.dot_dimension_numbers<[1], [0], [0], [1], [0, 0, 1, 1], [], []>} : vector<256x256xbf16>, vector<256x16xbf16>, vector<256x16xf32> -> vector<256x16xf32>
    %108 = tpu.concatenate %50, %69, %88, %107 in 1 : vector<256x16xf32>, vector<256x16xf32>, vector<256x16xf32>, vector<256x16xf32> -> vector<256x64xf32>
    %109 = arith.truncf %108 : vector<256x64xf32> to vector<256x64xbf16>
    %c0_31 = arith.constant 0 : index
    %c0_32 = arith.constant 0 : index
    %110 = vector.load %arg6[%c0_31, %c0_32] : memref<64x64xbf16, #tpu.memory_space<vmem>>, vector<64x64xbf16>
    %cst_33 = arith.constant dense<0.000000e+00> : vector<256x64xf32>
    %111 = tpu.matmul %109, %110, %cst_33 {dimension_numbers = #tpu.dot_dimension_numbers<[1], [0], [0], [1], [0, 0, 1, 1], [], []>} : vector<256x64xbf16>, vector<64x64xbf16>, vector<256x64xf32> -> vector<256x64xf32>
    %c0_34 = arith.constant 0 : index
    %c0_35 = arith.constant 0 : index
    %112 = vector.load %arg7[%c0_34, %c0_35] : memref<1x64xf32, #tpu.memory_space<vmem>>, vector<1x64xf32>
    %113 = vector.broadcast %112 : vector<1x64xf32> to vector<256x64xf32>
    %114 = arith.addf %111, %113 : vector<256x64xf32>
    %115 = arith.addf %114, %1 : vector<256x64xf32>
    %116 = vector.shape_cast %115 : vector<256x64xf32> to vector<1x256x64xf32>
    %c0_36 = arith.constant 0 : index
    %c0_37 = arith.constant 0 : index
    %c0_38 = arith.constant 0 : index
    %117 = vector.load %arg12[%c0_36, %c0_37, %c0_38] : memref<1x256x64xf32, #tpu.memory_space<vmem>>, vector<1x256x64xf32>
    tpu.vector_store %arg12[%c0_36, %c0_37, %c0_38], %116 {strides = array<i32>} : memref<1x256x64xf32, #tpu.memory_space<vmem>>, vector<1x256x64xf32>,
    %cst_39 = arith.constant dense<0.000000e+00> : vector<256xf32>
    %118 = vector.multi_reduction <add>, %115, %cst_39 [1] : vector<256x64xf32> to vector<256xf32>
    %119 = vector.shape_cast %118 : vector<256xf32> to vector<256x1xf32>
    %cst_40 = arith.constant 6.400000e+01 : f32
    %120 = vector.broadcast %cst_40 : f32 to vector<256x1xf32>
    %121 = arith.divf %119, %120 : vector<256x1xf32>
    %122 = vector.broadcast %121 : vector<256x1xf32> to vector<256x64xf32>
    %123 = arith.subf %115, %122 : vector<256x64xf32>
    %124 = arith.mulf %123, %123 : vector<256x64xf32>
    %cst_41 = arith.constant dense<0.000000e+00> : vector<256xf32>
    %125 = vector.multi_reduction <add>, %124, %cst_41 [1] : vector<256x64xf32> to vector<256xf32>
    %126 = vector.shape_cast %125 : vector<256xf32> to vector<256x1xf32>
    %cst_42 = arith.constant 6.400000e+01 : f32
    %127 = vector.broadcast %cst_42 : f32 to vector<256x1xf32>
    %128 = arith.divf %126, %127 : vector<256x1xf32>
    %129 = vector.broadcast %121 : vector<256x1xf32> to vector<256x64xf32>
    %130 = arith.subf %115, %129 : vector<256x64xf32>
    %cst_43 = arith.constant 9.99999974E-6 : f32
    %131 = vector.broadcast %cst_43 : f32 to vector<256x1xf32>
    %132 = arith.addf %128, %131 : vector<256x1xf32>
    %133 = math.rsqrt %132 : vector<256x1xf32>
    %134 = vector.broadcast %133 : vector<256x1xf32> to vector<256x64xf32>
    %135 = arith.mulf %130, %134 : vector<256x64xf32>
    %c0_44 = arith.constant 0 : index
    %c0_45 = arith.constant 0 : index
    %136 = vector.load %arg8[%c0_44, %c0_45] : memref<1x64xf32, #tpu.memory_space<vmem>>, vector<1x64xf32>
    %137 = vector.broadcast %136 : vector<1x64xf32> to vector<256x64xf32>
    %138 = arith.mulf %135, %137 : vector<256x64xf32>
    %c0_46 = arith.constant 0 : index
    %c0_47 = arith.constant 0 : index
    %139 = vector.load %arg9[%c0_46, %c0_47] : memref<1x64xf32, #tpu.memory_space<vmem>>, vector<1x64xf32>
    %140 = vector.broadcast %139 : vector<1x64xf32> to vector<256x64xf32>
    %141 = arith.addf %138, %140 : vector<256x64xf32>
    %142 = arith.truncf %141 : vector<256x64xf32> to vector<256x64xbf16>
    %c0_48 = arith.constant 0 : index
    %c0_49 = arith.constant 0 : index
    %143 = vector.load %arg10[%c0_48, %c0_49] : memref<64x64xbf16, #tpu.memory_space<vmem>>, vector<64x64xbf16>
    %cst_50 = arith.constant dense<0.000000e+00> : vector<256x64xf32>
    %144 = tpu.matmul %142, %143, %cst_50 {dimension_numbers = #tpu.dot_dimension_numbers<[1], [0], [0], [1], [0, 0, 1, 1], [], []>} : vector<256x64xbf16>, vector<64x64xbf16>, vector<256x64xf32> -> vector<256x64xf32>
    %c0_51 = arith.constant 0 : index
    %c0_52 = arith.constant 0 : index
    %145 = vector.load %arg11[%c0_51, %c0_52] : memref<1x64xf32, #tpu.memory_space<vmem>>, vector<1x64xf32>
    %146 = vector.broadcast %145 : vector<1x64xf32> to vector<256x64xf32>
    %147 = arith.addf %144, %146 : vector<256x64xf32>
    %148 = vector.shape_cast %147 : vector<256x64xf32> to vector<1x256x64xf32>
    %c0_53 = arith.constant 0 : index
    %c0_54 = arith.constant 0 : index
    %c0_55 = arith.constant 0 : index
    %149 = vector.load %arg13[%c0_53, %c0_54, %c0_55] : memref<1x256x64xf32, #tpu.memory_space<vmem>>, vector<1x256x64xf32>
    tpu.vector_store %arg13[%c0_53, %c0_54, %c0_55], %148 {strides = array<i32>} : memref<1x256x64xf32, #tpu.memory_space<vmem>>, vector<1x256x64xf32>,
    return
  }
  func.func @transform_0(%arg0: i32) -> (i32, i32, i32) {
    %c0_i32 = arith.constant 0 : i32
    %c0_i32_0 = arith.constant 0 : i32
    %c0_i32_1 = arith.constant 0 : i32
    return %arg0, %c0_i32, %c0_i32_0 : i32, i32, i32
  }
  func.func @transform_1(%arg0: i32) -> (i32, i32) {
    %c0_i32 = arith.constant 0 : i32
    %c0_i32_0 = arith.constant 0 : i32
    %c0_i32_1 = arith.constant 0 : i32
    return %c0_i32, %c0_i32_0 : i32, i32
  }
  func.func @transform_2(%arg0: i32) -> (i32, i32) {
    %c0_i32 = arith.constant 0 : i32
    %c0_i32_0 = arith.constant 0 : i32
    %c0_i32_1 = arith.constant 0 : i32
    return %c0_i32, %c0_i32_0 : i32, i32
  }
  func.func @transform_3(%arg0: i32) -> (i32, i32) {
    %c0_i32 = arith.constant 0 : i32
    %c0_i32_0 = arith.constant 0 : i32
    %c0_i32_1 = arith.constant 0 : i32
    return %c0_i32, %c0_i32_0 : i32, i32
  }
  func.func @transform_4(%arg0: i32) -> (i32, i32) {
    %c0_i32 = arith.constant 0 : i32
    %c0_i32_0 = arith.constant 0 : i32
    %c0_i32_1 = arith.constant 0 : i32
    return %c0_i32, %c0_i32_0 : i32, i32
  }
  func.func @transform_5(%arg0: i32) -> (i32, i32) {
    %c0_i32 = arith.constant 0 : i32
    %c0_i32_0 = arith.constant 0 : i32
    %c0_i32_1 = arith.constant 0 : i32
    return %c0_i32, %c0_i32_0 : i32, i32
  }
  func.func @transform_6(%arg0: i32) -> (i32, i32) {
    %c0_i32 = arith.constant 0 : i32
    %c0_i32_0 = arith.constant 0 : i32
    %c0_i32_1 = arith.constant 0 : i32
    return %c0_i32, %c0_i32_0 : i32, i32
  }
  func.func @transform_7(%arg0: i32) -> (i32, i32) {
    %c0_i32 = arith.constant 0 : i32
    %c0_i32_0 = arith.constant 0 : i32
    %c0_i32_1 = arith.constant 0 : i32
    return %c0_i32, %c0_i32_0 : i32, i32
  }
  func.func @transform_8(%arg0: i32) -> (i32, i32) {
    %c0_i32 = arith.constant 0 : i32
    %c0_i32_0 = arith.constant 0 : i32
    %c0_i32_1 = arith.constant 0 : i32
    return %c0_i32, %c0_i32_0 : i32, i32
  }
  func.func @transform_9(%arg0: i32) -> (i32, i32) {
    %c0_i32 = arith.constant 0 : i32
    %c0_i32_0 = arith.constant 0 : i32
    %c0_i32_1 = arith.constant 0 : i32
    return %c0_i32, %c0_i32_0 : i32, i32
  }
  func.func @transform_10(%arg0: i32) -> (i32, i32) {
    %c0_i32 = arith.constant 0 : i32
    %c0_i32_0 = arith.constant 0 : i32
    %c0_i32_1 = arith.constant 0 : i32
    return %c0_i32, %c0_i32_0 : i32, i32
  }
  func.func @transform_11(%arg0: i32) -> (i32, i32, i32) {
    %c0_i32 = arith.constant 0 : i32
    %c0_i32_0 = arith.constant 0 : i32
    %c0_i32_1 = arith.constant 0 : i32
    return %arg0, %c0_i32, %c0_i32_0 : i32, i32, i32
  }
  func.func @transform_12(%arg0: i32) -> (i32, i32, i32) {
    %c0_i32 = arith.constant 0 : i32
    %c0_i32_0 = arith.constant 0 : i32
    %c0_i32_1 = arith.constant 0 : i32
    return %arg0, %c0_i32, %c0_i32_0 : i32, i32, i32
  }
}

module attributes {stable_mosaic.version = 11 : i64} {
  func.func @_ff2_residual_kernel(%arg0: i32, %arg1: memref<1x256x64xbf16, #tpu.memory_space<vmem>>, %arg2: memref<1x256x64xf32, #tpu.memory_space<vmem>>, %arg3: memref<64x64xbf16, #tpu.memory_space<vmem>>, %arg4: memref<1x64xf32, #tpu.memory_space<vmem>>, %arg5: memref<1x256x64xf32, #tpu.memory_space<vmem>>) attributes {dimension_semantics = [#tpu.dimension_semantics<parallel>], iteration_bounds = array<i64: 2>, scalar_prefetch = 0 : i64, scratch_operands = 0 : i64, tpu.core_type = #tpu.core_type<tc>, window_params = [{transform_indices = @transform_0, window_bounds = array<i64: 1, 256, 64>}, {transform_indices = @transform_1, window_bounds = array<i64: 1, 256, 64>}, {pipeline_mode = #tpu.pipeline_mode<synchronous>, transform_indices = @transform_2, window_bounds = array<i64: 64, 64>}, {pipeline_mode = #tpu.pipeline_mode<synchronous>, transform_indices = @transform_3, window_bounds = array<i64: 1, 64>}, {transform_indices = @transform_4, window_bounds = array<i64: 1, 256, 64>}]} {
    %c0 = arith.constant 0 : index
    %c0_0 = arith.constant 0 : index
    %c0_1 = arith.constant 0 : index
    %0 = vector.load %arg1[%c0, %c0_0, %c0_1] : memref<1x256x64xbf16, #tpu.memory_space<vmem>>, vector<1x256x64xbf16>
    %1 = vector.shape_cast %0 : vector<1x256x64xbf16> to vector<256x64xbf16>
    %c0_2 = arith.constant 0 : index
    %c0_3 = arith.constant 0 : index
    %2 = vector.load %arg3[%c0_2, %c0_3] : memref<64x64xbf16, #tpu.memory_space<vmem>>, vector<64x64xbf16>
    %cst = arith.constant dense<0.000000e+00> : vector<256x64xf32>
    %3 = tpu.matmul %1, %2, %cst {dimension_numbers = #tpu.dot_dimension_numbers<[1], [0], [0], [1], [0, 0, 1, 1], [], []>} : vector<256x64xbf16>, vector<64x64xbf16>, vector<256x64xf32> -> vector<256x64xf32>
    %c0_4 = arith.constant 0 : index
    %c0_5 = arith.constant 0 : index
    %4 = vector.load %arg4[%c0_4, %c0_5] : memref<1x64xf32, #tpu.memory_space<vmem>>, vector<1x64xf32>
    %5 = vector.broadcast %4 : vector<1x64xf32> to vector<256x64xf32>
    %6 = arith.addf %3, %5 : vector<256x64xf32>
    %c0_6 = arith.constant 0 : index
    %c0_7 = arith.constant 0 : index
    %c0_8 = arith.constant 0 : index
    %7 = vector.load %arg2[%c0_6, %c0_7, %c0_8] : memref<1x256x64xf32, #tpu.memory_space<vmem>>, vector<1x256x64xf32>
    %8 = vector.shape_cast %7 : vector<1x256x64xf32> to vector<256x64xf32>
    %9 = arith.addf %6, %8 : vector<256x64xf32>
    %10 = vector.shape_cast %9 : vector<256x64xf32> to vector<1x256x64xf32>
    %c0_9 = arith.constant 0 : index
    %c0_10 = arith.constant 0 : index
    %c0_11 = arith.constant 0 : index
    %11 = vector.load %arg5[%c0_9, %c0_10, %c0_11] : memref<1x256x64xf32, #tpu.memory_space<vmem>>, vector<1x256x64xf32>
    tpu.vector_store %arg5[%c0_9, %c0_10, %c0_11], %10 {strides = array<i32>} : memref<1x256x64xf32, #tpu.memory_space<vmem>>, vector<1x256x64xf32>,
    return
  }
  func.func @transform_0(%arg0: i32) -> (i32, i32, i32) {
    %c0_i32 = arith.constant 0 : i32
    %c0_i32_0 = arith.constant 0 : i32
    %c0_i32_1 = arith.constant 0 : i32
    return %arg0, %c0_i32, %c0_i32_0 : i32, i32, i32
  }
  func.func @transform_1(%arg0: i32) -> (i32, i32, i32) {
    %c0_i32 = arith.constant 0 : i32
    %c0_i32_0 = arith.constant 0 : i32
    %c0_i32_1 = arith.constant 0 : i32
    return %arg0, %c0_i32, %c0_i32_0 : i32, i32, i32
  }
  func.func @transform_2(%arg0: i32) -> (i32, i32) {
    %c0_i32 = arith.constant 0 : i32
    %c0_i32_0 = arith.constant 0 : i32
    %c0_i32_1 = arith.constant 0 : i32
    return %c0_i32, %c0_i32_0 : i32, i32
  }
  func.func @transform_3(%arg0: i32) -> (i32, i32) {
    %c0_i32 = arith.constant 0 : i32
    %c0_i32_0 = arith.constant 0 : i32
    %c0_i32_1 = arith.constant 0 : i32
    return %c0_i32, %c0_i32_0 : i32, i32
  }
  func.func @transform_4(%arg0: i32) -> (i32, i32, i32) {
    %c0_i32 = arith.constant 0 : i32
    %c0_i32_0 = arith.constant 0 : i32
    %c0_i32_1 = arith.constant 0 : i32
    return %arg0, %c0_i32, %c0_i32_0 : i32, i32, i32
  }
}

</mosaic_0001>

<bundles_post_ra>
// kernel: self_attention_forward.3
= control target key start
LH: loop header
LB: loop body
LE: loop exit
PB: predicated region body
PF: predicated region fallthrough
CT: control target
= control target key end

     0   :  { %9 = vsyncpa [#allocation3], 0  ;;  %s1332_s0 = inlined_call_operand.vmem [shape: bf16[2,256,64], index: 0, kind: input, shape index: {}]   ;;  %s1333_s1 = inlined_call_operand.vmem [shape: f32[2,256,64], index: 1, kind: input, shape index: {}]   ;;  %s1334_s2 = inlined_call_operand.vmem [shape: bf16[64,64], index: 2, kind: input, shape index: {}]   ;;  %s1335_s3 = inlined_call_operand.vmem [shape: f32[1,64], index: 3, kind: input, shape index: {}]   ;;  %s1336_s4 = inlined_call_operand.hbm [shape: f32[2,256,64], index: 4, kind: output, shape index: {}]  }
   0x1   :  { %11 = vsyncpa [#allocation3 + $0x1], 0  ;;  %s1035_s15 = smov 0   ;;  %s1037_s16 = smov 0  }
   0x2   :  { %s1039_s17 = smov 0   ;;  %s1041_s18 = smov 0  }
   0x3 LB: > { %s1056_s19 = sadd.s32 4294967295, %s1005_s18   ;;  %s762_s20 = sadd.s32 4294967294, %s1005_s18   ;;  %s1005_s18 = sphi %s1041_s18, %s1342_s18   ;;  %s1001_s17 = sphi %s1039_s17, %s1341_s17   ;;  %s997_s16 = sphi %s1037_s16, %s1340_s16   ;;  %s993_s15 = sphi %s1035_s15, %s1339_s15  }
   0x4   : > { %s1060_s21 = sadd.s32 1, %s1005_s18   ;;  %s118_s22 = sadd.s32 1, %s1001_s17 }
   0x5   : > { %s115_s23 = ssub.s32 %s1005_s18, %s1060_s21  ;;  %p128_p0 = scmp.ne.s32.totalorder %s1001_s17, %s997_s16 }
   0x6   : > { %p116_p1 = scmp.eq.s32.totalorder %s115_s23, 0  ;;  %p129_p2 = scmp.eq.s32.totalorder %s1056_s19, 1 }
   0x7   : > { %p134_p3 = scmp.ne.s32.totalorder %s997_s16, %s993_s15  ;;  %p135_p4 = scmp.eq.s32.totalorder %s762_s20, 1 }
   0x8   : > { %s1071_s24 = scalar_select %p116_p1, %s1001_s17, %s118_s22  }
   0x9   : > { %p1073_p5 = por %p129_p2, %p128_p0  ;;  %p1077_p6 = por %p135_p4, %p134_p3 }
   0xa   : > { %p765_p7 = scmp.ge.s32.totalorder %s1005_s18, 1  ;;  %p175_p8 = scmp.lt.s32.totalorder %s1005_s18, 3 }
   0xc   : > { %p176_p9 = pnand %p765_p7, %p175_p8 }
   0xd   : > { %p206_p10 = scmp.lt.s32.totalorder (!%p176_p9), %s1056_s19, 1  ;;  %s203_s20 = sand.u32 (!%p176_p9), 1, %s997_s16  }
   0xe   : > { %179 = sbr.rel (%p176_p9) target bundleno = 277 (0x115), region = 36  ;;  %s766_s30 = sshll.u32 (!%p176_p9), %s203_s20, 8 }
   0xf   : > { %s815_s6 = sshll.u32 (!%p176_p9), %s1056_s19, 12  ;;  %s1292_s10 = scalar_lea.sflag (!%p176_p9), [#allocation3], %s203_s20 }
  0x10   : > { %s1278_s9 = scalar_lea.hbm (!%p176_p9), %s1336_s4, %s815_s6  ;;  %s1007_s12 = smov (!%p176_p9), [#allocation2]  }
  0x11   : > { %s949_s13 = sshll.u32 (!%p176_p9), %s1007_s12, 4  ;;  %s950_s13 = int_to_ptr.vmem [resolvable:$false] %s949_s13 }
  0x13   : > { %v925_v0 = vld [vmem:[%s1334_s2 + $0x18] sm:$0xff]   ;;  %v926_v1 = vld [vmem:[%s1334_s2 + $0x10] sm:$0xff]   ;;  %s1091_s5 = scalar_select %p206_p10, %s1056_s19, 1  ;;  %v927_v2 = vld [vmem:[%s1334_s2 + $0x8] sm:$0xff]   ;;  %vm368_vm0 = vcmask 523264  }
  0x14   : > { %836 = vmatprep.subr.bf16.mxu0 %v925_v0  ;;  %876 = vmatprep.subr.bf16.mxu1 %v925_v0  ;;  %v928_v5 = vld [vmem:[%s1334_s2] sm:$0xff]  }
  0x15   : > { %837 = vmatpush3.bf16.msra.mxu0 %v925_v0  ;;  %880 = vmatpush3.bf16.msra.mxu1 %v925_v0  ;;  %s813_s8 = sshll.u32 %s1091_s5, 7  ;;  %s814_s14 = sshll.u32 %s1091_s5, 8  ;;  %v1147_v20 = vld [vmem:[%s1335_s3] ss:$0 sm:$0xff] }
  0x16   : > { %838 = vmatprep.subr.bf16.mxu0 %v926_v1  ;;  %877 = vmatprep.subr.bf16.mxu1 %v926_v1  ;;  %s1100_s11 = scalar_lea.vmem %s1332_s0, %s813_s8  ;;  %s1142_s27 = scalar_lea.vmem %s1333_s1, %s814_s14 }
  0x17   : > { %v929_v3 = vld [vmem:[%s1100_s11] sm:$0xff]   ;;  %v931_v6 = vld [vmem:[%s1100_s11 + $0x8] sm:$0xff]   ;;  %v933_v8 = vld [vmem:[%s1100_s11 + $0x10] sm:$0xff]   ;;  %s1161_s5 = scalar_lea.vmem [#allocation2], %s766_s30  ;;  %s951_s14 = scalar_lea.vmem %s950_s13, 8192 }
  0x18   : > { %v930_v4 = vld [vmem:[%s1100_s11 + $0x40] sm:$0xff]   ;;  %844 = vmatprep.mubr.msk.bf16.mxu0 %vm368_vm0, %v929_v3  ;;  %v932_v7 = vld [vmem:[%s1100_s11 + $0x48] sm:$0xff]   ;;  %v934_v9 = vld [vmem:[%s1100_s11 + $0x50] sm:$0xff]   ;;  %s688_s7 = sshll.u32 %s1161_s5, 4  ;;  %s1280_s7 = int_to_ptr.vmem [resolvable:$true] %s688_s7 }
  0x19   : > { %839 = vmatpush3.bf16.msra.mxu0 %v926_v1  ;;  %881 = vmatpush3.bf16.msra.mxu1 %v926_v1  ;;  %v935_v10 = vld [vmem:[%s1100_s11 + $0x18] sm:$0xff]   ;;  %v937_v12 = vld [vmem:[%s1100_s11 + $0x20] sm:$0xff]   ;;  %v939_v14 = vld [vmem:[%s1100_s11 + $0x28] sm:$0xff]   ;;  %p952_p0 = scmp.lt.s32.totalorder %s1280_s7, %s950_s13 }
  0x1a   : > { %840 = vmatprep.subr.bf16.mxu0 %v927_v2  ;;  %878 = vmatprep.subr.bf16.mxu1 %v927_v2  ;;  %v936_v11 = vld [vmem:[%s1100_s11 + $0x58] sm:$0xff]   ;;  %v938_v13 = vld [vmem:[%s1100_s11 + $0x60] sm:$0xff]   ;;  %v940_v15 = vld [vmem:[%s1100_s11 + $0x68] sm:$0xff]  }
  0x1b   : > { %860 = vmatprep.mubr.msk.bf16.mxu1 %vm368_vm0, %v930_v4  ;;  %v941_v16 = vld [vmem:[%s1100_s11 + $0x30] sm:$0xff]   ;;  %v943_v18 = vld [vmem:[%s1100_s11 + $0x38] sm:$0xff]   ;;  %v578_v28 = vld [vmem:[%s1142_s27] sm:$0xff] }
  0x1c   : > { %v942_v17 = vld [vmem:[%s1100_s11 + $0x70] sm:$0xff]   ;;  %v944_v19 = vld [vmem:[%s1100_s11 + $0x78] sm:$0xff]   ;;  %v594_v30 = vld [vmem:[%s1142_s27 + $0x80] sm:$0xff]  ;;  %s945_s11 = scalar_lea.vmem %s1280_s7, 4096 }
  0x1d   : > { %841 = vmatpush3.bf16.msra.mxu0 %v927_v2  ;;  %882 = vmatpush3.bf16.msra.mxu1 %v927_v2  ;;  %v580_v22 = vld [vmem:[%s1142_s27 + $0x10] sm:$0xff]  ;;  %v581_v36 = vld [vmem:[%s1142_s27 + $0x18] sm:$0xff]  ;;  %v579_v44 = vld [vmem:[%s1142_s27 + $0x8] sm:$0xff]  ;;  %p946_p11 = scmp.ne.s32.totalorder %s1280_s7, %s945_s11  ;;  %p953_p1 = scmp.lt.s32.totalorder %s951_s14, %s945_s11 }
  0x1e   : > { %842 = vmatprep.subr.bf16.mxu0 %v928_v5  ;;  %879 = vmatprep.subr.bf16.mxu1 %v928_v5  ;;  %v596_v24 = vld [vmem:[%s1142_s27 + $0x90] sm:$0xff]  ;;  %v597_v38 = vld [vmem:[%s1142_s27 + $0x98] sm:$0xff]  ;;  %v595_v46 = vld [vmem:[%s1142_s27 + $0x88] sm:$0xff] }
  0x1f   : > { %v584_v52 = vld [vmem:[%s1142_s27 + $0x30] sm:$0xff]  ;;  %v582_v60 = vld [vmem:[%s1142_s27 + $0x20] sm:$0xff]  ;;  %v585_v4 = vld [vmem:[%s1142_s27 + $0x38] sm:$0xff]  ;;  %p947_p12 = pnand %p946_p11, %p1073_p5  ;;  %p954_p2 = por %p953_p1, %p952_p0 }
  0x20   : > { %v600_v54 = vld [vmem:[%s1142_s27 + $0xb0] sm:$0xff]  ;;  %v598_v62 = vld [vmem:[%s1142_s27 + $0xa0] sm:$0xff] }
  0x21   : > { %843 = vmatpush3.bf16.msra.mxu0 %v928_v5  ;;  %883 = vmatpush3.bf16.msra.mxu1 %v928_v5  ;;  %p948_p13 = pneg %p947_p12 }
  0x23   : > { %p955_p3 = pnand %p954_p2, %p948_p13 }
  0x24   : > { %845 = vmatmul.mubr.msk.bf16.vlgmr.msra.gmra.mxu0 %vm368_vm0, %v931_v6  ;;  %861 = vmatmul.mubr.msk.bf16.vlgmr.msra.gmra.mxu1 %vm368_vm0, %v932_v7  ;;  %v601_v6 = vld [vmem:[%s1142_s27 + $0xb8] sm:$0xff] }
  0x25   : > { %848 = vmatprep.mubr.msk.bf16.mxu0 %vm368_vm0, %v933_v8  ;;  %864 = vmatprep.mubr.msk.bf16.mxu1 %vm368_vm0, %v934_v9 }
  0x2c   : > { %849 = vmatmul.mubr.msk.bf16.gmra.mxu0 %vm368_vm0, %v935_v10  ;;  %865 = vmatmul.mubr.msk.bf16.gmra.mxu1 %vm368_vm0, %v936_v11 }
  0x2d   : > { %852 = vmatprep.mubr.msk.bf16.mxu0 %vm368_vm0, %v937_v12  ;;  %868 = vmatprep.mubr.msk.bf16.mxu1 %vm368_vm0, %v938_v13  ;;  %v583_v12 = vld [vmem:[%s1142_s27 + $0x28] sm:$0xff] }
  0x34   : > { %853 = vmatmul.mubr.msk.bf16.gmra.mxu0 %vm368_vm0, %v939_v14  ;;  %869 = vmatmul.mubr.msk.bf16.gmra.mxu1 %vm368_vm0, %v940_v15  ;;  %v599_v14 = vld [vmem:[%s1142_s27 + $0xa8] sm:$0xff] }
  0x35   : > { %856 = vmatprep.mubr.msk.bf16.mxu0 %vm368_vm0, %v941_v16  ;;  %872 = vmatprep.mubr.msk.bf16.mxu1 %vm368_vm0, %v942_v17 }
  0x3c   : > { %857 = vmatmul.mubr.msk.bf16.gmra.mxu0 %vm368_vm0, %v943_v18  ;;  %873 = vmatmul.mubr.msk.bf16.gmra.mxu1 %vm368_vm0, %v944_v19 }
  0xe4   : > { %v846_v21 = vpop.f32.mrf.mxu0  ;;  %v862_v23 = vpop.f32.mrf.mxu1 }
  0xe5   : > { %v460_v25 = vadd.f32 %v846_v21, %v1147_v20  ;;  %v524_v26 = vadd.f32 %v862_v23, %v1147_v20  ;;  %v588_v21 = vld [vmem:[%s1142_s27 + $0x50] sm:$0xff] }
  0xe6   : > { %v451_v27 = vpop.f32.mrf.mxu0  ;;  %v515_v29 = vpop.f32.mrf.mxu1  ;;  %v604_v23 = vld [vmem:[%s1142_s27 + $0xd0] sm:$0xff] }
  0xe7   : > { %v612_v31 = vadd.f32 %v580_v22, %v460_v25  ;;  %v628_v32 = vadd.f32 %v596_v24, %v524_v26  ;;  %v452_v33 = vadd.f32 %v1147_v20, %v451_v27  ;;  %v516_v34 = vadd.f32 %v1147_v20, %v515_v29  ;;  %v586_v29 = vld [vmem:[%s1142_s27 + $0x40] sm:$0xff] }
  0xe8   : > { %v847_v35 = vpop.f32.mrf.mxu0  ;;  %v863_v37 = vpop.f32.mrf.mxu1 }
  0xe9   : > { %644 = vst.msk [vmem:[%s1161_s5 + $0x10] sm:$0xff] %vm368_vm0, %v612_v31  ;;  %660 = vst.msk [vmem:[%s1161_s5 + $0x90] sm:$0xff] %vm368_vm0, %v628_v32  ;;  %v610_v39 = vadd.f32 %v578_v28, %v452_v33  ;;  %v626_v40 = vadd.f32 %v594_v30, %v516_v34  ;;  %v463_v41 = vadd.f32 %v847_v35, %v1147_v20  ;;  %v602_v31 = vld [vmem:[%s1142_s27 + $0xc0] sm:$0xff] }
  0xea   : > { %v527_v42 = vadd.f32 %v863_v37, %v1147_v20  ;;  %v454_v43 = vpop.f32.mrf.mxu0  ;;  %v518_v45 = vpop.f32.mrf.mxu1  ;;  %v589_v37 = vld [vmem:[%s1142_s27 + $0x58] sm:$0xff] }
  0xeb   : > { %642 = vst.msk [vmem:[%s1161_s5] sm:$0xff] %vm368_vm0, %v610_v39  ;;  %658 = vst.msk [vmem:[%s1161_s5 + $0x80] sm:$0xff] %vm368_vm0, %v626_v40  ;;  %v613_v47 = vadd.f32 %v581_v36, %v463_v41  ;;  %v455_v49 = vadd.f32 %v1147_v20, %v454_v43  ;;  %v519_v50 = vadd.f32 %v1147_v20, %v518_v45  ;;  %v605_v39 = vld [vmem:[%s1142_s27 + $0xd8] sm:$0xff]  ;;  %v587_v45 = vld [vmem:[%s1142_s27 + $0x48] sm:$0xff] }
  0xec   : > { %v629_v48 = vadd.f32 %v597_v38, %v527_v42  ;;  %v850_v51 = vpop.f32.mrf.mxu0  ;;  %v866_v53 = vpop.f32.mrf.mxu1 }
  0xed   : > { %645 = vst.msk [vmem:[%s1161_s5 + $0x18] sm:$0xff] %vm368_vm0, %v613_v47  ;;  %v611_v55 = vadd.f32 %v579_v44, %v455_v49  ;;  %v627_v56 = vadd.f32 %v595_v46, %v519_v50  ;;  %v476_v57 = vadd.f32 %v850_v51, %v1147_v20  ;;  %v540_v58 = vadd.f32 %v866_v53, %v1147_v20  ;;  %v603_v47 = vld [vmem:[%s1142_s27 + $0xc8] sm:$0xff]  ;;  %v592_v53 = vld [vmem:[%s1142_s27 + $0x70] sm:$0xff] }
  0xee   : > { %661 = vst.msk [vmem:[%s1161_s5 + $0x98] sm:$0xff] %vm368_vm0, %v629_v48  ;;  %v467_v59 = vpop.f32.mrf.mxu0  ;;  %v531_v61 = vpop.f32.mrf.mxu1 }
  0xef   : > { %643 = vst.msk [vmem:[%s1161_s5 + $0x8] sm:$0xff] %vm368_vm0, %v611_v55  ;;  %659 = vst.msk [vmem:[%s1161_s5 + $0x88] sm:$0xff] %vm368_vm0, %v627_v56  ;;  %v616_v63 = vadd.f32 %v584_v52, %v476_v57  ;;  %v632_v0 = vadd.f32 %v600_v54, %v540_v58  ;;  %v468_v1 = vadd.f32 %v1147_v20, %v467_v59  ;;  %v608_v55 = vld [vmem:[%s1142_s27 + $0xf0] sm:$0xff] }
  0xf0   : > { %v532_v2 = vadd.f32 %v1147_v20, %v531_v61  ;;  %v851_v3 = vpop.f32.mrf.mxu0  ;;  %v867_v5 = vpop.f32.mrf.mxu1  ;;  %v590_v61 = vld [vmem:[%s1142_s27 + $0x60] sm:$0xff] }
  0xf1   : > { %648 = vst.msk [vmem:[%s1161_s5 + $0x30] sm:$0xff] %vm368_vm0, %v616_v63  ;;  %664 = vst.msk [vmem:[%s1161_s5 + $0xb0] sm:$0xff] %vm368_vm0, %v632_v0  ;;  %v614_v7 = vadd.f32 %v582_v60, %v468_v1  ;;  %v479_v9 = vadd.f32 %v851_v3, %v1147_v20  ;;  %v543_v10 = vadd.f32 %v867_v5, %v1147_v20  ;;  %v606_v63 = vld [vmem:[%s1142_s27 + $0xe0] sm:$0xff]  ;;  %v593_v5 = vld [vmem:[%s1142_s27 + $0x78] sm:$0xff] }
  0xf2   : > { %v630_v8 = vadd.f32 %v598_v62, %v532_v2  ;;  %v470_v11 = vpop.f32.mrf.mxu0  ;;  %v534_v13 = vpop.f32.mrf.mxu1 }
  0xf3   : > { %646 = vst.msk [vmem:[%s1161_s5 + $0x20] sm:$0xff] %vm368_vm0, %v614_v7  ;;  %v617_v15 = vadd.f32 %v585_v4, %v479_v9  ;;  %v633_v16 = vadd.f32 %v601_v6, %v543_v10  ;;  %v471_v17 = vadd.f32 %v1147_v20, %v470_v11  ;;  %v535_v18 = vadd.f32 %v1147_v20, %v534_v13  ;;  %v609_v7 = vld [vmem:[%s1142_s27 + $0xf8] sm:$0xff]  ;;  %v591_v13 = vld [vmem:[%s1142_s27 + $0x68] sm:$0xff] }
  0xf4   : > { %662 = vst.msk [vmem:[%s1161_s5 + $0xa0] sm:$0xff] %vm368_vm0, %v630_v8  ;;  %v854_v19 = vpop.f32.mrf.mxu0  ;;  %v870_v22 = vpop.f32.mrf.mxu1 }
  0xf5   : > { %649 = vst.msk [vmem:[%s1161_s5 + $0x38] sm:$0xff] %vm368_vm0, %v617_v15  ;;  %665 = vst.msk [vmem:[%s1161_s5 + $0xb8] sm:$0xff] %vm368_vm0, %v633_v16  ;;  %v615_v24 = vadd.f32 %v583_v12, %v471_v17  ;;  %v631_v25 = vadd.f32 %v599_v14, %v535_v18  ;;  %v492_v26 = vadd.f32 %v854_v19, %v1147_v20  ;;  %v607_v15 = vld [vmem:[%s1142_s27 + $0xe8] sm:$0xff] }
  0xf6   : > { %v556_v27 = vadd.f32 %v870_v22, %v1147_v20  ;;  %v483_v28 = vpop.f32.mrf.mxu0  ;;  %v547_v30 = vpop.f32.mrf.mxu1 }
  0xf7   : > { %647 = vst.msk [vmem:[%s1161_s5 + $0x28] sm:$0xff] %vm368_vm0, %v615_v24  ;;  %663 = vst.msk [vmem:[%s1161_s5 + $0xa8] sm:$0xff] %vm368_vm0, %v631_v25  ;;  %v620_v32 = vadd.f32 %v588_v21, %v492_v26  ;;  %v484_v34 = vadd.f32 %v1147_v20, %v483_v28  ;;  %v548_v35 = vadd.f32 %v1147_v20, %v547_v30 }
  0xf8   : > { %v636_v33 = vadd.f32 %v604_v23, %v556_v27  ;;  %v855_v36 = vpop.f32.mrf.mxu0  ;;  %v871_v38 = vpop.f32.mrf.mxu1 }
  0xf9   : > { %652 = vst.msk [vmem:[%s1161_s5 + $0x50] sm:$0xff] %vm368_vm0, %v620_v32  ;;  %v618_v40 = vadd.f32 %v586_v29, %v484_v34  ;;  %v634_v41 = vadd.f32 %v602_v31, %v548_v35  ;;  %v495_v42 = vadd.f32 %v855_v36, %v1147_v20  ;;  %v559_v43 = vadd.f32 %v871_v38, %v1147_v20 }
  0xfa   : > { %668 = vst.msk [vmem:[%s1161_s5 + $0xd0] sm:$0xff] %vm368_vm0, %v636_v33  ;;  %v486_v44 = vpop.f32.mrf.mxu0  ;;  %v550_v46 = vpop.f32.mrf.mxu1 }
  0xfb   : > { %650 = vst.msk [vmem:[%s1161_s5 + $0x40] sm:$0xff] %vm368_vm0, %v618_v40  ;;  %666 = vst.msk [vmem:[%s1161_s5 + $0xc0] sm:$0xff] %vm368_vm0, %v634_v41  ;;  %v621_v48 = vadd.f32 %v589_v37, %v495_v42  ;;  %v637_v49 = vadd.f32 %v605_v39, %v559_v43  ;;  %v487_v50 = vadd.f32 %v1147_v20, %v486_v44 }
  0xfc   : > { %v551_v51 = vadd.f32 %v1147_v20, %v550_v46  ;;  %v858_v52 = vpop.f32.mrf.mxu0  ;;  %v874_v54 = vpop.f32.mrf.mxu1 }
  0xfd   : > { %653 = vst.msk [vmem:[%s1161_s5 + $0x58] sm:$0xff] %vm368_vm0, %v621_v48  ;;  %669 = vst.msk [vmem:[%s1161_s5 + $0xd8] sm:$0xff] %vm368_vm0, %v637_v49  ;;  %v619_v56 = vadd.f32 %v587_v45, %v487_v50  ;;  %v508_v58 = vadd.f32 %v858_v52, %v1147_v20  ;;  %v572_v59 = vadd.f32 %v874_v54, %v1147_v20 }
  0xfe   : > { %v635_v57 = vadd.f32 %v603_v47, %v551_v51  ;;  %v499_v60 = vpop.f32.mrf.mxu0  ;;  %v563_v62 = vpop.f32.mrf.mxu1 }
  0xff   : > { %651 = vst.msk [vmem:[%s1161_s5 + $0x48] sm:$0xff] %vm368_vm0, %v619_v56  ;;  %v624_v0 = vadd.f32 %v592_v53, %v508_v58  ;;  %v640_v1 = vadd.f32 %v608_v55, %v572_v59  ;;  %v500_v2 = vadd.f32 %v1147_v20, %v499_v60  ;;  %v564_v3 = vadd.f32 %v1147_v20, %v563_v62 }
 0x100   : > { %667 = vst.msk [vmem:[%s1161_s5 + $0xc8] sm:$0xff] %vm368_vm0, %v635_v57  ;;  %v859_v4 = vpop.f32.mrf.mxu0  ;;  %v875_v6 = vpop.f32.mrf.mxu1 }
 0x101   : > { %656 = vst.msk [vmem:[%s1161_s5 + $0x70] sm:$0xff] %vm368_vm0, %v624_v0  ;;  %672 = vst.msk [vmem:[%s1161_s5 + $0xf0] sm:$0xff] %vm368_vm0, %v640_v1  ;;  %v622_v8 = vadd.f32 %v590_v61, %v500_v2  ;;  %v638_v9 = vadd.f32 %v606_v63, %v564_v3  ;;  %v511_v10 = vadd.f32 %v859_v4, %v1147_v20 }
 0x102   : > { %v575_v11 = vadd.f32 %v875_v6, %v1147_v20  ;;  %v502_v12 = vpop.f32.mrf.mxu0  ;;  %v566_v14 = vpop.f32.mrf.mxu1 }
 0x103   : > { %654 = vst.msk [vmem:[%s1161_s5 + $0x60] sm:$0xff] %vm368_vm0, %v622_v8  ;;  %670 = vst.msk [vmem:[%s1161_s5 + $0xe0] sm:$0xff] %vm368_vm0, %v638_v9  ;;  %v625_v16 = vadd.f32 %v593_v5, %v511_v10  ;;  %v503_v18 = vadd.f32 %v1147_v20, %v502_v12  ;;  %v567_v19 = vadd.f32 %v1147_v20, %v566_v14 }
 0x104   : > { %v641_v17 = vadd.f32 %v609_v7, %v575_v11 }
 0x105   : > { %657 = vst.msk [vmem:[%s1161_s5 + $0x78] sm:$0xff] %vm368_vm0, %v625_v16  ;;  %v623_v21 = vadd.f32 %v591_v13, %v503_v18  ;;  %v639_v22 = vadd.f32 %v607_v15, %v567_v19 }
 0x106   : > { %673 = vst.msk [vmem:[%s1161_s5 + $0xf8] sm:$0xff] %vm368_vm0, %v641_v17 }
 0x107   : > { %655 = vst.msk [vmem:[%s1161_s5 + $0x68] sm:$0xff] %vm368_vm0, %v623_v21  ;;  %671 = vst.msk [vmem:[%s1161_s5 + $0xe8] sm:$0xff] %vm368_vm0, %v639_v22 }
 0x108   : > { %958 = shalt.err (!%p955_p3)
}
 0x109   : > { %s959_s20 = scalar_lea.hbm %s1278_s9, 4096  ;;  %s963_s27 = scalar_lea.hbm %s1336_s4, 8192 }
 0x10a   : > { %p960_p4 = scmp.ne.s32.totalorder %s1278_s9, %s959_s20  ;;  %p964_p9 = scmp.lt.s32.totalorder %s1278_s9, %s1336_s4 }
 0x10b   : > { %p965_p10 = scmp.lt.s32.totalorder %s963_s27, %s959_s20 }
 0x10c   : > { %p961_p7 = pnand %p960_p4, %p1073_p5 }
 0x10d   : > { %p966_p11 = por %p965_p10, %p964_p9 }
 0x10e   : > { %p962_p8 = pneg %p961_p7 }
 0x110   : > { %p967_p12 = pnand %p966_p11, %p962_p8 }
 0x112   : > { %970 = shalt.err (!%p967_p12)
}
 0x113   : > { %s1008_s30 = smov 128   ;;  %s1009_s5 = smov 8  }
 0x114   : > { %884 = dma.vmem_to_hbm [thread:$0]  (%p1073_p5), %s1280_s7, 4096, %s1278_s9, %s1292_s10, %s1008_s30, %s1008_s30, %s1009_s5  }
 0x115 PF: > { %p890_p13 = scmp.ge.s32.totalorder %s1005_s18, 2  ;;  %s703_s6 = sand.u32 1, %s993_s15  }
 0x116   : > { %s704_s19 = scalar_lea.sflag [#allocation3], %s703_s6 }
 0x117   : > { %p887_p0 = pnand %p890_p13, %p1077_p6 }
 0x119   : > { %p888_p1 = pneg %p887_p0 }
 0x11b   : > { %988 = dma.done.wait (%p888_p1), %s704_s19, 4096  }
 0x11c   : > { %990 = vsyncadd (%p888_p1), %s704_s19, 4294963200  ;;  %p14_p2 = scmp.ge.s32.totalorder %s1060_s21, 4   ;;  %s1339_s15 = smov %s997_s16 }
 0x11d   : > { %s1340_s16 = smov %s1001_s17  ;;  %s1341_s17 = smov %s1071_s24 }
 0x11e   : > { %s1342_s18 = smov %s1060_s21  ;;  %16 = sbr.rel (!%p14_p2) target bundleno = 3 (0x3), region = 74 }
 0x123   :  { %709 = vsyncpa [#allocation3], 1 }
 0x124   :  { %711 = vsyncpa [#allocation3 + $0x1], 1 }

// kernel: self_attention_forward.2
= control target key start
LH: loop header
LB: loop body
LE: loop exit
PB: predicated region body
PF: predicated region fallthrough
CT: control target
= control target key end

     0   :  { %s15427_s0 = inlined_call_operand.hbm [shape: f32[2,256,64], index: 0, kind: input, shape index: {}]   ;;  %s15428_s1 = inlined_call_operand.vmem [shape: f32[1,64], index: 1, kind: input, shape index: {}]   ;;  %s15429_s2 = inlined_call_operand.vmem [shape: f32[1,64], index: 2, kind: input, shape index: {}]   ;;  %s15430_s3 = inlined_call_operand.hbm [shape: bf16[64,192], index: 3, kind: input, shape index: {}]   ;;  %s15431_s4 = inlined_call_operand.vmem [shape: f32[1,192], index: 4, kind: input, shape index: {}]   ;;  %s15432_s5 = inlined_call_operand.hbm [shape: bf16[64,64], index: 5, kind: input, shape index: {}]   ;;  %s15433_s6 = inlined_call_operand.vmem [shape: f32[1,64], index: 6, kind: input, shape index: {}]   ;;  %s15434_s7 = inlined_call_operand.vmem [shape: f32[1,64], index: 7, kind: input, shape index: {}]   ;;  %s15435_s8 = inlined_call_operand.vmem [shape: f32[1,64], index: 8, kind: input, shape index: {}]   ;;  %s15436_s9 = inlined_call_operand.hbm [shape: bf16[64,64], index: 9, kind: input, shape index: {}]   ;;  %s15437_s10 = inlined_call_operand.hbm [shape: f32[1,64], index: 10, kind: input, shape index: {}]   ;;  %s15438_s11 = inlined_call_operand.vmem [shape: f32[2,256,64], index: 11, kind: output, shape index: {0}]   ;;  %s15439_s12 = inlined_call_operand.vmem [shape: f32[2,256,64], index: 12, kind: output, shape index: {1}]  }
   0x1   :  { %15842 = sst [smem:[#allocation173_spill]] %s15430_s3 }
   0x2   :  { %15843 = sst [smem:[#allocation174_spill]] %s15432_s5 }
   0x3   :  { %18 = vsyncpa [#allocation3], 0 }
   0x4   :  { %20 = vsyncpa [#allocation3 + $0x1], 0 }
   0x5   :  { %21 = vsyncpa [#allocation5], 0 }
   0x6   :  { %22 = vsyncpa [#allocation8], 0  ;;  %s9865_s21 = smov 0   ;;  %s9867_s22 = smov 0  }
   0x7   :  { %s9869_s23 = smov 0   ;;  %s9871_s24 = smov 0  }
   0x8 LB: > { %s9884_s25 = sadd.s32 4294967295, %s9781_s24   ;;  %p48_p0 = scmp.ne.s32.totalorder %s9773_s22, %s9769_s21  ;;  %s9781_s24 = sphi %s9871_s24, %s16842_s24   ;;  %s9777_s23 = sphi %s9869_s23, %s16841_s23   ;;  %s9773_s22 = sphi %s9867_s22, %s16840_s22   ;;  %s9769_s21 = sphi %s9865_s21, %s16839_s21  }
   0x9   : > { %p15442_p1 = scmp.eq.s32.totalorder %s9884_s25, 0  ;;  %p7369_p2 = scmp.ge.s32.totalorder %s9781_s24, 1 }
   0xa   : > { %p321_p3 = scmp.lt.s32.totalorder %s9781_s24, 3  ;;  %s9783_s28 = smov [#allocation4]  }
   0xb   : > { %p9892_p4 = por %p15442_p1, %p48_p0  ;;  %s339_s29 = sshll.u32 %s9783_s28, 4  ;;  %s340_s29 = int_to_ptr.vmem [resolvable:$true] %s339_s29 }
   0xc   : > { %p9896_p5 = pnand %p7369_p2, %p321_p3  ;;  %s9784_s13 = smov [#allocation7]  }
   0xd   : > { %s15844_s26 = scalar_select %p9892_p4, 1, 0 }
   0xe   : > { %s15845_s27 = scalar_select %p9896_p5, 1, 0 }
   0xf   : > { %p8345_p6 = pneg %p9896_p5  ;;  %s377_s14 = sshll.u32 %s9784_s13, 4  ;;  %s378_s14 = int_to_ptr.vmem [resolvable:$true] %s377_s14 }
  0x10   : > { %s9618_s15 = scalar_lea.vmem %s340_s29, 1024  ;;  %p9626_p12 = scmp.lt.s32.totalorder %s340_s29, %s340_s29 }
  0x11   : > { %p9904_p7 = pnand %p8345_p6, %p15442_p1  ;;  %p9619_p9 = scmp.ne.s32.totalorder %s340_s29, %s9618_s15 }
  0x12   : > { %p9627_p13 = scmp.lt.s32.totalorder %s9618_s15, %s9618_s15 }
  0x13   : > { %p9609_p8 = pneg %p9904_p7 }
  0x14   : > { %p9628_p0 = por %p9627_p13, %p9626_p12 }
  0x15   : > { %p9621_p10 = pnand %p9619_p9, %p9609_p8 }
  0x17   : > { %p9622_p11 = pneg %p9621_p10 }
  0x19   : > { %p9629_p2 = pnand %p9628_p0, %p9622_p11 }
  0x1b   : > { %9632 = shalt.err (!%p9629_p2)
}
  0x1c   : > { %s15440_s16 = smov 128   ;;  %s15441_s17 = smov 8  }
  0x1d   : > { %s15847_s3 = sld [smem:[#allocation173_spill]]  ;;  %s9787_s20 = smov [#allocation6]  }
  0x1e   : > { %s355_s21 = sshll.u32 %s9787_s20, 4  ;;  %s9644_s28 = scalar_lea.vmem %s378_s14, 512  ;;  %s356_s21 = int_to_ptr.vmem [resolvable:$true] %s355_s21 }
  0x1f   : > { %p9645_p3 = scmp.ne.s32.totalorder %s378_s14, %s9644_s28  ;;  %p9652_p10 = scmp.lt.s32.totalorder %s378_s14, %s378_s14 }
  0x20   : > { %p9653_p11 = scmp.lt.s32.totalorder %s9644_s28, %s9644_s28 }
  0x21   : > { %p9647_p6 = pnand %p9645_p3, %p9609_p8 }
  0x22   : > { %p9654_p12 = por %p9653_p11, %p9652_p10 }
  0x23   : > { %8348 = dma.hbm_to_vmem [thread:$0]  (!%p9904_p7), %s15847_s3, 1024, %s340_s29, [#allocation5], %s15440_s16, %s15440_s16, %s15441_s17  }
  0x24   : > { %p9648_p9 = pneg %p9647_p6 }
  0x26   : > { %p9655_p13 = pnand %p9654_p12, %p9648_p9 }
  0x28   : > { %9658 = shalt.err (!%p9655_p13)
}
  0x29   : > { %s9788_s13 = smov 64   ;;  %s9789_s15 = smov 4  }
  0x2a   : > { %8354 = dma.hbm_to_vmem [thread:$0]  (!%p9904_p7), %s15436_s9, 512, %s378_s14, [#allocation8], %s9788_s13, %s9788_s13, %s9789_s15  }
  0x2b   : > { %s9670_s19 = scalar_lea.vmem %s356_s21, 512  ;;  %p9678_p6 = scmp.lt.s32.totalorder %s356_s21, %s356_s21 }
  0x2c   : > { %p9671_p0 = scmp.ne.s32.totalorder %s356_s21, %s9670_s19  ;;  %p9679_p10 = scmp.lt.s32.totalorder %s9670_s19, %s9670_s19 }
  0x2e   : > { %p9673_p2 = pnand %p9671_p0, %p9609_p8  ;;  %p9680_p9 = por %p9679_p10, %p9678_p6 }
  0x30   : > { %p9674_p3 = pneg %p9673_p2 }
  0x32   : > { %p9681_p11 = pnand %p9680_p9, %p9674_p3 }
  0x34   : > { %9684 = shalt.err (!%p9681_p11)
}
  0x35   : > { %s15848_s5 = sld [smem:[#allocation174_spill]]  ;;  %s9790_s14 = smov [#allocation9]  }
  0x36   : > { %s391_s29 = sshll.u32 %s9790_s14, 4  ;;  %s392_s29 = int_to_ptr.vmem [resolvable:$true] %s391_s29 }
  0x37   : > { %s9696_s18 = scalar_lea.vmem %s392_s29, 16  ;;  %s9703_s19 = scalar_lea.vmem %s392_s29, 32 }
  0x38   : > { %p9697_p12 = scmp.ne.s32.totalorder %s392_s29, %s9696_s18  ;;  %p9704_p2 = scmp.lt.s32.totalorder %s392_s29, %s392_s29 }
  0x39   : > { %p9705_p3 = scmp.lt.s32.totalorder %s9703_s19, %s9696_s18 }
  0x3a   : > { %p9699_p13 = pnand %p9697_p12, %p9609_p8 }
  0x3b   : > { %8351 = dma.hbm_to_vmem [thread:$0]  (!%p9904_p7), %s15848_s5, 512, %s356_s21, [#allocation5], %s9788_s13, %s9788_s13, %s9789_s15  }
  0x3c   : > { %p9700_p0 = pneg %p9699_p13  ;;  %p9706_p6 = por %p9705_p3, %p9704_p2 }
  0x3e   : > { %p9707_p10 = pnand %p9706_p6, %p9700_p0 }
  0x40   : > { %9710 = shalt.err (!%p9707_p10)
}
  0x41   : > { %8357 = dma.hbm_to_vmem [thread:$0]  (!%p9904_p7), %s15437_s10, 16, %s392_s29, [#allocation8]  }
  0x42   : > { %s9946_s21 = sadd.s32 1, %s9781_s24   ;;  %s35_s13 = sadd.s32 1, %s9777_s23 }
  0x43   : > { %s32_s15 = ssub.s32 %s9781_s24, %s9946_s21  ;;  %p42_p8 = scmp.ne.s32.totalorder %s9777_s23, %s9773_s22 }
  0x44   : > { %p33_p9 = scmp.eq.s32.totalorder %s32_s15, 0  ;;  %p43_p11 = scmp.eq.s32.totalorder %s9781_s24, 0 }
  0x45   : > { %p8366_p12 = scmp.lt.s32.totalorder %s9781_s24, 2  ;;  %s402_s30 = sand.u32 1, %s9777_s23  }
  0x46   : > { %s9957_s14 = scalar_select %p33_p9, %s9777_s23, %s35_s13  }
  0x47   : > { %p44_p13 = por %p43_p11, %p42_p8  ;;  %s7375_s18 = sshll.u32 %s402_s30, 8 }
  0x48   : > { %s7524_s19 = sshll.u32 %s9781_s24, 12  ;;  %s406_s29 = scalar_lea.vmem [#allocation2], %s7375_s18 }
  0x49   : > { %s9963_s16 = scalar_lea.hbm %s15427_s0, %s7524_s19  ;;  %s413_s17 = sshll.u32 %s406_s29, 4  ;;  %s9969_s17 = int_to_ptr.vmem [resolvable:$true] %s413_s17 }
  0x4a   : > { %p9965_p7 = pnand %p8366_p12, %p44_p13  ;;  %s9971_s13 = scalar_lea.sflag [#allocation3], %s402_s30 }
  0x4b   : > { %s9711_s24 = scalar_lea.hbm %s9963_s16, 4096  ;;  %s9716_s18 = scalar_lea.hbm %s15427_s0, 8192 }
  0x4c   : > { %p9712_p0 = scmp.ne.s32.totalorder %s9963_s16, %s9711_s24  ;;  %p9713_p2 = pneg %p9965_p7 }
  0x4d   : > { %p9717_p10 = scmp.lt.s32.totalorder %s9963_s16, %s15427_s0  ;;  %p9718_p8 = scmp.lt.s32.totalorder %s9716_s18, %s9711_s24 }
  0x4e   : > { %p9714_p3 = pnand %p9713_p2, %p9712_p0 }
  0x4f   : > { %p9719_p9 = por %p9718_p8, %p9717_p10 }
  0x50   : > { %p9715_p6 = pneg %p9714_p3 }
  0x52   : > { %p9720_p11 = pnand %p9719_p9, %p9715_p6 }
  0x54   : > { %9723 = shalt.err (!%p9720_p11)
}
  0x55   : > { %s9724_s30 = scalar_lea.vmem %s9969_s17, 4096  ;;  %s9791_s3 = smov [#allocation2]  }
  0x56   : > { %p9725_p12 = scmp.ne.s32.totalorder %s9969_s17, %s9724_s30  ;;  %s9729_s5 = sshll.u32 %s9791_s3, 4  ;;  %s9730_s5 = int_to_ptr.vmem [resolvable:$false] %s9729_s5 }
  0x57   : > { %s9731_s19 = scalar_lea.vmem %s9730_s5, 8192  ;;  %p9732_p3 = scmp.lt.s32.totalorder %s9969_s17, %s9730_s5 }
  0x58   : > { %p9727_p13 = pnand %p9725_p12, %p9713_p2  ;;  %p9733_p1 = scmp.lt.s32.totalorder %s9731_s19, %s9724_s30 }
  0x5a   : > { %p9728_p0 = pneg %p9727_p13  ;;  %p9734_p4 = por %p9733_p1, %p9732_p3 }
  0x5c   : > { %p9735_p5 = pnand %p9734_p4, %p9728_p0 }
  0x5e   : > { %9738 = shalt.err (!%p9735_p5)
}
  0x5f   : > { %s15850_s24 = smov 8   ;;  %s15851_s20 = smov 128  }
  0x60   : > { %8361 = dma.hbm_to_vmem [thread:$0]  (!%p9965_p7), %s9963_s16, 4096, %s9969_s17, %s9971_s13, %s15851_s20, %s15851_s20, %s15850_s24  }
  0x61   : > { %p15852_p2 = scmp.ne.s32.totalorder %s15845_s27, 0 }
  0x63   : > { %425 = sbr.rel (%p15852_p2) target bundleno = 3969 (0xf81), region = 64 }
  0x68   : > { %s427_s3 = sand.u32 1, %s9773_s22   ;;  %p15853_p1 = scmp.ne.s32.totalorder %s15844_s26, 0 }
  0x69   : > { %s7379_s5 = sshll.u32 %s427_s3, 8  ;;  %s428_s18 = scalar_lea.sflag [#allocation3], %s427_s3 }
  0x6a   : > { %s9998_s28 = scalar_lea.vmem [#allocation2], %s7379_s5 }
  0x6b   : > { %9756 = dma.done.wait (%p15853_p1), %s428_s18, 4096  }
  0x6c   : > { %9758 = vsyncadd (%p15853_p1), %s428_s18, 4294963200  ;;  %p15854_p4 = scmp.eq.s32.totalorder %s9884_s25, 0 }
  0x6e   : > { %9760 = dma.done.wait (%p15854_p4), [#allocation5], 1536   ;;  %p15855_p5 = pmov %p15854_p4 }
  0x6f   : > { %p15856_p7 = pmov %p15854_p4 }
  0x70   : > { %9762 = vsyncadd (%p15855_p5), [#allocation5], 4294965760 }
  0x71   : > { %9764 = dma.done.wait (%p15856_p7), [#allocation8], 528   ;;  %p15857_p6 = pmov %p15854_p4 }
  0x72   : > { %vm536_vm0 = vcmask 523264   ;;  %v10013_v0 = vld [vmem:[%s9998_s28] sm:$0xff]  ;;  %v10016_v1 = vld [vmem:[%s9998_s28 + $0x10] sm:$0xff]  ;;  %v10019_v2 = vld [vmem:[%s9998_s28 + $0x8] sm:$0xff]  ;;  %vm1429_vm1 = vcmask 130048   ;;  %s9793_s29 = smov 64  }
  0x73   : > { %9766 = vsyncadd (%p15857_p6), [#allocation8], 4294966768  ;;  %v537_v3 = vsel %vm536_vm0, %v10013_v0, 0.0  ;;  %v543_v4 = vsel %vm536_vm0, %v10016_v1, 0.0  ;;  %v10026_v5 = vld [vmem:[%s9998_s28 + $0x18] sm:$0xff]  ;;  %v540_v6 = vsel %vm536_vm0, %v10019_v2, 0.0 }
  0x74   : > { %538 = vadd.xlane.f32.xlu0 %v537_v3  ;;  %544 = vadd.xlane.f32.xlu1 %v543_v4  ;;  %v546_v7 = vsel %vm536_vm0, %v10026_v5, 0.0  ;;  %v10033_v8 = vld [vmem:[%s9998_s28 + $0x20] sm:$0xff]  ;;  %v10036_v9 = vld [vmem:[%s9998_s28 + $0x28] sm:$0xff]  ;;  %v10043_v12 = vld [vmem:[%s9998_s28 + $0x30] sm:$0xff]  ;;  %s9794_s30 = smov 48   ;;  %s9795_s19 = smov 112  }
  0x75   : > { %v549_v10 = vsel %vm536_vm0, %v10033_v8, 0.0  ;;  %v552_v11 = vsel %vm536_vm0, %v10036_v9, 0.0  ;;  %v10046_v13 = vld [vmem:[%s9998_s28 + $0x38] sm:$0xff]  ;;  %v10049_v14 = vld [vmem:[%s9998_s28 + $0x40] sm:$0xff]  ;;  %v10052_v15 = vld [vmem:[%s9998_s28 + $0x48] sm:$0xff]  ;;  %v555_v16 = vsel %vm536_vm0, %v10043_v12, 0.0 }
  0x76   : > { %v558_v17 = vsel %vm536_vm0, %v10046_v13, 0.0  ;;  %v561_v18 = vsel %vm536_vm0, %v10049_v14, 0.0  ;;  %v564_v19 = vsel %vm536_vm0, %v10052_v15, 0.0  ;;  %v10063_v20 = vld [vmem:[%s9998_s28 + $0x50] sm:$0xff]  ;;  %v10066_v21 = vld [vmem:[%s9998_s28 + $0x58] sm:$0xff]  ;;  %v10073_v24 = vld [vmem:[%s9998_s28 + $0x60] sm:$0xff] }
  0x77   : > { %v567_v22 = vsel %vm536_vm0, %v10063_v20, 0.0  ;;  %v570_v23 = vsel %vm536_vm0, %v10066_v21, 0.0  ;;  %v10076_v25 = vld [vmem:[%s9998_s28 + $0x68] sm:$0xff]  ;;  %v573_v26 = vsel %vm536_vm0, %v10073_v24, 0.0  ;;  %v10083_v28 = vld [vmem:[%s9998_s28 + $0x70] sm:$0xff]  ;;  %v10086_v29 = vld [vmem:[%s9998_s28 + $0x78] sm:$0xff] }
  0x78   : > { %541 = vadd.xlane.f32.xlu0 %v540_v6  ;;  %547 = vadd.xlane.f32.xlu1 %v546_v7  ;;  %v576_v27 = vsel %vm536_vm0, %v10076_v25, 0.0  ;;  %v579_v30 = vsel %vm536_vm0, %v10083_v28, 0.0  ;;  %v582_v31 = vsel %vm536_vm0, %v10086_v29, 0.0  ;;  %v10093_v32 = vld [vmem:[%s9998_s28 + $0x80] sm:$0xff]  ;;  %v10096_v33 = vld [vmem:[%s9998_s28 + $0x88] sm:$0xff]  ;;  %v10103_v36 = vld [vmem:[%s9998_s28 + $0x90] sm:$0xff] }
  0x79   : > { %v585_v34 = vsel %vm536_vm0, %v10093_v32, 0.0  ;;  %v588_v35 = vsel %vm536_vm0, %v10096_v33, 0.0  ;;  %v10106_v37 = vld [vmem:[%s9998_s28 + $0x98] sm:$0xff]  ;;  %v591_v38 = vsel %vm536_vm0, %v10103_v36, 0.0  ;;  %v10113_v40 = vld [vmem:[%s9998_s28 + $0xa0] sm:$0xff]  ;;  %v10116_v41 = vld [vmem:[%s9998_s28 + $0xa8] sm:$0xff] }
  0x7a   : > { %v594_v39 = vsel %vm536_vm0, %v10106_v37, 0.0  ;;  %v597_v42 = vsel %vm536_vm0, %v10113_v40, 0.0  ;;  %v600_v43 = vsel %vm536_vm0, %v10116_v41, 0.0  ;;  %v10123_v44 = vld [vmem:[%s9998_s28 + $0xb0] sm:$0xff]  ;;  %v10126_v45 = vld [vmem:[%s9998_s28 + $0xb8] sm:$0xff]  ;;  %v10133_v48 = vld [vmem:[%s9998_s28 + $0xc0] sm:$0xff] }
  0x7b   : > { %v603_v46 = vsel %vm536_vm0, %v10123_v44, 0.0  ;;  %v606_v47 = vsel %vm536_vm0, %v10126_v45, 0.0  ;;  %v10136_v49 = vld [vmem:[%s9998_s28 + $0xc8] sm:$0xff]  ;;  %v609_v50 = vsel %vm536_vm0, %v10133_v48, 0.0  ;;  %v10143_v52 = vld [vmem:[%s9998_s28 + $0xd0] sm:$0xff]  ;;  %v10146_v53 = vld [vmem:[%s9998_s28 + $0xd8] sm:$0xff] }
  0x7c   : > { %550 = vadd.xlane.f32.xlu0 %v549_v10  ;;  %553 = vadd.xlane.f32.xlu1 %v552_v11  ;;  %v612_v51 = vsel %vm536_vm0, %v10136_v49, 0.0  ;;  %v615_v54 = vsel %vm536_vm0, %v10143_v52, 0.0  ;;  %v618_v55 = vsel %vm536_vm0, %v10146_v53, 0.0  ;;  %v10153_v56 = vld [vmem:[%s9998_s28 + $0xe0] sm:$0xff]  ;;  %v10156_v57 = vld [vmem:[%s9998_s28 + $0xe8] sm:$0xff]  ;;  %v10163_v60 = vld [vmem:[%s9998_s28 + $0xf0] sm:$0xff] }
  0x7d   : > { %v621_v58 = vsel %vm536_vm0, %v10153_v56, 0.0  ;;  %v624_v59 = vsel %vm536_vm0, %v10156_v57, 0.0  ;;  %v10166_v61 = vld [vmem:[%s9998_s28 + $0xf8] sm:$0xff]  ;;  %v627_v62 = vsel %vm536_vm0, %v10163_v60, 0.0  ;;  %s9796_s24 = smov 32   ;;  %s9797_s20 = smov 96  }
  0x7e   : > { %v630_v63 = vsel %vm536_vm0, %v10166_v61, 0.0  ;;  %s9798_s3 = smov 16   ;;  %s9799_s5 = smov 80   ;;  %vm6046_vm2 = vcmask 261120   ;;  %vm6079_vm3 = vcmask 392192  }
  0x7f   : > { %p493_p10 = scmp.lt.s32.totalorder %s9884_s25, 1 }
  0x80   : > { %556 = vadd.xlane.f32.xlu0 %v555_v16  ;;  %559 = vadd.xlane.f32.xlu1 %v558_v17 }
  0x81   : > { %s16844_s25 = smov (!%p493_p10, %s9884_s25), 1 }
  0x82   : > { %s7525_s27 = sshll.u32 %s16844_s25, 8 }
  0x83   : > { %s14696_s15 = scalar_lea.vmem %s15438_s11, %s7525_s27 }
  0x84   : > { %562 = vadd.xlane.f32.xlu0 %v561_v18  ;;  %565 = vadd.xlane.f32.xlu1 %v564_v19 }
  0x88   : > { %568 = vadd.xlane.f32.xlu0 %v567_v22  ;;  %571 = vadd.xlane.f32.xlu1 %v570_v23 }
  0x8c   : > { %574 = vadd.xlane.f32.xlu0 %v573_v26  ;;  %577 = vadd.xlane.f32.xlu1 %v576_v27 }
  0x90   : > { %580 = vadd.xlane.f32.xlu0 %v579_v30  ;;  %583 = vadd.xlane.f32.xlu1 %v582_v31 }
  0x94   : > { %586 = vadd.xlane.f32.xlu0 %v585_v34  ;;  %589 = vadd.xlane.f32.xlu1 %v588_v35 }
  0x98   : > { %592 = vadd.xlane.f32.xlu0 %v591_v38  ;;  %595 = vadd.xlane.f32.xlu1 %v594_v39 }
  0x9c   : > { %598 = vadd.xlane.f32.xlu0 %v597_v42  ;;  %601 = vadd.xlane.f32.xlu1 %v600_v43 }
  0xa0   : > { %604 = vadd.xlane.f32.xlu0 %v603_v46  ;;  %607 = vadd.xlane.f32.xlu1 %v606_v47 }
  0xa4   : > { %610 = vadd.xlane.f32.xlu0 %v609_v50  ;;  %613 = vadd.xlane.f32.xlu1 %v612_v51 }
  0xa8   : > { %616 = vadd.xlane.f32.xlu0 %v615_v54  ;;  %619 = vadd.xlane.f32.xlu1 %v618_v55 }
  0xac   : > { %622 = vadd.xlane.f32.xlu0 %v621_v58  ;;  %625 = vadd.xlane.f32.xlu1 %v624_v59 }
  0xb0   : > { %628 = vadd.xlane.f32.xlu0 %v627_v62  ;;  %631 = vadd.xlane.f32.xlu1 %v630_v63 }
  0xfd   : > { %v539_v3 = vpop.xlane.xlu0 %538  ;;  %v545_v4 = vpop.xlane.xlu1 %544 }
  0xfe   : > { %v634_v6 = vmul.f32 0.015625, %v539_v3  ;;  %v636_v7 = vmul.f32 0.015625, %v545_v4 }
 0x100   : > { %v10173_v10 = vsub.f32 %v10013_v0, %v634_v6  ;;  %v10176_v11 = vsub.f32 %v10016_v1, %v636_v7 }
 0x101   : > { %v542_v16 = vpop.xlane.xlu0 %541  ;;  %v548_v17 = vpop.xlane.xlu1 %547 }
 0x102   : > { %v635_v18 = vmul.f32 0.015625, %v542_v16  ;;  %v637_v19 = vmul.f32 0.015625, %v548_v17  ;;  %v698_v22 = vmul.f32 %v10173_v10, %v10173_v10  ;;  %v700_v23 = vmul.f32 %v10176_v11, %v10176_v11 }
 0x104   : > { %v10183_v26 = vsub.f32 %v10019_v2, %v635_v18  ;;  %v10186_v27 = vsub.f32 %v10026_v5, %v637_v19  ;;  %v730_v0 = vsel %vm536_vm0, %v698_v22, 0.0  ;;  %v736_v31 = vsel %vm536_vm0, %v700_v23, 0.0 }
 0x105   : > { %731 = vadd.xlane.f32.xlu0 %v730_v0  ;;  %v551_v1 = vpop.xlane.xlu0 %550  ;;  %v554_v30 = vpop.xlane.xlu1 %553 }
 0x106   : > { %v638_v34 = vmul.f32 0.015625, %v551_v1  ;;  %v639_v35 = vmul.f32 0.015625, %v554_v30  ;;  %v699_v38 = vmul.f32 %v10183_v26, %v10183_v26  ;;  %v701_v39 = vmul.f32 %v10186_v27, %v10186_v27 }
 0x108   : > { %v10195_v2 = vsub.f32 %v10033_v8, %v638_v34  ;;  %v10198_v5 = vsub.f32 %v10036_v9, %v639_v35  ;;  %v733_v42 = vsel %vm536_vm0, %v699_v38, 0.0  ;;  %v739_v47 = vsel %vm536_vm0, %v701_v39, 0.0 }
 0x109   : > { %737 = vadd.xlane.f32.xlu0 %v736_v31  ;;  %734 = vadd.xlane.f32.xlu1 %v733_v42  ;;  %v557_v43 = vpop.xlane.xlu0 %556  ;;  %v560_v46 = vpop.xlane.xlu1 %559 }
 0x10a   : > { %v640_v50 = vmul.f32 0.015625, %v557_v43  ;;  %v641_v51 = vmul.f32 0.015625, %v560_v46  ;;  %v702_v54 = vmul.f32 %v10195_v2, %v10195_v2  ;;  %v703_v8 = vmul.f32 %v10198_v5, %v10198_v5 }
 0x10c   : > { %v10207_v55 = vsub.f32 %v10043_v12, %v640_v50  ;;  %v10210_v9 = vsub.f32 %v10046_v13, %v641_v51  ;;  %v742_v58 = vsel %vm536_vm0, %v702_v54, 0.0  ;;  %v745_v63 = vsel %vm536_vm0, %v703_v8, 0.0 }
 0x10d   : > { %740 = vadd.xlane.f32.xlu1 %v739_v47  ;;  %743 = vadd.xlane.f32.xlu0 %v742_v58  ;;  %v563_v59 = vpop.xlane.xlu0 %562  ;;  %v566_v62 = vpop.xlane.xlu1 %565 }
 0x10e   : > { %v642_v3 = vmul.f32 0.015625, %v563_v59  ;;  %v643_v4 = vmul.f32 0.015625, %v566_v62  ;;  %v704_v6 = vmul.f32 %v10207_v55, %v10207_v55  ;;  %v705_v12 = vmul.f32 %v10210_v9, %v10210_v9 }
 0x110   : > { %v10219_v7 = vsub.f32 %v10049_v14, %v642_v3  ;;  %v10222_v13 = vsub.f32 %v10052_v15, %v643_v4  ;;  %v748_v16 = vsel %vm536_vm0, %v704_v6, 0.0  ;;  %v751_v19 = vsel %vm536_vm0, %v705_v12, 0.0  ;;  %v8661_v12 = vld [vmem:[#allocation4 + $0x30] ss:$8 sps:$4 sm:$0xff]  }
 0x111   : > { %746 = vadd.xlane.f32.xlu1 %v745_v63  ;;  %749 = vadd.xlane.f32.xlu0 %v748_v16  ;;  %v569_v17 = vpop.xlane.xlu0 %568  ;;  %v572_v18 = vpop.xlane.xlu1 %571  ;;  %v8659_v63 = vld [vmem:[#allocation4 + $0x34] ss:$8 sps:$4 sm:$0xff]  }
 0x112   : > { %v644_v22 = vmul.f32 0.015625, %v569_v17  ;;  %v645_v23 = vmul.f32 0.015625, %v572_v18  ;;  %v706_v0 = vmul.f32 %v10219_v7, %v10219_v7  ;;  %v707_v14 = vmul.f32 %v10222_v13, %v10222_v13  ;;  %1164 = vmatprep.subr.bf16.mxu0 %v8659_v63  ;;  %v8668_v63 = vld [vmem:[#allocation4 + $0x4] ss:$8 sps:$4 sm:$0xff]  }
 0x113   : > { %1165 = vmatpush1.bf16.msra.mxu0 %v8661_v12  ;;  %v8670_v12 = vld [vmem:[#allocation4] ss:$8 sps:$4 sm:$0xff]  }
 0x114   : > { %v10231_v1 = vsub.f32 %v10063_v20, %v644_v22  ;;  %v10234_v15 = vsub.f32 %v10066_v21, %v645_v23  ;;  %v754_v30 = vsel %vm536_vm0, %v706_v0, 0.0  ;;  %v757_v35 = vsel %vm536_vm0, %v707_v14, 0.0  ;;  %v8662_v23 = vld [vmem:[#allocation4 + $0x24] ss:$8 sps:$4 sm:$0xff]  }
 0x115   : > { %752 = vadd.xlane.f32.xlu1 %v751_v19  ;;  %755 = vadd.xlane.f32.xlu0 %v754_v30  ;;  %v575_v31 = vpop.xlane.xlu0 %574  ;;  %v578_v34 = vpop.xlane.xlu1 %577 }
 0x116   : > { %v646_v38 = vmul.f32 0.015625, %v575_v31  ;;  %v647_v39 = vmul.f32 0.015625, %v578_v34  ;;  %v708_v42 = vmul.f32 %v10231_v1, %v10231_v1  ;;  %v709_v20 = vmul.f32 %v10234_v15, %v10234_v15  ;;  %v8664_v31 = vld [vmem:[#allocation4 + $0x20] ss:$8 sps:$4 sm:$0xff]   ;;  %1166 = vmatprep.subr.bf16.mxu0 %v8662_v23 }
 0x117   : > { %1167 = vmatpush1.bf16.msra.mxu0 %v8664_v31 }
 0x118   : > { %v10243_v43 = vsub.f32 %v10073_v24, %v646_v38  ;;  %v10246_v21 = vsub.f32 %v10076_v25, %v647_v39  ;;  %v760_v46 = vsel %vm536_vm0, %v708_v42, 0.0  ;;  %v763_v51 = vsel %vm536_vm0, %v709_v20, 0.0  ;;  %v8665_v20 = vld [vmem:[#allocation4 + $0x14] ss:$8 sps:$4 sm:$0xff]  }
 0x119   : > { %758 = vadd.xlane.f32.xlu1 %v757_v35  ;;  %761 = vadd.xlane.f32.xlu0 %v760_v46  ;;  %v581_v47 = vpop.xlane.xlu0 %580  ;;  %v584_v50 = vpop.xlane.xlu1 %583 }
 0x11a   : > { %v648_v54 = vmul.f32 0.015625, %v581_v47  ;;  %v649_v8 = vmul.f32 0.015625, %v584_v50  ;;  %v710_v58 = vmul.f32 %v10243_v43, %v10243_v43  ;;  %v711_v24 = vmul.f32 %v10246_v21, %v10246_v21  ;;  %1168 = vmatprep.subr.bf16.mxu0 %v8665_v20 }
 0x11c   : > { %v10255_v59 = vsub.f32 %v10083_v28, %v648_v54  ;;  %v10258_v25 = vsub.f32 %v10086_v29, %v649_v8  ;;  %v766_v62 = vsel %vm536_vm0, %v710_v58, 0.0  ;;  %v769_v6 = vsel %vm536_vm0, %v711_v24, 0.0 }
 0x11d   : > { %764 = vadd.xlane.f32.xlu1 %v763_v51  ;;  %767 = vadd.xlane.f32.xlu0 %v766_v62  ;;  %v587_v3 = vpop.xlane.xlu0 %586  ;;  %v590_v4 = vpop.xlane.xlu1 %589  ;;  %v8667_v51 = vld [vmem:[#allocation4 + $0x10] ss:$8 sps:$4 sm:$0xff]  }
 0x11e   : > { %v650_v16 = vmul.f32 0.015625, %v587_v3  ;;  %v651_v17 = vmul.f32 0.015625, %v590_v4  ;;  %v712_v18 = vmul.f32 %v10255_v59, %v10255_v59  ;;  %v713_v28 = vmul.f32 %v10258_v25, %v10258_v25  ;;  %1169 = vmatpush1.bf16.msra.mxu0 %v8667_v51 }
 0x11f   : > { %1170 = vmatprep.subr.bf16.mxu0 %v8668_v63 }
 0x120   : > { %v10267_v29 = vsub.f32 %v10093_v32, %v650_v16  ;;  %v10270_v19 = vsub.f32 %v10096_v33, %v651_v17  ;;  %v772_v22 = vsel %vm536_vm0, %v712_v18, 0.0  ;;  %v775_v30 = vsel %vm536_vm0, %v713_v28, 0.0 }
 0x121   : > { %770 = vadd.xlane.f32.xlu1 %v769_v6  ;;  %773 = vadd.xlane.f32.xlu0 %v772_v22  ;;  %v593_v0 = vpop.xlane.xlu0 %592  ;;  %v596_v14 = vpop.xlane.xlu1 %595 }
 0x122   : > { %v652_v34 = vmul.f32 0.015625, %v593_v0  ;;  %v653_v35 = vmul.f32 0.015625, %v596_v14  ;;  %v714_v38 = vmul.f32 %v10267_v29, %v10267_v29  ;;  %v715_v32 = vmul.f32 %v10270_v19, %v10270_v19  ;;  %1171 = vmatpush1.bf16.msra.mxu0 %v8670_v12 }
 0x124   : > { %v10279_v33 = vsub.f32 %v10103_v36, %v652_v34  ;;  %v10282_v39 = vsub.f32 %v10106_v37, %v653_v35  ;;  %v778_v42 = vsel %vm536_vm0, %v714_v38, 0.0  ;;  %v781_v50 = vsel %vm536_vm0, %v715_v32, 0.0 }
 0x125   : > { %776 = vadd.xlane.f32.xlu1 %v775_v30  ;;  %779 = vadd.xlane.f32.xlu0 %v778_v42  ;;  %v599_v46 = vpop.xlane.xlu0 %598  ;;  %v602_v47 = vpop.xlane.xlu1 %601  ;;  %v9792_v35 = vmov 0  }
 0x126   : > { %v654_v54 = vmul.f32 0.015625, %v599_v46  ;;  %v655_v8 = vmul.f32 0.015625, %v602_v47  ;;  %v716_v58 = vmul.f32 %v10279_v33, %v10279_v33  ;;  %v717_v36 = vmul.f32 %v10282_v39, %v10282_v39  ;;  %1188 = vmatprep.mubr.bf16.mxu0 %v9792_v35 }
 0x128   : > { %v10291_v37 = vsub.f32 %v10113_v40, %v654_v54  ;;  %v10294_v24 = vsub.f32 %v10116_v41, %v655_v8  ;;  %v784_v62 = vsel %vm536_vm0, %v716_v58, 0.0  ;;  %v787_v6 = vsel %vm536_vm0, %v717_v36, 0.0 }
 0x129   : > { %782 = vadd.xlane.f32.xlu1 %v781_v50  ;;  %785 = vadd.xlane.f32.xlu0 %v784_v62  ;;  %v605_v3 = vpop.xlane.xlu0 %604  ;;  %v608_v4 = vpop.xlane.xlu1 %607 }
 0x12a   : > { %v656_v16 = vmul.f32 0.015625, %v605_v3  ;;  %v657_v17 = vmul.f32 0.015625, %v608_v4  ;;  %v718_v18 = vmul.f32 %v10291_v37, %v10291_v37  ;;  %v719_v40 = vmul.f32 %v10294_v24, %v10294_v24 }
 0x12c   : > { %v10303_v41 = vsub.f32 %v10123_v44, %v656_v16  ;;  %v10306_v28 = vsub.f32 %v10126_v45, %v657_v17  ;;  %v790_v22 = vsel %vm536_vm0, %v718_v18, 0.0  ;;  %v793_v14 = vsel %vm536_vm0, %v719_v40, 0.0 }
 0x12d   : > { %788 = vadd.xlane.f32.xlu1 %v787_v6  ;;  %791 = vadd.xlane.f32.xlu0 %v790_v22  ;;  %v611_v23 = vpop.xlane.xlu0 %610  ;;  %v614_v0 = vpop.xlane.xlu1 %613 }
 0x12e   : > { %v658_v30 = vmul.f32 0.015625, %v611_v23  ;;  %v659_v31 = vmul.f32 0.015625, %v614_v0  ;;  %v720_v34 = vmul.f32 %v10303_v41, %v10303_v41  ;;  %v721_v44 = vmul.f32 %v10306_v28, %v10306_v28 }
 0x130   : > { %v10316_v45 = vsub.f32 %v10133_v48, %v658_v30  ;;  %v10319_v38 = vsub.f32 %v10136_v49, %v659_v31  ;;  %v796_v32 = vsel %vm536_vm0, %v720_v34, 0.0  ;;  %v799_v46 = vsel %vm536_vm0, %v721_v44, 0.0 }
 0x131   : > { %794 = vadd.xlane.f32.xlu1 %v793_v14  ;;  %797 = vadd.xlane.f32.xlu0 %v796_v32  ;;  %v617_v42 = vpop.xlane.xlu0 %616  ;;  %v620_v20 = vpop.xlane.xlu1 %619 }
 0x132   : > { %v660_v47 = vmul.f32 0.015625, %v617_v42  ;;  %v661_v50 = vmul.f32 0.015625, %v620_v20  ;;  %v722_v51 = vmul.f32 %v10316_v45, %v10316_v45  ;;  %v723_v48 = vmul.f32 %v10319_v38, %v10319_v38 }
 0x134   : > { %v10328_v54 = vsub.f32 %v10143_v52, %v660_v47  ;;  %v10331_v49 = vsub.f32 %v10146_v53, %v661_v50  ;;  %v802_v8 = vsel %vm536_vm0, %v722_v51, 0.0  ;;  %v805_v62 = vsel %vm536_vm0, %v723_v48, 0.0 }
 0x135   : > { %800 = vadd.xlane.f32.xlu1 %v799_v46  ;;  %803 = vadd.xlane.f32.xlu0 %v802_v8  ;;  %v623_v58 = vpop.xlane.xlu0 %622  ;;  %v626_v36 = vpop.xlane.xlu1 %625 }
 0x136   : > { %v662_v63 = vmul.f32 0.015625, %v623_v58  ;;  %v663_v3 = vmul.f32 0.015625, %v626_v36  ;;  %v724_v4 = vmul.f32 %v10328_v54, %v10328_v54  ;;  %v725_v52 = vmul.f32 %v10331_v49, %v10331_v49 }
 0x138   : > { %v10340_v6 = vsub.f32 %v10153_v56, %v662_v63  ;;  %v10343_v53 = vsub.f32 %v10156_v57, %v663_v3  ;;  %v808_v12 = vsel %vm536_vm0, %v724_v4, 0.0  ;;  %v811_v18 = vsel %vm536_vm0, %v725_v52, 0.0 }
 0x139   : > { %806 = vadd.xlane.f32.xlu1 %v805_v62  ;;  %809 = vadd.xlane.f32.xlu0 %v808_v12  ;;  %v629_v16 = vpop.xlane.xlu0 %628  ;;  %v632_v17 = vpop.xlane.xlu1 %631 }
 0x13a   : > { %v664_v40 = vmul.f32 0.015625, %v629_v16  ;;  %v665_v22 = vmul.f32 0.015625, %v632_v17  ;;  %v726_v23 = vmul.f32 %v10340_v6, %v10340_v6  ;;  %v727_v56 = vmul.f32 %v10343_v53, %v10343_v53 }
 0x13c   : > { %v10352_v0 = vsub.f32 %v10163_v60, %v664_v40  ;;  %v10355_v57 = vsub.f32 %v10166_v61, %v665_v22  ;;  %v814_v14 = vsel %vm536_vm0, %v726_v23, 0.0  ;;  %v817_v30 = vsel %vm536_vm0, %v727_v56, 0.0 }
 0x13d   : > { %812 = vadd.xlane.f32.xlu1 %v811_v18  ;;  %815 = vadd.xlane.f32.xlu0 %v814_v14 }
 0x13e   : > { %v728_v31 = vmul.f32 %v10352_v0, %v10352_v0  ;;  %v729_v34 = vmul.f32 %v10355_v57, %v10355_v57 }
 0x140   : > { %v820_v44 = vsel %vm536_vm0, %v728_v31, 0.0  ;;  %v823_v60 = vsel %vm536_vm0, %v729_v34, 0.0  ;;  %v10369_v31 = vld [vmem:[%s15428_s1] ss:$0 sm:$0xff] }
 0x141   : > { %818 = vadd.xlane.f32.xlu1 %v817_v30  ;;  %821 = vadd.xlane.f32.xlu0 %v820_v44 }
 0x145   : > { %824 = vadd.xlane.f32.xlu1 %v823_v60 }
 0x18e   : > { %v732_v61 = vpop.xlane.xlu0 %731 }
 0x18f   : > { %v826_v32 = vmul.f32 0.015625, %v732_v61 }
 0x191   : > { %v858_v42 = vadd.f32 1e-05, %v826_v32 }
 0x192   : > { %v735_v20 = vpop.xlane.xlu1 %734  ;;  %v738_v46 = vpop.xlane.xlu0 %737 }
 0x193   : > { %8679 = vrsqrt.f32 %v858_v42  ;;  %v827_v47 = vmul.f32 0.015625, %v735_v20  ;;  %v828_v50 = vmul.f32 0.015625, %v738_v46 }
 0x195   : > { %v859_v51 = vadd.f32 1e-05, %v827_v47  ;;  %v860_v48 = vadd.f32 1e-05, %v828_v50 }
 0x196   : > { %v741_v8 = vpop.xlane.xlu1 %740  ;;  %v744_v58 = vpop.xlane.xlu0 %743 }
 0x197   : > { %8681 = vrsqrt.f32 %v859_v51  ;;  %v829_v36 = vmul.f32 0.015625, %v741_v8  ;;  %v830_v62 = vmul.f32 0.015625, %v744_v58 }
 0x198   : > { %8683 = vrsqrt.f32 %v860_v48 }
 0x199   : > { %v861_v63 = vadd.f32 1e-05, %v829_v36  ;;  %v862_v12 = vadd.f32 1e-05, %v830_v62 }
 0x19a   : > { %v747_v3 = vpop.xlane.xlu1 %746  ;;  %v750_v4 = vpop.xlane.xlu0 %749 }
 0x19b   : > { %8685 = vrsqrt.f32 %v861_v63  ;;  %v831_v52 = vmul.f32 0.015625, %v747_v3  ;;  %v832_v23 = vmul.f32 0.015625, %v750_v4 }
 0x19d   : > { %v863_v16 = vadd.f32 1e-05, %v831_v52  ;;  %v864_v60 = vadd.f32 1e-05, %v832_v23 }
 0x19e   : > { %v753_v17 = vpop.xlane.xlu1 %752  ;;  %v756_v18 = vpop.xlane.xlu0 %755 }
 0x19f   : > { %8687 = vrsqrt.f32 %v863_v16  ;;  %v833_v40 = vmul.f32 0.015625, %v753_v17  ;;  %v834_v48 = vmul.f32 0.015625, %v756_v18 }
 0x1a0   : > { %v8680_v22 = vpop.eup %8679  ;;  %8689 = vrsqrt.f32 %v862_v12 }
 0x1a1   : > { %v922_v56 = vmul.f32 %v8680_v22, %v10173_v10  ;;  %v865_v34 = vadd.f32 1e-05, %v833_v40  ;;  %v10376_v10 = vld [vmem:[%s15429_s2] ss:$0 sm:$0xff]  ;;  %v866_v12 = vadd.f32 1e-05, %v834_v48 }
 0x1a2   : > { %v759_v14 = vpop.xlane.xlu1 %758  ;;  %v762_v30 = vpop.xlane.xlu0 %761 }
 0x1a3   : > { %v961_v32 = vmul.f32 %v10369_v31, %v922_v56  ;;  %v835_v20 = vmul.f32 0.015625, %v759_v14  ;;  %8691 = vrsqrt.f32 %v865_v34  ;;  %v836_v40 = vmul.f32 0.015625, %v762_v30 }
 0x1a4   : > { %v8682_v44 = vpop.eup %8681  ;;  %8693 = vrsqrt.f32 %v864_v60 }
 0x1a5   : > { %v923_v61 = vmul.f32 %v8682_v44, %v10183_v26  ;;  %v8684_v42 = vpop.eup %8683  ;;  %v1000_v8 = vadd.f32 %v10376_v10, %v961_v32  ;;  %v867_v62 = vadd.f32 1e-05, %v835_v20  ;;  %v868_v44 = vadd.f32 1e-05, %v836_v40 }
 0x1a6   : > { %v765_v46 = vpop.xlane.xlu1 %764  ;;  %v768_v47 = vpop.xlane.xlu0 %767  ;;  %v924_v58 = vmul.f32 %v8684_v42, %v10176_v11 }
 0x1a7   : > { %v962_v50 = vmul.f32 %v10369_v31, %v923_v61  ;;  %8695 = vrsqrt.f32 %v867_v62  ;;  %v837_v22 = vmul.f32 0.015625, %v765_v46  ;;  %v838_v32 = vmul.f32 0.015625, %v768_v47 }
 0x1a8   : > { %v8686_v51 = vpop.eup %8685  ;;  %v963_v18 = vmul.f32 %v10369_v31, %v924_v58  ;;  %8697 = vrsqrt.f32 %v866_v12 }
 0x1a9   : > { %v1001_v26 = vadd.f32 %v10376_v10, %v962_v50  ;;  %v925_v36 = vmul.f32 %v8686_v51, %v10186_v27  ;;  %v869_v61 = vadd.f32 1e-05, %v837_v22 }
 0x1aa   : > { %v771_v63 = vpop.xlane.xlu1 %770  ;;  %v774_v3 = vpop.xlane.xlu0 %773  ;;  %v1002_v60 = vadd.f32 %v10376_v10, %v963_v18 }
 0x1ab   : > { %v1032_v4 = vpack.c.bf16 %v1001_v26, %v1000_v8  ;;  %v964_v16 = vmul.f32 %v10369_v31, %v925_v36  ;;  %v870_v36 = vadd.f32 1e-05, %v838_v32  ;;  %v839_v47 = vmul.f32 0.015625, %v771_v63 }
 0x1ac   : > { %v8688_v52 = vpop.eup %8687 }
 0x1ad   : > { %v8690_v17 = vpop.eup %8689  ;;  %7398 = vmatmul.mubr.msk.bf16.vlgmr.msra.gmra.mxu0 %vm536_vm0, %v1032_v4  ;;  %v927_v27 = vmul.f32 %v8688_v52, %v10198_v5  ;;  %v1003_v14 = vadd.f32 %v10376_v10, %v964_v16  ;;  %v871_v63 = vadd.f32 1e-05, %v839_v47 }
 0x1ae   : > { %v777_v23 = vpop.xlane.xlu1 %776  ;;  %v780_v11 = vpop.xlane.xlu0 %779  ;;  %1198 = vmatprep.mubr.bf16.mxu0 %v9792_v35  ;;  %v926_v34 = vmul.f32 %v8690_v17, %v10195_v2 }
 0x1af   : > { %v842_v56 = vmul.f32 0.015625, %v780_v11  ;;  %v966_v46 = vmul.f32 %v10369_v31, %v927_v27  ;;  %v1033_v48 = vpack.c.bf16 %v1003_v14, %v1002_v60  ;;  %v840_v27 = vmul.f32 0.015625, %v774_v3 }
 0x1b0   : > { %v8692_v5 = vpop.eup %8691  ;;  %v965_v8 = vmul.f32 %v10369_v31, %v926_v34  ;;  %v841_v32 = vmul.f32 0.015625, %v777_v23 }
 0x1b1   : > { %v874_v30 = vadd.f32 1e-05, %v842_v56  ;;  %v8694_v26 = vpop.eup %8693  ;;  %v1005_v52 = vadd.f32 %v10376_v10, %v966_v46  ;;  %v929_v17 = vmul.f32 %v8692_v5, %v10210_v9  ;;  %v872_v3 = vadd.f32 1e-05, %v840_v27 }
 0x1b2   : > { %v783_v42 = vpop.xlane.xlu1 %782  ;;  %v786_v20 = vpop.xlane.xlu0 %785  ;;  %v1004_v40 = vadd.f32 %v10376_v10, %v965_v8  ;;  %v928_v11 = vmul.f32 %v8694_v26, %v10207_v55 }
 0x1b3   : > { %v843_v50 = vmul.f32 0.015625, %v783_v42  ;;  %v844_v51 = vmul.f32 0.015625, %v786_v20  ;;  %8699 = vrsqrt.f32 %v874_v30 }
 0x1b4   : > { %8701 = vrsqrt.f32 %v868_v44  ;;  %v1034_v34 = vpack.c.bf16 %v1005_v52, %v1004_v40  ;;  %v8696_v44 = vpop.eup %8695  ;;  %v967_v55 = vmul.f32 %v10369_v31, %v928_v11 }
 0x1b5   : > { %v875_v2 = vadd.f32 1e-05, %v843_v50  ;;  %v876_v58 = vadd.f32 1e-05, %v844_v51  ;;  %7399 = vmatmul.mubr.msk.bf16.gmra.mxu0 %vm536_vm0, %v1033_v48  ;;  %8703 = vrsqrt.f32 %v869_v61  ;;  %v968_v61 = vmul.f32 %v10369_v31, %v929_v17  ;;  %v8698_v9 = vpop.eup %8697 }
 0x1b6   : > { %v789_v62 = vpop.xlane.xlu1 %788  ;;  %v792_v4 = vpop.xlane.xlu0 %791  ;;  %1208 = vmatprep.mubr.bf16.mxu0 %v9792_v35  ;;  %v931_v51 = vmul.f32 %v8696_v44, %v10222_v13  ;;  %v930_v23 = vmul.f32 %v8698_v9, %v10219_v7  ;;  %v1006_v47 = vadd.f32 %v10376_v10, %v967_v55 }
 0x1b7   : > { %8705 = vrsqrt.f32 %v875_v2  ;;  %v845_v12 = vmul.f32 0.015625, %v789_v62  ;;  %v846_v16 = vmul.f32 0.015625, %v792_v4  ;;  %v1007_v8 = vadd.f32 %v10376_v10, %v968_v61 }
 0x1b8   : > { %8707 = vrsqrt.f32 %v876_v58  ;;  %v873_v2 = vadd.f32 1e-05, %v841_v32  ;;  %v970_v13 = vmul.f32 %v10369_v31, %v931_v51 }
 0x1b9   : > { %v877_v18 = vadd.f32 1e-05, %v845_v12  ;;  %v878_v22 = vadd.f32 1e-05, %v846_v16  ;;  %8709 = vrsqrt.f32 %v870_v36 }
 0x1ba   : > { %v795_v56 = vpop.xlane.xlu1 %794  ;;  %v798_v14 = vpop.xlane.xlu0 %797  ;;  %v1009_v44 = vadd.f32 %v10376_v10, %v970_v13 }
 0x1bb   : > { %8711 = vrsqrt.f32 %v877_v18  ;;  %v847_v30 = vmul.f32 0.015625, %v795_v56  ;;  %v848_v60 = vmul.f32 0.015625, %v798_v14  ;;  %v1035_v18 = vpack.c.bf16 %v1007_v8, %v1006_v47 }
 0x1bc   : > { %8713 = vrsqrt.f32 %v878_v22  ;;  %v969_v22 = vmul.f32 %v10369_v31, %v930_v23 }
 0x1bd   : > { %v879_v42 = vadd.f32 1e-05, %v847_v30  ;;  %v880_v20 = vadd.f32 1e-05, %v848_v60  ;;  %7400 = vmatmul.mubr.msk.bf16.gmra.mxu0 %vm536_vm0, %v1034_v34  ;;  %8715 = vrsqrt.f32 %v871_v63 }
 0x1be   : > { %v801_v46 = vpop.xlane.xlu1 %800  ;;  %v804_v50 = vpop.xlane.xlu0 %803  ;;  %1218 = vmatprep.mubr.bf16.mxu0 %v9792_v35  ;;  %v1008_v55 = vadd.f32 %v10376_v10, %v969_v22 }
 0x1bf   : > { %8717 = vrsqrt.f32 %v879_v42  ;;  %v849_v48 = vmul.f32 0.015625, %v801_v46  ;;  %v850_v5 = vmul.f32 0.015625, %v804_v50 }
 0x1c0   : > { %8719 = vrsqrt.f32 %v880_v20  ;;  %v8700_v26 = vpop.eup %8699  ;;  %v1036_v23 = vpack.c.bf16 %v1009_v44, %v1008_v55 }
 0x1c1   : > { %v881_v58 = vadd.f32 1e-05, %v849_v48  ;;  %v882_v36 = vadd.f32 1e-05, %v850_v5  ;;  %v8702_v62 = vpop.eup %8701  ;;  %8721 = vrsqrt.f32 %v872_v3  ;;  %v938_v12 = vmul.f32 %v8700_v26, %v10267_v29 }
 0x1c2   : > { %v807_v4 = vpop.xlane.xlu1 %806  ;;  %v810_v52 = vpop.xlane.xlu0 %809  ;;  %v932_v3 = vmul.f32 %v8702_v62, %v10231_v1 }
 0x1c3   : > { %v8704_v16 = vpop.eup %8703  ;;  %8723 = vrsqrt.f32 %v881_v58  ;;  %v851_v17 = vmul.f32 0.015625, %v807_v4  ;;  %v852_v40 = vmul.f32 0.015625, %v810_v52  ;;  %v977_v11 = vmul.f32 %v10369_v31, %v938_v12 }
 0x1c4   : > { %v8706_v7 = vpop.eup %8705  ;;  %8725 = vrsqrt.f32 %v882_v36  ;;  %v933_v30 = vmul.f32 %v8704_v16, %v10234_v15 }
 0x1c5   : > { %v8708_v63 = vpop.eup %8707  ;;  %8727 = vrsqrt.f32 %v873_v2  ;;  %v883_v27 = vadd.f32 1e-05, %v851_v17  ;;  %v884_v56 = vadd.f32 1e-05, %v852_v40  ;;  %7401 = vmatmul.mubr.msk.bf16.gmra.mxu0 %vm536_vm0, %v1035_v18  ;;  %v939_v14 = vmul.f32 %v8706_v7, %v10270_v19 }
 0x1c6   : > { %v813_v29 = vpop.xlane.xlu1 %812  ;;  %v816_v34 = vpop.xlane.xlu0 %815  ;;  %1228 = vmatprep.mubr.bf16.mxu0 %v9792_v35  ;;  %v10417_v60 = vadd.f32 %v10376_v10, %v977_v11  ;;  %v940_v61 = vmul.f32 %v8708_v63, %v10279_v33  ;;  %v972_v26 = vmul.f32 %v10369_v31, %v933_v30 }
 0x1c7   : > { %v8710_v9 = vpop.eup %8709  ;;  %8729 = vrsqrt.f32 %v883_v27  ;;  %v853_v32 = vmul.f32 0.015625, %v813_v29  ;;  %v854_v42 = vmul.f32 0.015625, %v816_v34  ;;  %v978_v20 = vmul.f32 %v10369_v31, %v939_v14 }
 0x1c8   : > { %v8712_v19 = vpop.eup %8711  ;;  %8731 = vrsqrt.f32 %v884_v56  ;;  %v979_v46 = vmul.f32 %v10369_v31, %v940_v61  ;;  %v1011_v56 = vadd.f32 %v10376_v10, %v972_v26 }
 0x1c9   : > { %v8714_v15 = vpop.eup %8713  ;;  %v885_v50 = vadd.f32 1e-05, %v853_v32  ;;  %v886_v51 = vadd.f32 1e-05, %v854_v42  ;;  %v10425_v48 = vadd.f32 %v10376_v10, %v978_v20  ;;  %v941_v33 = vmul.f32 %v8712_v19, %v10282_v39 }
 0x1ca   : > { %v819_v5 = vpop.xlane.xlu1 %818  ;;  %v822_v8 = vpop.xlane.xlu0 %821  ;;  %v10430_v2 = vadd.f32 %v10376_v10, %v979_v46  ;;  %v942_v1 = vmul.f32 %v8714_v15, %v10291_v37  ;;  %v971_v39 = vmul.f32 %v10369_v31, %v932_v3 }
 0x1cb   : > { %v8716_v58 = vpop.eup %8715  ;;  %8733 = vrsqrt.f32 %v885_v50  ;;  %v855_v36 = vmul.f32 0.015625, %v819_v5  ;;  %v856_v47 = vmul.f32 0.015625, %v822_v8  ;;  %v1040_v62 = vpack.c.bf16 %v10425_v48, %v10417_v60  ;;  %v10535_v60 = vld [vmem:[%s15431_s4] sm:$0x3] }
 0x1cc   : > { %v8718_v4 = vpop.eup %8717  ;;  %8735 = vrsqrt.f32 %v886_v51  ;;  %v980_v52 = vmul.f32 %v10369_v31, %v941_v33  ;;  %v981_v13 = vmul.f32 %v10369_v31, %v942_v1  ;;  %v935_v18 = vmul.f32 %v8716_v58, %v10246_v21 }
 0x1cd   : > { %v8720_v12 = vpop.eup %8719  ;;  %v887_v16 = vadd.f32 1e-05, %v855_v36  ;;  %v888_v17 = vadd.f32 1e-05, %v856_v47  ;;  %7402 = vmatmul.mubr.msk.bf16.gmra.mxu0 %vm536_vm0, %v1036_v23  ;;  %v943_v37 = vmul.f32 %v8718_v4, %v10294_v24  ;;  %v1010_v29 = vadd.f32 %v10376_v10, %v971_v39 }
 0x1ce   : > { %v825_v40 = vpop.xlane.xlu1 %824  ;;  %1238 = vmatprep.mubr.bf16.mxu0 %v9792_v35  ;;  %v10443_v7 = vadd.f32 %v10376_v10, %v980_v52  ;;  %v10446_v22 = vadd.f32 %v10376_v10, %v981_v13  ;;  %v944_v11 = vmul.f32 %v8720_v12, %v10303_v41  ;;  %v8722_v63 = vpop.eup %8721  ;;  %v934_v41 = vmul.f32 %v8710_v9, %v10243_v43 }
 0x1cf   : > { %8737 = vrsqrt.f32 %v887_v16  ;;  %v857_v27 = vmul.f32 0.015625, %v825_v40  ;;  %v982_v24 = vmul.f32 %v10369_v31, %v943_v37  ;;  %v974_v20 = vmul.f32 %v10369_v31, %v935_v18 }
 0x1d0   : > { %v8724_v14 = vpop.eup %8723  ;;  %8739 = vrsqrt.f32 %v888_v17  ;;  %v1041_v21 = vpack.c.bf16 %v10443_v7, %v10430_v2  ;;  %v983_v34 = vmul.f32 %v10369_v31, %v944_v11  ;;  %v1037_v3 = vpack.c.bf16 %v1011_v56, %v1010_v29 }
 0x1d1   : > { %v8726_v44 = vpop.eup %8725  ;;  %v889_v30 = vadd.f32 1e-05, %v857_v27  ;;  %v10457_v61 = vadd.f32 %v10376_v10, %v982_v24  ;;  %v945_v32 = vmul.f32 %v8724_v14, %v10306_v28  ;;  %v973_v28 = vmul.f32 %v10369_v31, %v934_v41 }
 0x1d2   : > { %v8728_v42 = vpop.eup %8727  ;;  %v10462_v19 = vadd.f32 %v10376_v10, %v983_v34  ;;  %v946_v55 = vmul.f32 %v8726_v44, %v10316_v45  ;;  %v1013_v8 = vadd.f32 %v10376_v10, %v974_v20  ;;  %v936_v4 = vmul.f32 %v8722_v63, %v10255_v59 }
 0x1d3   : > { %8741 = vrsqrt.f32 %v889_v30  ;;  %v1042_v46 = vpack.c.bf16 %v10457_v61, %v10446_v22  ;;  %v984_v43 = vmul.f32 %v10369_v31, %v945_v32  ;;  %v937_v23 = vmul.f32 %v8728_v42, %v10258_v25 }
 0x1d4   : > { %v8730_v9 = vpop.eup %8729  ;;  %v985_v15 = vmul.f32 %v10369_v31, %v946_v55  ;;  %v975_v59 = vmul.f32 %v10369_v31, %v936_v4 }
 0x1d5   : > { %v8732_v50 = vpop.eup %8731  ;;  %7403 = vmatmul.mubr.msk.bf16.gmra.mxu0 %vm536_vm0, %v1037_v3  ;;  %v1023_v51 = vadd.f32 %v10376_v10, %v984_v43  ;;  %v947_v33 = vmul.f32 %v8730_v9, %v10319_v38  ;;  %v1012_v38 = vadd.f32 %v10376_v10, %v973_v28  ;;  %v976_v12 = vmul.f32 %v10369_v31, %v937_v23 }
 0x1d6   : > { %1248 = vmatprep.mubr.bf16.mxu0 %v9792_v35  ;;  %v1024_v45 = vadd.f32 %v10376_v10, %v985_v15  ;;  %v948_v5 = vmul.f32 %v8732_v50, %v10328_v54  ;;  %v1014_v29 = vadd.f32 %v10376_v10, %v975_v59 }
 0x1d7   : > { %v1043_v26 = vpack.c.bf16 %v1023_v51, %v10462_v19  ;;  %v986_v1 = vmul.f32 %v10369_v31, %v947_v33  ;;  %v1038_v13 = vpack.c.bf16 %v1013_v8, %v1012_v38  ;;  %v1015_v63 = vadd.f32 %v10376_v10, %v976_v12 }
 0x1d8   : > { %v8734_v58 = vpop.eup %8733  ;;  %v987_v36 = vmul.f32 %v10369_v31, %v948_v5 }
 0x1d9   : > { %v8736_v47 = vpop.eup %8735  ;;  %v1025_v39 = vadd.f32 %v10376_v10, %v986_v1  ;;  %v949_v54 = vmul.f32 %v8734_v58, %v10331_v49  ;;  %v1039_v30 = vpack.c.bf16 %v1015_v63, %v1014_v29 }
 0x1da   : > { %v1026_v52 = vadd.f32 %v10376_v10, %v987_v36  ;;  %v950_v25 = vmul.f32 %v8736_v47, %v10340_v6 }
 0x1db   : > { %v1044_v16 = vpack.c.bf16 %v1025_v39, %v1024_v45  ;;  %v988_v17 = vmul.f32 %v10369_v31, %v949_v54 }
 0x1dc   : > { %v8738_v37 = vpop.eup %8737  ;;  %v989_v40 = vmul.f32 %v10369_v31, %v950_v25 }
 0x1dd   : > { %v8740_v18 = vpop.eup %8739  ;;  %7404 = vmatmul.mubr.msk.bf16.gmra.mxu0 %vm536_vm0, %v1038_v13  ;;  %v1027_v49 = vadd.f32 %v10376_v10, %v988_v17  ;;  %v951_v22 = vmul.f32 %v8738_v37, %v10343_v53 }
 0x1de   : > { %1258 = vmatprep.mubr.bf16.mxu0 %v9792_v35  ;;  %v1028_v6 = vadd.f32 %v10376_v10, %v989_v40  ;;  %v952_v11 = vmul.f32 %v8740_v18, %v10352_v0 }
 0x1df   : > { %v1045_v27 = vpack.c.bf16 %v1027_v49, %v1026_v52  ;;  %v990_v56 = vmul.f32 %v10369_v31, %v951_v22 }
 0x1e0   : > { %v8742_v24 = vpop.eup %8741  ;;  %v991_v14 = vmul.f32 %v10369_v31, %v952_v11 }
 0x1e1   : > { %v1029_v34 = vadd.f32 %v10376_v10, %v990_v56  ;;  %v953_v53 = vmul.f32 %v8742_v24, %v10355_v57  ;;  %v1058_v57 = vlaneseq }
 0x1e2   : > { %v1030_v44 = vadd.f32 %v10376_v10, %v991_v14 }
 0x1e3   : > { %v1046_v41 = vpack.c.bf16 %v1029_v34, %v1028_v6  ;;  %v992_v0 = vmul.f32 %v10369_v31, %v953_v53  ;;  %v10529_v31 = vshrl.u32 %v1058_v57, 7 }
 0x1e5   : > { %7405 = vmatmul.mubr.msk.bf16.gmra.mxu0 %vm536_vm0, %v1039_v30  ;;  %v1031_v61 = vadd.f32 %v10376_v10, %v992_v0  ;;  %v1060_v10 = vsub.s32 0, %v10529_v31 }
 0x1e6   : > { %1268 = vmatprep.mubr.bf16.mxu0 %v9792_v35 }
 0x1e7   : > { %v1047_v32 = vpack.c.bf16 %v1031_v61, %v1030_v44  ;;  %v10538_v2 = vrot.slane %v10535_v60, %v1060_v10 }
 0x1ed   : > { %7406 = vmatmul.mubr.msk.bf16.gmra.mxu0 %vm536_vm0, %v1040_v62 }
 0x1ee   : > { %1278 = vmatprep.mubr.bf16.mxu0 %v9792_v35 }
 0x1f5   : > { %7407 = vmatmul.mubr.msk.bf16.gmra.mxu0 %vm536_vm0, %v1041_v21 }
 0x1f6   : > { %1288 = vmatprep.mubr.bf16.mxu0 %v9792_v35 }
 0x1fd   : > { %7408 = vmatmul.mubr.msk.bf16.gmra.mxu0 %vm536_vm0, %v1042_v46 }
 0x1fe   : > { %1298 = vmatprep.mubr.bf16.mxu0 %v9792_v35 }
 0x205   : > { %7409 = vmatmul.mubr.msk.bf16.gmra.mxu0 %vm536_vm0, %v1043_v26 }
 0x206   : > { %1308 = vmatprep.mubr.bf16.mxu0 %v9792_v35 }
 0x20d   : > { %7410 = vmatmul.mubr.msk.bf16.gmra.mxu0 %vm536_vm0, %v1044_v16 }
 0x20e   : > { %1318 = vmatprep.mubr.bf16.mxu0 %v9792_v35 }
 0x215   : > { %7411 = vmatmul.mubr.msk.bf16.gmra.mxu0 %vm536_vm0, %v1045_v27 }
 0x216   : > { %1328 = vmatprep.mubr.bf16.mxu0 %v9792_v35 }
 0x21d   : > { %7412 = vmatmul.mubr.msk.bf16.gmra.mxu0 %vm536_vm0, %v1046_v41 }
 0x21e   : > { %1338 = vmatprep.mubr.bf16.mxu0 %v9792_v35 }
 0x225   : > { %7413 = vmatmul.mubr.msk.bf16.gmra.mxu0 %vm536_vm0, %v1047_v32 }
 0x26d   : > { %v1190_v48 = vpop.f32.mrf.mxu0 }
 0x26e   : > { %v1191_v35 = vadd.f32 %v1190_v48, %v10538_v2 }
 0x26f   : > { %v10540_v62 = vpop.f32.mrf.mxu0 }
 0x271   : > { %v1194_v7 = vpop.f32.mrf.mxu0 }
 0x272   : > { %v1195_v21 = vadd.f32 %v1194_v7, %v10538_v2 }
 0x273   : > { %v10544_v42 = vpop.f32.mrf.mxu0 }
 0x274   : > { %v10546_v20 = vpack.c.bf16 %v1195_v21, %v1191_v35 }
 0x275   : > { %v1200_v19 = vpop.f32.mrf.mxu0 }
 0x276   : > { %1397 = vrot.lane.b32.xlu0 %v10546_v20, %s9793_s29  ;;  %7543 = vmatprep.mubr.msk.bf16.mxu1 %vm1429_vm1, %v10546_v20  ;;  %v1201_v46 = vadd.f32 %v1200_v19, %v10538_v2 }
 0x277   : > { %v10552_v55 = vpop.f32.mrf.mxu0 }
 0x279   : > { %v1204_v3 = vpop.f32.mrf.mxu0 }
 0x27a   : > { %v1205_v43 = vadd.f32 %v1204_v3, %v10538_v2  ;;  %2424 = vrot.lane.b32.xlu0 %v10546_v20, %s9794_s30 }
 0x27b   : > { %v10558_v9 = vpop.f32.mrf.mxu0 }
 0x27c   : > { %v10560_v15 = vpack.c.bf16 %v1205_v43, %v1201_v46 }
 0x27d   : > { %v1210_v50 = vpop.f32.mrf.mxu0 }
 0x27e   : > { %2392 = vrot.lane.b32.xlu0 %v10546_v20, %s9795_s19  ;;  %2394 = vrot.lane.b32.xlu1 %v10560_v15, %s9795_s19  ;;  %v1211_v26 = vadd.f32 %v1210_v50, %v10538_v2 }
 0x27f   : > { %v10566_v28 = vpop.f32.mrf.mxu0 }
 0x281   : > { %v1214_v51 = vpop.f32.mrf.mxu0 }
 0x282   : > { %3514 = vrot.lane.b32.xlu0 %v10546_v20, %s9796_s24  ;;  %3516 = vrot.lane.b32.xlu1 %v10560_v15, %s9796_s24  ;;  %v1215_v8 = vadd.f32 %v1214_v51, %v10538_v2 }
 0x283   : > { %v10572_v33 = vpop.f32.mrf.mxu0 }
 0x284   : > { %v10588_v58 = vpack.c.bf16 %v1215_v8, %v1211_v26 }
 0x285   : > { %v1220_v45 = vpop.f32.mrf.mxu0 }
 0x286   : > { %3482 = vrot.lane.b32.xlu0 %v10546_v20, %s9797_s20  ;;  %4590 = vrot.lane.b32.xlu1 %v10560_v15, %s9798_s3  ;;  %v1221_v38 = vadd.f32 %v1220_v45, %v10538_v2 }
 0x287   : > { %v10578_v5 = vpop.f32.mrf.mxu0 }
 0x289   : > { %v1224_v23 = vpop.f32.mrf.mxu0 }
 0x28a   : > { %4588 = vrot.lane.b32.xlu0 %v10546_v20, %s9798_s3  ;;  %4558 = vrot.lane.b32.xlu1 %v10560_v15, %s9799_s5  ;;  %v1225_v36 = vadd.f32 %v1224_v23, %v10538_v2 }
 0x28b   : > { %v10586_v1 = vpop.f32.mrf.mxu0 }
 0x28c   : > { %v10598_v39 = vpack.c.bf16 %v1225_v36, %v1221_v38 }
 0x28d   : > { %v1230_v47 = vpop.f32.mrf.mxu0 }
 0x28e   : > { %4556 = vrot.lane.b32.xlu0 %v10546_v20, %s9799_s5  ;;  %3486 = vrot.lane.b32.xlu1 %v10588_v58, %s9797_s20  ;;  %v1231_v40 = vadd.f32 %v1230_v47, %v10538_v2 }
 0x28f   : > { %v10596_v4 = vpop.f32.mrf.mxu0 }
 0x291   : > { %v1234_v54 = vpop.f32.mrf.mxu0 }
 0x292   : > { %1399 = vrot.lane.b32.xlu0 %v10560_v15, %s9793_s29  ;;  %2398 = vrot.lane.b32.xlu1 %v10598_v39, %s9795_s19  ;;  %v1235_v17 = vadd.f32 %v1234_v54, %v10538_v2 }
 0x293   : > { %v10604_v52 = vpop.f32.mrf.mxu0 }
 0x294   : > { %v10626_v59 = vpack.c.bf16 %v1235_v17, %v1231_v40 }
 0x295   : > { %v1240_v25 = vpop.f32.mrf.mxu0 }
 0x296   : > { %2426 = vrot.lane.b32.xlu0 %v10560_v15, %s9794_s30  ;;  %3520 = vrot.lane.b32.xlu1 %v10598_v39, %s9796_s24  ;;  %v1241_v6 = vadd.f32 %v1240_v25, %v10538_v2 }
 0x297   : > { %v10610_v13 = vpop.f32.mrf.mxu0 }
 0x299   : > { %v1244_v12 = vpop.f32.mrf.mxu0 }
 0x29a   : > { %3484 = vrot.lane.b32.xlu0 %v10560_v15, %s9797_s20  ;;  %4594 = vrot.lane.b32.xlu1 %v10598_v39, %s9798_s3  ;;  %v1245_v49 = vadd.f32 %v1244_v12, %v10538_v2 }
 0x29b   : > { %v10616_v16 = vpop.f32.mrf.mxu0 }
 0x29c   : > { %v10636_v63 = vpack.c.bf16 %v1245_v49, %v1241_v6 }
 0x29d   : > { %v1250_v37 = vpop.f32.mrf.mxu0 }
 0x29e   : > { %1401 = vrot.lane.b32.xlu0 %v10588_v58, %s9793_s29  ;;  %4562 = vrot.lane.b32.xlu1 %v10598_v39, %s9799_s5  ;;  %v1251_v30 = vadd.f32 %v1250_v37, %v10538_v2 }
 0x29f   : > { %v10624_v18 = vpop.f32.mrf.mxu0 }
 0x2a1   : > { %v1254_v22 = vpop.f32.mrf.mxu0 }
 0x2a2   : > { %2428 = vrot.lane.b32.xlu0 %v10588_v58, %s9794_s30  ;;  %3490 = vrot.lane.b32.xlu1 %v10626_v59, %s9797_s20  ;;  %v1255_v53 = vadd.f32 %v1254_v22, %v10538_v2 }
 0x2a3   : > { %v10634_v11 = vpop.f32.mrf.mxu0 }
 0x2a4   : > { %v10664_v0 = vpack.c.bf16 %v1255_v53, %v1251_v30 }
 0x2a5   : > { %v1260_v27 = vpop.f32.mrf.mxu0 }
 0x2a6   : > { %2396 = vrot.lane.b32.xlu0 %v10588_v58, %s9795_s19  ;;  %2402 = vrot.lane.b32.xlu1 %v10636_v63, %s9795_s19  ;;  %v1261_v48 = vadd.f32 %v1260_v27, %v10538_v2 }
 0x2a7   : > { %v10642_v56 = vpop.f32.mrf.mxu0 }
 0x2a9   : > { %v1264_v24 = vpop.f32.mrf.mxu0 }
 0x2aa   : > { %3518 = vrot.lane.b32.xlu0 %v10588_v58, %s9796_s24  ;;  %3524 = vrot.lane.b32.xlu1 %v10636_v63, %s9796_s24  ;;  %v1265_v57 = vadd.f32 %v1264_v24, %v10538_v2 }
 0x2ab   : > { %v10648_v14 = vpop.f32.mrf.mxu0 }
 0x2ac   : > { %v10680_v35 = vpack.c.bf16 %v1265_v57, %v1261_v48 }
 0x2ad   : > { %v1270_v29 = vpop.f32.mrf.mxu0 }
 0x2ae   : > { %4592 = vrot.lane.b32.xlu0 %v10588_v58, %s9798_s3  ;;  %4598 = vrot.lane.b32.xlu1 %v10636_v63, %s9798_s3  ;;  %v1271_v8 = vadd.f32 %v1270_v29, %v10538_v2 }
 0x2af   : > { %v10654_v34 = vpop.f32.mrf.mxu0 }
 0x2b1   : > { %v1274_v44 = vpop.f32.mrf.mxu0 }
 0x2b2   : > { %4560 = vrot.lane.b32.xlu0 %v10588_v58, %s9799_s5  ;;  %4566 = vrot.lane.b32.xlu1 %v10636_v63, %s9799_s5  ;;  %v1275_v51 = vadd.f32 %v1274_v44, %v10538_v2 }
 0x2b3   : > { %v10662_v41 = vpop.f32.mrf.mxu0 }
 0x2b4   : > { %v10716_v26 = vpack.c.bf16 %v1275_v51, %v1271_v8 }
 0x2b5   : > { %v1280_v61 = vpop.f32.mrf.mxu0 }
 0x2b6   : > { %1403 = vrot.lane.b32.xlu0 %v10598_v39, %s9793_s29  ;;  %1409 = vrot.lane.b32.xlu1 %v10664_v0, %s9793_s29  ;;  %v1281_v44 = vadd.f32 %v1280_v61, %v10538_v2 }
 0x2b7   : > { %v10670_v32 = vpop.f32.mrf.mxu0 }
 0x2b9   : > { %v1284_v10 = vpop.f32.mrf.mxu0 }
 0x2ba   : > { %2430 = vrot.lane.b32.xlu0 %v10598_v39, %s9794_s30  ;;  %3494 = vrot.lane.b32.xlu1 %v10664_v0, %s9797_s20  ;;  %v1285_v24 = vadd.f32 %v1284_v10, %v10538_v2 }
 0x2bb   : > { %v10678_v7 = vpop.f32.mrf.mxu0 }
 0x2bc   : > { %v10752_v57 = vpack.c.bf16 %v1285_v24, %v1281_v44 }
 0x2bd   : > { %v10682_v21 = vpop.f32.mrf.mxu0 }
 0x2be   : > { %3488 = vrot.lane.b32.xlu0 %v10598_v39, %s9797_s20  ;;  %2406 = vrot.lane.b32.xlu1 %v10680_v35, %s9795_s19 }
 0x2bf   : > { %v10688_v19 = vpop.f32.mrf.mxu0 }
 0x2c1   : > { %v10690_v3 = vpop.f32.mrf.mxu0 }
 0x2c2   : > { %1405 = vrot.lane.b32.xlu0 %v10626_v59, %s9793_s29  ;;  %3528 = vrot.lane.b32.xlu1 %v10680_v35, %s9796_s24 }
 0x2c3   : > { %v10696_v46 = vpop.f32.mrf.mxu0 }
 0x2c5   : > { %v10698_v43 = vpop.f32.mrf.mxu0 }
 0x2c6   : > { %2432 = vrot.lane.b32.xlu0 %v10626_v59, %s9794_s30  ;;  %4602 = vrot.lane.b32.xlu1 %v10680_v35, %s9798_s3 }
 0x2c7   : > { %v10704_v50 = vpop.f32.mrf.mxu0 }
 0x2c9   : > { %v10707_v45 = vpop.f32.mrf.mxu0 }
 0x2ca   : > { %2400 = vrot.lane.b32.xlu0 %v10626_v59, %s9795_s19  ;;  %4570 = vrot.lane.b32.xlu1 %v10680_v35, %s9799_s5 }
 0x2cb   : > { %v10714_v23 = vpop.f32.mrf.mxu0 }
 0x2cd   : > { %v1310_v36 = vpop.f32.mrf.mxu0 }
 0x2ce   : > { %3522 = vrot.lane.b32.xlu0 %v10626_v59, %s9796_s24  ;;  %1413 = vrot.lane.b32.xlu1 %v10716_v26, %s9793_s29  ;;  %v1311_v54 = vadd.f32 %v1310_v36, %v10538_v2  ;;  %v1064_v36 = vsub.s32 1, %v10529_v31 }
 0x2cf   : > { %v10722_v47 = vpop.f32.mrf.mxu0 }
 0x2d1   : > { %v1314_v38 = vpop.f32.mrf.mxu0 }
 0x2d2   : > { %v1315_v25 = vadd.f32 %v1314_v38, %v10538_v2  ;;  %4596 = vrot.lane.b32.xlu0 %v10626_v59, %s9798_s3  ;;  %2440 = vrot.lane.b32.xlu1 %v10716_v26, %s9794_s30 }
 0x2d3   : > { %v10730_v12 = vpop.f32.mrf.mxu0 }
 0x2d4   : > { %v10732_v17 = vpack.c.bf16 %v1315_v25, %v1311_v54  ;;  %v10768_v25 = vrot.slane %v10535_v60, %v1064_v36 }
 0x2d5   : > { %v1320_v37 = vpop.f32.mrf.mxu0 }
 0x2d6   : > { %15858 = vst [vmem:[#allocation13_spill] sm:$0xff] %v10732_v17  ;;  %4564 = vrot.lane.b32.xlu0 %v10626_v59, %s9799_s5  ;;  %3530 = vrot.lane.b32.xlu1 %v10716_v26, %s9796_s24  ;;  %v1321_v22 = vadd.f32 %v1320_v37, %v10538_v2  ;;  %v1267_v31 = vadd.f32 %v10648_v14, %v10768_v25 }
 0x2d7   : > { %v1322_v40 = vpop.f32.mrf.mxu0  ;;  %v1263_v44 = vadd.f32 %v10642_v56, %v10768_v25  ;;  %v1257_v14 = vadd.f32 %v10634_v11, %v10768_v25  ;;  %v1295_v56 = vadd.f32 %v10690_v3, %v10538_v2  ;;  %v1291_v11 = vadd.f32 %v10682_v21, %v10538_v2 }
 0x2d8   : > { %v1247_v3 = vadd.f32 %v10616_v16, %v10768_v25  ;;  %v1237_v16 = vadd.f32 %v10604_v52, %v10768_v25 }
 0x2d9   : > { %v1324_v49 = vpop.f32.mrf.mxu0 }
 0x2da   : > { %v1325_v6 = vadd.f32 %v1324_v49, %v10538_v2  ;;  %1407 = vrot.lane.b32.xlu0 %v10636_v63, %s9793_s29  ;;  %3498 = vrot.lane.b32.xlu1 %v10716_v26, %s9797_s20 }
 0x2db   : > { %v1326_v27 = vpop.f32.mrf.mxu0 }
 0x2dc   : > { %v10745_v29 = vpack.c.bf16 %v1325_v6, %v1321_v22 }
 0x2dd   : > { %v1330_v53 = vpop.f32.mrf.mxu0 }
 0x2de   : > { %15859 = vst [vmem:[#allocation14_spill] sm:$0xff] %v10745_v29  ;;  %2434 = vrot.lane.b32.xlu0 %v10636_v63, %s9794_s30  ;;  %4604 = vrot.lane.b32.xlu1 %v10716_v26, %s9798_s3  ;;  %v1331_v51 = vadd.f32 %v1330_v53, %v10538_v2 }
 0x2df   : > { %v1332_v30 = vpop.f32.mrf.mxu0 }
 0x2e0   : > { %v1333_v36 = vadd.f32 %v1332_v30, %v10768_v25 }
 0x2e1   : > { %v1334_v48 = vpop.f32.mrf.mxu0 }
 0x2e2   : > { %v1335_v8 = vadd.f32 %v1334_v48, %v10538_v2  ;;  %3492 = vrot.lane.b32.xlu0 %v10636_v63, %s9797_s20  ;;  %1415 = vrot.lane.b32.xlu1 %v10752_v57, %s9793_s29 }
 0x2e3   : > { %v1336_v61 = vpop.f32.mrf.mxu0 }
 0x2e4   : > { %v10760_v10 = vpack.c.bf16 %v1335_v8, %v1331_v51  ;;  %v1337_v48 = vadd.f32 %v1336_v61, %v10768_v25  ;;  %v10793_v8 = vpack.c.bf16 %v1267_v31, %v1263_v44  ;;  %v1253_v61 = vadd.f32 %v10624_v18, %v10768_v25 }
 0x2e5   : > { %v1340_v38 = vpop.f32.mrf.mxu0  ;;  %v1323_v18 = vadd.f32 %v1322_v40, %v10768_v25  ;;  %v1317_v31 = vadd.f32 %v10730_v12, %v10768_v25 }
 0x2e6   : > { %15860 = vst [vmem:[#allocation15_spill] sm:$0xff] %v10760_v10  ;;  %2436 = vrot.lane.b32.xlu0 %v10664_v0, %s9794_s30  ;;  %2442 = vrot.lane.b32.xlu1 %v10752_v57, %s9794_s30  ;;  %v1341_v49 = vadd.f32 %v1340_v38, %v10538_v2  ;;  %15863 = vst [vmem:[#allocation18_spill] sm:$0xff] %v10793_v8  ;;  %v10815_v30 = vpack.c.bf16 %v1257_v14, %v1253_v61 }
 0x2e7   : > { %v1342_v54 = vpop.f32.mrf.mxu0  ;;  %v1223_v14 = vadd.f32 %v10578_v5, %v10768_v25  ;;  %v1293_v5 = vadd.f32 %v10688_v19, %v10768_v25 }
 0x2e8   : > { %v1343_v24 = vadd.f32 %v1342_v54, %v10768_v25  ;;  %v1327_v54 = vadd.f32 %v1326_v27, %v10768_v25  ;;  %15865 = vst [vmem:[#allocation20_spill] sm:$0xff] %v10815_v30  ;;  %v10819_v27 = vpack.c.bf16 %v1295_v56, %v1291_v11  ;;  %v1287_v11 = vadd.f32 %v10678_v7, %v10768_v25 }
 0x2e9   : > { %v1344_v37 = vpop.f32.mrf.mxu0  ;;  %v1305_v7 = vadd.f32 %v10707_v45, %v10538_v2 }
 0x2ea   : > { %v1345_v22 = vadd.f32 %v1344_v37, %v10538_v2  ;;  %2404 = vrot.lane.b32.xlu0 %v10664_v0, %s9795_s19  ;;  %2410 = vrot.lane.b32.xlu1 %v10752_v57, %s9795_s19  ;;  %v10804_v37 = vpack.c.bf16 %v1337_v48, %v1333_v36  ;;  %v1297_v36 = vadd.f32 %v10696_v46, %v10768_v25 }
 0x2eb   : > { %v1346_v6 = vpop.f32.mrf.mxu0 }
 0x2ec   : > { %v10779_v53 = vpack.c.bf16 %v1345_v22, %v1341_v49  ;;  %v1347_v60 = vadd.f32 %v1346_v6, %v10768_v25  ;;  %15864 = vst [vmem:[#allocation19_spill] sm:$0xff] %v10804_v37  ;;  %v10821_v49 = vpop.permute.xlu0 %1397  ;;  %v1243_v22 = vadd.f32 %v10610_v13, %v10768_v25  ;;  %v10829_v6 = vpack.c.bf16 %v1327_v54, %v1323_v18 }
 0x2ed   : > { %v1313_v13 = vadd.f32 %v10722_v47, %v10768_v25  ;;  %v1227_v47 = vadd.f32 %v10586_v1, %v10768_v25  ;;  %v1217_v1 = vadd.f32 %v10572_v33, %v10768_v25  ;;  %v1213_v54 = vadd.f32 %v10566_v28, %v10768_v25 }
 0x2ee   : > { %15861 = vst [vmem:[#allocation16_spill] sm:$0xff] %v10779_v53  ;;  %v10785_v51 = vpack.c.bf16 %v1347_v60, %v1343_v24  ;;  %3526 = vrot.lane.b32.xlu0 %v10664_v0, %s9796_s24  ;;  %4606 = vrot.lane.b32.xlu1 %v10752_v57, %s9798_s3  ;;  %15867 = vst [vmem:[#allocation22_spill] sm:$0xff] %v10829_v6  ;;  %v10838_v40 = vpack.c.bf16 %v1247_v3, %v1243_v22 }
 0x2ef   : > { %v1233_v24 = vadd.f32 %v10596_v4, %v10768_v25  ;;  %v1307_v60 = vadd.f32 %v10714_v23, %v10768_v25  ;;  %v10849_v44 = vpack.c.bf16 %v1317_v31, %v1313_v13  ;;  %v1303_v4 = vadd.f32 %v10704_v50, %v10768_v25 }
 0x2f0   : > { %15862 = vst [vmem:[#allocation17_spill] sm:$0xff] %v10785_v51  ;;  %v10798_v38 = vpop.permute.xlu1 %2394  ;;  %7575 = vmatprep.subr.bf16.mxu0 %v10785_v51  ;;  %15868 = vst [vmem:[#allocation23_spill] sm:$0xff] %v10838_v40  ;;  %v10852_v52 = vpop.permute.xlu0 %2424  ;;  %v10880_v50 = vpack.c.bf16 %v1227_v47, %v1223_v14  ;;  %v10893_v3 = vpack.c.bf16 %v1297_v36, %v1293_v5  ;;  %v1207_v33 = vadd.f32 %v10558_v9, %v10768_v25 }
 0x2f1   : > { %7576 = vmatpush3.bf16.msra.mxu0 %v10793_v8  ;;  %15870 = vst [vmem:[#allocation25_spill] sm:$0xff] %v10849_v44  ;;  %v10860_v48 = vpack.c.bf16 %v1237_v16, %v1233_v24  ;;  %v10871_v56 = vpack.c.bf16 %v1307_v60, %v1303_v4  ;;  %v10902_v19 = vpack.c.bf16 %v1217_v1, %v1213_v54 }
 0x2f2   : > { %4600 = vrot.lane.b32.xlu0 %v10664_v0, %s9798_s3  ;;  %4574 = vrot.lane.b32.xlu1 %v10752_v57, %s9799_s5  ;;  %15874 = vst [vmem:[#allocation29_spill] sm:$0xff] %v10880_v50  ;;  %15876 = vst [vmem:[#allocation31_spill] sm:$0xff] %v10893_v3  ;;  %v1283_v28 = vadd.f32 %v10670_v32, %v10768_v25  ;;  %v1203_v22 = vadd.f32 %v10552_v55, %v10768_v25 }
 0x2f3   : > { %7577 = vmatprep.subr.bf16.mxu0 %v10804_v37  ;;  %15871 = vst [vmem:[#allocation26_spill] sm:$0xff] %v10860_v48  ;;  %15873 = vst [vmem:[#allocation28_spill] sm:$0xff] %v10871_v56  ;;  %v1277_v31 = vadd.f32 %v10662_v41, %v10768_v25  ;;  %v1301_v9 = vadd.f32 %v10698_v43, %v10538_v2  ;;  %v1197_v55 = vadd.f32 %v10544_v42, %v10768_v25 }
 0x2f4   : > { %v10823_v21 = vpop.permute.xlu1 %3516  ;;  %v10885_v46 = vpop.permute.xlu0 %2392  ;;  %15877 = vst [vmem:[#allocation32_spill] sm:$0xff] %v10902_v19  ;;  %v10915_v16 = vpack.c.bf16 %v1287_v11, %v1283_v28  ;;  %v10928_v45 = vpack.c.bf16 %v1207_v33, %v1203_v22  ;;  %v1273_v41 = vadd.f32 %v10654_v34, %v10768_v25  ;;  %v1193_v43 = vadd.f32 %v10540_v62, %v10768_v25 }
 0x2f5   : > { %15866 = vst [vmem:[#allocation21_spill] sm:$0xff] %v10823_v21  ;;  %7578 = vmatpush3.bf16.msra.mxu0 %v10815_v30  ;;  %v10933_v13 = vpack.c.bf16 %v1305_v7, %v1301_v9 }
 0x2f6   : > { %4568 = vrot.lane.b32.xlu0 %v10664_v0, %s9799_s5  ;;  %1417 = vrot.lane.b32.xlu1 %v10819_v27, %s9793_s29  ;;  %15878 = vst [vmem:[#allocation33_spill] sm:$0xff] %v10915_v16  ;;  %15880 = vst [vmem:[#allocation35_spill] sm:$0xff] %v10928_v45  ;;  %v10939_v24 = vpack.c.bf16 %v1277_v31, %v1273_v41  ;;  %v10946_v42 = vpack.c.bf16 %v1197_v55, %v1193_v43 }
 0x2f7   : > { %7579 = vmatprep.subr.bf16.mxu0 %v10829_v6 }
 0x2f8   : > { %v10843_v12 = vpop.permute.xlu1 %4590  ;;  %v10920_v32 = vpop.permute.xlu0 %3514  ;;  %15881 = vst [vmem:[#allocation36_spill] sm:$0xff] %v10939_v24  ;;  %15882 = vst [vmem:[#allocation37_spill] sm:$0xff] %v10946_v42 }
 0x2f9   : > { %15869 = vst [vmem:[#allocation24_spill] sm:$0xff] %v10843_v12  ;;  %7580 = vmatpush3.bf16.msra.mxu0 %v10838_v40  ;;  %15879 = vst [vmem:[#allocation34_spill] sm:$0xff] %v10920_v32 }
 0x2fa   : > { %1411 = vrot.lane.b32.xlu0 %v10680_v35, %s9793_s29  ;;  %2444 = vrot.lane.b32.xlu1 %v10819_v27, %s9794_s30 }
 0x2fb   : > { %7581 = vmatprep.subr.bf16.mxu0 %v10849_v44 }
 0x2fc   : > { %v10865_v23 = vpop.permute.xlu1 %4558  ;;  %v10949_v34 = vpop.permute.xlu0 %3482 }
 0x2fd   : > { %15872 = vst [vmem:[#allocation27_spill] sm:$0xff] %v10865_v23  ;;  %7582 = vmatpush3.bf16.msra.mxu0 %v10860_v48  ;;  %15883 = vst [vmem:[#allocation38_spill] sm:$0xff] %v10949_v34 }
 0x2fe   : > { %2438 = vrot.lane.b32.xlu0 %v10680_v35, %s9794_s30  ;;  %3534 = vrot.lane.b32.xlu1 %v10819_v27, %s9796_s24 }
 0x2ff   : > { %7583 = vmatprep.subr.bf16.mxu0 %v10871_v56 }
 0x300   : > { %v10887_v61 = vpop.permute.xlu1 %3486  ;;  %v10960_v25 = vpop.permute.xlu0 %4588 }
 0x301   : > { %15875 = vst [vmem:[#allocation30_spill] sm:$0xff] %v10887_v61  ;;  %7584 = vmatpush3.bf16.msra.mxu0 %v10880_v50  ;;  %15886 = vst [vmem:[#allocation41_spill] sm:$0xff] %v10960_v25 }
 0x302   : > { %3496 = vrot.lane.b32.xlu0 %v10680_v35, %s9797_s20  ;;  %3502 = vrot.lane.b32.xlu1 %v10819_v27, %s9797_s20 }
 0x303   : > { %7585 = vmatprep.subr.bf16.mxu0 %v10893_v3 }
 0x304   : > { %v10909_v18 = vpop.permute.xlu1 %2398  ;;  %v10972_v4 = vpop.permute.xlu0 %4556 }
 0x305   : > { %7586 = vmatpush3.bf16.msra.mxu0 %v10902_v19  ;;  %15888 = vst [vmem:[#allocation43_spill] sm:$0xff] %v10972_v4 }
 0x306   : > { %2408 = vrot.lane.b32.xlu0 %v10716_v26, %s9795_s19  ;;  %4608 = vrot.lane.b32.xlu1 %v10819_v27, %s9798_s3 }
 0x307   : > { %7587 = vmatprep.subr.bf16.mxu0 %v10915_v16 }
 0x308   : > { %v10935_v2 = vpop.permute.xlu1 %3520  ;;  %v10982_v1 = vpop.permute.xlu0 %1399 }
 0x309   : > { %7588 = vmatpush3.bf16.msra.mxu0 %v10928_v45 }
 0x30a   : > { %4572 = vrot.lane.b32.xlu0 %v10716_v26, %s9799_s5  ;;  %1419 = vrot.lane.b32.xlu1 %v10933_v13, %s9793_s29 }
 0x30b   : > { %7589 = vmatprep.subr.bf16.mxu0 %v10939_v24 }
 0x30c   : > { %v10951_v60 = vpop.permute.xlu1 %4594  ;;  %v10994_v54 = vpop.permute.xlu0 %2426 }
 0x30d   : > { %15884 = vst [vmem:[#allocation39_spill] sm:$0xff] %v10951_v60  ;;  %7590 = vmatpush3.bf16.msra.mxu0 %v10946_v42 }
 0x30e   : > { %3532 = vrot.lane.b32.xlu0 %v10752_v57, %s9796_s24  ;;  %2446 = vrot.lane.b32.xlu1 %v10933_v13, %s9794_s30 }
 0x310   : > { %v10958_v62 = vpop.permute.xlu1 %4562  ;;  %v11004_v28 = vpop.permute.xlu0 %3484 }
 0x311   : > { %15885 = vst [vmem:[#allocation40_spill] sm:$0xff] %v10958_v62  ;;  %15892 = vst [vmem:[#allocation47_spill] sm:$0xff] %v11004_v28 }
 0x312   : > { %3500 = vrot.lane.b32.xlu0 %v10752_v57, %s9797_s20  ;;  %2414 = vrot.lane.b32.xlu1 %v10933_v13, %s9795_s19 }
 0x314   : > { %v10966_v47 = vpop.permute.xlu1 %3490  ;;  %v11016_v22 = vpop.permute.xlu0 %1401 }
 0x315   : > { %15887 = vst [vmem:[#allocation42_spill] sm:$0xff] %v10966_v47 }
 0x316   : > { %2412 = vrot.lane.b32.xlu0 %v10819_v27, %s9795_s19  ;;  %1421 = vrot.lane.b32.xlu1 %v10732_v17, %s9793_s29 }
 0x318   : > { %v10974_v14 = vpop.permute.xlu1 %2402  ;;  %v11026_v55 = vpop.permute.xlu0 %2428 }
 0x319   : > { %15889 = vst [vmem:[#allocation44_spill] sm:$0xff] %v10974_v14 }
 0x31a   : > { %3536 = vrot.lane.b32.xlu0 %v10933_v13, %s9796_s24  ;;  %2448 = vrot.lane.b32.xlu1 %v10732_v17, %s9794_s30 }
 0x31c   : > { %v10980_v36 = vpop.permute.xlu1 %3524  ;;  %v11038_v43 = vpop.permute.xlu0 %2396 }
 0x31e   : > { %3504 = vrot.lane.b32.xlu0 %v10933_v13, %s9797_s20  ;;  %3538 = vrot.lane.b32.xlu1 %v10732_v17, %s9796_s24 }
 0x320   : > { %v10988_v5 = vpop.permute.xlu1 %4598  ;;  %v11048_v16 = vpop.permute.xlu0 %3518 }
 0x321   : > { %15890 = vst [vmem:[#allocation45_spill] sm:$0xff] %v10988_v5  ;;  %15897 = vst [vmem:[#allocation52_spill] sm:$0xff] %v11048_v16 }
 0x322   : > { %4610 = vrot.lane.b32.xlu0 %v10933_v13, %s9798_s3  ;;  %3506 = vrot.lane.b32.xlu1 %v10732_v17, %s9797_s20 }
 0x324   : > { %v10996_v11 = vpop.permute.xlu1 %4566  ;;  %v11058_v19 = vpop.permute.xlu0 %4592 }
 0x325   : > { %15891 = vst [vmem:[#allocation46_spill] sm:$0xff] %v10996_v11  ;;  %15898 = vst [vmem:[#allocation53_spill] sm:$0xff] %v11058_v19 }
 0x326   : > { %2416 = vrot.lane.b32.xlu0 %v10732_v17, %s9795_s19  ;;  %1423 = vrot.lane.b32.xlu1 %v10745_v29, %s9793_s29 }
 0x328   : > { %v11002_v33 = vpop.permute.xlu1 %1409  ;;  %v11066_v56 = vpop.permute.xlu0 %4560 }
 0x329   : > { %15901 = vst [vmem:[#allocation56_spill] sm:$0xff] %v11066_v56 }
 0x32a   : > { %4612 = vrot.lane.b32.xlu0 %v10732_v17, %s9798_s3  ;;  %2450 = vrot.lane.b32.xlu1 %v10745_v29, %s9794_s30 }
 0x32c   : > { %v11010_v7 = vpop.permute.xlu1 %3494  ;;  %v11074_v44 = vpop.permute.xlu0 %1403 }
 0x32d   : > { %15893 = vst [vmem:[#allocation48_spill] sm:$0xff] %v11010_v7 }
 0x32e   : > { %3540 = vrot.lane.b32.xlu0 %v10745_v29, %s9796_s24  ;;  %2418 = vrot.lane.b32.xlu1 %v10745_v29, %s9795_s19 }
 0x330   : > { %v11018_v31 = vpop.permute.xlu1 %2406  ;;  %v11082_v30 = vpop.permute.xlu0 %2430 }
 0x331   : > { %15894 = vst [vmem:[#allocation49_spill] sm:$0xff] %v11018_v31 }
 0x332   : > { %4614 = vrot.lane.b32.xlu1 %v10745_v29, %s9798_s3  ;;  %2420 = vrot.lane.b32.xlu0 %v10760_v10, %s9795_s19 }
 0x334   : > { %v11024_v9 = vpop.permute.xlu1 %3528  ;;  %v11088_v8 = vpop.permute.xlu0 %3488 }
 0x335   : > { %15904 = vst [vmem:[#allocation59_spill] sm:$0xff] %v11088_v8 }
 0x336   : > { %3508 = vrot.lane.b32.xlu1 %v10745_v29, %s9797_s20  ;;  %4616 = vrot.lane.b32.xlu0 %v10760_v10, %s9798_s3 }
 0x338   : > { %v11032_v41 = vpop.permute.xlu1 %4602  ;;  %v1406_v11 = vpop.permute.xlu0 %1405 }
 0x339   : > { %15895 = vst [vmem:[#allocation50_spill] sm:$0xff] %v11032_v41 }
 0x33a   : > { %1425 = vrot.lane.b32.xlu1 %v10760_v10, %s9793_s29  ;;  %3510 = vrot.lane.b32.xlu0 %v10760_v10, %s9797_s20 }
 0x33c   : > { %v11040_v42 = vpop.permute.xlu1 %4570  ;;  %v11094_v56 = vpop.permute.xlu0 %2432 }
 0x33d   : > { %15896 = vst [vmem:[#allocation51_spill] sm:$0xff] %v11040_v42 }
 0x33e   : > { %2452 = vrot.lane.b32.xlu1 %v10760_v10, %s9794_s30  ;;  %4576 = vrot.lane.b32.xlu0 %v10819_v27, %s9799_s5 }
 0x340   : > { %v11046_v24 = vpop.permute.xlu1 %1413 }
 0x342   : > { %3542 = vrot.lane.b32.xlu1 %v10760_v10, %s9796_s24  ;;  %3544 = vrot.lane.b32.xlu0 %v10779_v53, %s9796_s24 }
 0x344   : > { %v11054_v45 = vpop.permute.xlu1 %2440 }
 0x346   : > { %4578 = vrot.lane.b32.xlu1 %v10933_v13, %s9799_s5 }
 0x348   : > { %v11060_v3 = vpop.permute.xlu1 %3530 }
 0x349   : > { %15899 = vst [vmem:[#allocation54_spill] sm:$0xff] %v11060_v3 }
 0x34a   : > { %1427 = vrot.lane.b32.xlu1 %v10779_v53, %s9793_s29 }
 0x34c   : > { %v11064_v50 = vpop.permute.xlu1 %3498 }
 0x34d   : > { %15900 = vst [vmem:[#allocation55_spill] sm:$0xff] %v11064_v50  ;;  %v11100_v50 = vpop.permute.xlu0 %2400 }
 0x34e   : > { %2454 = vrot.lane.b32.xlu1 %v10779_v53, %s9794_s30 }
 0x350   : > { %v11070_v48 = vpop.permute.xlu1 %4604 }
 0x351   : > { %15902 = vst [vmem:[#allocation57_spill] sm:$0xff] %v11070_v48  ;;  %v11104_v48 = vpop.permute.xlu0 %3522 }
 0x352   : > { %2422 = vrot.lane.b32.xlu1 %v10779_v53, %s9795_s19 }
 0x354   : > { %v11076_v40 = vpop.permute.xlu1 %1415 }
 0x356   : > { %4618 = vrot.lane.b32.xlu1 %v10779_v53, %s9798_s3 }
 0x358   : > { %v11080_v6 = vpop.permute.xlu1 %2442 }
 0x35a   : > { %3512 = vrot.lane.b32.xlu1 %v10779_v53, %s9797_s20 }
 0x35c   : > { %v11086_v37 = vpop.permute.xlu1 %2410 }
 0x35d   : > { %15903 = vst [vmem:[#allocation58_spill] sm:$0xff] %v11086_v37 }
 0x360   : > { %v11090_v51 = vpop.permute.xlu1 %4606 }
 0x361   : > { %15905 = vst [vmem:[#allocation60_spill] sm:$0xff] %v11090_v51  ;;  %v11108_v51 = vpop.permute.xlu0 %4596 }
 0x362   : > { %15910 = vst [vmem:[#allocation65_spill] sm:$0xff] %v11108_v51 }
 0x364   : > { %v11092_v42 = vpop.permute.xlu1 %4574 }
 0x365   : > { %15906 = vst [vmem:[#allocation61_spill] sm:$0xff] %v11092_v42  ;;  %v11112_v19 = vpop.permute.xlu0 %4564 }
 0x366   : > { %15911 = vst [vmem:[#allocation66_spill] sm:$0xff] %v11112_v19 }
 0x368   : > { %v1418_v62 = vpop.permute.xlu1 %1417 }
 0x369   : > { %v1408_v8 = vpop.permute.xlu0 %1407 }
 0x36c   : > { %v11096_v23 = vpop.permute.xlu1 %2444 }
 0x36d   : > { %v11118_v61 = vpop.permute.xlu0 %2434 }
 0x370   : > { %v11098_v4 = vpop.permute.xlu1 %3534 }
 0x371   : > { %15907 = vst [vmem:[#allocation62_spill] sm:$0xff] %v11098_v4 }
 0x374   : > { %v11102_v25 = vpop.permute.xlu1 %3502 }
 0x375   : > { %15908 = vst [vmem:[#allocation63_spill] sm:$0xff] %v11102_v25 }
 0x378   : > { %v11106_v12 = vpop.permute.xlu1 %4608 }
 0x379   : > { %15909 = vst [vmem:[#allocation64_spill] sm:$0xff] %v11106_v12  ;;  %v11124_v12 = vpop.permute.xlu0 %3492 }
 0x37a   : > { %15914 = vst [vmem:[#allocation69_spill] sm:$0xff] %v11124_v12 }
 0x37c   : > { %v1420_v7 = vpop.permute.xlu1 %1419 }
 0x37d   : > { %v2437_v51 = vpop.permute.xlu0 %2436 }
 0x380   : > { %v11110_v42 = vpop.permute.xlu1 %2446 }
 0x381   : > { %v11128_v19 = vpop.permute.xlu0 %2404 }
 0x384   : > { %v11114_v60 = vpop.permute.xlu1 %2414 }
 0x385   : > { %15912 = vst [vmem:[#allocation67_spill] sm:$0xff] %v11114_v60  ;;  %v11132_v32 = vpop.permute.xlu0 %3526 }
 0x388   : > { %v1422_v47 = vpop.permute.xlu1 %1421 }
 0x389   : > { %v11136_v21 = vpop.permute.xlu0 %4600 }
 0x38a   : > { %15918 = vst [vmem:[#allocation73_spill] sm:$0xff] %v11136_v21  ;;  %v1491_v21 = vsel %vm1429_vm1, %v1406_v11, 0 }
 0x38c   : > { %v11116_v5 = vpop.permute.xlu1 %2448 }
 0x390   : > { %v11120_v25 = vpop.permute.xlu1 %3538 }
 0x394   : > { %v11122_v28 = vpop.permute.xlu1 %3506 }
 0x395   : > { %15913 = vst [vmem:[#allocation68_spill] sm:$0xff] %v11122_v28  ;;  %v11138_v28 = vpop.permute.xlu0 %4568 }
 0x396   : > { %15919 = vst [vmem:[#allocation74_spill] sm:$0xff] %v11138_v28  ;;  %v1494_v28 = vsel %vm1429_vm1, %v1408_v8, 0 }
 0x398   : > { %v1424_v41 = vpop.permute.xlu1 %1423 }
 0x399   : > { %v1412_v14 = vpop.permute.xlu0 %1411 }
 0x39c   : > { %v2451_v34 = vpop.permute.xlu1 %2450 }
 0x3a0   : > { %v11126_v37 = vpop.permute.xlu1 %2418 }
 0x3a1   : > { %15915 = vst [vmem:[#allocation70_spill] sm:$0xff] %v11126_v37 }
 0x3a4   : > { %v11130_v60 = vpop.permute.xlu1 %4614 }
 0x3a5   : > { %15916 = vst [vmem:[#allocation71_spill] sm:$0xff] %v11130_v60  ;;  %v1500_v60 = vsel %vm1429_vm1, %v1412_v14, 0  ;;  %v1482_v14 = vsel %vm1429_vm1, %v10982_v1, 0 }
 0x3a8   : > { %v11134_v3 = vpop.permute.xlu1 %3508 }
 0x3a9   : > { %15917 = vst [vmem:[#allocation72_spill] sm:$0xff] %v11134_v3  ;;  %v1497_v3 = vsel %vm1429_vm1, %v11002_v33, 0 }
 0x3ac   : > { %v1426_v31 = vpop.permute.xlu1 %1425 }
 0x3b0   : > { %v2453_v16 = vpop.permute.xlu1 %2452 }
 0x3b4   : > { %v11140_v12 = vpop.permute.xlu1 %3542 }
 0x3b8   : > { %v11142_v4 = vpop.permute.xlu1 %4578 }
 0x3b9   : > { %15920 = vst [vmem:[#allocation75_spill] sm:$0xff] %v11142_v4  ;;  %v2439_v4 = vpop.permute.xlu0 %2438 }
 0x3bc   : > { %v1428_v37 = vpop.permute.xlu1 %1427 }
 0x3bd   : > { %8295 = vmatprep.subr.msk.bf16.mxu1 %vm1429_vm1, %v1428_v37  ;;  %v11153_v37 = vpop.permute.xlu0 %3496 }
 0x3be   : > { %7528 = vmatpush3.bf16.xpose.msra.mxu1 %v1500_v60 }
 0x3bf   : > { %8296 = vmatprep.subr.msk.bf16.mxu1 %vm1429_vm1, %v1426_v31 }
 0x3c0   : > { %v2455_v33 = vpop.permute.xlu1 %2454 }
 0x3c1   : > { %v11156_v60 = vpop.permute.xlu0 %2408 }
 0x3c5   : > { %v11161_v8 = vpop.permute.xlu0 %4572 }
 0x3c6   : > { %7530 = vmatpush3.bf16.xpose.msra.mxu1 %v1497_v3  ;;  %v1488_v3 = vsel %vm1429_vm1, %v11074_v44, 0 }
 0x3c7   : > { %8297 = vmatprep.subr.msk.bf16.mxu1 %vm1429_vm1, %v1424_v41 }
 0x3ce   : > { %7532 = vmatpush3.bf16.xpose.msra.mxu1 %v1494_v28  ;;  %v2526_v28 = vsel %vm1429_vm1, %v2439_v4, 0 }
 0x3cf   : > { %8298 = vmatprep.subr.msk.bf16.mxu1 %vm1429_vm1, %v1422_v47  ;;  %v1485_v47 = vsel %vm1429_vm1, %v11016_v22, 0 }
 0x3d6   : > { %7534 = vmatpush3.bf16.xpose.msra.mxu1 %v1491_v21  ;;  %v11167_v21 = vpop.permute.xlu0 %3532 }
 0x3d7   : > { %8299 = vmatprep.subr.msk.bf16.mxu1 %vm1429_vm1, %v1420_v7 }
 0x3da   : > { %v11171_v11 = vpop.permute.xlu0 %3500 }
 0x3de   : > { %7536 = vmatpush3.bf16.xpose.msra.mxu1 %v1488_v3  ;;  %v11175_v44 = vpop.permute.xlu0 %2412  ;;  %v15929_v3 = vld [vmem:[#allocation67_spill] sm:$0xff] }
 0x3df   : > { %8300 = vmatprep.subr.msk.bf16.mxu1 %vm1429_vm1, %v1418_v62  ;;  %v1479_v62 = vsel %vm1429_vm1, %v10821_v49, 0  ;;  %v2523_v49 = vsel %vm1429_vm1, %v2437_v51, 0  ;;  %v2517_v51 = vsel %vm1429_vm1, %v11094_v56, 0  ;;  %v2511_v56 = vsel %vm1429_vm1, %v11026_v55, 0 }
 0x3e6   : > { %7538 = vmatpush3.bf16.xpose.msra.mxu1 %v1485_v47 }
 0x3e7   : > { %8301 = vmatprep.subr.msk.bf16.mxu1 %vm1429_vm1, %v11076_v40  ;;  %v11180_v40 = vpop.permute.xlu0 %3536 }
 0x3ee   : > { %7540 = vmatpush3.bf16.xpose.msra.mxu1 %v1482_v14 }
 0x3ef   : > { %8302 = vmatprep.subr.msk.bf16.mxu1 %vm1429_vm1, %v11046_v24  ;;  %v11188_v24 = vpop.permute.xlu0 %3504 }
 0x3f3   : > { %v11193_v1 = vpop.permute.xlu0 %4610 }
 0x3f6   : > { %7542 = vmatpush3.bf16.xpose.msra.mxu1 %v1479_v62 }
 0x3f7   : > { %8303 = vmatprep.subr.msk.bf16.mxu1 %vm1429_vm1, %v2455_v33 }
 0x3fd   : > { %7544 = vmatmul.mubr.msk.bf16.vlgmr.msra.gmra.mxu1 %vm1429_vm1, %v10546_v20  ;;  %v11198_v20 = vpop.permute.xlu0 %2416 }
 0x3fe   : > { %7545 = vmatprep.mubr.msk.bf16.mxu1 %vm1429_vm1, %v10560_v15  ;;  %7688 = vmatpush3.bf16.xpose.msra.mxu1 %v2526_v28 }
 0x3ff   : > { %8304 = vmatprep.subr.msk.bf16.mxu1 %vm1429_vm1, %v2453_v16  ;;  %v2520_v16 = vsel %vm1429_vm1, %v11118_v61, 0  ;;  %v2514_v61 = vsel %vm1429_vm1, %v11082_v30, 0  ;;  %v2508_v30 = vsel %vm1429_vm1, %v10994_v54, 0 }
 0x405   : > { %7546 = vmatmul.mubr.msk.bf16.gmra.mxu1 %vm1429_vm1, %v10560_v15  ;;  %v11208_v15 = vpop.permute.xlu0 %4612 }
 0x406   : > { %7547 = vmatprep.mubr.msk.bf16.mxu1 %vm1429_vm1, %v10588_v58  ;;  %7690 = vmatpush3.bf16.xpose.msra.mxu1 %v2523_v49 }
 0x407   : > { %8305 = vmatprep.subr.msk.bf16.mxu1 %vm1429_vm1, %v2451_v34 }
 0x40d   : > { %7548 = vmatmul.mubr.msk.bf16.gmra.mxu1 %vm1429_vm1, %v10588_v58  ;;  %v3541_v58 = vpop.permute.xlu0 %3540 }
 0x40e   : > { %7549 = vmatprep.mubr.msk.bf16.mxu1 %vm1429_vm1, %v10598_v39  ;;  %7692 = vmatpush3.bf16.xpose.msra.mxu1 %v2520_v16 }
 0x40f   : > { %8306 = vmatprep.subr.msk.bf16.mxu1 %vm1429_vm1, %v11116_v5 }
 0x411   : > { %v11222_v34 = vpop.permute.xlu0 %2420 }
 0x415   : > { %7550 = vmatmul.mubr.msk.bf16.gmra.mxu1 %vm1429_vm1, %v10598_v39  ;;  %v11228_v39 = vpop.permute.xlu0 %4616 }
 0x416   : > { %7551 = vmatprep.mubr.msk.bf16.mxu1 %vm1429_vm1, %v10626_v59  ;;  %7694 = vmatpush3.bf16.xpose.msra.mxu1 %v2517_v51 }
 0x417   : > { %8307 = vmatprep.subr.msk.bf16.mxu1 %vm1429_vm1, %v11110_v42 }
 0x41d   : > { %7552 = vmatmul.mubr.msk.bf16.gmra.mxu1 %vm1429_vm1, %v10626_v59  ;;  %v11238_v59 = vpop.permute.xlu0 %3510 }
 0x41e   : > { %7553 = vmatprep.mubr.msk.bf16.mxu1 %vm1429_vm1, %v10636_v63  ;;  %7696 = vmatpush3.bf16.xpose.msra.mxu1 %v2514_v61  ;;  %v15930_v61 = vld [vmem:[#allocation70_spill] sm:$0xff] }
 0x41f   : > { %8308 = vmatprep.subr.msk.bf16.mxu1 %vm1429_vm1, %v11096_v23 }
 0x425   : > { %7554 = vmatmul.mubr.msk.bf16.gmra.mxu1 %vm1429_vm1, %v10636_v63  ;;  %v11248_v63 = vpop.permute.xlu0 %4576 }
 0x426   : > { %7555 = vmatprep.mubr.msk.bf16.mxu1 %vm1429_vm1, %v10664_v0  ;;  %7698 = vmatpush3.bf16.xpose.msra.mxu1 %v2511_v56 }
 0x427   : > { %8309 = vmatprep.subr.msk.bf16.mxu1 %vm1429_vm1, %v11080_v6  ;;  %v2505_v6 = vsel %vm1429_vm1, %v10852_v52, 0  ;;  %v15923_v52 = vld [vmem:[#allocation52_spill] sm:$0xff] }
 0x429   : > { %v3545_v23 = vpop.permute.xlu0 %3544 }
 0x42d   : > { %7556 = vmatmul.mubr.msk.bf16.gmra.mxu1 %vm1429_vm1, %v10664_v0  ;;  %v3616_v0 = vsel %vm1429_vm1, %v11024_v9, 0 }
 0x42e   : > { %7557 = vmatprep.mubr.msk.bf16.mxu1 %vm1429_vm1, %v10680_v35  ;;  %7700 = vmatpush3.bf16.xpose.msra.mxu1 %v2508_v30 }
 0x42f   : > { %8310 = vmatprep.subr.msk.bf16.mxu1 %vm1429_vm1, %v11054_v45  ;;  %v11344_v45 = vpop.permute.xlu1 %2422 }
 0x433   : > { %v4619_v42 = vpop.permute.xlu1 %4618 }
 0x435   : > { %7558 = vmatmul.mubr.msk.bf16.gmra.mxu1 %vm1429_vm1, %v10680_v35  ;;  %v3613_v35 = vsel %vm1429_vm1, %v11132_v32, 0  ;;  %v15926_v32 = vld [vmem:[#allocation54_spill] sm:$0xff] }
 0x436   : > { %7559 = vmatprep.mubr.msk.bf16.mxu1 %vm1429_vm1, %v10716_v26  ;;  %7702 = vmatpush3.bf16.xpose.msra.mxu1 %v2505_v6 }
 0x437   : > { %8311 = vmatprep.subr.msk.bf16.mxu1 %vm1429_vm1, %v3545_v23 }
 0x43d   : > { %7560 = vmatmul.mubr.msk.bf16.gmra.mxu1 %vm1429_vm1, %v10716_v26  ;;  %v3610_v26 = vsel %vm1429_vm1, %v10980_v36, 0 }
 0x43e   : > { %7561 = vmatprep.mubr.msk.bf16.mxu1 %vm1429_vm1, %v10752_v57 }
 0x445   : > { %7562 = vmatmul.mubr.msk.bf16.gmra.mxu1 %vm1429_vm1, %v10752_v57  ;;  %v3607_v57 = vsel %vm1429_vm1, %v11104_v48, 0  ;;  %v3601_v48 = vsel %vm1429_vm1, %v15923_v52, 0 }
 0x446   : > { %7563 = vmatprep.mubr.msk.bf16.mxu1 %vm1429_vm1, %v10819_v27 }
 0x44d   : > { %7564 = vmatmul.mubr.msk.bf16.gmra.mxu1 %vm1429_vm1, %v10819_v27  ;;  %v15921_v27 = vld [vmem:[#allocation44_spill] sm:$0xff] }
 0x44e   : > { %7565 = vmatprep.mubr.msk.bf16.mxu1 %vm1429_vm1, %v10933_v13 }
 0x455   : > { %7566 = vmatmul.mubr.msk.bf16.gmra.mxu1 %vm1429_vm1, %v10933_v13  ;;  %v15927_v13 = vld [vmem:[#allocation34_spill] sm:$0xff] }
 0x456   : > { %7567 = vmatprep.mubr.msk.bf16.mxu1 %vm1429_vm1, %v10732_v17 }
 0x45d   : > { %7568 = vmatmul.mubr.msk.bf16.gmra.mxu1 %vm1429_vm1, %v10732_v17 }
 0x45e   : > { %7569 = vmatprep.mubr.msk.bf16.mxu1 %vm1429_vm1, %v10745_v29 }
 0x465   : > { %7570 = vmatmul.mubr.msk.bf16.gmra.mxu1 %vm1429_vm1, %v10745_v29 }
 0x466   : > { %7571 = vmatprep.mubr.msk.bf16.mxu1 %vm1429_vm1, %v10760_v10 }
 0x46d   : > { %7572 = vmatmul.mubr.msk.bf16.gmra.mxu1 %vm1429_vm1, %v10760_v10  ;;  %v15947_v10 = vld [vmem:[#allocation64_spill] sm:$0xff] }
 0x46e   : > { %7573 = vmatprep.mubr.msk.bf16.mxu1 %vm1429_vm1, %v10779_v53 }
 0x475   : > { %7574 = vmatmul.mubr.msk.bf16.gmra.mxu1 %vm1429_vm1, %v10779_v53 }
 0x476   : > { %7703 = vmatprep.mubr.msk.bf16.mxu1 %vm1429_vm1, %v10885_v46 }
 0x47d   : > { %7704 = vmatmul.mubr.msk.bf16.vlgmr.msra.gmra.mxu1 %vm1429_vm1, %v10885_v46 }
 0x47e   : > { %7848 = vmatpush3.bf16.xpose.msra.mxu1 %v3616_v0  ;;  %7705 = vmatprep.mubr.msk.bf16.mxu1 %vm1429_vm1, %v10798_v38 }
 0x47f   : > { %8312 = vmatprep.subr.msk.bf16.mxu1 %vm1429_vm1, %v11140_v12  ;;  %v15922_v12 = vld [vmem:[#allocation62_spill] sm:$0xff] }
 0x485   : > { %7706 = vmatmul.mubr.msk.bf16.gmra.mxu1 %vm1429_vm1, %v10798_v38  ;;  %v3604_v38 = vsel %vm1429_vm1, %v10935_v2, 0  ;;  %v3595_v2 = vsel %vm1429_vm1, %v15927_v13, 0 }
 0x486   : > { %7850 = vmatpush3.bf16.xpose.msra.mxu1 %v3613_v35  ;;  %7707 = vmatprep.mubr.msk.bf16.mxu1 %vm1429_vm1, %v11038_v43 }
 0x487   : > { %8313 = vmatprep.subr.msk.bf16.mxu1 %vm1429_vm1, %v3541_v58 }
 0x48d   : > { %7708 = vmatmul.mubr.msk.bf16.gmra.mxu1 %vm1429_vm1, %v11038_v43 }
 0x48e   : > { %7852 = vmatpush3.bf16.xpose.msra.mxu1 %v3610_v26  ;;  %7709 = vmatprep.mubr.msk.bf16.mxu1 %vm1429_vm1, %v10909_v18 }
 0x48f   : > { %8314 = vmatprep.subr.msk.bf16.mxu1 %vm1429_vm1, %v11120_v25  ;;  %v15928_v25 = vld [vmem:[#allocation58_spill] sm:$0xff] }
 0x495   : > { %7710 = vmatmul.mubr.msk.bf16.gmra.mxu1 %vm1429_vm1, %v10909_v18  ;;  %v15925_v18 = vld [vmem:[#allocation49_spill] sm:$0xff] }
 0x496   : > { %7854 = vmatpush3.bf16.xpose.msra.mxu1 %v3607_v57  ;;  %7711 = vmatprep.mubr.msk.bf16.mxu1 %vm1429_vm1, %v11100_v50 }
 0x497   : > { %8315 = vmatprep.subr.msk.bf16.mxu1 %vm1429_vm1, %v11180_v40 }
 0x49d   : > { %7712 = vmatmul.mubr.msk.bf16.gmra.mxu1 %vm1429_vm1, %v11100_v50  ;;  %v15924_v50 = vld [vmem:[#allocation21_spill] sm:$0xff] }
 0x49e   : > { %7856 = vmatpush3.bf16.xpose.msra.mxu1 %v3604_v38  ;;  %7713 = vmatprep.mubr.msk.bf16.mxu1 %vm1429_vm1, %v15921_v27  ;;  %v3598_v46 = vsel %vm1429_vm1, %v15924_v50, 0 }
 0x49f   : > { %8316 = vmatprep.subr.msk.bf16.mxu1 %vm1429_vm1, %v15922_v12 }
 0x4a5   : > { %7714 = vmatmul.mubr.msk.bf16.gmra.mxu1 %vm1429_vm1, %v15921_v27 }
 0x4a6   : > { %7858 = vmatpush3.bf16.xpose.msra.mxu1 %v3601_v48  ;;  %7715 = vmatprep.mubr.msk.bf16.mxu1 %vm1429_vm1, %v11128_v19 }
 0x4a7   : > { %8317 = vmatprep.subr.msk.bf16.mxu1 %vm1429_vm1, %v11167_v21 }
 0x4ad   : > { %7716 = vmatmul.mubr.msk.bf16.gmra.mxu1 %vm1429_vm1, %v11128_v19 }
 0x4ae   : > { %7860 = vmatpush3.bf16.xpose.msra.mxu1 %v3598_v46  ;;  %7717 = vmatprep.mubr.msk.bf16.mxu1 %vm1429_vm1, %v15925_v18 }
 0x4af   : > { %8318 = vmatprep.subr.msk.bf16.mxu1 %vm1429_vm1, %v15926_v32 }
 0x4b5   : > { %7718 = vmatmul.mubr.msk.bf16.gmra.mxu1 %vm1429_vm1, %v15925_v18 }
 0x4b6   : > { %7862 = vmatpush3.bf16.xpose.msra.mxu1 %v3595_v2  ;;  %7719 = vmatprep.mubr.msk.bf16.mxu1 %vm1429_vm1, %v11156_v60 }
 0x4b7   : > { %8319 = vmatprep.subr.msk.bf16.mxu1 %vm1429_vm1, %v4619_v42 }
 0x4bd   : > { %v11353_v19 = vpop.f32.mrf.mxu1  ;;  %7720 = vmatmul.mubr.msk.bf16.gmra.mxu1 %vm1429_vm1, %v11156_v60 }
 0x4be   : > { %7721 = vmatprep.mubr.msk.bf16.mxu1 %vm1429_vm1, %v15928_v25 }
 0x4bf   : > { %v11359_v4 = vpop.f32.mrf.mxu1 }
 0x4c0   : > { %v1719_v36 = vmax.f32 %v11353_v19, %v11359_v4 }
 0x4c1   : > { %v11363_v5 = vpop.f32.mrf.mxu1 }
 0x4c2   : > { %1720 = vmax.xlane.f32.xlu1 %v1719_v36 }
 0x4c3   : > { %v11365_v54 = vpop.f32.mrf.mxu1 }
 0x4c4   : > { %v1722_v7 = vmax.f32 %v11363_v5, %v11365_v54 }
 0x4c5   : > { %v11369_v22 = vpop.f32.mrf.mxu1  ;;  %7722 = vmatmul.mubr.msk.bf16.gmra.mxu1 %vm1429_vm1, %v15928_v25 }
 0x4c6   : > { %1723 = vmax.xlane.f32.xlu0 %v1722_v7  ;;  %7723 = vmatprep.mubr.msk.bf16.mxu1 %vm1429_vm1, %v11175_v44  ;;  %v15932_v7 = vld [vmem:[#allocation50_spill] sm:$0xff] }
 0x4c7   : > { %v11375_v31 = vpop.f32.mrf.mxu1 }
 0x4c8   : > { %v1725_v9 = vmax.f32 %v11369_v22, %v11375_v31 }
 0x4c9   : > { %v11379_v55 = vpop.f32.mrf.mxu1 }
 0x4ca   : > { %1726 = vmax.xlane.f32.xlu1 %v1725_v9 }
 0x4cb   : > { %v11381_v41 = vpop.f32.mrf.mxu1 }
 0x4cc   : > { %v1728_v43 = vmax.f32 %v11379_v55, %v11381_v41 }
 0x4cd   : > { %v11385_v60 = vpop.f32.mrf.mxu1  ;;  %7724 = vmatmul.mubr.msk.bf16.gmra.mxu1 %vm1429_vm1, %v11175_v44 }
 0x4ce   : > { %1729 = vmax.xlane.f32.xlu1 %v1728_v43  ;;  %7725 = vmatprep.mubr.msk.bf16.mxu1 %vm1429_vm1, %v15929_v3  ;;  %v15933_v43 = vld [vmem:[#allocation47_spill] sm:$0xff] }
 0x4cf   : > { %v11391_v47 = vpop.f32.mrf.mxu1 }
 0x4d0   : > { %v1731_v21 = vmax.f32 %v11385_v60, %v11391_v47 }
 0x4d1   : > { %v11395_v14 = vpop.f32.mrf.mxu1 }
 0x4d2   : > { %1732 = vmax.xlane.f32.xlu0 %v1731_v21 }
 0x4d3   : > { %v11397_v62 = vpop.f32.mrf.mxu1 }
 0x4d4   : > { %v1734_v33 = vmax.f32 %v11395_v14, %v11397_v62 }
 0x4d5   : > { %v11401_v40 = vpop.f32.mrf.mxu1  ;;  %7726 = vmatmul.mubr.msk.bf16.gmra.mxu1 %vm1429_vm1, %v15929_v3 }
 0x4d6   : > { %1735 = vmax.xlane.f32.xlu1 %v1734_v33  ;;  %7727 = vmatprep.mubr.msk.bf16.mxu1 %vm1429_vm1, %v11198_v20 }
 0x4d7   : > { %v11407_v44 = vpop.f32.mrf.mxu1 }
 0x4d8   : > { %v1737_v28 = vmax.f32 %v11401_v40, %v11407_v44 }
 0x4d9   : > { %v11411_v49 = vpop.f32.mrf.mxu1 }
 0x4da   : > { %1738 = vmax.xlane.f32.xlu1 %v1737_v28 }
 0x4db   : > { %v11413_v16 = vpop.f32.mrf.mxu1 }
 0x4dc   : > { %v1740_v51 = vmax.f32 %v11411_v49, %v11413_v16 }
 0x4dd   : > { %v11417_v58 = vpop.f32.mrf.mxu1  ;;  %7728 = vmatmul.mubr.msk.bf16.gmra.mxu1 %vm1429_vm1, %v11198_v20 }
 0x4de   : > { %1741 = vmax.xlane.f32.xlu1 %v1740_v51  ;;  %7729 = vmatprep.mubr.msk.bf16.mxu1 %vm1429_vm1, %v15930_v61 }
 0x4df   : > { %v11423_v56 = vpop.f32.mrf.mxu1 }
 0x4e0   : > { %v1743_v30 = vmax.f32 %v11417_v58, %v11423_v56 }
 0x4e1   : > { %v11427_v6 = vpop.f32.mrf.mxu1 }
 0x4e2   : > { %1744 = vmax.xlane.f32.xlu0 %v1743_v30 }
 0x4e3   : > { %v11429_v23 = vpop.f32.mrf.mxu1 }
 0x4e4   : > { %v1746_v0 = vmax.f32 %v11427_v6, %v11429_v23 }
 0x4e5   : > { %v11433_v35 = vpop.f32.mrf.mxu1  ;;  %7730 = vmatmul.mubr.msk.bf16.gmra.mxu1 %vm1429_vm1, %v15930_v61  ;;  %v15934_v61 = vld [vmem:[#allocation73_spill] sm:$0xff] }
 0x4e6   : > { %1747 = vmax.xlane.f32.xlu1 %v1746_v0  ;;  %7731 = vmatprep.mubr.msk.bf16.mxu1 %vm1429_vm1, %v11222_v34  ;;  %v4687_v30 = vsel %vm1429_vm1, %v15934_v61, 0 }
 0x4e7   : > { %v11439_v20 = vpop.f32.mrf.mxu1 }
 0x4e8   : > { %v1749_v26 = vmax.f32 %v11433_v35, %v11439_v20 }
 0x4e9   : > { %v11443_v57 = vpop.f32.mrf.mxu1 }
 0x4ea   : > { %1750 = vmax.xlane.f32.xlu1 %v1749_v26  ;;  %v15936_v26 = vld [vmem:[#allocation71_spill] sm:$0xff] }
 0x4eb   : > { %v11445_v38 = vpop.f32.mrf.mxu1 }
 0x4ec   : > { %v1752_v27 = vmax.f32 %v11443_v57, %v11445_v38 }
 0x4ed   : > { %v11449_v12 = vpop.f32.mrf.mxu1  ;;  %7732 = vmatmul.mubr.msk.bf16.gmra.mxu1 %vm1429_vm1, %v11222_v34  ;;  %v15931_v34 = vld [vmem:[#allocation38_spill] sm:$0xff] }
 0x4ee   : > { %1753 = vmax.xlane.f32.xlu0 %v1752_v27  ;;  %7733 = vmatprep.mubr.msk.bf16.mxu1 %vm1429_vm1, %v11344_v45 }
 0x4ef   : > { %v11455_v52 = vpop.f32.mrf.mxu1 }
 0x4f0   : > { %v1755_v48 = vmax.f32 %v11449_v12, %v11455_v52 }
 0x4f1   : > { %v11459_v50 = vpop.f32.mrf.mxu1 }
 0x4f2   : > { %1756 = vmax.xlane.f32.xlu1 %v1755_v48 }
 0x4f3   : > { %v11461_v46 = vpop.f32.mrf.mxu1 }
 0x4f4   : > { %v1758_v18 = vmax.f32 %v11459_v50, %v11461_v46 }
 0x4f5   : > { %v11465_v32 = vpop.f32.mrf.mxu1  ;;  %7734 = vmatmul.mubr.msk.bf16.gmra.mxu1 %vm1429_vm1, %v11344_v45  ;;  %v4690_v45 = vsel %vm1429_vm1, %v15932_v7, 0 }
 0x4f6   : > { %1759 = vmax.xlane.f32.xlu0 %v1758_v18  ;;  %7863 = vmatprep.mubr.msk.bf16.mxu1 %vm1429_vm1, %v15931_v34 }
 0x4f7   : > { %v11471_v13 = vpop.f32.mrf.mxu1 }
 0x4f8   : > { %v1761_v2 = vmax.f32 %v11465_v32, %v11471_v13 }
 0x4f9   : > { %v11475_v42 = vpop.f32.mrf.mxu1 }
 0x4fa   : > { %1762 = vmax.xlane.f32.xlu1 %v1761_v2 }
 0x4fb   : > { %v11477_v25 = vpop.f32.mrf.mxu1 }
 0x4fc   : > { %v1764_v36 = vmax.f32 %v11475_v42, %v11477_v25 }
 0x4fd   : > { %v11483_v9 = vpop.f32.mrf.mxu1  ;;  %7864 = vmatmul.mubr.msk.bf16.vlgmr.msra.gmra.mxu1 %vm1429_vm1, %v15931_v34 }
 0x4fe   : > { %8008 = vmatpush3.bf16.xpose.msra.mxu1 %v4690_v45  ;;  %1765 = vmax.xlane.f32.xlu0 %v1764_v36  ;;  %v15937_v36 = vld [vmem:[#allocation45_spill] sm:$0xff] }
 0x4ff   : > { %7865 = vmatprep.mubr.msk.bf16.mxu1 %vm1429_vm1, %v15933_v43  ;;  %8320 = vmatprep.subr.msk.bf16.mxu1 %vm1429_vm1, %v11228_v39  ;;  %v11491_v3 = vpop.f32.mrf.mxu1  ;;  %v15935_v39 = vld [vmem:[#allocation30_spill] sm:$0xff]  ;;  %v4684_v7 = vsel %vm1429_vm1, %v15937_v36, 0 }
 0x500   : > { %v1767_v21 = vmax.f32 %v11483_v9, %v11491_v3 }
 0x501   : > { %v11495_v33 = vpop.f32.mrf.mxu1 }
 0x502   : > { %1768 = vmax.xlane.f32.xlu1 %v1767_v21 }
 0x503   : > { %v11497_v28 = vpop.f32.mrf.mxu1 }
 0x504   : > { %v1770_v51 = vmax.f32 %v11495_v33, %v11497_v28 }
 0x505   : > { %v11503_v0 = vpop.f32.mrf.mxu1  ;;  %7866 = vmatmul.mubr.msk.bf16.gmra.mxu1 %vm1429_vm1, %v15933_v43  ;;  %v15938_v43 = vld [vmem:[#allocation59_spill] sm:$0xff] }
 0x506   : > { %8010 = vmatpush3.bf16.xpose.msra.mxu1 %v4687_v30  ;;  %1771 = vmax.xlane.f32.xlu0 %v1770_v51 }
 0x507   : > { %7867 = vmatprep.mubr.msk.bf16.mxu1 %vm1429_vm1, %v15935_v39  ;;  %8321 = vmatprep.subr.msk.bf16.mxu1 %vm1429_vm1, %v15936_v26  ;;  %v11511_v27 = vpop.f32.mrf.mxu1  ;;  %v15940_v26 = vld [vmem:[#allocation65_spill] sm:$0xff] }
 0x508   : > { %v1773_v48 = vmax.f32 %v11503_v0, %v11511_v27 }
 0x509   : > { %v11515_v18 = vpop.f32.mrf.mxu1 }
 0x50a   : > { %1774 = vmax.xlane.f32.xlu1 %v1773_v48  ;;  %v4681_v48 = vsel %vm1429_vm1, %v15940_v26, 0 }
 0x50b   : > { %v11517_v34 = vpop.f32.mrf.mxu1 }
 0x50c   : > { %v1776_v2 = vmax.f32 %v11515_v18, %v11517_v34 }
 0x50d   : > { %v11523_v45 = vpop.f32.mrf.mxu1  ;;  %7868 = vmatmul.mubr.msk.bf16.gmra.mxu1 %vm1429_vm1, %v15935_v39 }
 0x50e   : > { %8012 = vmatpush3.bf16.xpose.msra.mxu1 %v4684_v7  ;;  %1777 = vmax.xlane.f32.xlu0 %v1776_v2 }
 0x50f   : > { %7869 = vmatprep.mubr.msk.bf16.mxu1 %vm1429_vm1, %v15938_v43  ;;  %8322 = vmatprep.subr.msk.bf16.mxu1 %vm1429_vm1, %v11208_v15  ;;  %v11531_v21 = vpop.f32.mrf.mxu1  ;;  %v15941_v15 = vld [vmem:[#allocation42_spill] sm:$0xff] }
 0x510   : > { %v1779_v51 = vmax.f32 %v11523_v45, %v11531_v21 }
 0x511   : > { %v11535_v61 = vpop.f32.mrf.mxu1 }
 0x512   : > { %1780 = vmax.xlane.f32.xlu1 %v1779_v51 }
 0x513   : > { %v11537_v30 = vpop.f32.mrf.mxu1 }
 0x514   : > { %15939 = vst [vmem:[#allocation44_spill] sm:$0xff] %v11537_v30  ;;  %v1782_v39 = vmax.f32 %v11535_v61, %v11537_v30 }
 0x515   : > { %v11543_v2 = vpop.f32.mrf.mxu1  ;;  %7870 = vmatmul.mubr.msk.bf16.gmra.mxu1 %vm1429_vm1, %v15938_v43 }
 0x516   : > { %8014 = vmatpush3.bf16.xpose.msra.mxu1 %v4681_v48  ;;  %1783 = vmax.xlane.f32.xlu0 %v1782_v39  ;;  %v15944_v39 = vld [vmem:[#allocation39_spill] sm:$0xff] }
 0x517   : > { %7871 = vmatprep.mubr.msk.bf16.mxu1 %vm1429_vm1, %v15941_v15  ;;  %8323 = vmatprep.subr.msk.bf16.mxu1 %vm1429_vm1, %v11193_v1  ;;  %v11551_v36 = vpop.f32.mrf.mxu1  ;;  %v4678_v48 = vsel %vm1429_vm1, %v15944_v39, 0  ;;  %v15946_v1 = vld [vmem:[#allocation69_spill] sm:$0xff] }
 0x518   : > { %v1785_v7 = vmax.f32 %v11543_v2, %v11551_v36 }
 0x519   : > { %v11555_v51 = vpop.f32.mrf.mxu1 }
 0x51a   : > { %15942 = vst [vmem:[#allocation62_spill] sm:$0xff] %v11555_v51  ;;  %1786 = vmax.xlane.f32.xlu1 %v1785_v7 }
 0x51b   : > { %v11557_v26 = vpop.f32.mrf.mxu1 }
 0x51c   : > { %15943 = vst [vmem:[#allocation52_spill] sm:$0xff] %v11557_v26  ;;  %v1788_v43 = vmax.f32 %v11555_v51, %v11557_v26 }
 0x51d   : > { %v11563_v53 = vpop.f32.mrf.mxu1  ;;  %7872 = vmatmul.mubr.msk.bf16.gmra.mxu1 %vm1429_vm1, %v15941_v15 }
 0x51e   : > { %15945 = vst [vmem:[#allocation21_spill] sm:$0xff] %v11563_v53  ;;  %8016 = vmatpush3.bf16.xpose.msra.mxu1 %v4678_v48  ;;  %1789 = vmax.xlane.f32.xlu0 %v1788_v43  ;;  %v15951_v43 = vld [vmem:[#allocation53_spill] sm:$0xff] }
 0x51f   : > { %7873 = vmatprep.mubr.msk.bf16.mxu1 %vm1429_vm1, %v15946_v1  ;;  %8324 = vmatprep.subr.msk.bf16.mxu1 %vm1429_vm1, %v15947_v10  ;;  %v11571_v7 = vpop.f32.mrf.mxu1  ;;  %v4675_v48 = vsel %vm1429_vm1, %v15951_v43, 0  ;;  %v15952_v10 = vld [vmem:[#allocation48_spill] sm:$0xff] }
 0x520   : > { %15948 = vst [vmem:[#allocation49_spill] sm:$0xff] %v11571_v7  ;;  %v1791_v29 = vmax.f32 %v11563_v53, %v11571_v7  ;;  %v15953_v7 = vld [vmem:[#allocation60_spill] sm:$0xff] }
 0x521   : > { %v11575_v17 = vpop.f32.mrf.mxu1 }
 0x522   : > { %15949 = vst [vmem:[#allocation54_spill] sm:$0xff] %v11575_v17  ;;  %1792 = vmax.xlane.f32.xlu1 %v1791_v29 }
 0x523   : > { %v11577_v39 = vpop.f32.mrf.mxu1 }
 0x524   : > { %15950 = vst [vmem:[#allocation34_spill] sm:$0xff] %v11577_v39  ;;  %v1794_v15 = vmax.f32 %v11575_v17, %v11577_v39 }
 0x525   : > { %v11583_v26 = vpop.f32.mrf.mxu1  ;;  %7874 = vmatmul.mubr.msk.bf16.gmra.mxu1 %vm1429_vm1, %v15946_v1 }
 0x526   : > { %8018 = vmatpush3.bf16.xpose.msra.mxu1 %v4675_v48  ;;  %1795 = vmax.xlane.f32.xlu0 %v1794_v15  ;;  %v15956_v15 = vld [vmem:[#allocation24_spill] sm:$0xff] }
 0x527   : > { %7875 = vmatprep.mubr.msk.bf16.mxu1 %vm1429_vm1, %v15952_v10  ;;  %8325 = vmatprep.subr.msk.bf16.mxu1 %vm1429_vm1, %v15953_v7  ;;  %v11591_v29 = vpop.f32.mrf.mxu1  ;;  %v4672_v48 = vsel %vm1429_vm1, %v15956_v15, 0  ;;  %v15958_v7 = vld [vmem:[#allocation57_spill] sm:$0xff] }
 0x528   : > { %v1797_v39 = vmax.f32 %v11583_v26, %v11591_v29 }
 0x529   : > { %v11595_v17 = vpop.f32.mrf.mxu1 }
 0x52a   : > { %15954 = vst [vmem:[#allocation58_spill] sm:$0xff] %v11595_v17  ;;  %1798 = vmax.xlane.f32.xlu1 %v1797_v39 }
 0x52b   : > { %v11597_v43 = vpop.f32.mrf.mxu1 }
 0x52c   : > { %15955 = vst [vmem:[#allocation67_spill] sm:$0xff] %v11597_v43  ;;  %v1800_v1 = vmax.f32 %v11595_v17, %v11597_v43 }
 0x52d   : > { %v11603_v53 = vpop.f32.mrf.mxu1  ;;  %7876 = vmatmul.mubr.msk.bf16.gmra.mxu1 %vm1429_vm1, %v15952_v10 }
 0x52e   : > { %15957 = vst [vmem:[#allocation70_spill] sm:$0xff] %v11603_v53  ;;  %8020 = vmatpush3.bf16.xpose.msra.mxu1 %v4672_v48  ;;  %1801 = vmax.xlane.f32.xlu0 %v1800_v1  ;;  %v15962_v1 = vld [vmem:[#allocation41_spill] sm:$0xff] }
 0x52f   : > { %7877 = vmatprep.mubr.msk.bf16.mxu1 %vm1429_vm1, %v11153_v37  ;;  %8326 = vmatprep.subr.msk.bf16.mxu1 %vm1429_vm1, %v15958_v7  ;;  %v11611_v39 = vpop.f32.mrf.mxu1  ;;  %v4669_v48 = vsel %vm1429_vm1, %v15962_v1, 0  ;;  %v15964_v7 = vld [vmem:[#allocation55_spill] sm:$0xff] }
 0x530   : > { %15959 = vst [vmem:[#allocation38_spill] sm:$0xff] %v11611_v39  ;;  %v1803_v43 = vmax.f32 %v11603_v53, %v11611_v39 }
 0x531   : > { %v11615_v17 = vpop.f32.mrf.mxu1 }
 0x532   : > { %15960 = vst [vmem:[#allocation50_spill] sm:$0xff] %v11615_v17  ;;  %1804 = vmax.xlane.f32.xlu0 %v1803_v43 }
 0x533   : > { %v11617_v15 = vpop.f32.mrf.mxu1 }
 0x534   : > { %15961 = vst [vmem:[#allocation47_spill] sm:$0xff] %v11617_v15  ;;  %v1806_v10 = vmax.f32 %v11615_v17, %v11617_v15 }
 0x535   : > { %v11623_v51 = vpop.f32.mrf.mxu1  ;;  %7878 = vmatmul.mubr.msk.bf16.gmra.mxu1 %vm1429_vm1, %v11153_v37 }
 0x536   : > { %15963 = vst [vmem:[#allocation73_spill] sm:$0xff] %v11623_v51  ;;  %8022 = vmatpush3.bf16.xpose.msra.mxu1 %v4669_v48  ;;  %1807 = vmax.xlane.f32.xlu1 %v1806_v10 }
 0x537   : > { %7879 = vmatprep.mubr.msk.bf16.mxu1 %vm1429_vm1, %v15964_v7  ;;  %v11629_v39 = vpop.f32.mrf.mxu1 }
 0x538   : > { %15965 = vst [vmem:[#allocation30_spill] sm:$0xff] %v11629_v39  ;;  %v1809_v43 = vmax.f32 %v11623_v51, %v11629_v39 }
 0x539   : > { %v11633_v53 = vpop.f32.mrf.mxu1 }
 0x53a   : > { %15966 = vst [vmem:[#allocation71_spill] sm:$0xff] %v11633_v53  ;;  %1810 = vmax.xlane.f32.xlu1 %v1809_v43 }
 0x53b   : > { %v11635_v15 = vpop.f32.mrf.mxu1 }
 0x53c   : > { %15967 = vst [vmem:[#allocation45_spill] sm:$0xff] %v11635_v15  ;;  %v1812_v1 = vmax.f32 %v11633_v53, %v11635_v15 }
 0x53d   : > { %v11639_v17 = vpop.f32.mrf.mxu1  ;;  %7880 = vmatmul.mubr.msk.bf16.gmra.mxu1 %vm1429_vm1, %v15964_v7  ;;  %v15973_v7 = vld [vmem:[#allocation63_spill] sm:$0xff] }
 0x53e   : > { %15968 = vst [vmem:[#allocation59_spill] sm:$0xff] %v11639_v17  ;;  %1813 = vmax.xlane.f32.xlu0 %v1812_v1  ;;  %7881 = vmatprep.mubr.msk.bf16.mxu1 %vm1429_vm1, %v11171_v11  ;;  %v11661_v1 = vpop.permute.xlu1 %3512 }
 0x53f   : > { %v11645_v37 = vpop.f32.mrf.mxu1 }
 0x540   : > { %15969 = vst [vmem:[#allocation65_spill] sm:$0xff] %v11645_v37  ;;  %v2745_v10 = vmax.f32 %v11639_v17, %v11645_v37 }
 0x541   : > { %v11649_v48 = vpop.f32.mrf.mxu1 }
 0x542   : > { %15970 = vst [vmem:[#allocation42_spill] sm:$0xff] %v11649_v48  ;;  %2746 = vmax.xlane.f32.xlu1 %v2745_v10 }
 0x543   : > { %v11651_v43 = vpop.f32.mrf.mxu1 }
 0x544   : > { %15971 = vst [vmem:[#allocation39_spill] sm:$0xff] %v11651_v43  ;;  %v2748_v39 = vmax.f32 %v11649_v48, %v11651_v43 }
 0x545   : > { %v11655_v15 = vpop.f32.mrf.mxu1  ;;  %7882 = vmatmul.mubr.msk.bf16.gmra.mxu1 %vm1429_vm1, %v11171_v11 }
 0x546   : > { %15972 = vst [vmem:[#allocation69_spill] sm:$0xff] %v11655_v15  ;;  %2749 = vmax.xlane.f32.xlu1 %v2748_v39  ;;  %7883 = vmatprep.mubr.msk.bf16.mxu1 %vm1429_vm1, %v15973_v7 }
 0x547   : > { %v11663_v37 = vpop.f32.mrf.mxu1 }
 0x548   : > { %15974 = vst [vmem:[#allocation64_spill] sm:$0xff] %v11663_v37  ;;  %v2751_v10 = vmax.f32 %v11655_v15, %v11663_v37 }
 0x549   : > { %v11667_v17 = vpop.f32.mrf.mxu1 }
 0x54a   : > { %15975 = vst [vmem:[#allocation53_spill] sm:$0xff] %v11667_v17  ;;  %2752 = vmax.xlane.f32.xlu0 %v2751_v10 }
 0x54b   : > { %v1721_v43 = vpop.xlane.xlu1 %1720  ;;  %v11669_v48 = vpop.f32.mrf.mxu1 }
 0x54c   : > { %15976 = vst [vmem:[#allocation48_spill] sm:$0xff] %v11669_v48  ;;  %v1815_v53 = vsub.f32 %v11353_v19, %v1721_v43  ;;  %v1816_v11 = vsub.f32 %v11359_v4, %v1721_v43  ;;  %v2754_v39 = vmax.f32 %v11667_v17, %v11669_v48 }
 0x54d   : > { %v11675_v51 = vpop.f32.mrf.mxu1  ;;  %7884 = vmatmul.mubr.msk.bf16.gmra.mxu1 %vm1429_vm1, %v15973_v7 }
 0x54e   : > { %15977 = vst [vmem:[#allocation60_spill] sm:$0xff] %v11675_v51  ;;  %v1879_v30 = vmul.f32 1.442695, %v1815_v53  ;;  %v1881_v37 = vmul.f32 1.442695, %v1816_v11  ;;  %2755 = vmax.xlane.f32.xlu1 %v2754_v39  ;;  %7885 = vmatprep.mubr.msk.bf16.mxu1 %vm1429_vm1, %v11188_v24 }
 0x54f   : > { %v11681_v10 = vpop.f32.mrf.mxu1  ;;  %v1724_v15 = vpop.xlane.xlu0 %1723 }
 0x550   : > { %15978 = vst [vmem:[#allocation24_spill] sm:$0xff] %v11681_v10  ;;  %8743 = vpow2.f32 %v1879_v30  ;;  %v2757_v19 = vmax.f32 %v11675_v51, %v11681_v10  ;;  %v1817_v4 = vsub.f32 %v11363_v5, %v1724_v15  ;;  %v1818_v43 = vsub.f32 %v11365_v54, %v1724_v15  ;;  %v15982_v54 = vld [vmem:[#allocation68_spill] sm:$0xff] }
 0x551   : > { %8745 = vpow2.f32 %v1881_v37  ;;  %v11687_v48 = vpop.f32.mrf.mxu1 }
 0x552   : > { %15979 = vst [vmem:[#allocation57_spill] sm:$0xff] %v11687_v48  ;;  %v1883_v53 = vmul.f32 1.442695, %v1817_v4  ;;  %2758 = vmax.xlane.f32.xlu1 %v2757_v19  ;;  %v1885_v7 = vmul.f32 1.442695, %v1818_v43 }
 0x553   : > { %v1727_v11 = vpop.xlane.xlu1 %1726  ;;  %v11689_v39 = vpop.f32.mrf.mxu1 }
 0x554   : > { %15980 = vst [vmem:[#allocation41_spill] sm:$0xff] %v11689_v39  ;;  %v2760_v17 = vmax.f32 %v11687_v48, %v11689_v39  ;;  %8747 = vpow2.f32 %v1883_v53  ;;  %v1819_v5 = vsub.f32 %v11369_v22, %v1727_v11  ;;  %v1820_v15 = vsub.f32 %v11375_v31, %v1727_v11 }
 0x555   : > { %v11693_v30 = vpop.f32.mrf.mxu1  ;;  %7886 = vmatmul.mubr.msk.bf16.gmra.mxu1 %vm1429_vm1, %v11188_v24  ;;  %8749 = vpow2.f32 %v1885_v7 }
 0x556   : > { %15981 = vst [vmem:[#allocation55_spill] sm:$0xff] %v11693_v30  ;;  %2761 = vmax.xlane.f32.xlu1 %v2760_v17  ;;  %7887 = vmatprep.mubr.msk.bf16.mxu1 %vm1429_vm1, %v15982_v54  ;;  %v1887_v43 = vmul.f32 1.442695, %v1819_v5  ;;  %v1889_v24 = vmul.f32 1.442695, %v1820_v15  ;;  %v15987_v15 = vld [vmem:[#allocation72_spill] sm:$0xff] }
 0x557   : > { %v11701_v37 = vpop.f32.mrf.mxu1  ;;  %v1730_v53 = vpop.xlane.xlu1 %1729 }
 0x558   : > { %15983 = vst [vmem:[#allocation63_spill] sm:$0xff] %v11701_v37  ;;  %v2763_v19 = vmax.f32 %v11693_v30, %v11701_v37  ;;  %8751 = vpow2.f32 %v1887_v43  ;;  %v1821_v11 = vsub.f32 %v11379_v55, %v1730_v53 }
 0x559   : > { %v11705_v4 = vpop.f32.mrf.mxu1  ;;  %8753 = vpow2.f32 %v1889_v24 }
 0x55a   : > { %15984 = vst [vmem:[#allocation68_spill] sm:$0xff] %v11705_v4  ;;  %2764 = vmax.xlane.f32.xlu1 %v2763_v19  ;;  %v1822_v19 = vsub.f32 %v11381_v41, %v1730_v53  ;;  %v1891_v43 = vmul.f32 1.442695, %v1821_v11 }
 0x55b   : > { %v11707_v39 = vpop.f32.mrf.mxu1  ;;  %v1733_v5 = vpop.xlane.xlu0 %1732 }
 0x55c   : > { %15985 = vst [vmem:[#allocation76_spill] sm:$0xff] %v11707_v39  ;;  %v2766_v17 = vmax.f32 %v11705_v4, %v11707_v39  ;;  %v1823_v55 = vsub.f32 %v11385_v60, %v1733_v5  ;;  %v1824_v48 = vsub.f32 %v11391_v47, %v1733_v5  ;;  %8755 = vpow2.f32 %v1891_v43 }
 0x55d   : > { %v11711_v22 = vpop.eup %8743  ;;  %v11713_v7 = vpop.f32.mrf.mxu1  ;;  %7888 = vmatmul.mubr.msk.bf16.gmra.mxu1 %vm1429_vm1, %v15982_v54 }
 0x55e   : > { %15986 = vst [vmem:[#allocation77_spill] sm:$0xff] %v11713_v7  ;;  %v11717_v31 = vpop.eup %8745  ;;  %2767 = vmax.xlane.f32.xlu0 %v2766_v17  ;;  %7889 = vmatprep.mubr.msk.bf16.mxu1 %vm1429_vm1, %v15987_v15  ;;  %v1893_v17 = vmul.f32 1.442695, %v1822_v19  ;;  %v1895_v60 = vmul.f32 1.442695, %v1823_v55 }
 0x55f   : > { %v1736_v39 = vpop.xlane.xlu1 %1735  ;;  %v11723_v4 = vpop.f32.mrf.mxu1  ;;  %v2007_v37 = vadd.f32 %v11717_v31, %v11711_v22  ;;  %v1897_v19 = vmul.f32 1.442695, %v1824_v48 }
 0x560   : > { %15988 = vst [vmem:[#allocation72_spill] sm:$0xff] %v11723_v4  ;;  %v2769_v41 = vmax.f32 %v11713_v7, %v11723_v4  ;;  %8757 = vpow2.f32 %v1893_v17  ;;  %v1825_v4 = vsub.f32 %v11395_v14, %v1736_v39 }
 0x561   : > { %2008 = vadd.xlane.f32.xlu1 %v2007_v37  ;;  %v11727_v54 = vpop.f32.mrf.mxu1  ;;  %v11730_v30 = vpop.eup %8747 }
 0x562   : > { %15989 = vst [vmem:[#allocation78_spill] sm:$0xff] %v11727_v54  ;;  %v11737_v10 = vpop.eup %8749 }
 0x563   : > { %v1739_v24 = vpop.xlane.xlu1 %1738  ;;  %v11735_v53 = vpop.f32.mrf.mxu1 }
 0x564   : > { %15990 = vst [vmem:[#allocation79_spill] sm:$0xff] %v11735_v53  ;;  %v1827_v37 = vsub.f32 %v11401_v40, %v1739_v24  ;;  %v1828_v51 = vsub.f32 %v11407_v44, %v1739_v24  ;;  %v2010_v44 = vadd.f32 %v11737_v10, %v11730_v30  ;;  %v2772_v24 = vmax.f32 %v11727_v54, %v11735_v53 }
 0x565   : > { %2770 = vmax.xlane.f32.xlu1 %v2769_v41  ;;  %v11741_v11 = vpop.f32.mrf.mxu1  ;;  %7890 = vmatmul.mubr.msk.bf16.gmra.mxu1 %vm1429_vm1, %v15987_v15  ;;  %v11757_v17 = vpop.eup %8751  ;;  %v1899_v41 = vmul.f32 1.442695, %v1825_v4 }
 0x566   : > { %15991 = vst [vmem:[#allocation80_spill] sm:$0xff] %v11741_v11  ;;  %v1903_v47 = vmul.f32 1.442695, %v1827_v37  ;;  %v1905_v5 = vmul.f32 1.442695, %v1828_v51  ;;  %7891 = vmatprep.mubr.msk.bf16.mxu1 %vm1429_vm1, %v11238_v59  ;;  %v1826_v51 = vsub.f32 %v11397_v62, %v1736_v39 }
 0x567   : > { %v1742_v40 = vpop.xlane.xlu1 %1741  ;;  %v11748_v7 = vpop.f32.mrf.mxu1 }
 0x568   : > { %15992 = vst [vmem:[#allocation81_spill] sm:$0xff] %v11748_v7  ;;  %8759 = vpow2.f32 %v1903_v47  ;;  %v1829_v15 = vsub.f32 %v11411_v49, %v1742_v40  ;;  %v1830_v43 = vsub.f32 %v11413_v16, %v1742_v40  ;;  %v11763_v16 = vpop.eup %8753  ;;  %v1901_v47 = vmul.f32 1.442695, %v1826_v51 }
 0x569   : > { %8761 = vpow2.f32 %v1905_v5  ;;  %2011 = vadd.xlane.f32.xlu1 %v2010_v44  ;;  %v11755_v55 = vpop.f32.mrf.mxu1 }
 0x56a   : > { %15993 = vst [vmem:[#allocation82_spill] sm:$0xff] %v11755_v55  ;;  %8763 = vpow2.f32 %v1895_v60  ;;  %v1907_v48 = vmul.f32 1.442695, %v1829_v15  ;;  %v1909_v14 = vmul.f32 1.442695, %v1830_v43  ;;  %v11781_v15 = vpop.eup %8755 }
 0x56b   : > { %8765 = vpow2.f32 %v1897_v19  ;;  %v11761_v37 = vpop.f32.mrf.mxu1  ;;  %v1745_v49 = vpop.xlane.xlu0 %1744  ;;  %15998 = vst [vmem:[#allocation87_spill] sm:$0xff] %v11781_v15 }
 0x56c   : > { %15994 = vst [vmem:[#allocation83_spill] sm:$0xff] %v11761_v37  ;;  %8767 = vpow2.f32 %v1907_v48  ;;  %v2778_v62 = vmax.f32 %v11755_v55, %v11761_v37  ;;  %v1831_v39 = vsub.f32 %v11417_v58, %v1745_v49  ;;  %v1832_v60 = vsub.f32 %v11423_v56, %v1745_v49 }
 0x56d   : > { %8769 = vpow2.f32 %v1909_v14  ;;  %2773 = vmax.xlane.f32.xlu1 %v2772_v24  ;;  %v11769_v4 = vpop.f32.mrf.mxu1  ;;  %7892 = vmatmul.mubr.msk.bf16.gmra.mxu1 %vm1429_vm1, %v11238_v59  ;;  %v2013_v58 = vadd.f32 %v11763_v16, %v11757_v17  ;;  %v2775_v59 = vmax.f32 %v11741_v11, %v11748_v7  ;;  %v11787_v51 = vpop.eup %8757  ;;  %v16003_v24 = vld [vmem:[#allocation43_spill] sm:$0xff] }
 0x56e   : > { %15995 = vst [vmem:[#allocation84_spill] sm:$0xff] %v11769_v4  ;;  %v1911_v5 = vmul.f32 1.442695, %v1831_v39  ;;  %2779 = vmax.xlane.f32.xlu0 %v2778_v62  ;;  %7893 = vmatprep.mubr.msk.bf16.mxu1 %vm1429_vm1, %v11661_v1  ;;  %v1913_v19 = vmul.f32 1.442695, %v1832_v60  ;;  %8771 = vpow2.f32 %v1899_v41 }
 0x56f   : > { %v11775_v40 = vpop.f32.mrf.mxu1  ;;  %8773 = vpow2.f32 %v1901_v47  ;;  %v1748_v56 = vpop.xlane.xlu1 %1747  ;;  %v2016_v47 = vadd.f32 %v11787_v51, %v11781_v15 }
 0x570   : > { %15996 = vst [vmem:[#allocation85_spill] sm:$0xff] %v11775_v40  ;;  %8775 = vpow2.f32 %v1911_v5  ;;  %v1834_v11 = vsub.f32 %v11429_v23, %v1748_v56 }
 0x571   : > { %2014 = vadd.xlane.f32.xlu1 %v2013_v58  ;;  %v11779_v44 = vpop.f32.mrf.mxu1  ;;  %8777 = vpow2.f32 %v1913_v19 }
 0x572   : > { %15997 = vst [vmem:[#allocation86_spill] sm:$0xff] %v11779_v44 }
 0x573   : > { %v11785_v43 = vpop.f32.mrf.mxu1  ;;  %v1751_v62 = vpop.xlane.xlu1 %1750 }
 0x574   : > { %15999 = vst [vmem:[#allocation88_spill] sm:$0xff] %v11785_v43 }
 0x575   : > { %v11789_v48 = vpop.eup %8759  ;;  %2776 = vmax.xlane.f32.xlu1 %v2775_v59  ;;  %v11791_v14 = vpop.f32.mrf.mxu1  ;;  %7894 = vmatmul.mubr.msk.bf16.gmra.mxu1 %vm1429_vm1, %v11661_v1  ;;  %v1833_v59 = vsub.f32 %v11427_v6, %v1748_v56 }
 0x576   : > { %16000 = vst [vmem:[#allocation89_spill] sm:$0xff] %v11789_v48  ;;  %16001 = vst [vmem:[#allocation90_spill] sm:$0xff] %v11791_v14  ;;  %v11795_v41 = vpop.eup %8761  ;;  %8023 = vmatprep.mubr.msk.bf16.mxu1 %vm1429_vm1, %v16003_v24 }
 0x577   : > { %16002 = vst [vmem:[#allocation91_spill] sm:$0xff] %v11795_v41  ;;  %v11799_v49 = vpop.eup %8763  ;;  %v11801_v39 = vpop.f32.mrf.mxu1  ;;  %v2025_v60 = vadd.f32 %v11795_v41, %v11789_v48  ;;  %v1915_v56 = vmul.f32 1.442695, %v1833_v59 }
 0x578   : > { %16004 = vst [vmem:[#allocation43_spill] sm:$0xff] %v11801_v39  ;;  %v11807_v5 = vpop.eup %8765  ;;  %v11816_v7 = vpop.xlane.xlu0 %1753 }
 0x579   : > { %v11809_v19 = vpop.eup %8767  ;;  %2026 = vadd.xlane.f32.xlu0 %v2025_v60  ;;  %2017 = vadd.xlane.f32.xlu1 %v2016_v47  ;;  %v11811_v1 = vpop.f32.mrf.mxu1  ;;  %v2019_v60 = vadd.f32 %v11807_v5, %v11799_v49 }
 0x57a   : > { %16005 = vst [vmem:[#allocation92_spill] sm:$0xff] %v11809_v19  ;;  %16006 = vst [vmem:[#allocation93_spill] sm:$0xff] %v11811_v1  ;;  %v11813_v58 = vpop.eup %8769 }
 0x57b   : > { %16007 = vst [vmem:[#allocation94_spill] sm:$0xff] %v11813_v58  ;;  %v1757_v37 = vpop.xlane.xlu1 %1756  ;;  %v11819_v55 = vpop.f32.mrf.mxu1  ;;  %v2028_v53 = vadd.f32 %v11813_v58, %v11809_v19  ;;  %v1917_v58 = vmul.f32 1.442695, %v1834_v11 }
 0x57c   : > { %16008 = vst [vmem:[#allocation95_spill] sm:$0xff] %v11819_v55  ;;  %v1839_v47 = vsub.f32 %v11449_v12, %v1757_v37  ;;  %v1840_v54 = vsub.f32 %v11455_v52, %v1757_v37  ;;  %v11827_v48 = vpop.eup %8771  ;;  %v2781_v12 = vmax.f32 %v11769_v4, %v11775_v40  ;;  %v2790_v52 = vmax.f32 %v11811_v1, %v11819_v55 }
 0x57d   : > { %2029 = vadd.xlane.f32.xlu0 %v2028_v53  ;;  %2020 = vadd.xlane.f32.xlu1 %v2019_v60  ;;  %v11829_v6 = vpop.f32.mrf.mxu1  ;;  %v11831_v23 = vpop.eup %8773  ;;  %v16010_v53 = vld [vmem:[#allocation27_spill] sm:$0xff]  ;;  %v1836_v55 = vsub.f32 %v11439_v20, %v1751_v62 }
 0x57e   : > { %16009 = vst [vmem:[#allocation96_spill] sm:$0xff] %v11829_v6  ;;  %v1927_v41 = vmul.f32 1.442695, %v1839_v47  ;;  %v1929_v15 = vmul.f32 1.442695, %v1840_v54  ;;  %8024 = vmatmul.mubr.msk.bf16.vlgmr.msra.gmra.mxu1 %vm1429_vm1, %v16003_v24  ;;  %v11835_v19 = vpop.eup %8775  ;;  %v1835_v47 = vsub.f32 %v11433_v35, %v1751_v62  ;;  %v2784_v62 = vmax.f32 %v11779_v44, %v11785_v43  ;;  %v16032_v44 = vld [vmem:[#allocation74_spill] sm:$0xff] }
 0x57f   : > { %8025 = vmatprep.mubr.msk.bf16.mxu1 %vm1429_vm1, %v16010_v53  ;;  %v11843_v37 = vpop.f32.mrf.mxu1  ;;  %v1760_v59 = vpop.xlane.xlu0 %1759  ;;  %v1921_v20 = vmul.f32 1.442695, %v1836_v55  ;;  %v1837_v55 = vsub.f32 %v11443_v57, %v11816_v7 }
 0x580   : > { %16011 = vst [vmem:[#allocation27_spill] sm:$0xff] %v11843_v37  ;;  %v11845_v60 = vpop.eup %8777  ;;  %8779 = vpow2.f32 %v1927_v41  ;;  %v1841_v54 = vsub.f32 %v11459_v50, %v1760_v59  ;;  %v1842_v24 = vsub.f32 %v11461_v46, %v1760_v59  ;;  %v2022_v50 = vadd.f32 %v11831_v23, %v11827_v48 }
 0x581   : > { %8781 = vpow2.f32 %v1929_v15  ;;  %2791 = vmax.xlane.f32.xlu0 %v2790_v52  ;;  %2782 = vmax.xlane.f32.xlu1 %v2781_v12  ;;  %v11849_v11 = vpop.f32.mrf.mxu1  ;;  %v2031_v46 = vadd.f32 %v11845_v60, %v11835_v19  ;;  %v1919_v35 = vmul.f32 1.442695, %v1835_v47 }
 0x582   : > { %16012 = vst [vmem:[#allocation97_spill] sm:$0xff] %v11849_v11  ;;  %8783 = vpow2.f32 %v1915_v56  ;;  %v1931_v40 = vmul.f32 1.442695, %v1841_v54  ;;  %v1933_v4 = vmul.f32 1.442695, %v1842_v24  ;;  %v2787_v54 = vmax.f32 %v11791_v14, %v11801_v39 }
 0x583   : > { %8785 = vpow2.f32 %v1917_v58  ;;  %v11853_v1 = vpop.f32.mrf.mxu1  ;;  %v11861_v41 = vpop.xlane.xlu1 %1762  ;;  %v16015_v58 = vld [vmem:[#allocation56_spill] sm:$0xff]  ;;  %v1838_v24 = vsub.f32 %v11445_v38, %v11816_v7  ;;  %v1923_v38 = vmul.f32 1.442695, %v1837_v55 }
 0x584   : > { %16013 = vst [vmem:[#allocation98_spill] sm:$0xff] %v11853_v1  ;;  %8787 = vpow2.f32 %v1931_v40 }
 0x585   : > { %8789 = vpow2.f32 %v1933_v4  ;;  %2023 = vadd.xlane.f32.xlu1 %v2022_v50  ;;  %2032 = vadd.xlane.f32.xlu0 %v2031_v46  ;;  %v11859_v15 = vpop.f32.mrf.mxu1 }
 0x586   : > { %16014 = vst [vmem:[#allocation99_spill] sm:$0xff] %v11859_v15  ;;  %8026 = vmatmul.mubr.msk.bf16.gmra.mxu1 %vm1429_vm1, %v16010_v53  ;;  %8791 = vpow2.f32 %v1919_v35 }
 0x587   : > { %8027 = vmatprep.mubr.msk.bf16.mxu1 %vm1429_vm1, %v16015_v58  ;;  %v11869_v56 = vpop.f32.mrf.mxu1  ;;  %v1766_v4 = vpop.xlane.xlu0 %1765  ;;  %8793 = vpow2.f32 %v1921_v20 }
 0x588   : > { %16016 = vst [vmem:[#allocation56_spill] sm:$0xff] %v11869_v56  ;;  %v1845_v40 = vsub.f32 %v11475_v42, %v1766_v4  ;;  %v1846_v12 = vsub.f32 %v11477_v25, %v1766_v4  ;;  %v2793_v4 = vmax.f32 %v11829_v6, %v11843_v37 }
 0x589   : > { %2785 = vmax.xlane.f32.xlu1 %v2784_v62  ;;  %v11873_v52 = vpop.f32.mrf.mxu1 }
 0x58a   : > { %16017 = vst [vmem:[#allocation100_spill] sm:$0xff] %v11873_v52  ;;  %v1939_v53 = vmul.f32 1.442695, %v1845_v40  ;;  %v1941_v59 = vmul.f32 1.442695, %v1846_v12  ;;  %v16020_v40 = vld [vmem:[#allocation40_spill] sm:$0xff] }
 0x58b   : > { %v1769_v47 = vpop.xlane.xlu1 %1768  ;;  %v11881_v42 = vpop.f32.mrf.mxu1 }
 0x58c   : > { %16018 = vst [vmem:[#allocation101_spill] sm:$0xff] %v11881_v42  ;;  %8795 = vpow2.f32 %v1939_v53  ;;  %v1847_v25 = vsub.f32 %v11483_v9, %v1769_v47  ;;  %v1848_v50 = vsub.f32 %v11491_v3, %v1769_v47  ;;  %v2802_v57 = vmax.f32 %v11873_v52, %v11881_v42 }
 0x58d   : > { %v11887_v46 = vpop.eup %8779  ;;  %8797 = vpow2.f32 %v1941_v59  ;;  %2788 = vmax.xlane.f32.xlu1 %v2787_v54  ;;  %v11889_v35 = vpop.f32.mrf.mxu1  ;;  %v1925_v3 = vmul.f32 1.442695, %v1838_v24 }
 0x58e   : > { %16019 = vst [vmem:[#allocation102_spill] sm:$0xff] %v11889_v35  ;;  %v11891_v20 = vpop.eup %8781  ;;  %v1943_v7 = vmul.f32 1.442695, %v1847_v25  ;;  %v1945_v62 = vmul.f32 1.442695, %v1848_v50  ;;  %8028 = vmatmul.mubr.msk.bf16.gmra.mxu1 %vm1429_vm1, %v16015_v58  ;;  %2803 = vmax.xlane.f32.xlu0 %v2802_v57 }
 0x58f   : > { %v11895_v9 = vpop.eup %8783  ;;  %8029 = vmatprep.mubr.msk.bf16.mxu1 %vm1429_vm1, %v16020_v40  ;;  %v11901_v12 = vpop.f32.mrf.mxu1  ;;  %v2043_v54 = vadd.f32 %v11891_v20, %v11887_v46 }
 0x590   : > { %16021 = vst [vmem:[#allocation40_spill] sm:$0xff] %v11901_v12  ;;  %v1772_v53 = vpop.xlane.xlu0 %1771  ;;  %v11903_v59 = vpop.eup %8785  ;;  %8799 = vpow2.f32 %v1943_v7 }
 0x591   : > { %v1849_v55 = vsub.f32 %v11495_v33, %v1772_v53  ;;  %v1850_v58 = vsub.f32 %v11497_v28, %v1772_v53  ;;  %v11909_v24 = vpop.eup %8787  ;;  %8801 = vpow2.f32 %v1945_v62  ;;  %2794 = vmax.xlane.f32.xlu1 %v2793_v4  ;;  %v11911_v47 = vpop.f32.mrf.mxu1  ;;  %v2034_v33 = vadd.f32 %v11903_v59, %v11895_v9 }
 0x592   : > { %16022 = vst [vmem:[#allocation103_spill] sm:$0xff] %v11911_v47  ;;  %v11913_v25 = vpop.eup %8789  ;;  %8803 = vpow2.f32 %v1923_v38  ;;  %2044 = vadd.xlane.f32.xlu0 %v2043_v54  ;;  %v1843_v38 = vsub.f32 %v11465_v32, %v11861_v41  ;;  %v1844_v4 = vsub.f32 %v11471_v13, %v11861_v41  ;;  %v2796_v53 = vmax.f32 %v11849_v11, %v11853_v1 }
 0x593   : > { %v1947_v50 = vmul.f32 1.442695, %v1849_v55  ;;  %v1949_v57 = vmul.f32 1.442695, %v1850_v58  ;;  %8805 = vpow2.f32 %v1925_v3  ;;  %v11915_v7 = vpop.f32.mrf.mxu1  ;;  %v2046_v28 = vadd.f32 %v11913_v25, %v11909_v24  ;;  %v11927_v3 = vpop.eup %8791  ;;  %v16025_v58 = vld [vmem:[#allocation66_spill] sm:$0xff] }
 0x594   : > { %16023 = vst [vmem:[#allocation104_spill] sm:$0xff] %v11915_v7  ;;  %v1775_v55 = vpop.xlane.xlu1 %1774  ;;  %v1937_v41 = vmul.f32 1.442695, %v1844_v4  ;;  %v2799_v4 = vmax.f32 %v11859_v15, %v11869_v56 }
 0x595   : > { %8807 = vpow2.f32 %v1947_v50  ;;  %2035 = vadd.xlane.f32.xlu1 %v2034_v33  ;;  %v11921_v62 = vpop.f32.mrf.mxu1  ;;  %v11937_v50 = vpop.eup %8793  ;;  %v1935_v33 = vmul.f32 1.442695, %v1843_v38  ;;  %v1851_v13 = vsub.f32 %v11503_v0, %v1775_v55 }
 0x596   : > { %8809 = vpow2.f32 %v1949_v57  ;;  %16024 = vst [vmem:[#allocation105_spill] sm:$0xff] %v11921_v62  ;;  %8030 = vmatmul.mubr.msk.bf16.gmra.mxu1 %vm1429_vm1, %v16020_v40  ;;  %2047 = vadd.xlane.f32.xlu0 %v2046_v28  ;;  %v1852_v28 = vsub.f32 %v11511_v27, %v1775_v55  ;;  %v2037_v6 = vadd.f32 %v11937_v50, %v11927_v3 }
 0x597   : > { %8031 = vmatprep.mubr.msk.bf16.mxu1 %vm1429_vm1, %v16025_v58  ;;  %v11935_v54 = vpop.f32.mrf.mxu1  ;;  %8811 = vpow2.f32 %v1935_v33  ;;  %v1951_v0 = vmul.f32 1.442695, %v1851_v13 }
 0x598   : > { %16026 = vst [vmem:[#allocation66_spill] sm:$0xff] %v11935_v54  ;;  %8813 = vpow2.f32 %v1937_v41  ;;  %v1953_v55 = vmul.f32 1.442695, %v1852_v28 }
 0x599   : > { %v11939_v32 = vpop.eup %8795  ;;  %2797 = vmax.xlane.f32.xlu1 %v2796_v53  ;;  %v11941_v40 = vpop.f32.mrf.mxu1  ;;  %8815 = vpow2.f32 %v1951_v0  ;;  %v2805_v0 = vmax.f32 %v11889_v35, %v11901_v12 }
 0x59a   : > { %16027 = vst [vmem:[#allocation106_spill] sm:$0xff] %v11941_v40  ;;  %v11943_v57 = vpop.eup %8797  ;;  %8817 = vpow2.f32 %v1953_v55 }
 0x59b   : > { %v11947_v37 = vpop.f32.mrf.mxu1  ;;  %v2052_v39 = vadd.f32 %v11943_v57, %v11939_v32  ;;  %v11965_v42 = vpop.xlane.xlu1 %1780 }
 0x59c   : > { %16028 = vst [vmem:[#allocation107_spill] sm:$0xff] %v11947_v37  ;;  %v2814_v55 = vmax.f32 %v11941_v40, %v11947_v37 }
 0x59d   : > { %v11953_v14 = vpop.eup %8799  ;;  %2038 = vadd.xlane.f32.xlu1 %v2037_v6  ;;  %2053 = vadd.xlane.f32.xlu0 %v2052_v39  ;;  %v11955_v53 = vpop.f32.mrf.mxu1  ;;  %v16029_v6 = vld [vmem:[#allocation46_spill] sm:$0xff] }
 0x59e   : > { %v11957_v38 = vpop.eup %8801  ;;  %8032 = vmatmul.mubr.msk.bf16.gmra.mxu1 %vm1429_vm1, %v16025_v58 }
 0x59f   : > { %v11961_v27 = vpop.eup %8803  ;;  %8033 = vmatprep.mubr.msk.bf16.mxu1 %vm1429_vm1, %v16029_v6  ;;  %v11969_v39 = vpop.f32.mrf.mxu1  ;;  %v2055_v33 = vadd.f32 %v11957_v38, %v11953_v14 }
 0x5a0   : > { %v11973_v13 = vpop.eup %8805 }
 0x5a1   : > { %2800 = vmax.xlane.f32.xlu1 %v2799_v4  ;;  %2056 = vadd.xlane.f32.xlu0 %v2055_v33  ;;  %v11979_v28 = vpop.f32.mrf.mxu1  ;;  %v2040_v15 = vadd.f32 %v11973_v13, %v11961_v27 }
 0x5a2   : > { %v11975_v58 = vpop.eup %8807  ;;  %16030 = vst [vmem:[#allocation46_spill] sm:$0xff] %v11979_v28 }
 0x5a3   : > { %v11977_v41 = vpop.eup %8809  ;;  %v1787_v56 = vpop.xlane.xlu1 %1786 }
 0x5a4   : > { %v2058_v52 = vadd.f32 %v11977_v41, %v11975_v58  ;;  %v1859_v1 = vsub.f32 %v11543_v2, %v1787_v56  ;;  %v1860_v11 = vsub.f32 %v11551_v36, %v1787_v56  ;;  %v11987_v33 = vpop.f32.mrf.mxu1  ;;  %v11999_v36 = vpop.eup %8811 }
 0x5a5   : > { %2041 = vadd.xlane.f32.xlu1 %v2040_v15  ;;  %16031 = vst [vmem:[#allocation108_spill] sm:$0xff] %v11987_v33  ;;  %v12003_v15 = vpop.eup %8813 }
 0x5a6   : > { %2059 = vadd.xlane.f32.xlu0 %v2058_v52  ;;  %v1967_v4 = vmul.f32 1.442695, %v1859_v1  ;;  %8034 = vmatmul.mubr.msk.bf16.gmra.mxu1 %vm1429_vm1, %v16029_v6  ;;  %v1969_v43 = vmul.f32 1.442695, %v1860_v11  ;;  %v11997_v2 = vpop.f32.mrf.mxu1  ;;  %v2808_v1 = vmax.f32 %v11911_v47, %v11915_v7  ;;  %v12009_v11 = vpop.eup %8815  ;;  %v16036_v6 = vld [vmem:[#allocation51_spill] sm:$0xff] }
 0x5a7   : > { %8035 = vmatprep.mubr.msk.bf16.mxu1 %vm1429_vm1, %v16032_v44  ;;  %16033 = vst [vmem:[#allocation74_spill] sm:$0xff] %v11997_v2  ;;  %16035 = vst [vmem:[#allocation110_spill] sm:$0xff] %v12009_v11  ;;  %v16065_v2 = vld [vmem:[#allocation67_spill] sm:$0xff] }
 0x5a8   : > { %8819 = vpow2.f32 %v1967_v4  ;;  %v12005_v56 = vpop.f32.mrf.mxu1  ;;  %v2049_v4 = vadd.f32 %v12003_v15, %v11999_v36 }
 0x5a9   : > { %2806 = vmax.xlane.f32.xlu1 %v2805_v0  ;;  %8821 = vpow2.f32 %v1969_v43  ;;  %16034 = vst [vmem:[#allocation109_spill] sm:$0xff] %v12005_v56  ;;  %v12017_v0 = vpop.eup %8817 }
 0x5aa   : > { %2815 = vmax.xlane.f32.xlu0 %v2814_v55  ;;  %16037 = vst [vmem:[#allocation51_spill] sm:$0xff] %v12017_v0  ;;  %v12019_v43 = vpop.f32.mrf.mxu1 }
 0x5ab   : > { %v12011_v52 = vpop.xlane.xlu1 %1792 }
 0x5ac   : > { %v12025_v35 = vpop.f32.mrf.mxu1 }
 0x5ad   : > { %2809 = vmax.xlane.f32.xlu1 %v2808_v1  ;;  %v2061_v1 = vadd.f32 %v12017_v0, %v12009_v11 }
 0x5ae   : > { %8036 = vmatmul.mubr.msk.bf16.gmra.mxu1 %vm1429_vm1, %v16032_v44 }
 0x5af   : > { %8037 = vmatprep.mubr.msk.bf16.mxu1 %vm1429_vm1, %v16036_v6 }
 0x5b1   : > { %2050 = vadd.xlane.f32.xlu1 %v2049_v4  ;;  %v2811_v4 = vmax.f32 %v11921_v62, %v11935_v54 }
 0x5b3   : > { %v1799_v55 = vpop.xlane.xlu1 %1798 }
 0x5b4   : > { %v1867_v44 = vsub.f32 %v11583_v26, %v1799_v55  ;;  %v1868_v12 = vsub.f32 %v11591_v29, %v1799_v55  ;;  %v12037_v26 = vpop.f32.mrf.mxu1  ;;  %v16043_v55 = vld [vmem:[#allocation17_spill] sm:$0xff] }
 0x5b5   : > { %2062 = vadd.xlane.f32.xlu1 %v2061_v1  ;;  %v12029_v7 = vpop.eup %8819  ;;  %16040 = vst [vmem:[#allocation113_spill] sm:$0xff] %v12037_v26 }
 0x5b6   : > { %v1983_v37 = vmul.f32 1.442695, %v1867_v44  ;;  %v1985_v40 = vmul.f32 1.442695, %v1868_v12  ;;  %8038 = vmatmul.mubr.msk.bf16.gmra.mxu1 %vm1429_vm1, %v16036_v6  ;;  %16038 = vst [vmem:[#allocation111_spill] sm:$0xff] %v12029_v7  ;;  %v12035_v47 = vpop.eup %8821  ;;  %v12041_v12 = vpop.f32.mrf.mxu1  ;;  %v16042_v6 = vld [vmem:[#allocation61_spill] sm:$0xff] }
 0x5b7   : > { %8039 = vmatprep.mubr.msk.bf16.mxu1 %vm1429_vm1, %v11161_v8  ;;  %16039 = vst [vmem:[#allocation112_spill] sm:$0xff] %v12035_v47  ;;  %v2073_v29 = vadd.f32 %v12035_v47, %v12029_v7  ;;  %16041 = vst [vmem:[#allocation114_spill] sm:$0xff] %v12041_v12 }
 0x5b8   : > { %8823 = vpow2.f32 %v1983_v37  ;;  %v1778_v37 = vpop.xlane.xlu0 %1777 }
 0x5b9   : > { %8825 = vpow2.f32 %v1985_v40  ;;  %2812 = vmax.xlane.f32.xlu1 %v2811_v4  ;;  %v12049_v40 = vpop.f32.mrf.mxu1  ;;  %v1853_v1 = vsub.f32 %v11515_v18, %v1778_v37  ;;  %v1854_v4 = vsub.f32 %v11517_v34, %v1778_v37  ;;  %v1856_v37 = vsub.f32 %v11531_v21, %v11965_v42 }
 0x5ba   : > { %16044 = vst [vmem:[#allocation61_spill] sm:$0xff] %v12049_v40 }
 0x5bb   : > { %v1955_v62 = vmul.f32 1.442695, %v1853_v1  ;;  %v1957_v34 = vmul.f32 1.442695, %v1854_v4  ;;  %v1961_v1 = vmul.f32 1.442695, %v1856_v37 }
 0x5bc   : > { %v1784_v26 = vpop.xlane.xlu0 %1783 }
 0x5bd   : > { %2074 = vadd.xlane.f32.xlu1 %v2073_v29  ;;  %8827 = vpow2.f32 %v1955_v62  ;;  %v16052_v62 = vld [vmem:[#allocation75_spill] sm:$0xff] }
 0x5be   : > { %8040 = vmatmul.mubr.msk.bf16.gmra.mxu1 %vm1429_vm1, %v11161_v8  ;;  %v12059_v8 = vpop.f32.mrf.mxu1  ;;  %8829 = vpow2.f32 %v1957_v34 }
 0x5bf   : > { %8041 = vmatprep.mubr.msk.bf16.mxu1 %vm1429_vm1, %v16042_v6  ;;  %v12052_v44 = vpop.xlane.xlu1 %1807  ;;  %16047 = vst [vmem:[#allocation117_spill] sm:$0xff] %v12059_v8  ;;  %v16049_v8 = vld [vmem:[#allocation44_spill] sm:$0xff] }
 0x5c0   : > { %3303 = vrot.lane.b32.xlu0 %v16043_v55, %s9795_s19  ;;  %v1855_v55 = vsub.f32 %v11523_v45, %v11965_v42  ;;  %v12073_v40 = vpop.f32.mrf.mxu1  ;;  %v1857_v45 = vsub.f32 %v11535_v61, %v1784_v26  ;;  %v1858_v7 = vsub.f32 %v16049_v8, %v1784_v26  ;;  %v1790_v47 = vpop.xlane.xlu0 %1789  ;;  %v16051_v42 = vld [vmem:[#allocation62_spill] sm:$0xff] }
 0x5c1   : > { %16048 = vst [vmem:[#allocation118_spill] sm:$0xff] %v12073_v40  ;;  %v16055_v40 = vld [vmem:[#allocation21_spill] sm:$0xff] }
 0x5c2   : > { %v12079_v4 = vpop.f32.mrf.mxu1  ;;  %v1963_v21 = vmul.f32 1.442695, %v1857_v45  ;;  %v1965_v61 = vmul.f32 1.442695, %v1858_v7  ;;  %v16056_v45 = vld [vmem:[#allocation49_spill] sm:$0xff]  ;;  %v16058_v7 = vld [vmem:[#allocation54_spill] sm:$0xff] }
 0x5c3   : > { %v12071_v12 = vpop.xlane.xlu1 %1810  ;;  %16050 = vst [vmem:[#allocation44_spill] sm:$0xff] %v12079_v4  ;;  %v1863_v4 = vsub.f32 %v16055_v40, %v12011_v52 }
 0x5c4   : > { %v1796_v26 = vpop.xlane.xlu0 %1795  ;;  %v12087_v8 = vpop.f32.mrf.mxu1 }
 0x5c5   : > { %v12055_v29 = vpop.eup %8823  ;;  %16054 = vst [vmem:[#allocation62_spill] sm:$0xff] %v12087_v8 }
 0x5c6   : > { %16045 = vst [vmem:[#allocation115_spill] sm:$0xff] %v12055_v29  ;;  %v12057_v54 = vpop.eup %8825  ;;  %8042 = vmatmul.mubr.msk.bf16.gmra.mxu1 %vm1429_vm1, %v16042_v6  ;;  %v1959_v6 = vmul.f32 1.442695, %v1855_v55  ;;  %v16053_v55 = vld [vmem:[#allocation52_spill] sm:$0xff] }
 0x5c7   : > { %16046 = vst [vmem:[#allocation116_spill] sm:$0xff] %v12057_v54  ;;  %8043 = vmatprep.mubr.msk.bf16.mxu1 %vm1429_vm1, %v11248_v63  ;;  %v2085_v18 = vadd.f32 %v12057_v54, %v12055_v29  ;;  %v1862_v34 = vsub.f32 %v16053_v55, %v1790_v47  ;;  %v16060_v55 = vld [vmem:[#allocation34_spill] sm:$0xff] }
 0x5c8   : > { %8831 = vpow2.f32 %v1959_v6  ;;  %v1802_v54 = vpop.xlane.xlu0 %1801 }
 0x5c9   : > { %2086 = vadd.xlane.f32.xlu1 %v2085_v18  ;;  %v1861_v18 = vsub.f32 %v16051_v42, %v1790_v47  ;;  %8833 = vpow2.f32 %v1961_v1  ;;  %v1973_v6 = vmul.f32 1.442695, %v1862_v34  ;;  %v1864_v42 = vsub.f32 %v16056_v45, %v12011_v52  ;;  %v12095_v1 = vpop.f32.mrf.mxu1  ;;  %v16062_v52 = vld [vmem:[#allocation18_spill] sm:$0xff] }
 0x5ca   : > { %8835 = vpow2.f32 %v1963_v21  ;;  %16057 = vst [vmem:[#allocation75_spill] sm:$0xff] %v12095_v1  ;;  %v1975_v47 = vmul.f32 1.442695, %v1863_v4  ;;  %v1865_v21 = vsub.f32 %v16058_v7, %v1796_v26  ;;  %v12102_v40 = vpop.eup %8827  ;;  %v1866_v34 = vsub.f32 %v16060_v55, %v1796_v26 }
 0x5cb   : > { %v12077_v29 = vpop.xlane.xlu1 %2746  ;;  %v1971_v37 = vmul.f32 1.442695, %v1861_v18  ;;  %8837 = vpow2.f32 %v1965_v61  ;;  %16059 = vst [vmem:[#allocation52_spill] sm:$0xff] %v12102_v40  ;;  %v1977_v61 = vmul.f32 1.442695, %v1864_v42  ;;  %v12105_v8 = vpop.eup %8829 }
 0x5cc   : > { %16061 = vst [vmem:[#allocation21_spill] sm:$0xff] %v12105_v8  ;;  %v1979_v45 = vmul.f32 1.442695, %v1865_v21  ;;  %v1981_v1 = vmul.f32 1.442695, %v1866_v34  ;;  %v1805_v42 = vpop.xlane.xlu0 %1804  ;;  %v2064_v26 = vadd.f32 %v12105_v8, %v12102_v40  ;;  %v16068_v21 = vld [vmem:[#allocation70_spill] sm:$0xff] }
 0x5cd   : > { %8839 = vpow2.f32 %v1971_v37  ;;  %v16070_v34 = vld [vmem:[#allocation38_spill] sm:$0xff] }
 0x5ce   : > { %8044 = vmatmul.mubr.msk.bf16.gmra.mxu1 %vm1429_vm1, %v11248_v63  ;;  %8841 = vpow2.f32 %v1973_v6  ;;  %v1870_v6 = vsub.f32 %v16065_v2, %v1802_v54 }
 0x5cf   : > { %8045 = vmatprep.mubr.msk.bf16.mxu1 %vm1429_vm1, %v16052_v62  ;;  %v12091_v63 = vpop.xlane.xlu1 %2749  ;;  %8843 = vpow2.f32 %v1975_v47 }
 0x5d0   : > { %8845 = vpow2.f32 %v1977_v61  ;;  %v1989_v61 = vmul.f32 1.442695, %v1870_v6 }
 0x5d1   : > { %8847 = vpow2.f32 %v1979_v45 }
 0x5d2   : > { %8849 = vpow2.f32 %v1981_v1 }
 0x5d5   : > { %v12112_v7 = vpop.eup %8831 }
 0x5d6   : > { %8046 = vmatmul.mubr.msk.bf16.gmra.mxu1 %vm1429_vm1, %v16052_v62  ;;  %v16063_v62 = vld [vmem:[#allocation58_spill] sm:$0xff]  ;;  %16064 = vst [vmem:[#allocation49_spill] sm:$0xff] %v12112_v7  ;;  %v12117_v55 = vpop.eup %8833 }
 0x5d7   : > { %v12100_v18 = vpop.xlane.xlu1 %2755  ;;  %v1869_v37 = vsub.f32 %v16063_v62, %v1802_v54  ;;  %16066 = vst [vmem:[#allocation54_spill] sm:$0xff] %v12117_v55  ;;  %v1871_v62 = vsub.f32 %v16068_v21, %v1805_v42  ;;  %v12122_v56 = vpop.eup %8835  ;;  %v1872_v54 = vsub.f32 %v16070_v34, %v1805_v42  ;;  %v2067_v40 = vadd.f32 %v12117_v55, %v12112_v7  ;;  %v16075_v42 = vld [vmem:[#allocation47_spill] sm:$0xff] }
 0x5d8   : > { %16069 = vst [vmem:[#allocation34_spill] sm:$0xff] %v12122_v56  ;;  %v12129_v11 = vpop.eup %8837  ;;  %v1874_v21 = vsub.f32 %v16075_v42, %v12052_v44  ;;  %v1814_v34 = vpop.xlane.xlu0 %1813  ;;  %v16081_v42 = vld [vmem:[#allocation45_spill] sm:$0xff] }
 0x5d9   : > { %v1987_v47 = vmul.f32 1.442695, %v1869_v37  ;;  %16071 = vst [vmem:[#allocation58_spill] sm:$0xff] %v12129_v11  ;;  %v1991_v45 = vmul.f32 1.442695, %v1871_v62  ;;  %v16073_v37 = vld [vmem:[#allocation50_spill] sm:$0xff]  ;;  %v2070_v7 = vadd.f32 %v12129_v11, %v12122_v56  ;;  %v1878_v8 = vsub.f32 %v16081_v42, %v1814_v34 }
 0x5da   : > { %3287 = vrot.lane.b32.xlu1 %v16062_v52, %s9795_s19  ;;  %v16067_v52 = vld [vmem:[#allocation13_spill] sm:$0xff]  ;;  %v12135_v1 = vpop.eup %8839  ;;  %v1993_v6 = vmul.f32 1.442695, %v1872_v54 }
 0x5db   : > { %v12110_v4 = vpop.xlane.xlu1 %2758  ;;  %8851 = vpow2.f32 %v1987_v47  ;;  %16074 = vst [vmem:[#allocation67_spill] sm:$0xff] %v12135_v1  ;;  %v12141_v55 = vpop.eup %8841 }
 0x5dc   : > { %8853 = vpow2.f32 %v1989_v61  ;;  %16076 = vst [vmem:[#allocation13_spill] sm:$0xff] %v12141_v55  ;;  %v12148_v54 = vpop.eup %8843  ;;  %v2076_v56 = vadd.f32 %v12141_v55, %v12135_v1 }
 0x5dd   : > { %8855 = vpow2.f32 %v1991_v45  ;;  %16080 = vst [vmem:[#allocation38_spill] sm:$0xff] %v12148_v54  ;;  %v12153_v11 = vpop.eup %8845 }
 0x5de   : > { %4580 = vrot.lane.b32.xlu1 %v16067_v52, %s9799_s5  ;;  %v16072_v52 = vld [vmem:[#allocation19_spill] sm:$0xff]  ;;  %8857 = vpow2.f32 %v1993_v6  ;;  %v12159_v6 = vpop.eup %8847  ;;  %v2079_v1 = vadd.f32 %v12153_v11, %v12148_v54 }
 0x5df   : > { %2065 = vadd.xlane.f32.xlu0 %v2064_v26  ;;  %v12125_v2 = vpop.xlane.xlu1 %2761  ;;  %v1873_v26 = vsub.f32 %v16073_v37, %v12052_v44  ;;  %v1997_v44 = vmul.f32 1.442695, %v1874_v21  ;;  %v2005_v21 = vmul.f32 1.442695, %v1878_v8  ;;  %v12165_v55 = vpop.eup %8849 }
 0x5e0   : > { %v2082_v8 = vadd.f32 %v12165_v55, %v12159_v6 }
 0x5e1   : > { %v1995_v37 = vmul.f32 1.442695, %v1873_v26 }
 0x5e2   : > { %3301 = vrot.lane.b32.xlu1 %v16072_v52, %s9795_s19  ;;  %v16079_v52 = vld [vmem:[#allocation71_spill] sm:$0xff] }
 0x5e3   : > { %2068 = vadd.xlane.f32.xlu0 %v2067_v40  ;;  %v16077_v40 = vld [vmem:[#allocation73_spill] sm:$0xff]  ;;  %v12145_v62 = vpop.xlane.xlu1 %2764  ;;  %v1877_v61 = vsub.f32 %v16079_v52, %v1814_v34  ;;  %8859 = vpow2.f32 %v1995_v37  ;;  %v16083_v52 = vld [vmem:[#allocation42_spill] sm:$0xff]  ;;  %v16084_v34 = vld [vmem:[#allocation39_spill] sm:$0xff] }
 0x5e4   : > { %v1875_v47 = vsub.f32 %v16077_v40, %v12071_v12  ;;  %16078 = vst [vmem:[#allocation70_spill] sm:$0xff] %v12145_v62  ;;  %v16082_v40 = vld [vmem:[#allocation30_spill] sm:$0xff]  ;;  %v2843_v26 = vsub.f32 %v16083_v52, %v12091_v63  ;;  %8861 = vpow2.f32 %v1997_v44  ;;  %v2844_v42 = vsub.f32 %v16084_v34, %v12091_v63 }
 0x5e5   : > { %v1876_v0 = vsub.f32 %v16082_v40, %v12071_v12  ;;  %v2003_v45 = vmul.f32 1.442695, %v1877_v61  ;;  %v12181_v40 = vpop.xlane.xlu0 %2752 }
 0x5e6   : > { %v1999_v62 = vmul.f32 1.442695, %v1875_v47  ;;  %v2909_v47 = vmul.f32 1.442695, %v2843_v26  ;;  %v2911_v61 = vmul.f32 1.442695, %v2844_v42 }
 0x5e7   : > { %2071 = vadd.xlane.f32.xlu0 %v2070_v7  ;;  %v2001_v12 = vmul.f32 1.442695, %v1876_v0 }
 0x5e8   : > { %8863 = vpow2.f32 %v1999_v62  ;;  %v12169_v37 = vpop.eup %8851 }
 0x5e9   : > { %8865 = vpow2.f32 %v2003_v45  ;;  %16086 = vst [vmem:[#allocation47_spill] sm:$0xff] %v12169_v37  ;;  %v12173_v63 = vpop.eup %8853 }
 0x5ea   : > { %v2009_v7 = vpop.xlane.xlu1 %2008  ;;  %8867 = vpow2.f32 %v2005_v21  ;;  %v12175_v0 = vpop.eup %8855 }
 0x5eb   : > { %2077 = vadd.xlane.f32.xlu0 %v2076_v56  ;;  %8869 = vpow2.f32 %v2001_v12  ;;  %16087 = vst [vmem:[#allocation73_spill] sm:$0xff] %v12175_v0  ;;  %v12179_v62 = vpop.eup %8857  ;;  %v12191_v21 = vpop.xlane.xlu0 %2767 }
 0x5ec   : > { %8871 = vrcp.f32 %v2009_v7  ;;  %16088 = vst [vmem:[#allocation71_spill] sm:$0xff] %v12179_v62  ;;  %v2091_v7 = vadd.f32 %v12179_v62, %v12175_v0  ;;  %16092 = vst [vmem:[#allocation39_spill] sm:$0xff] %v12191_v21 }
 0x5ed   : > { %8873 = vpow2.f32 %v2909_v47 }
 0x5ee   : > { %v12167_v56 = vpop.xlane.xlu1 %2770  ;;  %8875 = vpow2.f32 %v2911_v61 }
 0x5ef   : > { %16085 = vst [vmem:[#allocation50_spill] sm:$0xff] %v12167_v56  ;;  %2080 = vadd.xlane.f32.xlu0 %v2079_v1  ;;  %v2088_v1 = vadd.f32 %v12173_v63, %v12169_v37 }
 0x5f0   : > { %v12185_v52 = vpop.eup %8859 }
 0x5f1   : > { %16090 = vst [vmem:[#allocation30_spill] sm:$0xff] %v12185_v52  ;;  %v12189_v26 = vpop.eup %8861 }
 0x5f2   : > { %v2012_v44 = vpop.xlane.xlu1 %2011  ;;  %16091 = vst [vmem:[#allocation42_spill] sm:$0xff] %v12189_v26  ;;  %v2094_v47 = vadd.f32 %v12189_v26, %v12185_v52 }
 0x5f3   : > { %2083 = vadd.xlane.f32.xlu0 %v2082_v8  ;;  %8877 = vrcp.f32 %v2012_v44 }
 0x5f5   : > { %v12193_v42 = vpop.eup %8863 }
 0x5f6   : > { %v12183_v45 = vpop.xlane.xlu1 %2773  ;;  %v12195_v12 = vpop.eup %8865 }
 0x5f7   : > { %16089 = vst [vmem:[#allocation45_spill] sm:$0xff] %v12183_v45  ;;  %2089 = vadd.xlane.f32.xlu0 %v2088_v1  ;;  %16093 = vst [vmem:[#allocation119_spill] sm:$0xff] %v12195_v12  ;;  %v12199_v61 = vpop.eup %8867  ;;  %v12203_v44 = vpop.xlane.xlu0 %2779 }
 0x5f8   : > { %16094 = vst [vmem:[#allocation120_spill] sm:$0xff] %v12199_v61  ;;  %v12201_v8 = vpop.eup %8869  ;;  %16095 = vst [vmem:[#allocation121_spill] sm:$0xff] %v12203_v44 }
 0x5f9   : > { %v8872_v56 = vpop.eup %8871  ;;  %v2097_v37 = vadd.f32 %v12201_v8, %v12193_v42 }
 0x5fa   : > { %v2015_v34 = vpop.xlane.xlu1 %2014  ;;  %v12207_v45 = vpop.eup %8873  ;;  %v2136_v26 = vmul.f32 %v8872_v56, %v11717_v31 }
 0x5fb   : > { %2092 = vadd.xlane.f32.xlu0 %v2091_v7  ;;  %v2100_v7 = vadd.f32 %v12199_v61, %v12195_v12  ;;  %v12211_v0 = vpop.eup %8875  ;;  %8879 = vrcp.f32 %v2015_v34 }
 0x5fc   : > { %v3036_v12 = vadd.f32 %v12211_v0, %v12207_v45 }
 0x5fe   : > { %v12205_v1 = vpop.xlane.xlu1 %2776 }
 0x5ff   : > { %16096 = vst [vmem:[#allocation122_spill] sm:$0xff] %v12205_v1  ;;  %2095 = vadd.xlane.f32.xlu0 %v2094_v47  ;;  %v2135_v1 = vmul.f32 %v8872_v56, %v11711_v22 }
 0x600   : > { %v8878_v21 = vpop.eup %8877 }
 0x601   : > { %v2138_v44 = vmul.f32 %v8878_v21, %v11737_v10  ;;  %v2137_v47 = vmul.f32 %v8878_v21, %v11730_v30  ;;  %v2820_v10 = vmax.f32 %v11979_v28, %v11987_v33 }
 0x602   : > { %v2018_v62 = vpop.xlane.xlu1 %2017  ;;  %v2027_v52 = vpop.xlane.xlu0 %2026 }
 0x603   : > { %2101 = vadd.xlane.f32.xlu0 %v2100_v7  ;;  %8881 = vrcp.f32 %v2018_v62  ;;  %v2200_v61 = vpack.c.bf16 %v2138_v44, %v2136_v26  ;;  %v2199_v54 = vpack.c.bf16 %v2137_v47, %v2135_v1 }
 0x605   : > { %2263 = vmatprep.mubr.bf16.mxu0 %v2200_v61  ;;  %v16100_v61 = vld [vmem:[#allocation87_spill] sm:$0xff] }
 0x606   : > { %v2021_v7 = vpop.xlane.xlu1 %2020  ;;  %2098 = vadd.xlane.f32.xlu1 %v2097_v37  ;;  %v2030_v31 = vpop.xlane.xlu0 %2029  ;;  %2264 = vmatmul.mubr.bf16.vlgmr.msra.gmra.mxu0 %v2199_v54 }
 0x607   : > { %3037 = vadd.xlane.f32.xlu0 %v3036_v12  ;;  %8883 = vrcp.f32 %v2021_v7  ;;  %v16102_v7 = vld [vmem:[#allocation20_spill] sm:$0xff] }
 0x608   : > { %v8880_v21 = vpop.eup %8879  ;;  %8885 = vrcp.f32 %v2030_v31 }
 0x609   : > { %8887 = vrcp.f32 %v2027_v52  ;;  %v2140_v34 = vmul.f32 %v8880_v21, %v11763_v16  ;;  %v2139_v54 = vmul.f32 %v8880_v21, %v11757_v17  ;;  %v16105_v17 = vld [vmem:[#allocation59_spill] sm:$0xff] }
 0x60a   : > { %v12223_v22 = vpop.xlane.xlu1 %2782  ;;  %v12225_v30 = vpop.xlane.xlu0 %2791  ;;  %v2841_v21 = vsub.f32 %v16105_v17, %v12077_v29 }
 0x60b   : > { %16097 = vst [vmem:[#allocation123_spill] sm:$0xff] %v12223_v22  ;;  %2821 = vmax.xlane.f32.xlu0 %v2820_v10  ;;  %16098 = vst [vmem:[#allocation124_spill] sm:$0xff] %v12225_v30 }
 0x60e   : > { %v2024_v56 = vpop.xlane.xlu1 %2023  ;;  %v2033_v37 = vpop.xlane.xlu0 %2032 }
 0x60f   : > { %8889 = vrcp.f32 %v2024_v56 }
 0x610   : > { %v8882_v62 = vpop.eup %8881  ;;  %8891 = vrcp.f32 %v2033_v37 }
 0x611   : > { %v2142_v12 = vmul.f32 %v8882_v62, %v11787_v51  ;;  %v2141_v44 = vmul.f32 %v8882_v62, %v16100_v61 }
 0x612   : > { %v12227_v26 = vpop.xlane.xlu1 %2785 }
 0x613   : > { %16099 = vst [vmem:[#allocation125_spill] sm:$0xff] %v12227_v26  ;;  %v2202_v1 = vpack.c.bf16 %v2142_v12, %v2140_v34  ;;  %v2201_v47 = vpack.c.bf16 %v2141_v44, %v2139_v54  ;;  %v16106_v54 = vld [vmem:[#allocation65_spill] sm:$0xff] }
 0x614   : > { %v8884_v56 = vpop.eup %8883  ;;  %v2842_v61 = vsub.f32 %v16106_v54, %v12077_v29  ;;  %v16107_v44 = vld [vmem:[#allocation69_spill] sm:$0xff]  ;;  %v16110_v29 = vld [vmem:[#allocation64_spill] sm:$0xff] }
 0x615   : > { %2271 = vmatprep.mubr.bf16.mxu0 %v2202_v1  ;;  %v8886_v51 = vpop.eup %8885  ;;  %v2845_v1 = vsub.f32 %v16107_v44, %v12181_v40  ;;  %v2143_v28 = vmul.f32 %v8884_v56, %v11799_v49  ;;  %v2846_v54 = vsub.f32 %v16110_v29, %v12181_v40 }
 0x616   : > { %v12233_v10 = vpop.xlane.xlu1 %2788  ;;  %2272 = vmatmul.mubr.bf16.gmra.mxu0 %v2201_v47  ;;  %v8888_v34 = vpop.eup %8887  ;;  %v16108_v47 = vld [vmem:[#allocation22_spill] sm:$0xff]  ;;  %v2907_v49 = vmul.f32 1.442695, %v2842_v61  ;;  %v16115_v61 = vld [vmem:[#allocation89_spill] sm:$0xff] }
 0x617   : > { %16101 = vst [vmem:[#allocation87_spill] sm:$0xff] %v12233_v10  ;;  %3285 = vrot.lane.b32.xlu1 %v16102_v7, %s9795_s19  ;;  %v12237_v52 = vpop.xlane.xlu0 %2803  ;;  %v2144_v7 = vmul.f32 %v8884_v56, %v11807_v5 }
 0x618   : > { %16103 = vst [vmem:[#allocation126_spill] sm:$0xff] %v12237_v52  ;;  %v2905_v52 = vmul.f32 1.442695, %v2841_v21 }
 0x61a   : > { %v12239_v31 = vpop.xlane.xlu1 %2794 }
 0x61b   : > { %16104 = vst [vmem:[#allocation127_spill] sm:$0xff] %v12239_v31  ;;  %v2045_v16 = vpop.xlane.xlu0 %2044  ;;  %v16109_v31 = vld [vmem:[#allocation94_spill] sm:$0xff] }
 0x61c   : > { %v8890_v12 = vpop.eup %8889  ;;  %v2150_v10 = vmul.f32 %v8886_v51, %v16109_v31  ;;  %v2913_v31 = vmul.f32 1.442695, %v2845_v1 }
 0x61d   : > { %v2146_v33 = vmul.f32 %v8890_v12, %v11831_v23  ;;  %v2145_v17 = vmul.f32 %v8890_v12, %v11827_v48  ;;  %v16112_v23 = vld [vmem:[#allocation91_spill] sm:$0xff]  ;;  %v16113_v48 = vld [vmem:[#allocation48_spill] sm:$0xff]  ;;  %v2915_v12 = vmul.f32 1.442695, %v2846_v54 }
 0x61e   : > { %v2036_v62 = vpop.xlane.xlu1 %2035  ;;  %v2148_v26 = vmul.f32 %v8888_v34, %v16112_v23  ;;  %v2848_v56 = vsub.f32 %v16113_v48, %v12100_v18 }
 0x61f   : > { %8893 = vrcp.f32 %v2036_v62  ;;  %v2048_v44 = vpop.xlane.xlu0 %2047  ;;  %v2204_v5 = vpack.c.bf16 %v2146_v33, %v2144_v7  ;;  %v2203_v30 = vpack.c.bf16 %v2145_v17, %v2143_v28  ;;  %v16114_v33 = vld [vmem:[#allocation92_spill] sm:$0xff] }
 0x620   : > { %v2206_v21 = vpack.c.bf16 %v2150_v10, %v2148_v26  ;;  %8895 = vpow2.f32 %v2905_v52  ;;  %v2149_v28 = vmul.f32 %v8886_v51, %v16114_v33  ;;  %v2817_v33 = vmax.f32 %v11955_v53, %v11969_v39 }
 0x621   : > { %3299 = vrot.lane.b32.xlu0 %v16108_v47, %s9795_s19  ;;  %v16111_v47 = vld [vmem:[#allocation53_spill] sm:$0xff]  ;;  %2279 = vmatprep.mubr.bf16.mxu0 %v2204_v5  ;;  %8897 = vpow2.f32 %v2907_v49 }
 0x622   : > { %v12256_v37 = vpop.xlane.xlu1 %2797  ;;  %v2847_v22 = vsub.f32 %v16111_v47, %v12100_v18  ;;  %2280 = vmatmul.mubr.bf16.gmra.mxu0 %v2203_v30  ;;  %v2919_v47 = vmul.f32 1.442695, %v2848_v56  ;;  %8899 = vpow2.f32 %v2913_v31  ;;  %v2147_v18 = vmul.f32 %v8888_v34, %v16115_v61  ;;  %v8892_v30 = vpop.eup %8891 }
 0x623   : > { %2287 = vmatprep.mubr.bf16.mxu0 %v2206_v21  ;;  %8901 = vpow2.f32 %v2915_v12  ;;  %v2152_v51 = vmul.f32 %v8892_v30, %v11845_v60  ;;  %v2151_v54 = vmul.f32 %v8892_v30, %v11835_v19 }
 0x624   : > { %v2917_v29 = vmul.f32 1.442695, %v2847_v22  ;;  %v2205_v26 = vpack.c.bf16 %v2149_v28, %v2147_v18 }
 0x626   : > { %v2039_v40 = vpop.xlane.xlu1 %2038  ;;  %v2054_v62 = vpop.xlane.xlu0 %2053  ;;  %8903 = vpow2.f32 %v2917_v29 }
 0x627   : > { %8905 = vpow2.f32 %v2919_v47 }
 0x628   : > { %8907 = vrcp.f32 %v2048_v44 }
 0x629   : > { %8909 = vrcp.f32 %v2039_v40 }
 0x62a   : > { %v12264_v7 = vpop.xlane.xlu1 %2800  ;;  %v2057_v1 = vpop.xlane.xlu0 %2056  ;;  %2288 = vmatmul.mubr.bf16.gmra.mxu0 %v2205_v26  ;;  %8911 = vrcp.f32 %v2045_v16 }
 0x62c   : > { %v8894_v52 = vpop.eup %8893 }
 0x62d   : > { %v2154_v17 = vmul.f32 %v8894_v52, %v11903_v59  ;;  %v2153_v34 = vmul.f32 %v8894_v52, %v11895_v9  ;;  %v12275_v48 = vpop.eup %8895 }
 0x62e   : > { %v2042_v22 = vpop.xlane.xlu1 %2041  ;;  %v12277_v56 = vpop.eup %8897 }
 0x62f   : > { %v2060_v10 = vpop.xlane.xlu0 %2059  ;;  %8913 = vrcp.f32 %v2042_v22  ;;  %v2208_v5 = vpack.c.bf16 %v2154_v17, %v2152_v51  ;;  %v2207_v49 = vpack.c.bf16 %v2153_v34, %v2151_v54  ;;  %v12279_v16 = vpop.eup %8899  ;;  %v3033_v21 = vadd.f32 %v12277_v56, %v12275_v48 }
 0x630   : > { %16116 = vst [vmem:[#allocation59_spill] sm:$0xff] %v12279_v16  ;;  %v12283_v59 = vpop.eup %8901  ;;  %8915 = vrcp.f32 %v2054_v62 }
 0x631   : > { %2295 = vmatprep.mubr.bf16.mxu0 %v2208_v5  ;;  %16117 = vst [vmem:[#allocation65_spill] sm:$0xff] %v12283_v59  ;;  %v3039_v28 = vadd.f32 %v12283_v59, %v12279_v16 }
 0x632   : > { %v12271_v23 = vpop.xlane.xlu1 %2806  ;;  %2296 = vmatmul.mubr.bf16.gmra.mxu0 %v2207_v49 }
 0x633   : > { %v12273_v44 = vpop.xlane.xlu0 %2815  ;;  %v12285_v9 = vpop.eup %8903 }
 0x634   : > { %16118 = vst [vmem:[#allocation69_spill] sm:$0xff] %v12285_v9  ;;  %v12287_v31 = vpop.eup %8905 }
 0x635   : > { %v8908_v12 = vpop.eup %8907  ;;  %v3042_v52 = vadd.f32 %v12287_v31, %v12285_v9 }
 0x636   : > { %v12281_v60 = vpop.xlane.xlu1 %2809  ;;  %v8910_v29 = vpop.eup %8909  ;;  %v2162_v26 = vmul.f32 %v8908_v12, %v11913_v25 }
 0x637   : > { %v3304_v19 = vpop.permute.xlu0 %3303  ;;  %v8912_v47 = vpop.eup %8911  ;;  %v2156_v18 = vmul.f32 %v8910_v29, %v11937_v50  ;;  %v2155_v62 = vmul.f32 %v8910_v29, %v11927_v3 }
 0x638   : > { %7735 = vmatprep.subr.bf16.mxu0 %v3304_v19  ;;  %v2160_v54 = vmul.f32 %v8912_v47, %v11891_v20 }
 0x63a   : > { %v2051_v40 = vpop.xlane.xlu1 %2050  ;;  %v2212_v25 = vpack.c.bf16 %v2162_v26, %v2160_v54 }
 0x63b   : > { %3034 = vadd.xlane.f32.xlu1 %v3033_v21  ;;  %8917 = vrcp.f32 %v2051_v40 }
 0x63c   : > { %v8914_v61 = vpop.eup %8913  ;;  %8919 = vrcp.f32 %v2060_v10 }
 0x63d   : > { %v2158_v30 = vmul.f32 %v8914_v61, %v11973_v13  ;;  %v2157_v22 = vmul.f32 %v8914_v61, %v11961_v27  ;;  %8921 = vrcp.f32 %v2057_v1  ;;  %v2161_v13 = vmul.f32 %v8908_v12, %v11909_v24  ;;  %v8916_v10 = vpop.eup %8915 }
 0x63e   : > { %v2063_v50 = vpop.xlane.xlu1 %2062  ;;  %v2159_v27 = vmul.f32 %v8912_v47, %v11887_v46  ;;  %v2166_v49 = vmul.f32 %v8916_v10, %v11943_v57  ;;  %v2165_v12 = vmul.f32 %v8916_v10, %v11939_v32  ;;  %v16128_v10 = vld [vmem:[#allocation57_spill] sm:$0xff] }
 0x63f   : > { %2818 = vmax.xlane.f32.xlu1 %v2817_v33  ;;  %v2210_v51 = vpack.c.bf16 %v2158_v30, %v2156_v18  ;;  %v2209_v17 = vpack.c.bf16 %v2157_v22, %v2155_v62  ;;  %v12312_v33 = vpop.f32.mrf.mxu1  ;;  %v16124_v22 = vld [vmem:[#allocation60_spill] sm:$0xff] }
 0x640   : > { %3040 = vadd.xlane.f32.xlu0 %v3039_v28  ;;  %v2211_v5 = vpack.c.bf16 %v2161_v13, %v2159_v27  ;;  %v16119_v28 = vld [vmem:[#allocation23_spill] sm:$0xff]  ;;  %v2851_v27 = vsub.f32 %v16128_v10, %v12125_v2 }
 0x641   : > { %2303 = vmatprep.mubr.bf16.mxu0 %v2210_v51  ;;  %v12319_v61 = vpop.f32.mrf.mxu1  ;;  %v16125_v51 = vld [vmem:[#allocation26_spill] sm:$0xff] }
 0x642   : > { %2304 = vmatmul.mubr.bf16.gmra.mxu0 %v2209_v17  ;;  %v12304_v3 = vpop.xlane.xlu1 %2812  ;;  %16120 = vst [vmem:[#allocation94_spill] sm:$0xff] %v12319_v61  ;;  %v16127_v17 = vld [vmem:[#allocation24_spill] sm:$0xff] }
 0x643   : > { %3043 = vadd.xlane.f32.xlu1 %v3042_v52  ;;  %2311 = vmatprep.mubr.bf16.mxu0 %v2212_v25  ;;  %v12327_v26 = vpop.f32.mrf.mxu1  ;;  %v2849_v52 = vsub.f32 %v16124_v22, %v12110_v4  ;;  %v2850_v54 = vsub.f32 %v16127_v17, %v12110_v4 }
 0x644   : > { %16123 = vst [vmem:[#allocation64_spill] sm:$0xff] %v12327_v26 }
 0x645   : > { %v2921_v25 = vmul.f32 1.442695, %v2849_v52  ;;  %v2923_v13 = vmul.f32 1.442695, %v2850_v54 }
 0x646   : > { %v2075_v40 = vpop.xlane.xlu1 %2074 }
 0x647   : > { %8923 = vpow2.f32 %v2921_v25 }
 0x648   : > { %v8918_v34 = vpop.eup %8917  ;;  %8925 = vpow2.f32 %v2923_v13 }
 0x649   : > { %v2164_v1 = vmul.f32 %v8918_v34, %v12003_v15  ;;  %v8920_v20 = vpop.eup %8919  ;;  %v2163_v29 = vmul.f32 %v8918_v34, %v11999_v36  ;;  %v16121_v36 = vld [vmem:[#allocation25_spill] sm:$0xff]  ;;  %8927 = vrcp.f32 %v2063_v50 }
 0x64a   : > { %2312 = vmatmul.mubr.bf16.gmra.mxu0 %v2211_v5  ;;  %v8922_v21 = vpop.eup %8921  ;;  %v2170_v24 = vmul.f32 %v8920_v20, %v11977_v41  ;;  %v2169_v32 = vmul.f32 %v8920_v20, %v11975_v58  ;;  %v12334_v58 = vpop.f32.mrf.mxu1  ;;  %v16129_v34 = vld [vmem:[#allocation41_spill] sm:$0xff] }
 0x64b   : > { %v2214_v19 = vpack.c.bf16 %v2166_v49, %v2164_v1  ;;  %v2168_v46 = vmul.f32 %v8922_v21, %v11957_v38  ;;  %v2213_v15 = vpack.c.bf16 %v2165_v12, %v2163_v29  ;;  %v16122_v38 = vld [vmem:[#allocation14_spill] sm:$0xff]  ;;  %v2167_v18 = vmul.f32 %v8922_v21, %v11953_v14  ;;  %16126 = vst [vmem:[#allocation53_spill] sm:$0xff] %v12334_v58 }
 0x64c   : > { %v2852_v5 = vsub.f32 %v16129_v34, %v12125_v2  ;;  %v2925_v1 = vmul.f32 1.442695, %v2851_v27  ;;  %v2826_v2 = vmax.f32 %v12019_v43, %v12025_v35  ;;  %v16138_v27 = vld [vmem:[#allocation109_spill] sm:$0xff]  ;;  %v16139_v34 = vld [vmem:[#allocation74_spill] sm:$0xff] }
 0x64d   : > { %2319 = vmatprep.mubr.bf16.mxu0 %v2214_v19  ;;  %v2216_v57 = vpack.c.bf16 %v2170_v24, %v2168_v46  ;;  %v2215_v62 = vpack.c.bf16 %v2169_v32, %v2167_v18  ;;  %v16134_v32 = vld [vmem:[#allocation21_spill] sm:$0xff]  ;;  %v16135_v18 = vld [vmem:[#allocation110_spill] sm:$0xff] }
 0x64e   : > { %v2927_v49 = vmul.f32 1.442695, %v2852_v5  ;;  %v2823_v5 = vmax.f32 %v16139_v34, %v16138_v27 }
 0x652   : > { %v12315_v47 = vpop.xlane.xlu1 %2086  ;;  %2320 = vmatmul.mubr.bf16.gmra.mxu0 %v2213_v15 }
 0x653   : > { %2327 = vmatprep.mubr.bf16.mxu0 %v2216_v57  ;;  %v16133_v57 = vld [vmem:[#allocation51_spill] sm:$0xff] }
 0x654   : > { %3283 = vrot.lane.b32.xlu1 %v16119_v28, %s9795_s19  ;;  %v12343_v21 = vpop.eup %8923  ;;  %v16193_v28 = vld [vmem:[#allocation16_spill] sm:$0xff] }
 0x655   : > { %16130 = vst [vmem:[#allocation91_spill] sm:$0xff] %v12343_v21  ;;  %v12345_v29 = vpop.eup %8925 }
 0x656   : > { %3297 = vrot.lane.b32.xlu0 %v16121_v36, %s9795_s19  ;;  %v3288_v41 = vpop.permute.xlu1 %3287  ;;  %16131 = vst [vmem:[#allocation48_spill] sm:$0xff] %v12345_v29  ;;  %v8928_v24 = vpop.eup %8927  ;;  %v3045_v46 = vadd.f32 %v12345_v29, %v12343_v21  ;;  %v16219_v29 = vld [vmem:[#allocation62_spill] sm:$0xff] }
 0x657   : > { %7736 = vmatpush3.bf16.msra.mxu0 %v3288_v41  ;;  %v2172_v41 = vmul.f32 %v8928_v24, %v16133_v57 }
 0x658   : > { %4582 = vrot.lane.b32.xlu1 %v16122_v38, %s9799_s5 }
 0x65a   : > { %v4581_v30 = vpop.permute.xlu1 %4580  ;;  %2328 = vmatmul.mubr.bf16.gmra.mxu0 %v2215_v62  ;;  %v16136_v62 = vld [vmem:[#allocation52_spill] sm:$0xff] }
 0x65b   : > { %8047 = vmatprep.mubr.msk.bf16.mxu1 %vm1429_vm1, %v4581_v30 }
 0x65c   : > { %3281 = vrot.lane.b32.xlu1 %v16125_v51, %s9795_s19  ;;  %8048 = vmatmul.mubr.msk.bf16.gmra.mxu1 %vm1429_vm1, %v4581_v30  ;;  %v2171_v30 = vmul.f32 %v8928_v24, %v16135_v18  ;;  %v16143_v24 = vld [vmem:[#allocation34_spill] sm:$0xff] }
 0x65e   : > { %v3302_v14 = vpop.permute.xlu1 %3301 }
 0x65f   : > { %7737 = vmatprep.subr.bf16.mxu0 %v3302_v14 }
 0x668   : > { %v2066_v20 = vpop.xlane.xlu0 %2065 }
 0x669   : > { %8929 = vrcp.f32 %v2066_v20  ;;  %v16141_v20 = vld [vmem:[#allocation58_spill] sm:$0xff] }
 0x66a   : > { %8931 = vpow2.f32 %v2925_v1  ;;  %v16140_v1 = vld [vmem:[#allocation54_spill] sm:$0xff] }
 0x66b   : > { %8933 = vpow2.f32 %v2927_v49 }
 0x66c   : > { %v2069_v4 = vpop.xlane.xlu0 %2068 }
 0x66d   : > { %8935 = vrcp.f32 %v2069_v4 }
 0x670   : > { %v2072_v19 = vpop.xlane.xlu0 %2071 }
 0x671   : > { %8937 = vrcp.f32 %v2072_v19  ;;  %v16142_v19 = vld [vmem:[#allocation49_spill] sm:$0xff] }
 0x672   : > { %8939 = vrcp.f32 %v2075_v40 }
 0x674   : > { %v2078_v12 = vpop.xlane.xlu0 %2077 }
 0x675   : > { %8941 = vrcp.f32 %v2078_v12  ;;  %2827 = vmax.xlane.f32.xlu0 %v2826_v2 }
 0x676   : > { %v8930_v50 = vpop.eup %8929 }
 0x677   : > { %v12351_v15 = vpop.eup %8931  ;;  %v2174_v38 = vmul.f32 %v8930_v50, %v16134_v32  ;;  %v2173_v22 = vmul.f32 %v8930_v50, %v16136_v62 }
 0x678   : > { %16132 = vst [vmem:[#allocation92_spill] sm:$0xff] %v12351_v15  ;;  %v12357_v52 = vpop.eup %8933  ;;  %v2081_v40 = vpop.xlane.xlu0 %2080 }
 0x679   : > { %16137 = vst [vmem:[#allocation89_spill] sm:$0xff] %v12357_v52  ;;  %3046 = vadd.xlane.f32.xlu0 %v3045_v46  ;;  %v2218_v17 = vpack.c.bf16 %v2174_v38, %v2172_v41  ;;  %v2217_v54 = vpack.c.bf16 %v2173_v22, %v2171_v30  ;;  %8943 = vrcp.f32 %v2081_v40  ;;  %v3048_v14 = vadd.f32 %v12357_v52, %v12351_v15  ;;  %v16144_v38 = vld [vmem:[#allocation112_spill] sm:$0xff]  ;;  %v16145_v30 = vld [vmem:[#allocation13_spill] sm:$0xff] }
 0x67a   : > { %v8936_v25 = vpop.eup %8935 }
 0x67b   : > { %2335 = vmatprep.mubr.bf16.mxu0 %v2218_v17  ;;  %v2176_v49 = vmul.f32 %v8936_v25, %v16140_v1  ;;  %v2175_v2 = vmul.f32 %v8936_v25, %v16142_v19  ;;  %v16146_v17 = vld [vmem:[#allocation67_spill] sm:$0xff] }
 0x67c   : > { %2336 = vmatmul.mubr.bf16.gmra.mxu0 %v2217_v54  ;;  %v2084_v13 = vpop.xlane.xlu0 %2083  ;;  %v16147_v25 = vld [vmem:[#allocation111_spill] sm:$0xff] }
 0x67d   : > { %8945 = vrcp.f32 %v2084_v13  ;;  %3049 = vadd.xlane.f32.xlu0 %v3048_v14 }
 0x67e   : > { %v8938_v10 = vpop.eup %8937  ;;  %8947 = vrcp.f32 %v12315_v47 }
 0x67f   : > { %v2178_v4 = vmul.f32 %v8938_v10, %v16141_v20  ;;  %v2177_v12 = vmul.f32 %v8938_v10, %v16143_v24  ;;  %v8940_v50 = vpop.eup %8939 }
 0x680   : > { %v2090_v46 = vpop.xlane.xlu0 %2089  ;;  %2824 = vmax.xlane.f32.xlu1 %v2823_v5  ;;  %v2180_v18 = vmul.f32 %v8940_v50, %v16144_v38  ;;  %v2179_v13 = vmul.f32 %v8940_v50, %v16147_v25 }
 0x681   : > { %8949 = vrcp.f32 %v2090_v46  ;;  %v2220_v57 = vpack.c.bf16 %v2178_v4, %v2176_v49  ;;  %v2219_v41 = vpack.c.bf16 %v2177_v12, %v2175_v2 }
 0x682   : > { %v8942_v32 = vpop.eup %8941 }
 0x683   : > { %2343 = vmatprep.mubr.bf16.mxu0 %v2220_v57  ;;  %v2182_v62 = vmul.f32 %v8942_v32, %v16145_v30  ;;  %v2181_v54 = vmul.f32 %v8942_v32, %v16146_v17  ;;  %v16148_v57 = vld [vmem:[#allocation38_spill] sm:$0xff]  ;;  %v16153_v17 = vld [vmem:[#allocation47_spill] sm:$0xff] }
 0x684   : > { %2344 = vmatmul.mubr.bf16.gmra.mxu0 %v2219_v41  ;;  %v2093_v22 = vpop.xlane.xlu0 %2092 }
 0x685   : > { %v2222_v40 = vpack.c.bf16 %v2182_v62, %v2180_v18  ;;  %8951 = vrcp.f32 %v2093_v22  ;;  %v2221_v5 = vpack.c.bf16 %v2181_v54, %v2179_v13  ;;  %v16151_v18 = vld [vmem:[#allocation15_spill] sm:$0xff] }
 0x686   : > { %v8944_v14 = vpop.eup %8943  ;;  %v16155_v13 = vld [vmem:[#allocation115_spill] sm:$0xff] }
 0x687   : > { %2351 = vmatprep.mubr.bf16.mxu0 %v2222_v40  ;;  %v2184_v1 = vmul.f32 %v8944_v14, %v12153_v11  ;;  %v2183_v41 = vmul.f32 %v8944_v14, %v16148_v57  ;;  %v16149_v11 = vld [vmem:[#allocation116_spill] sm:$0xff]  ;;  %v16152_v40 = vld [vmem:[#allocation29_spill] sm:$0xff]  ;;  %v16154_v14 = vld [vmem:[#allocation42_spill] sm:$0xff] }
 0x688   : > { %v2096_v47 = vpop.xlane.xlu0 %2095  ;;  %v16160_v57 = vld [vmem:[#allocation63_spill] sm:$0xff] }
 0x689   : > { %8953 = vrcp.f32 %v2096_v47 }
 0x68a   : > { %v8946_v10 = vpop.eup %8945 }
 0x68b   : > { %v2186_v49 = vmul.f32 %v8946_v10, %v12165_v55  ;;  %v8948_v4 = vpop.eup %8947  ;;  %v2185_v24 = vmul.f32 %v8946_v10, %v12159_v6  ;;  %v16150_v55 = vld [vmem:[#allocation28_spill] sm:$0xff] }
 0x68c   : > { %2352 = vmatmul.mubr.bf16.gmra.mxu0 %v2221_v5  ;;  %v2102_v20 = vpop.xlane.xlu0 %2101  ;;  %v2188_v32 = vmul.f32 %v8948_v4, %v16149_v11  ;;  %v2187_v10 = vmul.f32 %v8948_v4, %v16155_v13  ;;  %v16156_v5 = vld [vmem:[#allocation71_spill] sm:$0xff]  ;;  %v16161_v4 = vld [vmem:[#allocation32_spill] sm:$0xff]  ;;  %v16166_v13 = vld [vmem:[#allocation73_spill] sm:$0xff] }
 0x68d   : > { %v2224_v19 = vpack.c.bf16 %v2186_v49, %v2184_v1  ;;  %8955 = vrcp.f32 %v2102_v20  ;;  %v2223_v38 = vpack.c.bf16 %v2185_v24, %v2183_v41  ;;  %v16157_v49 = vld [vmem:[#allocation31_spill] sm:$0xff] }
 0x68e   : > { %v8950_v2 = vpop.eup %8949  ;;  %v16159_v24 = vld [vmem:[#allocation55_spill] sm:$0xff] }
 0x68f   : > { %2359 = vmatprep.mubr.bf16.mxu0 %v2224_v19  ;;  %v2190_v12 = vmul.f32 %v8950_v2, %v12173_v63  ;;  %v2099_v46 = vpop.xlane.xlu1 %2098  ;;  %v2189_v54 = vmul.f32 %v8950_v2, %v16153_v17  ;;  %v16158_v19 = vld [vmem:[#allocation70_spill] sm:$0xff] }
 0x690   : > { %v12376_v50 = vpop.xlane.xlu0 %3037  ;;  %8957 = vrcp.f32 %v2099_v46  ;;  %v2854_v41 = vsub.f32 %v16160_v57, %v16158_v19 }
 0x691   : > { %3295 = vrot.lane.b32.xlu1 %v16150_v55, %s9795_s19  ;;  %v2226_v6 = vpack.c.bf16 %v2190_v12, %v2188_v32  ;;  %v2225_v20 = vpack.c.bf16 %v2189_v54, %v2187_v10  ;;  %v2853_v12 = vsub.f32 %v16159_v24, %v16158_v19  ;;  %v16162_v32 = vld [vmem:[#allocation30_spill] sm:$0xff] }
 0x692   : > { %v8952_v62 = vpop.eup %8951 }
 0x693   : > { %4584 = vrot.lane.b32.xlu0 %v16151_v18, %s9799_s5  ;;  %v3286_v30 = vpop.permute.xlu1 %3285  ;;  %v2192_v1 = vmul.f32 %v8952_v62, %v16156_v5  ;;  %v2929_v18 = vmul.f32 1.442695, %v2853_v12  ;;  %v2191_v10 = vmul.f32 %v8952_v62, %v16166_v13  ;;  %v16167_v5 = vld [vmem:[#allocation120_spill] sm:$0xff]  ;;  %v16180_v13 = vld [vmem:[#allocation113_spill] sm:$0xff] }
 0x694   : > { %2360 = vmatmul.mubr.bf16.gmra.mxu0 %v2223_v38  ;;  %v12384_v63 = vpop.xlane.xlu0 %2821 }
 0x695   : > { %2367 = vmatprep.mubr.bf16.mxu0 %v2226_v6  ;;  %7738 = vmatpush3.bf16.msra.mxu0 %v3286_v30  ;;  %v16163_v6 = vld [vmem:[#allocation39_spill] sm:$0xff]  ;;  %v16164_v30 = vld [vmem:[#allocation68_spill] sm:$0xff]  ;;  %8959 = vpow2.f32 %v2929_v18 }
 0x696   : > { %v8954_v22 = vpop.eup %8953  ;;  %3279 = vrot.lane.b32.xlu1 %v16152_v40, %s9795_s19  ;;  %v2855_v17 = vsub.f32 %v16164_v30, %v16163_v6 }
 0x697   : > { %v2194_v47 = vmul.f32 %v8954_v22, %v16154_v14  ;;  %v2193_v38 = vmul.f32 %v8954_v22, %v16162_v32  ;;  %v2931_v14 = vmul.f32 1.442695, %v2854_v41  ;;  %v12410_v41 = vpop.f32.mrf.mxu1  ;;  %v16171_v32 = vld [vmem:[#allocation117_spill] sm:$0xff] }
 0x698   : > { %v3300_v25 = vpop.permute.xlu0 %3299  ;;  %v2933_v19 = vmul.f32 1.442695, %v2855_v17  ;;  %16169 = vst [vmem:[#allocation14_spill] sm:$0xff] %v12410_v41 }
 0x699   : > { %7739 = vmatprep.subr.bf16.mxu0 %v3300_v25  ;;  %v2228_v46 = vpack.c.bf16 %v2194_v47, %v2192_v1  ;;  %v16165_v47 = vld [vmem:[#allocation76_spill] sm:$0xff]  ;;  %8961 = vpow2.f32 %v2931_v14 }
 0x69a   : > { %3293 = vrot.lane.b32.xlu1 %v16157_v49, %s9795_s19  ;;  %v8956_v2 = vpop.eup %8955  ;;  %v2856_v25 = vsub.f32 %v16165_v47, %v16163_v6  ;;  %8963 = vpow2.f32 %v2933_v19  ;;  %v12416_v6 = vpop.f32.mrf.mxu1  ;;  %v16188_v49 = vld [vmem:[#allocation33_spill] sm:$0xff] }
 0x69b   : > { %v2198_v1 = vmul.f32 %v8956_v2, %v16167_v5  ;;  %16173 = vst [vmem:[#allocation24_spill] sm:$0xff] %v12416_v6 }
 0x69c   : > { %2368 = vmatmul.mubr.bf16.gmra.mxu0 %v2225_v20  ;;  %v2227_v20 = vpack.c.bf16 %v2193_v38, %v2191_v10  ;;  %v2935_v22 = vmul.f32 1.442695, %v2856_v25  ;;  %v16172_v38 = vld [vmem:[#allocation61_spill] sm:$0xff]  ;;  %v16179_v25 = vld [vmem:[#allocation114_spill] sm:$0xff] }
 0x69d   : > { %2375 = vmatprep.mubr.bf16.mxu0 %v2228_v46  ;;  %v8958_v11 = vpop.eup %8957  ;;  %v2832_v18 = vmax.f32 %v16172_v38, %v16171_v32  ;;  %v2829_v10 = vmax.f32 %v16180_v13, %v16179_v25 }
 0x69e   : > { %3277 = vrot.lane.b32.xlu1 %v16161_v4, %s9795_s19  ;;  %v2196_v54 = vmul.f32 %v8958_v11, %v12201_v8  ;;  %v2195_v12 = vmul.f32 %v8958_v11, %v12193_v42  ;;  %8965 = vpow2.f32 %v2935_v22  ;;  %v16168_v8 = vld [vmem:[#allocation119_spill] sm:$0xff]  ;;  %v12422_v42 = vpop.f32.mrf.mxu1 }
 0x69f   : > { %v2197_v46 = vmul.f32 %v8956_v2, %v16168_v8  ;;  %16176 = vst [vmem:[#allocation51_spill] sm:$0xff] %v12422_v42  ;;  %8967 = vrcp.f32 %v12376_v50  ;;  %v16186_v50 = vld [vmem:[#allocation35_spill] sm:$0xff] }
 0x6a0   : > { %v2230_v24 = vpack.c.bf16 %v2198_v1, %v2196_v54  ;;  %v12428_v54 = vpop.f32.mrf.mxu1 }
 0x6a1   : > { %v2229_v57 = vpack.c.bf16 %v2197_v46, %v2195_v12  ;;  %16178 = vst [vmem:[#allocation110_spill] sm:$0xff] %v12428_v54 }
 0x6a2   : > { %v12412_v62 = vpop.eup %8959  ;;  %v12432_v47 = vpop.f32.mrf.mxu1 }
 0x6a3   : > { %16170 = vst [vmem:[#allocation60_spill] sm:$0xff] %v12412_v62 }
 0x6a4   : > { %2376 = vmatmul.mubr.bf16.gmra.mxu0 %v2227_v20  ;;  %v12436_v5 = vpop.f32.mrf.mxu1 }
 0x6a5   : > { %2383 = vmatprep.mubr.bf16.mxu0 %v2230_v24 }
 0x6a6   : > { %v12418_v30 = vpop.eup %8961  ;;  %v12438_v1 = vpop.f32.mrf.mxu1 }
 0x6a7   : > { %16174 = vst [vmem:[#allocation57_spill] sm:$0xff] %v12418_v30  ;;  %v12420_v17 = vpop.eup %8963  ;;  %v3051_v2 = vadd.f32 %v12418_v30, %v12412_v62  ;;  %16181 = vst [vmem:[#allocation52_spill] sm:$0xff] %v12438_v1  ;;  %v16201_v62 = vld [vmem:[#allocation37_spill] sm:$0xff] }
 0x6a8   : > { %16175 = vst [vmem:[#allocation41_spill] sm:$0xff] %v12420_v17  ;;  %v12441_v19 = vpop.f32.mrf.mxu1 }
 0x6a9   : > { %16182 = vst [vmem:[#allocation109_spill] sm:$0xff] %v12441_v19 }
 0x6aa   : > { %v12445_v8 = vpop.f32.mrf.mxu1 }
 0x6ab   : > { %v12426_v11 = vpop.eup %8965  ;;  %16183 = vst [vmem:[#allocation74_spill] sm:$0xff] %v12445_v8 }
 0x6ac   : > { %2384 = vmatmul.mubr.bf16.gmra.mxu0 %v2229_v57  ;;  %16177 = vst [vmem:[#allocation21_spill] sm:$0xff] %v12426_v11  ;;  %v3054_v14 = vadd.f32 %v12426_v11, %v12420_v17 }
 0x6b2   : > { %2833 = vmax.xlane.f32.xlu0 %v2832_v18 }
 0x6b6   : > { %3052 = vadd.xlane.f32.xlu0 %v3051_v2  ;;  %v12453_v2 = vpop.f32.mrf.mxu1 }
 0x6b7   : > { %16185 = vst [vmem:[#allocation58_spill] sm:$0xff] %v12453_v2 }
 0x6ba   : > { %3055 = vadd.xlane.f32.xlu0 %v3054_v14  ;;  %v8968_v14 = vpop.eup %8967 }
 0x6bb   : > { %v3164_v55 = vmul.f32 %v8968_v14, %v12211_v0  ;;  %v16197_v0 = vld [vmem:[#allocation79_spill] sm:$0xff] }
 0x6c2   : > { %2830 = vmax.xlane.f32.xlu1 %v2829_v10 }
 0x6c4   : > { %v3035_v20 = vpop.xlane.xlu1 %3034 }
 0x6c5   : > { %8969 = vrcp.f32 %v3035_v20 }
 0x6c6   : > { %v7591_v24 = vpop.f32.mrf.mxu0 }
 0x6c8   : > { %v12443_v22 = vpop.xlane.xlu1 %2818  ;;  %v7592_v12 = vpop.f32.mrf.mxu0 }
 0x6c9   : > { %v12447_v46 = vadd.f32 %v7592_v12, %v7591_v24  ;;  %v12449_v57 = vpop.xlane.xlu0 %3040  ;;  %v12461_v24 = vpop.f32.mrf.mxu1  ;;  %v12464_v12 = vmul.f32 %v8968_v14, %v12207_v45 }
 0x6ca   : > { %v12457_v4 = vpop.f32.mrf.mxu0  ;;  %16189 = vst [vmem:[#allocation34_spill] sm:$0xff] %v12461_v24 }
 0x6cb   : > { %16184 = vst [vmem:[#allocation54_spill] sm:$0xff] %v12447_v46  ;;  %16187 = vst [vmem:[#allocation49_spill] sm:$0xff] %v12457_v4  ;;  %v12479_v45 = vpop.f32.mrf.mxu1 }
 0x6cc   : > { %v12451_v18 = vpop.xlane.xlu1 %3043  ;;  %16190 = vst [vmem:[#allocation112_spill] sm:$0xff] %v12464_v12  ;;  %16194 = vst [vmem:[#allocation111_spill] sm:$0xff] %v12479_v45 }
 0x6cd   : > { %v3298_v20 = vpop.permute.xlu0 %3297 }
 0x6d0   : > { %3275 = vrot.lane.b32.xlu0 %v16186_v50, %s9795_s19  ;;  %v3284_v10 = vpop.permute.xlu1 %3283 }
 0x6d1   : > { %7740 = vmatpush3.bf16.msra.mxu0 %v3284_v10 }
 0x6d2   : > { %v8970_v40 = vpop.eup %8969  ;;  %7741 = vmatprep.subr.bf16.mxu0 %v3298_v20  ;;  %v12474_v20 = vpop.f32.mrf.mxu0 }
 0x6d3   : > { %3291 = vrot.lane.b32.xlu1 %v16188_v49, %s9795_s19  ;;  %v12467_v46 = vmul.f32 %v8970_v40, %v12275_v48  ;;  %v3162_v50 = vmul.f32 %v8970_v40, %v12277_v56  ;;  %16192 = vst [vmem:[#allocation67_spill] sm:$0xff] %v12474_v20  ;;  %v16195_v48 = vld [vmem:[#allocation45_spill] sm:$0xff]  ;;  %v16196_v56 = vld [vmem:[#allocation78_spill] sm:$0xff]  ;;  %v16198_v20 = vld [vmem:[#allocation36_spill] sm:$0xff] }
 0x6d4   : > { %v4583_v10 = vpop.permute.xlu1 %4582  ;;  %v2859_v40 = vsub.f32 %v16196_v56, %v16195_v48  ;;  %v2860_v14 = vsub.f32 %v16197_v0, %v16195_v48  ;;  %v16203_v56 = vld [vmem:[#allocation82_spill] sm:$0xff] }
 0x6d5   : > { %16191 = vst [vmem:[#allocation13_spill] sm:$0xff] %v12467_v46  ;;  %8049 = vmatprep.mubr.msk.bf16.mxu1 %vm1429_vm1, %v4583_v10  ;;  %v3226_v4 = vpack.c.bf16 %v3164_v55, %v3162_v50 }
 0x6d6   : > { %8050 = vmatmul.mubr.msk.bf16.gmra.mxu1 %vm1429_vm1, %v4583_v10  ;;  %v7597_v55 = vpop.f32.mrf.mxu0  ;;  %v2941_v51 = vmul.f32 1.442695, %v2859_v40  ;;  %v12489_v10 = vpop.f32.mrf.mxu1  ;;  %v2943_v36 = vmul.f32 1.442695, %v2860_v14 }
 0x6d7   : > { %4586 = vrot.lane.b32.xlu1 %v16193_v28, %s9799_s5  ;;  %3353 = vmatprep.mubr.bf16.mxu0 %v3226_v4  ;;  %16200 = vst [vmem:[#allocation116_spill] sm:$0xff] %v12489_v10  ;;  %v16202_v4 = vld [vmem:[#allocation121_spill] sm:$0xff] }
 0x6d8   : > { %v3282_v50 = vpop.permute.xlu1 %3281  ;;  %v7598_v49 = vpop.f32.mrf.mxu0  ;;  %8971 = vpow2.f32 %v2941_v51  ;;  %v2863_v48 = vsub.f32 %v16203_v56, %v16202_v4  ;;  %v16209_v51 = vld [vmem:[#allocation125_spill] sm:$0xff] }
 0x6d9   : > { %7742 = vmatpush3.bf16.msra.mxu0 %v3282_v50  ;;  %v12487_v28 = vadd.f32 %v7598_v49, %v7597_v55  ;;  %v12495_v0 = vpop.f32.mrf.mxu1  ;;  %8973 = vpow2.f32 %v2943_v36  ;;  %v16205_v50 = vld [vmem:[#allocation83_spill] sm:$0xff]  ;;  %v16212_v36 = vld [vmem:[#allocation88_spill] sm:$0xff] }
 0x6da   : > { %16204 = vst [vmem:[#allocation15_spill] sm:$0xff] %v12495_v0  ;;  %v2864_v17 = vsub.f32 %v16205_v50, %v16202_v4  ;;  %v2949_v49 = vmul.f32 1.442695, %v2863_v48  ;;  %v2868_v21 = vsub.f32 %v16212_v36, %v16209_v51 }
 0x6db   : > { %3289 = vrot.lane.b32.xlu1 %v16198_v20, %s9795_s19  ;;  %16199 = vst [vmem:[#allocation38_spill] sm:$0xff] %v12487_v28  ;;  %v12499_v20 = vpop.f32.mrf.mxu0  ;;  %v12501_v40 = vpop.f32.mrf.mxu1 }
 0x6dc   : > { %16206 = vst [vmem:[#allocation47_spill] sm:$0xff] %v12499_v20  ;;  %16207 = vst [vmem:[#allocation42_spill] sm:$0xff] %v12501_v40  ;;  %v2951_v55 = vmul.f32 1.442695, %v2864_v17  ;;  %8975 = vpow2.f32 %v2949_v49  ;;  %v16215_v20 = vld [vmem:[#allocation50_spill] sm:$0xff]  ;;  %v16216_v17 = vld [vmem:[#allocation77_spill] sm:$0xff] }
 0x6dd   : > { %v12503_v14 = vpop.f32.mrf.mxu0  ;;  %v12507_v56 = vpop.f32.mrf.mxu1  ;;  %v2857_v11 = vsub.f32 %v16216_v17, %v16215_v20  ;;  %v16218_v49 = vld [vmem:[#allocation75_spill] sm:$0xff]  ;;  %v16224_v17 = vld [vmem:[#allocation124_spill] sm:$0xff] }
 0x6de   : > { %16208 = vst [vmem:[#allocation115_spill] sm:$0xff] %v12503_v14  ;;  %16211 = vst [vmem:[#allocation71_spill] sm:$0xff] %v12507_v56  ;;  %8977 = vpow2.f32 %v2951_v55  ;;  %v16221_v55 = vld [vmem:[#allocation72_spill] sm:$0xff] }
 0x6df   : > { %3273 = vrot.lane.b32.xlu1 %v16201_v62, %s9795_s19  ;;  %v16210_v62 = vld [vmem:[#allocation86_spill] sm:$0xff]  ;;  %v12521_v16 = vpop.f32.mrf.mxu1  ;;  %v2858_v52 = vsub.f32 %v16221_v55, %v16215_v20 }
 0x6e0   : > { %v2867_v30 = vsub.f32 %v16210_v62, %v16209_v51  ;;  %v2838_v62 = vmax.f32 %v16219_v29, %v16218_v49  ;;  %16220 = vst [vmem:[#allocation30_spill] sm:$0xff] %v12521_v16  ;;  %v2959_v51 = vmul.f32 1.442695, %v2868_v21  ;;  %v16227_v29 = vld [vmem:[#allocation95_spill] sm:$0xff] }
 0x6e1   : > { %v12531_v9 = vpop.f32.mrf.mxu1  ;;  %v2939_v49 = vmul.f32 1.442695, %v2858_v52  ;;  %v2872_v46 = vsub.f32 %v16227_v29, %v16224_v17  ;;  %v3838_v29 = vmax.f32 %v12327_v26, %v12334_v58 }
 0x6e2   : > { %v7603_v28 = vpop.f32.mrf.mxu0  ;;  %v2957_v14 = vmul.f32 1.442695, %v2867_v30  ;;  %v16225_v30 = vld [vmem:[#allocation93_spill] sm:$0xff]  ;;  %16226 = vst [vmem:[#allocation76_spill] sm:$0xff] %v12531_v9 }
 0x6e3   : > { %v12547_v52 = vpop.f32.mrf.mxu1 }
 0x6e4   : > { %v7604_v4 = vpop.f32.mrf.mxu0  ;;  %8979 = vpow2.f32 %v2957_v14  ;;  %16233 = vst [vmem:[#allocation117_spill] sm:$0xff] %v12547_v52 }
 0x6e5   : > { %v12511_v50 = vadd.f32 %v7604_v4, %v7603_v28  ;;  %v12517_v15 = vpop.eup %8971  ;;  %8981 = vpow2.f32 %v2959_v51  ;;  %v16234_v51 = vld [vmem:[#allocation81_spill] sm:$0xff] }
 0x6e6   : > { %v12513_v48 = vpop.f32.mrf.mxu0  ;;  %16217 = vst [vmem:[#allocation63_spill] sm:$0xff] %v12517_v15  ;;  %v12527_v28 = vpop.eup %8973 }
 0x6e7   : > { %16213 = vst [vmem:[#allocation70_spill] sm:$0xff] %v12511_v50  ;;  %16214 = vst [vmem:[#allocation55_spill] sm:$0xff] %v12513_v48  ;;  %v2937_v50 = vmul.f32 1.442695, %v2857_v11  ;;  %v2871_v48 = vsub.f32 %v16225_v30, %v16224_v17  ;;  %v3060_v21 = vadd.f32 %v12527_v28, %v12517_v15  ;;  %v16230_v11 = vld [vmem:[#allocation122_spill] sm:$0xff] }
 0x6e8   : > { %v12525_v36 = vpop.f32.mrf.mxu0  ;;  %16223 = vst [vmem:[#allocation68_spill] sm:$0xff] %v12527_v28  ;;  %v2967_v17 = vmul.f32 1.442695, %v2872_v46 }
 0x6e9   : > { %16222 = vst [vmem:[#allocation39_spill] sm:$0xff] %v12525_v36  ;;  %8983 = vpow2.f32 %v2937_v50  ;;  %v2965_v30 = vmul.f32 1.442695, %v2871_v48  ;;  %v12543_v12 = vpop.eup %8975  ;;  %v16237_v48 = vld [vmem:[#allocation97_spill] sm:$0xff] }
 0x6ea   : > { %v7609_v4 = vpop.f32.mrf.mxu0  ;;  %16232 = vst [vmem:[#allocation119_spill] sm:$0xff] %v12543_v12  ;;  %8985 = vpow2.f32 %v2939_v49  ;;  %v16239_v49 = vld [vmem:[#allocation98_spill] sm:$0xff] }
 0x6eb   : > { %8987 = vpow2.f32 %v2965_v30  ;;  %v2876_v28 = vsub.f32 %v16239_v49, %v12256_v37  ;;  %v16242_v30 = vld [vmem:[#allocation84_spill] sm:$0xff] }
 0x6ec   : > { %v7610_v20 = vpop.f32.mrf.mxu0  ;;  %8989 = vpow2.f32 %v2967_v17 }
 0x6ed   : > { %v12537_v55 = vadd.f32 %v7610_v20, %v7609_v4  ;;  %v2862_v4 = vsub.f32 %v16234_v51, %v16230_v11 }
 0x6ee   : > { %v12539_v36 = vpop.f32.mrf.mxu0 }
 0x6ef   : > { %2839 = vmax.xlane.f32.xlu0 %v2838_v62  ;;  %16228 = vst [vmem:[#allocation73_spill] sm:$0xff] %v12537_v55  ;;  %16229 = vst [vmem:[#allocation120_spill] sm:$0xff] %v12539_v36  ;;  %v16231_v62 = vld [vmem:[#allocation80_spill] sm:$0xff]  ;;  %v2875_v55 = vsub.f32 %v16237_v48, %v12256_v37  ;;  %v12557_v36 = vpop.f32.mrf.mxu1  ;;  %v2947_v15 = vmul.f32 1.442695, %v2862_v4  ;;  %v3844_v4 = vmax.f32 %v12422_v42, %v12428_v54  ;;  %v16245_v37 = vld [vmem:[#allocation85_spill] sm:$0xff] }
 0x6f0   : > { %v2861_v14 = vsub.f32 %v16231_v62, %v16230_v11  ;;  %v12551_v20 = vpop.f32.mrf.mxu0  ;;  %16238 = vst [vmem:[#allocation113_spill] sm:$0xff] %v12557_v36  ;;  %v16251_v54 = vld [vmem:[#allocation100_spill] sm:$0xff] }
 0x6f1   : > { %16235 = vst [vmem:[#allocation61_spill] sm:$0xff] %v12551_v20  ;;  %v2973_v20 = vmul.f32 1.442695, %v2875_v55  ;;  %v12571_v17 = vpop.f32.mrf.mxu1  ;;  %v16248_v55 = vld [vmem:[#allocation44_spill] sm:$0xff] }
 0x6f2   : > { %v7615_v50 = vpop.f32.mrf.mxu0  ;;  %v2945_v62 = vmul.f32 1.442695, %v2861_v14  ;;  %v16241_v14 = vld [vmem:[#allocation123_spill] sm:$0xff]  ;;  %16244 = vst [vmem:[#allocation78_spill] sm:$0xff] %v12571_v17 }
 0x6f3   : > { %3061 = vadd.xlane.f32.xlu0 %v3060_v21  ;;  %v12553_v21 = vpop.eup %8977  ;;  %v2866_v49 = vsub.f32 %v16245_v37, %v16241_v14  ;;  %v12587_v58 = vpop.f32.mrf.mxu1 }
 0x6f4   : > { %16236 = vst [vmem:[#allocation114_spill] sm:$0xff] %v12553_v21  ;;  %v7616_v11 = vpop.f32.mrf.mxu0  ;;  %v3066_v46 = vadd.f32 %v12553_v21, %v12543_v12  ;;  %8991 = vpow2.f32 %v2945_v62  ;;  %v12567_v48 = vpop.eup %8979  ;;  %v2975_v12 = vmul.f32 1.442695, %v2876_v28  ;;  %v16250_v21 = vld [vmem:[#allocation126_spill] sm:$0xff]  ;;  %16253 = vst [vmem:[#allocation83_spill] sm:$0xff] %v12587_v58 }
 0x6f5   : > { %v12563_v51 = vadd.f32 %v7616_v11, %v7615_v50  ;;  %16243 = vst [vmem:[#allocation45_spill] sm:$0xff] %v12567_v48  ;;  %8993 = vpow2.f32 %v2947_v15  ;;  %v12575_v50 = vpop.eup %8981  ;;  %v2879_v42 = vsub.f32 %v16251_v54, %v16250_v21  ;;  %v2955_v28 = vmul.f32 1.442695, %v2866_v49  ;;  %v16258_v49 = vld [vmem:[#allocation90_spill] sm:$0xff] }
 0x6f6   : > { %16246 = vst [vmem:[#allocation79_spill] sm:$0xff] %v12575_v50  ;;  %v12579_v62 = vpop.f32.mrf.mxu0  ;;  %8995 = vpow2.f32 %v2973_v20  ;;  %v12585_v15 = vpop.eup %8983  ;;  %v3850_v54 = vmax.f32 %v12438_v1, %v12441_v19  ;;  %v16257_v20 = vld [vmem:[#allocation87_spill] sm:$0xff] }
 0x6f7   : > { %3839 = vmax.xlane.f32.xlu0 %v3838_v29  ;;  %16240 = vst [vmem:[#allocation16_spill] sm:$0xff] %v12563_v51  ;;  %v2865_v29 = vsub.f32 %v16242_v30, %v16241_v14  ;;  %16247 = vst [vmem:[#allocation121_spill] sm:$0xff] %v12579_v62  ;;  %v16254_v14 = vld [vmem:[#allocation101_spill] sm:$0xff]  ;;  %8997 = vpow2.f32 %v2975_v12  ;;  %v12593_v62 = vpop.eup %8985 }
 0x6f8   : > { %16252 = vst [vmem:[#allocation82_spill] sm:$0xff] %v12585_v15  ;;  %v2880_v37 = vsub.f32 %v16254_v14, %v16250_v21  ;;  %16255 = vst [vmem:[#allocation125_spill] sm:$0xff] %v12593_v62  ;;  %v2981_v21 = vmul.f32 1.442695, %v2879_v42  ;;  %v12603_v12 = vpop.eup %8987  ;;  %v12605_v14 = vpop.f32.mrf.mxu1  ;;  %v3835_v42 = vmax.f32 %v12312_v33, %v12319_v61 }
 0x6f9   : > { %v2953_v51 = vmul.f32 1.442695, %v2865_v29  ;;  %v12597_v29 = vpop.f32.mrf.mxu0  ;;  %16259 = vst [vmem:[#allocation88_spill] sm:$0xff] %v12603_v12  ;;  %16260 = vst [vmem:[#allocation50_spill] sm:$0xff] %v12605_v14 }
 0x6fa   : > { %16256 = vst [vmem:[#allocation86_spill] sm:$0xff] %v12597_v29  ;;  %v12623_v1 = vpop.f32.mrf.mxu1 }
 0x6fb   : > { %3067 = vadd.xlane.f32.xlu0 %v3066_v46  ;;  %v16249_v46 = vld [vmem:[#allocation118_spill] sm:$0xff]  ;;  %8999 = vpow2.f32 %v2953_v51  ;;  %16266 = vst [vmem:[#allocation93_spill] sm:$0xff] %v12623_v1 }
 0x6fc   : > { %v2835_v30 = vmax.f32 %v16249_v46, %v16248_v55  ;;  %v2869_v55 = vsub.f32 %v16258_v49, %v16257_v20  ;;  %9001 = vpow2.f32 %v2955_v28  ;;  %v2983_v46 = vmul.f32 1.442695, %v2880_v37  ;;  %v16263_v28 = vld [vmem:[#allocation103_spill] sm:$0xff] }
 0x6fd   : > { %9003 = vpow2.f32 %v2981_v21 }
 0x6fe   : > { %v12577_v11 = vpop.xlane.xlu0 %2827  ;;  %v2961_v19 = vmul.f32 1.442695, %v2869_v55  ;;  %9005 = vpow2.f32 %v2983_v46  ;;  %v16271_v46 = vld [vmem:[#allocation127_spill] sm:$0xff] }
 0x6ff   : > { %3845 = vmax.xlane.f32.xlu0 %v3844_v4  ;;  %v3072_v4 = vadd.f32 %v12575_v50, %v12567_v48  ;;  %v16261_v48 = vld [vmem:[#allocation43_spill] sm:$0xff] }
 0x700   : > { %v2870_v50 = vsub.f32 %v16261_v48, %v16257_v20  ;;  %v2883_v48 = vsub.f32 %v16263_v28, %v12281_v60  ;;  %9007 = vpow2.f32 %v2961_v19 }
 0x702   : > { %v12595_v26 = vpop.xlane.xlu0 %3046  ;;  %v7621_v29 = vpop.f32.mrf.mxu0 }
 0x703   : > { %2836 = vmax.xlane.f32.xlu1 %v2835_v30  ;;  %3073 = vadd.xlane.f32.xlu0 %v3072_v4  ;;  %v3057_v30 = vadd.f32 %v12593_v62, %v12585_v15  ;;  %v12611_v4 = vpop.eup %8989  ;;  %v2963_v15 = vmul.f32 1.442695, %v2870_v50  ;;  %v16267_v62 = vld [vmem:[#allocation104_spill] sm:$0xff]  ;;  %v3856_v50 = vmax.f32 %v12461_v24, %v12479_v45 }
 0x704   : > { %16262 = vst [vmem:[#allocation77_spill] sm:$0xff] %v12611_v4  ;;  %v7622_v49 = vpop.f32.mrf.mxu0  ;;  %v12621_v20 = vpop.eup %8991  ;;  %v2884_v59 = vsub.f32 %v16267_v62, %v12281_v60  ;;  %v3078_v55 = vadd.f32 %v12611_v4, %v12603_v12  ;;  %v16272_v60 = vld [vmem:[#allocation96_spill] sm:$0xff]  ;;  %v16277_v4 = vld [vmem:[#allocation107_spill] sm:$0xff] }
 0x705   : > { %v12619_v37 = vadd.f32 %v7622_v49, %v7621_v29  ;;  %16265 = vst [vmem:[#allocation124_spill] sm:$0xff] %v12621_v20  ;;  %v2873_v62 = vsub.f32 %v16272_v60, %v16271_v46  ;;  %v2989_v49 = vmul.f32 1.442695, %v2883_v48  ;;  %9009 = vpow2.f32 %v2963_v15 }
 0x706   : > { %v12613_v51 = vpop.xlane.xlu0 %3049  ;;  %v12627_v61 = vpop.f32.mrf.mxu0  ;;  %v2991_v12 = vmul.f32 1.442695, %v2884_v59  ;;  %v3841_v60 = vmax.f32 %v12410_v41, %v12416_v6  ;;  %v16275_v59 = vld [vmem:[#allocation106_spill] sm:$0xff] }
 0x707   : > { %3058 = vadd.xlane.f32.xlu1 %v3057_v30  ;;  %3851 = vmax.xlane.f32.xlu0 %v3850_v54  ;;  %16264 = vst [vmem:[#allocation72_spill] sm:$0xff] %v12619_v37  ;;  %16268 = vst [vmem:[#allocation95_spill] sm:$0xff] %v12627_v61  ;;  %v12631_v54 = vpop.eup %8993  ;;  %v16273_v37 = vld [vmem:[#allocation27_spill] sm:$0xff]  ;;  %v2969_v15 = vmul.f32 1.442695, %v2873_v62  ;;  %9011 = vpow2.f32 %v2989_v49 }
 0x708   : > { %16269 = vst [vmem:[#allocation122_spill] sm:$0xff] %v12631_v54  ;;  %v12635_v30 = vpop.f32.mrf.mxu0  ;;  %v12642_v28 = vpop.eup %8995  ;;  %v2874_v61 = vsub.f32 %v16273_v37, %v16271_v46  ;;  %v2887_v37 = vsub.f32 %v16275_v59, %v12273_v44  ;;  %9013 = vpow2.f32 %v2991_v12 }
 0x709   : > { %v12633_v21 = vpop.xlane.xlu1 %2824  ;;  %16270 = vst [vmem:[#allocation80_spill] sm:$0xff] %v12635_v30  ;;  %v12649_v19 = vpop.eup %8997  ;;  %9015 = vpow2.f32 %v2969_v15 }
 0x70a   : > { %v4585_v29 = vpop.permute.xlu0 %4584  ;;  %v7627_v30 = vpop.f32.mrf.mxu0  ;;  %v2971_v24 = vmul.f32 1.442695, %v2874_v61  ;;  %v3862_v61 = vmax.f32 %v12501_v40, %v12507_v56  ;;  %v16286_v40 = vld [vmem:[#allocation108_spill] sm:$0xff] }
 0x70b   : > { %3836 = vmax.xlane.f32.xlu1 %v3835_v42  ;;  %3079 = vadd.xlane.f32.xlu0 %v3078_v55  ;;  %v3063_v42 = vadd.f32 %v12631_v54, %v12621_v20  ;;  %v12651_v55 = vpop.f32.mrf.mxu1  ;;  %v12659_v46 = vpop.eup %8999  ;;  %v2888_v20 = vsub.f32 %v16277_v4, %v12273_v44  ;;  %v16281_v44 = vld [vmem:[#allocation99_spill] sm:$0xff]  ;;  %v2997_v4 = vmul.f32 1.442695, %v2887_v37  ;;  %v3847_v37 = vmax.f32 %v12432_v47, %v12436_v5 }
 0x70c   : > { %8051 = vmatprep.mubr.msk.bf16.mxu1 %vm1429_vm1, %v4585_v29  ;;  %16274 = vst [vmem:[#allocation81_spill] sm:$0xff] %v12651_v55  ;;  %v7628_v45 = vpop.f32.mrf.mxu0  ;;  %v12667_v62 = vpop.eup %9001  ;;  %v2877_v12 = vsub.f32 %v16281_v44, %v12264_v7  ;;  %9017 = vpow2.f32 %v2971_v24  ;;  %v2892_v6 = vsub.f32 %v16286_v40, %v12384_v63 }
 0x70d   : > { %8052 = vmatmul.mubr.msk.bf16.gmra.mxu1 %vm1429_vm1, %v4585_v29  ;;  %v3296_v48 = vpop.permute.xlu1 %3295  ;;  %v12657_v29 = vadd.f32 %v7628_v45, %v7627_v30  ;;  %v12677_v30 = vpop.eup %9003  ;;  %9019 = vpow2.f32 %v2997_v4 }
 0x70e   : > { %7743 = vmatprep.subr.bf16.mxu0 %v3296_v48  ;;  %v12663_v54 = vpop.f32.mrf.mxu0  ;;  %v16282_v48 = vld [vmem:[#allocation56_spill] sm:$0xff]  ;;  %v2977_v24 = vmul.f32 1.442695, %v2877_v12 }
 0x70f   : > { %3064 = vadd.xlane.f32.xlu1 %v3063_v42  ;;  %3857 = vmax.xlane.f32.xlu0 %v3856_v50  ;;  %16276 = vst [vmem:[#allocation97_spill] sm:$0xff] %v12657_v29  ;;  %16278 = vst [vmem:[#allocation98_spill] sm:$0xff] %v12663_v54  ;;  %v3084_v50 = vadd.f32 %v12649_v19, %v12642_v28  ;;  %v12669_v42 = vpop.f32.mrf.mxu1  ;;  %v2878_v59 = vsub.f32 %v16282_v48, %v12264_v7  ;;  %v2999_v29 = vmul.f32 1.442695, %v2888_v20  ;;  %v16284_v7 = vld [vmem:[#allocation46_spill] sm:$0xff] }
 0x710   : > { %16279 = vst [vmem:[#allocation123_spill] sm:$0xff] %v12669_v42  ;;  %v12671_v45 = vpop.f32.mrf.mxu0  ;;  %v2891_v20 = vsub.f32 %v16284_v7, %v12384_v63  ;;  %v16290_v63 = vld [vmem:[#allocation102_spill] sm:$0xff] }
 0x711   : > { %v3280_v49 = vpop.permute.xlu1 %3279  ;;  %16280 = vst [vmem:[#allocation84_spill] sm:$0xff] %v12671_v45  ;;  %v12685_v45 = vpop.f32.mrf.mxu1  ;;  %v2979_v56 = vmul.f32 1.442695, %v2878_v59  ;;  %9021 = vpow2.f32 %v2999_v29  ;;  %v3868_v29 = vmax.f32 %v12547_v52, %v12557_v36  ;;  %v2881_v40 = vsub.f32 %v16290_v63, %v12271_v23 }
 0x712   : > { %7744 = vmatpush3.bf16.msra.mxu0 %v3280_v49  ;;  %v7633_v54 = vpop.f32.mrf.mxu0  ;;  %16283 = vst [vmem:[#allocation85_spill] sm:$0xff] %v12685_v45  ;;  %9023 = vpow2.f32 %v2977_v24  ;;  %v3005_v59 = vmul.f32 1.442695, %v2891_v20  ;;  %v3853_v24 = vmax.f32 %v12445_v8, %v12453_v2 }
 0x713   : > { %3842 = vmax.xlane.f32.xlu1 %v3841_v60  ;;  %3085 = vadd.xlane.f32.xlu0 %v3084_v50  ;;  %v3069_v60 = vadd.f32 %v12667_v62, %v12659_v46  ;;  %v12683_v50 = vpop.eup %9005  ;;  %v12703_v4 = vpop.f32.mrf.mxu1  ;;  %9025 = vpow2.f32 %v2979_v56 }
 0x714   : > { %v7634_v49 = vpop.f32.mrf.mxu0  ;;  %v12693_v48 = vpop.eup %9007  ;;  %16288 = vst [vmem:[#allocation101_spill] sm:$0xff] %v12703_v4  ;;  %9027 = vpow2.f32 %v3005_v59 }
 0x715   : > { %v3294_v15 = vpop.permute.xlu1 %3293  ;;  %v12691_v44 = vadd.f32 %v7634_v49, %v7633_v54  ;;  %v12701_v12 = vpop.eup %9009  ;;  %v16291_v49 = vld [vmem:[#allocation40_spill] sm:$0xff] }
 0x716   : > { %7745 = vmatprep.subr.bf16.mxu0 %v3294_v15  ;;  %v12697_v41 = vpop.f32.mrf.mxu0  ;;  %v12711_v15 = vpop.eup %9011  ;;  %v2882_v7 = vsub.f32 %v16291_v49, %v12271_v23  ;;  %v2895_v23 = vsub.f32 %v12019_v43, %v12577_v11  ;;  %v2896_v49 = vsub.f32 %v12025_v35, %v12577_v11  ;;  %v3874_v43 = vmax.f32 %v12605_v14, %v12623_v1  ;;  %v16296_v35 = vld [vmem:[#allocation66_spill] sm:$0xff] }
 0x717   : > { %3070 = vadd.xlane.f32.xlu1 %v3069_v60  ;;  %3863 = vmax.xlane.f32.xlu0 %v3862_v61  ;;  %16285 = vst [vmem:[#allocation126_spill] sm:$0xff] %v12691_v44  ;;  %16287 = vst [vmem:[#allocation100_spill] sm:$0xff] %v12697_v41  ;;  %v3090_v61 = vadd.f32 %v12683_v50, %v12677_v30  ;;  %v3007_v44 = vmul.f32 1.442695, %v2892_v6  ;;  %v2886_v11 = vsub.f32 %v16296_v35, %v12304_v3 }
 0x718   : > { %v12705_v54 = vpop.f32.mrf.mxu0  ;;  %v2987_v63 = vmul.f32 1.442695, %v2882_v7  ;;  %v3015_v7 = vmul.f32 1.442695, %v2896_v49  ;;  %v2890_v35 = vsub.f32 %v11969_v39, %v12443_v22 }
 0x719   : > { %v3278_v60 = vpop.permute.xlu1 %3277  ;;  %16289 = vst [vmem:[#allocation87_spill] sm:$0xff] %v12705_v54  ;;  %v12719_v54 = vpop.f32.mrf.mxu1  ;;  %9029 = vpow2.f32 %v3007_v44  ;;  %v3013_v44 = vmul.f32 1.442695, %v2895_v23  ;;  %v3859_v23 = vmax.f32 %v12489_v10, %v12495_v0 }
 0x71a   : > { %7746 = vmatpush3.bf16.msra.mxu0 %v3278_v60  ;;  %v7639_v41 = vpop.f32.mrf.mxu0  ;;  %16292 = vst [vmem:[#allocation90_spill] sm:$0xff] %v12719_v54  ;;  %v2985_v60 = vmul.f32 1.442695, %v2881_v40 }
 0x71b   : > { %3848 = vmax.xlane.f32.xlu1 %v3847_v37  ;;  %3091 = vadd.xlane.f32.xlu0 %v3090_v61  ;;  %v3075_v37 = vadd.f32 %v12701_v12, %v12693_v48  ;;  %v12717_v61 = vpop.eup %9013 }
 0x71c   : > { %v7640_v20 = vpop.f32.mrf.mxu0  ;;  %v12727_v56 = vpop.eup %9015  ;;  %v3096_v36 = vadd.f32 %v12717_v61, %v12711_v15  ;;  %9031 = vpow2.f32 %v2985_v60 }
 0x71d   : > { %v12725_v6 = vadd.f32 %v7640_v20, %v7639_v41  ;;  %v12733_v52 = vpop.eup %9017  ;;  %v16295_v41 = vld [vmem:[#allocation105_spill] sm:$0xff]  ;;  %9033 = vpow2.f32 %v2987_v63  ;;  %v2995_v63 = vmul.f32 1.442695, %v2886_v11 }
 0x71e   : > { %v2885_v40 = vsub.f32 %v16295_v41, %v12304_v3  ;;  %v12741_v59 = vpop.eup %9019  ;;  %9035 = vpow2.f32 %v3013_v44  ;;  %v3880_v44 = vmax.f32 %v12685_v45, %v12703_v4 }
 0x71f   : > { %3076 = vadd.xlane.f32.xlu1 %v3075_v37  ;;  %3869 = vmax.xlane.f32.xlu0 %v3868_v29  ;;  %16293 = vst [vmem:[#allocation43_spill] sm:$0xff] %v12725_v6  ;;  %v12735_v29 = vpop.f32.mrf.mxu1  ;;  %v3081_v37 = vadd.f32 %v12733_v52, %v12727_v56  ;;  %9037 = vpow2.f32 %v3015_v7 }
 0x720   : > { %16294 = vst [vmem:[#allocation103_spill] sm:$0xff] %v12735_v29  ;;  %v2993_v20 = vmul.f32 1.442695, %v2885_v40 }
 0x722   : > { %9039 = vpow2.f32 %v2993_v20 }
 0x723   : > { %3854 = vmax.xlane.f32.xlu1 %v3853_v24  ;;  %3097 = vadd.xlane.f32.xlu0 %v3096_v36  ;;  %v12747_v24 = vpop.eup %9021  ;;  %v12749_v36 = vpop.f32.mrf.mxu1  ;;  %9041 = vpow2.f32 %v2995_v63 }
 0x724   : > { %16297 = vst [vmem:[#allocation104_spill] sm:$0xff] %v12749_v36  ;;  %v12751_v60 = vpop.eup %9023  ;;  %v3102_v3 = vadd.f32 %v12747_v24, %v12741_v59 }
 0x725   : > { %v12757_v49 = vpop.eup %9025  ;;  %v12759_v41 = vpop.f32.mrf.mxu1 }
 0x726   : > { %16298 = vst [vmem:[#allocation127_spill] sm:$0xff] %v12759_v41  ;;  %v12763_v40 = vpop.eup %9027  ;;  %v3087_v11 = vadd.f32 %v12757_v49, %v12751_v60 }
 0x727   : > { %3082 = vadd.xlane.f32.xlu1 %v3081_v37  ;;  %3875 = vmax.xlane.f32.xlu0 %v3874_v43  ;;  %v2889_v43 = vsub.f32 %v11955_v53, %v12443_v22  ;;  %v12771_v7 = vpop.eup %9029  ;;  %v12773_v37 = vpop.f32.mrf.mxu1 }
 0x728   : > { %16299 = vst [vmem:[#allocation96_spill] sm:$0xff] %v12773_v37  ;;  %v3108_v63 = vadd.f32 %v12771_v7, %v12763_v40 }
 0x729   : > { %v3001_v20 = vmul.f32 1.442695, %v2889_v43  ;;  %v12775_v53 = vpop.eup %9031  ;;  %v12783_v22 = vpop.f32.mrf.mxu1 }
 0x72a   : > { %v12781_v39 = vpop.eup %9033  ;;  %16300 = vst [vmem:[#allocation27_spill] sm:$0xff] %v12783_v22 }
 0x72b   : > { %3860 = vmax.xlane.f32.xlu1 %v3859_v23  ;;  %3103 = vadd.xlane.f32.xlu0 %v3102_v3  ;;  %v3865_v23 = vmax.f32 %v12521_v16, %v12531_v9  ;;  %v3003_v3 = vmul.f32 1.442695, %v2890_v35  ;;  %9043 = vpow2.f32 %v3001_v20  ;;  %v12787_v43 = vpop.eup %9035  ;;  %v2894_v35 = vsub.f32 %v16138_v27, %v12633_v21  ;;  %v12799_v20 = vpop.f32.mrf.mxu0 }
 0x72c   : > { %v3093_v6 = vadd.f32 %v12781_v39, %v12775_v53  ;;  %v12795_v4 = vpop.eup %9037  ;;  %16302 = vst [vmem:[#allocation107_spill] sm:$0xff] %v12799_v20 }
 0x72d   : > { %9045 = vpow2.f32 %v3003_v3  ;;  %v3871_v3 = vmax.f32 %v12571_v17, %v12587_v58  ;;  %v3114_v27 = vadd.f32 %v12795_v4, %v12787_v43  ;;  %v12811_v45 = vpop.f32.mrf.mxu0 }
 0x72e   : > { %16304 = vst [vmem:[#allocation56_spill] sm:$0xff] %v12811_v45 }
 0x72f   : > { %3088 = vadd.xlane.f32.xlu1 %v3087_v11  ;;  %3881 = vmax.xlane.f32.xlu0 %v3880_v44  ;;  %v2893_v44 = vsub.f32 %v16139_v34, %v12633_v21  ;;  %v3886_v11 = vmax.f32 %v12749_v36, %v12759_v41  ;;  %v3011_v41 = vmul.f32 1.442695, %v2894_v35 }
 0x731   : > { %v3009_v34 = vmul.f32 1.442695, %v2893_v44 }
 0x733   : > { %3866 = vmax.xlane.f32.xlu1 %v3865_v23  ;;  %3109 = vadd.xlane.f32.xlu0 %v3108_v63  ;;  %v12797_v23 = vpop.f32.mrf.mxu1  ;;  %v12801_v63 = vpop.eup %9039  ;;  %9047 = vpow2.f32 %v3009_v34 }
 0x734   : > { %16301 = vst [vmem:[#allocation106_spill] sm:$0xff] %v12797_v23  ;;  %v12807_v21 = vpop.eup %9041  ;;  %9049 = vpow2.f32 %v3011_v41 }
 0x735   : > { %v12809_v36 = vpop.f32.mrf.mxu1  ;;  %v3099_v1 = vadd.f32 %v12807_v21, %v12801_v63 }
 0x736   : > { %16303 = vst [vmem:[#allocation99_spill] sm:$0xff] %v12809_v36  ;;  %v3892_v35 = vmax.f32 %v12797_v23, %v12809_v36 }
 0x737   : > { %3094 = vadd.xlane.f32.xlu1 %v3093_v6  ;;  %3887 = vmax.xlane.f32.xlu0 %v3886_v11 }
 0x73b   : > { %3872 = vmax.xlane.f32.xlu1 %v3871_v3  ;;  %3115 = vadd.xlane.f32.xlu0 %v3114_v27  ;;  %v2834_v6 = vpop.xlane.xlu0 %2833  ;;  %v12831_v27 = vpop.f32.mrf.mxu1 }
 0x73c   : > { %v2899_v44 = vsub.f32 %v16172_v38, %v2834_v6  ;;  %v2900_v11 = vsub.f32 %v16171_v32, %v2834_v6  ;;  %v7645_v20 = vpop.f32.mrf.mxu0  ;;  %v12823_v38 = vpop.eup %9043  ;;  %v3877_v32 = vmax.f32 %v12651_v55, %v12669_v42  ;;  %16308 = vst [vmem:[#allocation40_spill] sm:$0xff] %v12831_v27  ;;  %v3889_v42 = vmax.f32 %v12773_v37, %v12783_v22 }
 0x73d   : > { %v12827_v41 = vpop.eup %9045  ;;  %v12835_v6 = vpop.f32.mrf.mxu1 }
 0x73e   : > { %v3021_v58 = vmul.f32 1.442695, %v2899_v44  ;;  %v3023_v17 = vmul.f32 1.442695, %v2900_v11  ;;  %v7646_v14 = vpop.f32.mrf.mxu0  ;;  %16309 = vst [vmem:[#allocation105_spill] sm:$0xff] %v12835_v6 }
 0x73f   : > { %v12819_v45 = vadd.f32 %v7646_v14, %v7645_v20  ;;  %3100 = vadd.xlane.f32.xlu1 %v3099_v1  ;;  %3893 = vmax.xlane.f32.xlu0 %v3892_v35  ;;  %v3053_v14 = vpop.xlane.xlu0 %3052  ;;  %v3883_v35 = vmax.f32 %v12719_v54, %v12735_v29 }
 0x740   : > { %9051 = vpow2.f32 %v3021_v58  ;;  %v12821_v34 = vpop.f32.mrf.mxu0  ;;  %v3105_v58 = vadd.f32 %v12827_v41, %v12823_v38 }
 0x741   : > { %16305 = vst [vmem:[#allocation46_spill] sm:$0xff] %v12819_v45  ;;  %16306 = vst [vmem:[#allocation108_spill] sm:$0xff] %v12821_v34  ;;  %9053 = vpow2.f32 %v3023_v17  ;;  %v12841_v17 = vpop.eup %9047  ;;  %v12850_v34 = vpop.f32.mrf.mxu1 }
 0x742   : > { %v12829_v3 = vpop.f32.mrf.mxu0  ;;  %v12845_v45 = vpop.eup %9049  ;;  %9055 = vrcp.f32 %v12451_v18  ;;  %16313 = vst [vmem:[#allocation130_spill] sm:$0xff] %v12850_v34 }
 0x743   : > { %16307 = vst [vmem:[#allocation102_spill] sm:$0xff] %v12829_v3  ;;  %3878 = vmax.xlane.f32.xlu1 %v3877_v32  ;;  %v3056_v32 = vpop.xlane.xlu0 %3055  ;;  %9057 = vrcp.f32 %v12449_v57  ;;  %v3111_v36 = vadd.f32 %v12845_v45, %v12841_v17  ;;  %v12861_v54 = vpop.f32.mrf.mxu1 }
 0x744   : > { %v7651_v20 = vpop.f32.mrf.mxu0  ;;  %16314 = vst [vmem:[#allocation131_spill] sm:$0xff] %v12861_v54 }
 0x746   : > { %v7652_v1 = vpop.f32.mrf.mxu0 }
 0x747   : > { %v12837_v44 = vadd.f32 %v7652_v1, %v7651_v20  ;;  %3106 = vadd.xlane.f32.xlu1 %v3105_v58 }
 0x748   : > { %v12839_v11 = vpop.f32.mrf.mxu0 }
 0x749   : > { %16310 = vst [vmem:[#allocation66_spill] sm:$0xff] %v12837_v44  ;;  %16311 = vst [vmem:[#allocation128_spill] sm:$0xff] %v12839_v11 }
 0x74a   : > { %v12848_v3 = vpop.f32.mrf.mxu0 }
 0x74b   : > { %16312 = vst [vmem:[#allocation129_spill] sm:$0xff] %v12848_v3  ;;  %3884 = vmax.xlane.f32.xlu1 %v3883_v35  ;;  %v2831_v20 = vpop.xlane.xlu1 %2830 }
 0x74c   : > { %v2897_v58 = vsub.f32 %v16180_v13, %v2831_v20  ;;  %v2898_v1 = vsub.f32 %v16179_v25, %v2831_v20  ;;  %v7657_v44 = vpop.f32.mrf.mxu0  ;;  %v3276_v13 = vpop.permute.xlu0 %3275 }
 0x74d   : > { %v12855_v11 = vpop.eup %9051 }
 0x74e   : > { %v12859_v18 = vpop.eup %9053  ;;  %v3017_v23 = vmul.f32 1.442695, %v2897_v58  ;;  %v3019_v3 = vmul.f32 1.442695, %v2898_v1  ;;  %v7658_v29 = vpop.f32.mrf.mxu0 }
 0x74f   : > { %v12863_v35 = vadd.f32 %v7658_v29, %v7657_v44  ;;  %3112 = vadd.xlane.f32.xlu1 %v3111_v36  ;;  %v3292_v57 = vpop.permute.xlu1 %3291  ;;  %v3120_v25 = vadd.f32 %v12859_v18, %v12855_v11  ;;  %v3898_v36 = vmax.f32 %v12850_v34, %v12861_v54  ;;  %v9056_v58 = vpop.eup %9055 }
 0x750   : > { %9059 = vpow2.f32 %v3017_v23  ;;  %v12867_v20 = vpop.f32.mrf.mxu0  ;;  %7747 = vmatprep.subr.bf16.mxu0 %v3292_v57 }
 0x751   : > { %16315 = vst [vmem:[#allocation132_spill] sm:$0xff] %v12863_v35  ;;  %16316 = vst [vmem:[#allocation133_spill] sm:$0xff] %v12867_v20  ;;  %9061 = vpow2.f32 %v3019_v3  ;;  %3121 = vadd.xlane.f32.xlu0 %v3120_v25  ;;  %7748 = vmatpush3.bf16.msra.mxu0 %v3276_v13  ;;  %v9058_v25 = vpop.eup %9057  ;;  %v16324_v20 = vld [vmem:[#allocation13_spill] sm:$0xff] }
 0x752   : > { %9063 = vrcp.f32 %v12613_v51  ;;  %v12872_v29 = vpop.f32.mrf.mxu0 }
 0x753   : > { %16317 = vst [vmem:[#allocation134_spill] sm:$0xff] %v12872_v29  ;;  %3890 = vmax.xlane.f32.xlu1 %v3889_v42  ;;  %v4587_v44 = vpop.permute.xlu1 %4586  ;;  %9065 = vrcp.f32 %v12595_v26  ;;  %v3168_v26 = vmul.f32 %v9056_v58, %v12287_v31 }
 0x754   : > { %v7663_v23 = vpop.f32.mrf.mxu0  ;;  %8053 = vmatprep.mubr.msk.bf16.mxu1 %vm1429_vm1, %v4587_v44  ;;  %9067 = vrcp.f32 %v3056_v32  ;;  %v16323_v32 = vld [vmem:[#allocation112_spill] sm:$0xff] }
 0x755   : > { %3899 = vmax.xlane.f32.xlu0 %v3898_v36  ;;  %8054 = vmatmul.mubr.msk.bf16.gmra.mxu1 %vm1429_vm1, %v4587_v44  ;;  %9069 = vrcp.f32 %v3053_v14  ;;  %v16321_v36 = vld [vmem:[#allocation65_spill] sm:$0xff] }
 0x756   : > { %v7664_v3 = vpop.f32.mrf.mxu0  ;;  %v3166_v44 = vmul.f32 %v9058_v25, %v16321_v36  ;;  %v16327_v36 = vld [vmem:[#allocation69_spill] sm:$0xff] }
 0x757   : > { %v12879_v1 = vadd.f32 %v7664_v3, %v7663_v23  ;;  %v3290_v51 = vpop.permute.xlu1 %3289  ;;  %v3167_v54 = vmul.f32 %v9056_v58, %v16327_v36 }
 0x758   : > { %v12881_v57 = vpop.f32.mrf.mxu0  ;;  %7749 = vmatprep.subr.bf16.mxu0 %v3290_v51 }
 0x759   : > { %16318 = vst [vmem:[#allocation135_spill] sm:$0xff] %v12879_v1  ;;  %16319 = vst [vmem:[#allocation136_spill] sm:$0xff] %v12881_v57  ;;  %v3228_v1 = vpack.c.bf16 %v3168_v26, %v3166_v44  ;;  %v16329_v26 = vld [vmem:[#allocation89_spill] sm:$0xff] }
 0x75a   : > { %v12883_v42 = vpop.f32.mrf.mxu0 }
 0x75b   : > { %16320 = vst [vmem:[#allocation137_spill] sm:$0xff] %v12883_v42  ;;  %v3274_v13 = vpop.permute.xlu1 %3273  ;;  %v16325_v42 = vpack.c.bf16 %v16323_v32, %v16324_v20  ;;  %v16331_v32 = vld [vmem:[#allocation48_spill] sm:$0xff] }
 0x75c   : > { %v7669_v35 = vpop.f32.mrf.mxu0  ;;  %7750 = vmatpush3.bf16.msra.mxu0 %v3274_v13 }
 0x75d   : > { %v12887_v29 = vpop.eup %9059 }
 0x75e   : > { %v12889_v23 = vpop.eup %9061  ;;  %v7670_v3 = vpop.f32.mrf.mxu0 }
 0x75f   : > { %v9064_v57 = vpop.eup %9063  ;;  %v12891_v51 = vadd.f32 %v7670_v3, %v7669_v35  ;;  %3354 = vmatmul.mubr.bf16.vlgmr.msra.gmra.mxu0 %v16325_v42  ;;  %v3117_v31 = vadd.f32 %v12889_v23, %v12887_v29  ;;  %v3895_v35 = vmax.f32 %v12831_v27, %v12835_v6  ;;  %v16330_v3 = vld [vmem:[#allocation59_spill] sm:$0xff] }
 0x760   : > { %v12898_v14 = vpop.f32.mrf.mxu0  ;;  %3361 = vmatprep.mubr.bf16.mxu0 %v3228_v1  ;;  %v9066_v13 = vpop.eup %9065  ;;  %v3172_v44 = vmul.f32 %v9064_v57, %v16329_v26  ;;  %v3165_v20 = vmul.f32 %v9058_v25, %v16330_v3  ;;  %v16334_v26 = vld [vmem:[#allocation92_spill] sm:$0xff]  ;;  %v16336_v25 = vld [vmem:[#allocation21_spill] sm:$0xff]  ;;  %v16337_v27 = vld [vmem:[#allocation91_spill] sm:$0xff] }
 0x761   : > { %16322 = vst [vmem:[#allocation65_spill] sm:$0xff] %v12891_v51  ;;  %16326 = vst [vmem:[#allocation112_spill] sm:$0xff] %v12898_v14  ;;  %3118 = vadd.xlane.f32.xlu1 %v3117_v31  ;;  %v3170_v51 = vmul.f32 %v9066_v13, %v16331_v32  ;;  %v9068_v37 = vpop.eup %9067  ;;  %v3169_v32 = vmul.f32 %v9066_v13, %v16337_v27  ;;  %v16343_v27 = vld [vmem:[#allocation75_spill] sm:$0xff] }
 0x762   : > { %v12901_v34 = vpop.f32.mrf.mxu0  ;;  %v3227_v22 = vpack.c.bf16 %v3167_v54, %v3165_v20  ;;  %v9070_v36 = vpop.eup %9069  ;;  %v3176_v3 = vmul.f32 %v9068_v37, %v16336_v25  ;;  %v16338_v54 = vld [vmem:[#allocation57_spill] sm:$0xff]  ;;  %v16342_v25 = vld [vmem:[#allocation62_spill] sm:$0xff] }
 0x763   : > { %16328 = vst [vmem:[#allocation13_spill] sm:$0xff] %v12901_v34  ;;  %v3230_v1 = vpack.c.bf16 %v3172_v44, %v3170_v51  ;;  %v3171_v34 = vmul.f32 %v9064_v57, %v16334_v26  ;;  %v3174_v20 = vmul.f32 %v9070_v36, %v16338_v54 }
 0x764   : > { %v7675_v42 = vpop.f32.mrf.mxu0 }
 0x765   : > { %3896 = vmax.xlane.f32.xlu1 %v3895_v35  ;;  %v3229_v51 = vpack.c.bf16 %v3171_v34, %v3169_v32  ;;  %v12924_v32 = vpop.f32.mrf.mxu1 }
 0x766   : > { %v7676_v14 = vpop.f32.mrf.mxu0  ;;  %16344 = vst [vmem:[#allocation92_spill] sm:$0xff] %v12924_v32 }
 0x767   : > { %v12908_v31 = vadd.f32 %v7676_v14, %v7675_v42  ;;  %3362 = vmatmul.mubr.bf16.gmra.mxu0 %v3227_v22  ;;  %v3232_v14 = vpack.c.bf16 %v3176_v3, %v3174_v20  ;;  %v16340_v22 = vld [vmem:[#allocation41_spill] sm:$0xff]  ;;  %v12926_v20 = vpop.f32.mrf.mxu1 }
 0x768   : > { %v12910_v58 = vpop.f32.mrf.mxu0  ;;  %3369 = vmatprep.mubr.bf16.mxu0 %v3230_v1  ;;  %v3175_v1 = vmul.f32 %v9068_v37, %v16340_v22  ;;  %16345 = vst [vmem:[#allocation21_spill] sm:$0xff] %v12926_v20 }
 0x769   : > { %16332 = vst [vmem:[#allocation69_spill] sm:$0xff] %v12908_v31  ;;  %16333 = vst [vmem:[#allocation89_spill] sm:$0xff] %v12910_v58  ;;  %v16341_v31 = vld [vmem:[#allocation60_spill] sm:$0xff] }
 0x76a   : > { %v12913_v6 = vpop.f32.mrf.mxu0  ;;  %v3173_v57 = vmul.f32 %v9070_v36, %v16341_v31  ;;  %v12930_v31 = vpop.f32.mrf.mxu1 }
 0x76b   : > { %16335 = vst [vmem:[#allocation59_spill] sm:$0xff] %v12913_v6  ;;  %16346 = vst [vmem:[#allocation91_spill] sm:$0xff] %v12930_v31 }
 0x76c   : > { %v7681_v35 = vpop.f32.mrf.mxu0  ;;  %v3231_v26 = vpack.c.bf16 %v3175_v1, %v3173_v57  ;;  %v16350_v1 = vld [vmem:[#allocation44_spill] sm:$0xff] }
 0x76e   : > { %v7682_v44 = vpop.f32.mrf.mxu0 }
 0x76f   : > { %v12918_v42 = vadd.f32 %v7682_v44, %v7681_v35  ;;  %3370 = vmatmul.mubr.bf16.gmra.mxu0 %v3229_v51  ;;  %v12938_v44 = vpop.f32.mrf.mxu1 }
 0x770   : > { %3377 = vmatprep.mubr.bf16.mxu0 %v3232_v14  ;;  %16348 = vst [vmem:[#allocation41_spill] sm:$0xff] %v12938_v44  ;;  %v16349_v14 = vld [vmem:[#allocation118_spill] sm:$0xff] }
 0x771   : > { %16339 = vst [vmem:[#allocation48_spill] sm:$0xff] %v12918_v42 }
 0x777   : > { %3378 = vmatmul.mubr.bf16.gmra.mxu0 %v3231_v26  ;;  %v16351_v26 = vld [vmem:[#allocation64_spill] sm:$0xff] }
 0x778   : > { %v2840_v6 = vpop.xlane.xlu0 %2839 }
 0x779   : > { %v2903_v58 = vsub.f32 %v16342_v25, %v2840_v6  ;;  %v2904_v13 = vsub.f32 %v16343_v27, %v2840_v6 }
 0x77b   : > { %v3029_v55 = vmul.f32 1.442695, %v2903_v58  ;;  %v3031_v54 = vmul.f32 1.442695, %v2904_v13 }
 0x77c   : > { %v3062_v34 = vpop.xlane.xlu0 %3061 }
 0x77d   : > { %9071 = vpow2.f32 %v3029_v55 }
 0x77e   : > { %9073 = vpow2.f32 %v3031_v54  ;;  %v3904_v54 = vmax.f32 %v12930_v31, %v12938_v44 }
 0x77f   : > { %9075 = vrcp.f32 %v3062_v34 }
 0x780   : > { %v3840_v3 = vpop.xlane.xlu0 %3839 }
 0x781   : > { %v3933_v25 = vsub.f32 %v16351_v26, %v3840_v3 }
 0x783   : > { %v3999_v16 = vmul.f32 1.442695, %v3933_v25 }
 0x784   : > { %v3068_v35 = vpop.xlane.xlu0 %3067 }
 0x788   : > { %v12928_v37 = vpop.xlane.xlu0 %3845 }
 0x78a   : > { %v12932_v36 = vpop.eup %9071 }
 0x78b   : > { %16347 = vst [vmem:[#allocation57_spill] sm:$0xff] %v12932_v36  ;;  %v12934_v51 = vpop.eup %9073 }
 0x78c   : > { %v2837_v6 = vpop.xlane.xlu1 %2836  ;;  %v3074_v58 = vpop.xlane.xlu0 %3073  ;;  %v3126_v55 = vadd.f32 %v12934_v51, %v12932_v36 }
 0x78d   : > { %v2901_v22 = vsub.f32 %v16349_v14, %v2837_v6  ;;  %v2902_v57 = vsub.f32 %v16350_v1, %v2837_v6  ;;  %v16352_v14 = vld [vmem:[#allocation53_spill] sm:$0xff]  ;;  %v9076_v25 = vpop.eup %9075 }
 0x78e   : > { %3127 = vadd.xlane.f32.xlu0 %v3126_v55  ;;  %v3934_v0 = vsub.f32 %v16352_v14, %v3840_v3 }
 0x78f   : > { %v3025_v27 = vmul.f32 1.442695, %v2901_v22  ;;  %v3027_v13 = vmul.f32 1.442695, %v2902_v57  ;;  %v16353_v22 = vld [vmem:[#allocation94_spill] sm:$0xff] }
 0x790   : > { %v3059_v42 = vpop.xlane.xlu1 %3058  ;;  %v12945_v9 = vpop.xlane.xlu0 %3851  ;;  %v4001_v34 = vmul.f32 1.442695, %v3934_v0 }
 0x791   : > { %9077 = vpow2.f32 %v3025_v27 }
 0x792   : > { %9079 = vpow2.f32 %v3027_v13  ;;  %3905 = vmax.xlane.f32.xlu0 %v3904_v54 }
 0x793   : > { %9081 = vrcp.f32 %v3059_v42 }
 0x794   : > { %v3837_v6 = vpop.xlane.xlu1 %3836  ;;  %v3080_v55 = vpop.xlane.xlu0 %3079  ;;  %9083 = vpow2.f32 %v3999_v16 }
 0x795   : > { %v3931_v1 = vsub.f32 %v12312_v33, %v3837_v6  ;;  %v3932_v57 = vsub.f32 %v16353_v22, %v3837_v6  ;;  %9085 = vrcp.f32 %v3068_v35  ;;  %v16356_v35 = vld [vmem:[#allocation125_spill] sm:$0xff]  ;;  %v16358_v6 = vld [vmem:[#allocation82_spill] sm:$0xff]  ;;  %v16359_v22 = vld [vmem:[#allocation63_spill] sm:$0xff] }
 0x797   : > { %v3995_v26 = vmul.f32 1.442695, %v3931_v1  ;;  %v3997_v44 = vmul.f32 1.442695, %v3932_v57  ;;  %v3179_v57 = vmul.f32 %v9076_v25, %v16359_v22  ;;  %v16363_v22 = vld [vmem:[#allocation124_spill] sm:$0xff] }
 0x798   : > { %v3065_v31 = vpop.xlane.xlu1 %3064  ;;  %v12950_v10 = vpop.xlane.xlu0 %3857 }
 0x799   : > { %16354 = vst [vmem:[#allocation60_spill] sm:$0xff] %v12950_v10  ;;  %9087 = vpow2.f32 %v3995_v26 }
 0x79a   : > { %9089 = vpow2.f32 %v3997_v44 }
 0x79b   : > { %9091 = vrcp.f32 %v3065_v31  ;;  %v16357_v31 = vld [vmem:[#allocation68_spill] sm:$0xff] }
 0x79c   : > { %9093 = vpow2.f32 %v4001_v34  ;;  %v12952_v42 = vpop.xlane.xlu1 %3842  ;;  %v3086_v3 = vpop.xlane.xlu0 %3085  ;;  %v3180_v14 = vmul.f32 %v9076_v25, %v16357_v31  ;;  %v16361_v31 = vld [vmem:[#allocation122_spill] sm:$0xff] }
 0x79d   : > { %9095 = vrcp.f32 %v3074_v58 }
 0x79e   : > { %v12954_v27 = vpop.eup %9077 }
 0x79f   : > { %v12956_v33 = vpop.eup %9079 }
 0x7a0   : > { %v9082_v16 = vpop.eup %9081  ;;  %v3071_v13 = vpop.xlane.xlu1 %3070  ;;  %v3123_v0 = vadd.f32 %v12956_v33, %v12954_v27 }
 0x7a1   : > { %v12958_v54 = vpop.xlane.xlu0 %3863  ;;  %v3178_v44 = vmul.f32 %v9082_v16, %v16356_v35  ;;  %v3177_v1 = vmul.f32 %v9082_v16, %v16358_v6  ;;  %9097 = vrcp.f32 %v3071_v13  ;;  %v12966_v34 = vpop.eup %9083  ;;  %v16362_v6 = vld [vmem:[#allocation114_spill] sm:$0xff] }
 0x7a2   : > { %16355 = vst [vmem:[#allocation62_spill] sm:$0xff] %v12958_v54  ;;  %3124 = vadd.xlane.f32.xlu1 %v3123_v0  ;;  %v3901_v54 = vmax.f32 %v12924_v32, %v12926_v20  ;;  %v9086_v58 = vpop.eup %9085  ;;  %9099 = vrcp.f32 %v3080_v55 }
 0x7a3   : > { %v3234_v26 = vpack.c.bf16 %v3180_v14, %v3178_v44  ;;  %v3233_v2 = vpack.c.bf16 %v3179_v57, %v3177_v1  ;;  %v3184_v1 = vmul.f32 %v9086_v58, %v16362_v6 }
 0x7a4   : > { %v12970_v10 = vpop.xlane.xlu1 %3848 }
 0x7a5   : > { %3385 = vmatprep.mubr.bf16.mxu0 %v3234_v26  ;;  %v3092_v35 = vpop.xlane.xlu0 %3091  ;;  %v16364_v26 = vld [vmem:[#allocation119_spill] sm:$0xff] }
 0x7a6   : > { %v12972_v8 = vpop.eup %9087  ;;  %3386 = vmatmul.mubr.bf16.gmra.mxu0 %v3233_v2  ;;  %3902 = vmax.xlane.f32.xlu1 %v3901_v54  ;;  %v3183_v2 = vmul.f32 %v9086_v58, %v16364_v26 }
 0x7a7   : > { %v12974_v16 = vpop.eup %9089 }
 0x7a8   : > { %16360 = vst [vmem:[#allocation75_spill] sm:$0xff] %v12974_v16  ;;  %v9092_v25 = vpop.eup %9091  ;;  %v3077_v13 = vpop.xlane.xlu1 %3076  ;;  %v4123_v0 = vadd.f32 %v12974_v16, %v12972_v8 }
 0x7a9   : > { %v12978_v44 = vpop.eup %9093  ;;  %v3182_v14 = vmul.f32 %v9092_v25, %v16361_v31  ;;  %v3181_v57 = vmul.f32 %v9092_v25, %v16363_v22  ;;  %9101 = vrcp.f32 %v3077_v13  ;;  %v12984_v54 = vpop.xlane.xlu0 %3869  ;;  %v16365_v13 = vld [vmem:[#allocation79_spill] sm:$0xff] }
 0x7aa   : > { %4124 = vadd.xlane.f32.xlu0 %v4123_v0  ;;  %v4126_v16 = vadd.f32 %v12978_v44, %v12966_v34  ;;  %v9096_v55 = vpop.eup %9095  ;;  %9103 = vrcp.f32 %v3086_v3  ;;  %v16367_v3 = vld [vmem:[#allocation17_spill] sm:$0xff] }
 0x7ab   : > { %v3236_v20 = vpack.c.bf16 %v3184_v1, %v3182_v14  ;;  %v3235_v36 = vpack.c.bf16 %v3183_v2, %v3181_v57  ;;  %v3188_v6 = vmul.f32 %v9096_v55, %v16365_v13  ;;  %v16366_v1 = vld [vmem:[#allocation45_spill] sm:$0xff] }
 0x7ac   : > { %v12986_v32 = vpop.xlane.xlu1 %3854  ;;  %v3187_v22 = vmul.f32 %v9096_v55, %v16366_v1 }
 0x7ad   : > { %3393 = vmatprep.mubr.bf16.mxu0 %v3236_v20  ;;  %v3098_v25 = vpop.xlane.xlu0 %3097 }
 0x7ae   : > { %3394 = vmatmul.mubr.bf16.gmra.mxu0 %v3235_v36  ;;  %4127 = vadd.xlane.f32.xlu0 %v4126_v16  ;;  %v9098_v31 = vpop.eup %9097 }
 0x7af   : > { %v3186_v58 = vmul.f32 %v9098_v31, %v12667_v62  ;;  %v3185_v14 = vmul.f32 %v9098_v31, %v12659_v46  ;;  %v9100_v36 = vpop.eup %9099  ;;  %v16368_v31 = vld [vmem:[#allocation77_spill] sm:$0xff] }
 0x7b0   : > { %v3083_v0 = vpop.xlane.xlu1 %3082  ;;  %v3192_v55 = vmul.f32 %v9100_v36, %v16368_v31 }
 0x7b1   : > { %9105 = vrcp.f32 %v3083_v0  ;;  %v3238_v57 = vpack.c.bf16 %v3188_v6, %v3186_v58  ;;  %v3237_v20 = vpack.c.bf16 %v3187_v22, %v3185_v14  ;;  %v12996_v16 = vpop.xlane.xlu0 %3875  ;;  %v16369_v58 = vld [vmem:[#allocation88_spill] sm:$0xff]  ;;  %v16370_v6 = vld [vmem:[#allocation19_spill] sm:$0xff] }
 0x7b2   : > { %9107 = vrcp.f32 %v3092_v35  ;;  %v3191_v13 = vmul.f32 %v9100_v36, %v16369_v58 }
 0x7b3   : > { %3401 = vmatprep.mubr.bf16.mxu0 %v3238_v57 }
 0x7b4   : > { %v12994_v26 = vpop.xlane.xlu1 %3860 }
 0x7b5   : > { %v3104_v57 = vpop.xlane.xlu0 %3103 }
 0x7b6   : > { %3402 = vmatmul.mubr.bf16.gmra.mxu0 %v3237_v20  ;;  %v9102_v62 = vpop.eup %9101 }
 0x7b7   : > { %4377 = vrot.lane.b32.xlu1 %v16367_v3, %s9797_s20  ;;  %v3190_v46 = vmul.f32 %v9102_v62, %v12701_v12  ;;  %v3189_v0 = vmul.f32 %v9102_v62, %v12693_v48  ;;  %v9104_v20 = vpop.eup %9103  ;;  %v16371_v12 = vld [vmem:[#allocation20_spill] sm:$0xff] }
 0x7b8   : > { %v3089_v2 = vpop.xlane.xlu1 %3088  ;;  %v3196_v62 = vmul.f32 %v9104_v20, %v12649_v19 }
 0x7b9   : > { %9109 = vrcp.f32 %v3089_v2  ;;  %v3240_v14 = vpack.c.bf16 %v3192_v55, %v3190_v46  ;;  %v3239_v22 = vpack.c.bf16 %v3191_v13, %v3189_v0  ;;  %v3195_v46 = vmul.f32 %v9104_v20, %v12642_v28  ;;  %v13014_v31 = vpop.xlane.xlu0 %3881  ;;  %v16372_v0 = vld [vmem:[#allocation18_spill] sm:$0xff] }
 0x7ba   : > { %9111 = vrcp.f32 %v3098_v25 }
 0x7bb   : > { %4375 = vrot.lane.b32.xlu1 %v16370_v6, %s9797_s20  ;;  %3409 = vmatprep.mubr.bf16.mxu0 %v3240_v14 }
 0x7bc   : > { %v13006_v1 = vpop.xlane.xlu1 %3866 }
 0x7bd   : > { %v3110_v19 = vpop.xlane.xlu0 %3109 }
 0x7be   : > { %3410 = vmatmul.mubr.bf16.gmra.mxu0 %v3239_v22  ;;  %v9106_v35 = vpop.eup %9105 }
 0x7bf   : > { %4359 = vrot.lane.b32.xlu1 %v16371_v12, %s9797_s20  ;;  %v3194_v36 = vmul.f32 %v9106_v35, %v12733_v52  ;;  %v3193_v2 = vmul.f32 %v9106_v35, %v12727_v56  ;;  %v9108_v25 = vpop.eup %9107 }
 0x7c0   : > { %v3095_v48 = vpop.xlane.xlu1 %3094  ;;  %v3200_v28 = vmul.f32 %v9108_v25, %v12683_v50  ;;  %v3199_v20 = vmul.f32 %v9108_v25, %v12677_v30 }
 0x7c1   : > { %9113 = vrcp.f32 %v3095_v48  ;;  %v3242_v55 = vpack.c.bf16 %v3196_v62, %v3194_v36  ;;  %v3241_v13 = vpack.c.bf16 %v3195_v46, %v3193_v2  ;;  %v16373_v48 = vld [vmem:[#allocation14_spill] sm:$0xff]  ;;  %v16374_v62 = vld [vmem:[#allocation24_spill] sm:$0xff] }
 0x7c2   : > { %9115 = vrcp.f32 %v3104_v57  ;;  %v3935_v36 = vsub.f32 %v16373_v48, %v12952_v42  ;;  %v3936_v2 = vsub.f32 %v16374_v62, %v12952_v42 }
 0x7c3   : > { %3417 = vmatprep.mubr.bf16.mxu0 %v3242_v55 }
 0x7c4   : > { %4361 = vrot.lane.b32.xlu0 %v16372_v0, %s9797_s20  ;;  %v13018_v58 = vpop.xlane.xlu1 %3872 }
 0x7c6   : > { %3418 = vmatmul.mubr.bf16.gmra.mxu0 %v3241_v13  ;;  %v9110_v52 = vpop.eup %9109  ;;  %v13034_v13 = vpop.xlane.xlu0 %3887 }
 0x7c7   : > { %v3198_v56 = vmul.f32 %v9110_v52, %v12757_v49  ;;  %v3197_v22 = vmul.f32 %v9110_v52, %v12751_v60  ;;  %v9112_v55 = vpop.eup %9111  ;;  %v16375_v49 = vld [vmem:[#allocation51_spill] sm:$0xff]  ;;  %v16376_v60 = vld [vmem:[#allocation110_spill] sm:$0xff]  ;;  %v4003_v52 = vmul.f32 1.442695, %v3935_v36 }
 0x7c8   : > { %v3101_v14 = vpop.xlane.xlu1 %3100  ;;  %v3937_v50 = vsub.f32 %v16375_v49, %v12928_v37  ;;  %v3938_v30 = vsub.f32 %v16376_v60, %v12928_v37  ;;  %v3204_v42 = vmul.f32 %v9112_v55, %v12717_v61 }
 0x7c9   : > { %9117 = vrcp.f32 %v3101_v14  ;;  %v3244_v35 = vpack.c.bf16 %v3200_v28, %v3198_v56  ;;  %v3243_v57 = vpack.c.bf16 %v3199_v20, %v3197_v22  ;;  %v4005_v14 = vmul.f32 1.442695, %v3936_v2 }
 0x7ca   : > { %9119 = vrcp.f32 %v3110_v19  ;;  %v3203_v20 = vmul.f32 %v9112_v55, %v12711_v15  ;;  %v4007_v48 = vmul.f32 1.442695, %v3937_v50  ;;  %v4009_v62 = vmul.f32 1.442695, %v3938_v30  ;;  %v3116_v2 = vpop.xlane.xlu0 %3115 }
 0x7cb   : > { %3425 = vmatprep.mubr.bf16.mxu0 %v3244_v35  ;;  %v13040_v35 = vpop.f32.mrf.mxu1 }
 0x7cc   : > { %v13028_v46 = vpop.xlane.xlu1 %3878 }
 0x7cd   : > { %v13044_v19 = vpop.f32.mrf.mxu1 }
 0x7ce   : > { %3426 = vmatmul.mubr.bf16.gmra.mxu0 %v3243_v57  ;;  %v9114_v25 = vpop.eup %9113 }
 0x7cf   : > { %v3202_v28 = vmul.f32 %v9114_v25, %v12781_v39  ;;  %v3201_v22 = vmul.f32 %v9114_v25, %v12775_v53  ;;  %v9116_v61 = vpop.eup %9115  ;;  %v13050_v60 = vpop.f32.mrf.mxu1 }
 0x7d0   : > { %v3107_v56 = vpop.xlane.xlu1 %3106  ;;  %v3208_v55 = vmul.f32 %v9116_v61, %v12747_v24  ;;  %v3207_v50 = vmul.f32 %v9116_v61, %v12741_v59  ;;  %v3907_v24 = vmax.f32 %v13040_v35, %v13044_v19 }
 0x7d1   : > { %9121 = vrcp.f32 %v3107_v56  ;;  %v3246_v37 = vpack.c.bf16 %v3204_v42, %v3202_v28  ;;  %v3245_v57 = vpack.c.bf16 %v3203_v20, %v3201_v22  ;;  %v13064_v22 = vpop.xlane.xlu0 %3893 }
 0x7d2   : > { %9123 = vpow2.f32 %v4003_v52 }
 0x7d3   : > { %9125 = vpow2.f32 %v4005_v14  ;;  %3433 = vmatprep.mubr.bf16.mxu0 %v3246_v37  ;;  %v13052_v14 = vpop.f32.mrf.mxu1 }
 0x7d4   : > { %v13042_v36 = vpop.xlane.xlu1 %3884  ;;  %9127 = vpow2.f32 %v4007_v48 }
 0x7d5   : > { %9129 = vpow2.f32 %v4009_v62 }
 0x7d6   : > { %3434 = vmatmul.mubr.bf16.gmra.mxu0 %v3245_v57  ;;  %v9118_v15 = vpop.eup %9117  ;;  %9131 = vrcp.f32 %v3116_v2 }
 0x7d7   : > { %v3206_v39 = vmul.f32 %v9118_v15, %v12807_v21  ;;  %v3205_v49 = vmul.f32 %v9118_v15, %v12801_v63  ;;  %v9120_v52 = vpop.eup %9119  ;;  %v3910_v63 = vmax.f32 %v13050_v60, %v13052_v14 }
 0x7d8   : > { %v3113_v53 = vpop.xlane.xlu1 %3112  ;;  %v3212_v21 = vmul.f32 %v9120_v52, %v12771_v7  ;;  %v3211_v48 = vmul.f32 %v9120_v52, %v12763_v40  ;;  %v16381_v52 = vld [vmem:[#allocation22_spill] sm:$0xff] }
 0x7d9   : > { %9133 = vrcp.f32 %v3113_v53  ;;  %v3248_v30 = vpack.c.bf16 %v3208_v55, %v3206_v39  ;;  %v3247_v25 = vpack.c.bf16 %v3207_v50, %v3205_v49 }
 0x7db   : > { %3441 = vmatprep.mubr.bf16.mxu0 %v3248_v30 }
 0x7dc   : > { %v13074_v15 = vpop.xlane.xlu1 %3890 }
 0x7de   : > { %3442 = vmatmul.mubr.bf16.gmra.mxu0 %v3247_v25  ;;  %v9122_v56 = vpop.eup %9121 }
 0x7df   : > { %v13054_v42 = vpop.eup %9123  ;;  %v3210_v59 = vmul.f32 %v9122_v56, %v12827_v41  ;;  %v3209_v20 = vmul.f32 %v9122_v56, %v12823_v38  ;;  %v3122_v41 = vpop.xlane.xlu0 %3121 }
 0x7e0   : > { %16377 = vst [vmem:[#allocation118_spill] sm:$0xff] %v13054_v42  ;;  %v13062_v28 = vpop.eup %9125  ;;  %9135 = vrcp.f32 %v3122_v41  ;;  %v13102_v41 = vpop.f32.mrf.mxu1 }
 0x7e1   : > { %16378 = vst [vmem:[#allocation44_spill] sm:$0xff] %v13062_v28  ;;  %v13068_v62 = vpop.eup %9127  ;;  %v3250_v37 = vpack.c.bf16 %v3212_v21, %v3210_v59  ;;  %v3249_v2 = vpack.c.bf16 %v3211_v48, %v3209_v20  ;;  %v4129_v7 = vadd.f32 %v13062_v28, %v13054_v42  ;;  %v16383_v20 = vld [vmem:[#allocation26_spill] sm:$0xff]  ;;  %v16384_v48 = vld [vmem:[#allocation23_spill] sm:$0xff] }
 0x7e2   : > { %16379 = vst [vmem:[#allocation64_spill] sm:$0xff] %v13068_v62  ;;  %v13070_v57 = vpop.eup %9129 }
 0x7e3   : > { %3908 = vmax.xlane.f32.xlu1 %v3907_v24  ;;  %3911 = vmax.xlane.f32.xlu0 %v3910_v63  ;;  %16380 = vst [vmem:[#allocation53_spill] sm:$0xff] %v13070_v57  ;;  %v9132_v61 = vpop.eup %9131  ;;  %v4132_v40 = vadd.f32 %v13070_v57, %v13068_v62 }
 0x7e4   : > { %3449 = vmatprep.mubr.bf16.mxu0 %v3250_v37  ;;  %v3216_v53 = vmul.f32 %v9132_v61, %v12795_v4  ;;  %v3215_v49 = vmul.f32 %v9132_v61, %v12787_v43  ;;  %v16382_v4 = vld [vmem:[#allocation25_spill] sm:$0xff]  ;;  %v3939_v37 = vsub.f32 %v12432_v47, %v12970_v10 }
 0x7e6   : > { %3450 = vmatmul.mubr.bf16.gmra.mxu0 %v3249_v2  ;;  %v9134_v38 = vpop.eup %9133  ;;  %v16386_v2 = vld [vmem:[#allocation109_spill] sm:$0xff] }
 0x7e7   : > { %4130 = vadd.xlane.f32.xlu0 %v4129_v7  ;;  %v3214_v39 = vmul.f32 %v9134_v38, %v12845_v45  ;;  %v3213_v55 = vmul.f32 %v9134_v38, %v12841_v17  ;;  %v3942_v61 = vsub.f32 %v16386_v2, %v12945_v9 }
 0x7e9   : > { %v3252_v30 = vpack.c.bf16 %v3216_v53, %v3214_v39  ;;  %v3251_v25 = vpack.c.bf16 %v3215_v49, %v3213_v55  ;;  %v13104_v53 = vpop.f32.mrf.mxu1 }
 0x7ea   : > { %v3119_v50 = vpop.xlane.xlu1 %3118  ;;  %v3913_v55 = vmax.f32 %v13102_v41, %v13104_v53 }
 0x7eb   : > { %9137 = vrcp.f32 %v3119_v50  ;;  %4133 = vadd.xlane.f32.xlu0 %v4132_v40  ;;  %3457 = vmatprep.mubr.bf16.mxu0 %v3252_v30  ;;  %v4017_v40 = vmul.f32 1.442695, %v3942_v61  ;;  %v13106_v47 = vpop.f32.mrf.mxu1 }
 0x7ed   : > { %v9136_v56 = vpop.eup %9135 }
 0x7ee   : > { %3458 = vmatmul.mubr.bf16.gmra.mxu0 %v3251_v25  ;;  %v3220_v17 = vmul.f32 %v9136_v56, %v12859_v18  ;;  %v3219_v63 = vmul.f32 %v9136_v56, %v12855_v11  ;;  %v3940_v18 = vsub.f32 %v12436_v5, %v12970_v10  ;;  %v4011_v11 = vmul.f32 1.442695, %v3939_v37  ;;  %v13108_v5 = vpop.f32.mrf.mxu0  ;;  %v13110_v10 = vpop.f32.mrf.mxu1 }
 0x7ef   : > { %16387 = vst [vmem:[#allocation94_spill] sm:$0xff] %v13108_v5  ;;  %16388 = vst [vmem:[#allocation125_spill] sm:$0xff] %v13110_v10  ;;  %v3916_v49 = vmax.f32 %v13106_v47, %v13110_v10  ;;  %v13134_v37 = vpop.xlane.xlu1 %3896 }
 0x7f0   : > { %v4013_v7 = vmul.f32 1.442695, %v3940_v18  ;;  %9139 = vpow2.f32 %v4011_v11  ;;  %v13112_v39 = vpop.f32.mrf.mxu0 }
 0x7f1   : > { %16389 = vst [vmem:[#allocation68_spill] sm:$0xff] %v13112_v39 }
 0x7f2   : > { %9141 = vpow2.f32 %v4013_v7 }
 0x7f4   : > { %4373 = vrot.lane.b32.xlu1 %v16381_v52, %s9797_s20 }
 0x7f8   : > { %v9138_v24 = vpop.eup %9137  ;;  %4371 = vrot.lane.b32.xlu1 %v16382_v4, %s9797_s20 }
 0x7f9   : > { %v3218_v45 = vmul.f32 %v9138_v24, %v12889_v23  ;;  %v3217_v43 = vmul.f32 %v9138_v24, %v12887_v29  ;;  %v16385_v29 = vld [vmem:[#allocation52_spill] sm:$0xff] }
 0x7fa   : > { %v3941_v23 = vsub.f32 %v16385_v29, %v12945_v9 }
 0x7fb   : > { %v3254_v59 = vpack.c.bf16 %v3220_v17, %v3218_v45  ;;  %v3253_v21 = vpack.c.bf16 %v3219_v63, %v3217_v43  ;;  %v13130_v43 = vpop.xlane.xlu0 %3899 }
 0x7fc   : > { %4355 = vrot.lane.b32.xlu1 %v16383_v20, %s9797_s20  ;;  %v4015_v38 = vmul.f32 1.442695, %v3941_v23 }
 0x7fd   : > { %3465 = vmatprep.mubr.bf16.mxu0 %v3254_v59  ;;  %v13114_v9 = vpop.eup %9139 }
 0x7fe   : > { %3466 = vmatmul.mubr.bf16.gmra.mxu0 %v3253_v21  ;;  %9143 = vpow2.f32 %v4015_v38  ;;  %16390 = vst [vmem:[#allocation82_spill] sm:$0xff] %v13114_v9  ;;  %v13132_v21 = vpop.f32.mrf.mxu1 }
 0x7ff   : > { %9145 = vpow2.f32 %v4017_v40  ;;  %v13120_v50 = vpop.eup %9141  ;;  %16395 = vst [vmem:[#allocation119_spill] sm:$0xff] %v13132_v21 }
 0x800   : > { %16391 = vst [vmem:[#allocation63_spill] sm:$0xff] %v13120_v50  ;;  %v4135_v45 = vadd.f32 %v13120_v50, %v13114_v9  ;;  %v13142_v7 = vpop.f32.mrf.mxu1 }
 0x801   : > { %4357 = vrot.lane.b32.xlu0 %v16384_v48, %s9797_s20  ;;  %16397 = vst [vmem:[#allocation45_spill] sm:$0xff] %v13142_v7 }
 0x80b   : > { %v13122_v56 = vpop.eup %9143 }
 0x80c   : > { %16392 = vst [vmem:[#allocation122_spill] sm:$0xff] %v13122_v56  ;;  %v13128_v17 = vpop.eup %9145 }
 0x80d   : > { %16394 = vst [vmem:[#allocation124_spill] sm:$0xff] %v13128_v17  ;;  %v4138_v29 = vadd.f32 %v13128_v17, %v13122_v56 }
 0x817   : > { %v3128_v23 = vpop.xlane.xlu0 %3127 }
 0x818   : > { %9147 = vrcp.f32 %v3128_v23  ;;  %v16401_v23 = vld [vmem:[#allocation28_spill] sm:$0xff] }
 0x81f   : > { %v7751_v30 = vpop.f32.mrf.mxu0 }
 0x820   : > { %3914 = vmax.xlane.f32.xlu1 %v3913_v55  ;;  %3917 = vmax.xlane.f32.xlu0 %v3916_v49 }
 0x821   : > { %v7752_v25 = vpop.f32.mrf.mxu0 }
 0x822   : > { %v13124_v24 = vadd.f32 %v7752_v25, %v7751_v30  ;;  %v13146_v30 = vpop.f32.mrf.mxu1  ;;  %v13148_v25 = vpop.xlane.xlu0 %3905 }
 0x823   : > { %v7754_v63 = vpop.f32.mrf.mxu0  ;;  %16399 = vst [vmem:[#allocation88_spill] sm:$0xff] %v13146_v30 }
 0x824   : > { %16393 = vst [vmem:[#allocation114_spill] sm:$0xff] %v13124_v24  ;;  %4136 = vadd.xlane.f32.xlu0 %v4135_v45 }
 0x825   : > { %v7755_v59 = vpop.f32.mrf.mxu0  ;;  %v9148_v24 = vpop.eup %9147 }
 0x826   : > { %v13136_v18 = vadd.f32 %v7755_v59, %v7754_v63 }
 0x827   : > { %v7757_v11 = vpop.f32.mrf.mxu0 }
 0x828   : > { %16396 = vst [vmem:[#allocation79_spill] sm:$0xff] %v13136_v18  ;;  %4139 = vadd.xlane.f32.xlu0 %v4138_v29 }
 0x829   : > { %v7758_v61 = vpop.f32.mrf.mxu0 }
 0x82a   : > { %v13144_v38 = vadd.f32 %v7758_v61, %v7757_v11  ;;  %v13158_v61 = vpop.f32.mrf.mxu1 }
 0x82b   : > { %v3125_v40 = vpop.xlane.xlu1 %3124  ;;  %v7760_v55 = vpop.f32.mrf.mxu0  ;;  %16402 = vst [vmem:[#allocation24_spill] sm:$0xff] %v13158_v61 }
 0x82c   : > { %16398 = vst [vmem:[#allocation77_spill] sm:$0xff] %v13144_v38  ;;  %9149 = vrcp.f32 %v3125_v40  ;;  %v13164_v18 = vpop.f32.mrf.mxu1 }
 0x82d   : > { %v7761_v49 = vpop.f32.mrf.mxu0 }
 0x82e   : > { %v13150_v45 = vadd.f32 %v7761_v49, %v7760_v55  ;;  %v16404_v55 = vld [vmem:[#allocation31_spill] sm:$0xff]  ;;  %v13176_v4 = vpop.f32.mrf.mxu1 }
 0x82f   : > { %v13152_v63 = vpop.xlane.xlu1 %3902  ;;  %v7763_v59 = vpop.f32.mrf.mxu0 }
 0x830   : > { %16400 = vst [vmem:[#allocation14_spill] sm:$0xff] %v13150_v45 }
 0x831   : > { %4369 = vrot.lane.b32.xlu1 %v16401_v23, %s9797_s20  ;;  %v7764_v11 = vpop.f32.mrf.mxu0 }
 0x832   : > { %v13160_v40 = vadd.f32 %v7764_v11, %v7763_v59 }
 0x833   : > { %v4378_v2 = vpop.permute.xlu1 %4377  ;;  %v4125_v39 = vpop.xlane.xlu0 %4124 }
 0x834   : > { %16403 = vst [vmem:[#allocation51_spill] sm:$0xff] %v13160_v40  ;;  %v7766_v5 = vpop.f32.mrf.mxu0  ;;  %7895 = vmatprep.subr.bf16.mxu0 %v4378_v2  ;;  %9151 = vrcp.f32 %v4125_v39  ;;  %v16406_v2 = vld [vmem:[#allocation32_spill] sm:$0xff] }
 0x835   : > { %4367 = vrot.lane.b32.xlu1 %v16404_v55, %s9797_s20  ;;  %v3224_v55 = vmul.f32 %v9148_v24, %v12934_v51  ;;  %v13182_v51 = vpop.f32.mrf.mxu1 }
 0x836   : > { %v7767_v49 = vpop.f32.mrf.mxu0  ;;  %16410 = vst [vmem:[#allocation109_spill] sm:$0xff] %v13182_v51 }
 0x837   : > { %v13166_v29 = vadd.f32 %v7767_v49, %v7766_v5  ;;  %v4128_v38 = vpop.xlane.xlu0 %4127  ;;  %v4376_v11 = vpop.permute.xlu1 %4375  ;;  %v16407_v5 = vld [vmem:[#allocation57_spill] sm:$0xff] }
 0x838   : > { %9153 = vrcp.f32 %v4128_v38  ;;  %v7769_v45 = vpop.f32.mrf.mxu0  ;;  %v3223_v49 = vmul.f32 %v9148_v24, %v16407_v5 }
 0x839   : > { %16405 = vst [vmem:[#allocation110_spill] sm:$0xff] %v13166_v29  ;;  %v9150_v23 = vpop.eup %9149  ;;  %4351 = vrot.lane.b32.xlu1 %v16406_v2, %s9797_s20  ;;  %v16409_v2 = vld [vmem:[#allocation29_spill] sm:$0xff] }
 0x83a   : > { %v7770_v48 = vpop.f32.mrf.mxu0  ;;  %v3222_v39 = vmul.f32 %v9150_v23, %v12956_v33  ;;  %v3221_v20 = vmul.f32 %v9150_v23, %v12954_v27 }
 0x83b   : > { %v13178_v38 = vadd.f32 %v7770_v48, %v7769_v45  ;;  %v4362_v52 = vpop.permute.xlu0 %4361  ;;  %v4360_v27 = vpop.permute.xlu1 %4359  ;;  %v16413_v45 = vld [vmem:[#allocation74_spill] sm:$0xff] }
 0x83c   : > { %v7772_v0 = vpop.f32.mrf.mxu0  ;;  %7896 = vmatpush3.bf16.msra.mxu0 %v4362_v52  ;;  %v3256_v59 = vpack.c.bf16 %v3224_v55, %v3222_v39  ;;  %v3255_v40 = vpack.c.bf16 %v3223_v49, %v3221_v20  ;;  %v13188_v52 = vpop.f32.mrf.mxu1  ;;  %v3943_v23 = vsub.f32 %v16413_v45, %v12986_v32  ;;  %v16417_v39 = vld [vmem:[#allocation58_spill] sm:$0xff]  ;;  %v16418_v45 = vld [vmem:[#allocation60_spill] sm:$0xff] }
 0x83d   : > { %16408 = vst [vmem:[#allocation52_spill] sm:$0xff] %v13178_v38  ;;  %7897 = vmatprep.subr.bf16.mxu0 %v4376_v11  ;;  %16412 = vst [vmem:[#allocation138_spill] sm:$0xff] %v13188_v52  ;;  %v3944_v5 = vsub.f32 %v16417_v39, %v12986_v32  ;;  %v16419_v48 = vld [vmem:[#allocation34_spill] sm:$0xff]  ;;  %v3922_v39 = vmax.f32 %v13146_v30, %v13158_v61 }
 0x83e   : > { %v7773_v29 = vpop.f32.mrf.mxu0  ;;  %4353 = vrot.lane.b32.xlu0 %v16409_v2, %s9797_s20  ;;  %3473 = vmatprep.mubr.bf16.mxu0 %v3256_v59  ;;  %v13200_v11 = vpop.f32.mrf.mxu1  ;;  %v4019_v38 = vmul.f32 1.442695, %v3943_v23  ;;  %v3919_v23 = vmax.f32 %v13132_v21, %v13142_v7 }
 0x83f   : > { %v13184_v33 = vadd.f32 %v7773_v29, %v7772_v0  ;;  %3474 = vmatmul.mubr.bf16.gmra.mxu0 %v3255_v40  ;;  %v16416_v0 = vld [vmem:[#allocation75_spill] sm:$0xff] }
 0x840   : > { %7898 = vmatpush3.bf16.msra.mxu0 %v4360_v27  ;;  %9155 = vpow2.f32 %v4019_v38 }
 0x841   : > { %16411 = vst [vmem:[#allocation57_spill] sm:$0xff] %v13184_v33  ;;  %v9152_v24 = vpop.eup %9151 }
 0x842   : > { %v13193_v55 = vmul.f32 %v9152_v24, %v12972_v8  ;;  %v4252_v29 = vmul.f32 %v9152_v24, %v16416_v0  ;;  %v3945_v8 = vsub.f32 %v16419_v48, %v16418_v45  ;;  %v16420_v24 = vld [vmem:[#allocation111_spill] sm:$0xff] }
 0x843   : > { %v3946_v0 = vsub.f32 %v16420_v24, %v16418_v45 }
 0x844   : > { %16414 = vst [vmem:[#allocation74_spill] sm:$0xff] %v13193_v55 }
 0x845   : > { %v9154_v20 = vpop.eup %9153  ;;  %v4025_v32 = vmul.f32 1.442695, %v3946_v0 }
 0x846   : > { %v13196_v59 = vmul.f32 %v9154_v20, %v12966_v34  ;;  %v4254_v40 = vmul.f32 %v9154_v20, %v12978_v44  ;;  %v13208_v34 = vpop.f32.mrf.mxu1  ;;  %v4021_v44 = vmul.f32 1.442695, %v3944_v5  ;;  %v4023_v20 = vmul.f32 1.442695, %v3945_v8 }
 0x848   : > { %16415 = vst [vmem:[#allocation139_spill] sm:$0xff] %v13196_v59  ;;  %v4316_v49 = vpack.c.bf16 %v4254_v40, %v4252_v29  ;;  %v13212_v33 = vpop.f32.mrf.mxu1  ;;  %9157 = vpow2.f32 %v4021_v44 }
 0x849   : > { %9159 = vpow2.f32 %v4023_v20 }
 0x84a   : > { %4427 = vmatprep.mubr.bf16.mxu0 %v4316_v49  ;;  %v13214_v29 = vpop.f32.mrf.mxu1  ;;  %9161 = vpow2.f32 %v4025_v32 }
 0x84c   : > { %v13216_v40 = vpop.f32.mrf.mxu1 }
 0x84d   : > { %16421 = vst [vmem:[#allocation75_spill] sm:$0xff] %v13216_v40  ;;  %v13218_v48 = vpop.eup %9155 }
 0x84e   : > { %16422 = vst [vmem:[#allocation58_spill] sm:$0xff] %v13218_v48  ;;  %v13224_v5 = vpop.f32.mrf.mxu1 }
 0x84f   : > { %16423 = vst [vmem:[#allocation60_spill] sm:$0xff] %v13224_v5 }
 0x850   : > { %v13230_v45 = vpop.f32.mrf.mxu1 }
 0x851   : > { %16426 = vst [vmem:[#allocation140_spill] sm:$0xff] %v13230_v45 }
 0x852   : > { %v13236_v0 = vpop.f32.mrf.mxu1 }
 0x853   : > { %16428 = vst [vmem:[#allocation142_spill] sm:$0xff] %v13236_v0 }
 0x854   : > { %v13240_v32 = vpop.f32.mrf.mxu1 }
 0x855   : > { %v13226_v38 = vpop.eup %9157  ;;  %16429 = vst [vmem:[#allocation143_spill] sm:$0xff] %v13240_v32 }
 0x856   : > { %16424 = vst [vmem:[#allocation34_spill] sm:$0xff] %v13226_v38  ;;  %v13228_v49 = vpop.eup %9159  ;;  %v4141_v8 = vadd.f32 %v13226_v38, %v13218_v48  ;;  %v13244_v2 = vpop.f32.mrf.mxu1 }
 0x857   : > { %16425 = vst [vmem:[#allocation111_spill] sm:$0xff] %v13228_v49  ;;  %v13234_v24 = vpop.eup %9161  ;;  %16431 = vst [vmem:[#allocation145_spill] sm:$0xff] %v13244_v2 }
 0x858   : > { %16427 = vst [vmem:[#allocation141_spill] sm:$0xff] %v13234_v24  ;;  %v4144_v44 = vadd.f32 %v13234_v24, %v13228_v49  ;;  %v16433_v49 = vld [vmem:[#allocation33_spill] sm:$0xff] }
 0x85d   : > { %3920 = vmax.xlane.f32.xlu1 %v3919_v23  ;;  %3923 = vmax.xlane.f32.xlu0 %v3922_v39 }
 0x861   : > { %4142 = vadd.xlane.f32.xlu0 %v4141_v8 }
 0x865   : > { %4145 = vadd.xlane.f32.xlu0 %v4144_v44  ;;  %v13254_v44 = vpop.f32.mrf.mxu1 }
 0x866   : > { %v7775_v20 = vpop.f32.mrf.mxu0  ;;  %16434 = vst [vmem:[#allocation147_spill] sm:$0xff] %v13254_v44 }
 0x867   : > { %v13264_v56 = vpop.f32.mrf.mxu1 }
 0x868   : > { %v7776_v23 = vpop.f32.mrf.mxu0  ;;  %16438 = vst [vmem:[#allocation150_spill] sm:$0xff] %v13264_v56 }
 0x869   : > { %v13242_v39 = vadd.f32 %v7776_v23, %v7775_v20  ;;  %v16441_v20 = vld [vmem:[#allocation37_spill] sm:$0xff] }
 0x86a   : > { %v7778_v27 = vpop.f32.mrf.mxu0 }
 0x86b   : > { %16430 = vst [vmem:[#allocation144_spill] sm:$0xff] %v13242_v39 }
 0x86c   : > { %v7779_v12 = vpop.f32.mrf.mxu0  ;;  %v13246_v6 = vpop.xlane.xlu1 %3908 }
 0x86d   : > { %v13248_v3 = vadd.f32 %v7779_v12, %v7778_v27  ;;  %v13250_v8 = vpop.xlane.xlu0 %3911  ;;  %v16437_v27 = vld [vmem:[#allocation36_spill] sm:$0xff] }
 0x86e   : > { %v7781_v48 = vpop.f32.mrf.mxu0  ;;  %4365 = vrot.lane.b32.xlu1 %v16433_v49, %s9797_s20 }
 0x86f   : > { %16432 = vst [vmem:[#allocation146_spill] sm:$0xff] %v13248_v3 }
 0x870   : > { %v7782_v23 = vpop.f32.mrf.mxu0  ;;  %v4374_v38 = vpop.permute.xlu1 %4373 }
 0x871   : > { %v13258_v9 = vadd.f32 %v7782_v23, %v7781_v48  ;;  %v13260_v24 = vpop.xlane.xlu0 %4130  ;;  %7899 = vmatprep.subr.bf16.mxu0 %v4374_v38  ;;  %v13274_v38 = vpop.f32.mrf.mxu1 }
 0x872   : > { %16436 = vst [vmem:[#allocation149_spill] sm:$0xff] %v13260_v24  ;;  %v7784_v12 = vpop.f32.mrf.mxu0  ;;  %4363 = vrot.lane.b32.xlu1 %v16437_v27, %s9797_s20  ;;  %16442 = vst [vmem:[#allocation153_spill] sm:$0xff] %v13274_v38 }
 0x873   : > { %16435 = vst [vmem:[#allocation148_spill] sm:$0xff] %v13258_v9 }
 0x874   : > { %v7785_v50 = vpop.f32.mrf.mxu0  ;;  %v4372_v23 = vpop.permute.xlu1 %4371 }
 0x875   : > { %v13266_v49 = vadd.f32 %v7785_v50, %v7784_v12  ;;  %v13268_v42 = vpop.xlane.xlu0 %4133  ;;  %v16444_v50 = vld [vmem:[#allocation35_spill] sm:$0xff]  ;;  %v13280_v12 = vpop.f32.mrf.mxu1 }
 0x876   : > { %16440 = vst [vmem:[#allocation152_spill] sm:$0xff] %v13268_v42  ;;  %v7787_v17 = vpop.f32.mrf.mxu0  ;;  %4347 = vrot.lane.b32.xlu1 %v16441_v20, %s9797_s20  ;;  %16445 = vst [vmem:[#allocation155_spill] sm:$0xff] %v13280_v12 }
 0x877   : > { %16439 = vst [vmem:[#allocation151_spill] sm:$0xff] %v13266_v49  ;;  %v16448_v49 = vld [vmem:[#allocation62_spill] sm:$0xff] }
 0x878   : > { %v7788_v39 = vpop.f32.mrf.mxu0  ;;  %v4356_v20 = vpop.permute.xlu1 %4355 }
 0x879   : > { %v13276_v3 = vadd.f32 %v7788_v39, %v7787_v17  ;;  %v4358_v27 = vpop.permute.xlu0 %4357  ;;  %v13286_v17 = vpop.f32.mrf.mxu1 }
 0x87a   : > { %v7790_v62 = vpop.f32.mrf.mxu0  ;;  %7900 = vmatpush3.bf16.msra.mxu0 %v4358_v27  ;;  %16447 = vst [vmem:[#allocation157_spill] sm:$0xff] %v13286_v17  ;;  %v16449_v27 = vld [vmem:[#allocation42_spill] sm:$0xff] }
 0x87b   : > { %16443 = vst [vmem:[#allocation154_spill] sm:$0xff] %v13276_v3  ;;  %7901 = vmatprep.subr.bf16.mxu0 %v4372_v23  ;;  %4349 = vrot.lane.b32.xlu0 %v16444_v50, %s9797_s20  ;;  %v3949_v23 = vsub.f32 %v16449_v27, %v16448_v49  ;;  %v16451_v50 = vld [vmem:[#allocation71_spill] sm:$0xff]  ;;  %v13296_v30 = vpop.f32.mrf.mxu1  ;;  %s15316_s20 = scalar_lea.vmem %s15439_s12, %s7525_s27 }
 0x87c   : > { %v7791_v55 = vpop.f32.mrf.mxu0  ;;  %v3950_v57 = vsub.f32 %v16451_v50, %v16448_v49  ;;  %16453 = vst [vmem:[#allocation42_spill] sm:$0xff] %v13296_v30 }
 0x87d   : > { %v13282_v59 = vadd.f32 %v7791_v55, %v7790_v62  ;;  %v16452_v62 = vld [vmem:[#allocation116_spill] sm:$0xff]  ;;  %v13304_v49 = vpop.f32.mrf.mxu1 }
 0x87e   : > { %v7793_v48 = vpop.f32.mrf.mxu0  ;;  %7902 = vmatpush3.bf16.msra.mxu0 %v4356_v20  ;;  %v3947_v55 = vsub.f32 %v16452_v62, %v12994_v26  ;;  %v16454_v20 = vld [vmem:[#allocation15_spill] sm:$0xff]  ;;  %v4033_v21 = vmul.f32 1.442695, %v3950_v57  ;;  %16456 = vst [vmem:[#allocation116_spill] sm:$0xff] %v13304_v49  ;;  %v16457_v62 = vld [vmem:[#allocation117_spill] sm:$0xff] }
 0x87f   : > { %16446 = vst [vmem:[#allocation156_spill] sm:$0xff] %v13282_v59  ;;  %v3948_v9 = vsub.f32 %v16454_v20, %v12994_v26  ;;  %v4031_v59 = vmul.f32 1.442695, %v3949_v23  ;;  %v3953_v42 = vsub.f32 %v16457_v62, %v12984_v54  ;;  %v16459_v26 = vld [vmem:[#allocation113_spill] sm:$0xff] }
 0x880   : > { %v7794_v39 = vpop.f32.mrf.mxu0 }
 0x881   : > { %v13290_v28 = vadd.f32 %v7794_v39, %v7793_v48  ;;  %v4027_v48 = vmul.f32 1.442695, %v3947_v55  ;;  %v4029_v50 = vmul.f32 1.442695, %v3948_v9  ;;  %9163 = vpow2.f32 %v4031_v59  ;;  %v13314_v55 = vpop.f32.mrf.mxu1  ;;  %v16462_v9 = vld [vmem:[#allocation76_spill] sm:$0xff] }
 0x882   : > { %v7796_v61 = vpop.f32.mrf.mxu0  ;;  %9165 = vpow2.f32 %v4033_v21  ;;  %16461 = vst [vmem:[#allocation117_spill] sm:$0xff] %v13314_v55  ;;  %v3952_v59 = vsub.f32 %v16462_v9, %v13006_v1  ;;  %v4039_v39 = vmul.f32 1.442695, %v3953_v42  ;;  %v16469_v9 = vld [vmem:[#allocation83_spill] sm:$0xff] }
 0x883   : > { %16450 = vst [vmem:[#allocation62_spill] sm:$0xff] %v13290_v28  ;;  %9167 = vpow2.f32 %v4027_v48  ;;  %v13322_v48 = vpop.f32.mrf.mxu1 }
 0x884   : > { %v7797_v3 = vpop.f32.mrf.mxu0  ;;  %9169 = vpow2.f32 %v4029_v50 }
 0x885   : > { %v13300_v7 = vadd.f32 %v7797_v3, %v7796_v61  ;;  %v3954_v3 = vsub.f32 %v16459_v26, %v12984_v54  ;;  %v16460_v61 = vld [vmem:[#allocation30_spill] sm:$0xff]  ;;  %v4037_v26 = vmul.f32 1.442695, %v3952_v59  ;;  %9171 = vpow2.f32 %v4039_v39  ;;  %v16470_v39 = vld [vmem:[#allocation93_spill] sm:$0xff] }
 0x886   : > { %v7799_v27 = vpop.f32.mrf.mxu0  ;;  %v3951_v23 = vsub.f32 %v16460_v61, %v13006_v1  ;;  %16464 = vst [vmem:[#allocation30_spill] sm:$0xff] %v13322_v48  ;;  %v16466_v1 = vld [vmem:[#allocation50_spill] sm:$0xff] }
 0x887   : > { %16455 = vst [vmem:[#allocation71_spill] sm:$0xff] %v13300_v7  ;;  %v3957_v50 = vsub.f32 %v16466_v1, %v12996_v16 }
 0x888   : > { %v7800_v24 = vpop.f32.mrf.mxu0 }
 0x889   : > { %v13308_v10 = vadd.f32 %v7800_v24, %v7799_v27  ;;  %v4041_v24 = vmul.f32 1.442695, %v3954_v3  ;;  %v4035_v27 = vmul.f32 1.442695, %v3951_v23  ;;  %v16467_v3 = vld [vmem:[#allocation78_spill] sm:$0xff]  ;;  %v13330_v23 = vpop.f32.mrf.mxu1 }
 0x88a   : > { %v7802_v57 = vpop.f32.mrf.mxu0  ;;  %16468 = vst [vmem:[#allocation50_spill] sm:$0xff] %v13330_v23  ;;  %v4047_v1 = vmul.f32 1.442695, %v3957_v50 }
 0x88b   : > { %16458 = vst [vmem:[#allocation15_spill] sm:$0xff] %v13308_v10  ;;  %9173 = vpow2.f32 %v4041_v24 }
 0x88c   : > { %v7803_v20 = vpop.f32.mrf.mxu0  ;;  %9175 = vpow2.f32 %v4035_v27 }
 0x88d   : > { %v13318_v62 = vadd.f32 %v7803_v20, %v7802_v57  ;;  %v3955_v57 = vsub.f32 %v16467_v3, %v13018_v58  ;;  %9177 = vpow2.f32 %v4037_v26  ;;  %v3956_v20 = vsub.f32 %v16469_v9, %v13018_v58 }
 0x88e   : > { %v7805_v21 = vpop.f32.mrf.mxu0  ;;  %v13338_v24 = vpop.eup %9163  ;;  %v3925_v58 = vmax.f32 %v13164_v18, %v13176_v4  ;;  %9179 = vpow2.f32 %v4047_v1 }
 0x88f   : > { %16463 = vst [vmem:[#allocation113_spill] sm:$0xff] %v13318_v62  ;;  %16472 = vst [vmem:[#allocation83_spill] sm:$0xff] %v13338_v24  ;;  %v13340_v27 = vpop.eup %9165  ;;  %v4043_v10 = vmul.f32 1.442695, %v3955_v57  ;;  %v4045_v9 = vmul.f32 1.442695, %v3956_v20 }
 0x890   : > { %v7806_v61 = vpop.f32.mrf.mxu0  ;;  %16473 = vst [vmem:[#allocation93_spill] sm:$0xff] %v13340_v27  ;;  %v13344_v26 = vpop.eup %9167  ;;  %v16478_v57 = vld [vmem:[#allocation85_spill] sm:$0xff]  ;;  %v16481_v20 = vld [vmem:[#allocation123_spill] sm:$0xff]  ;;  %v4150_v1 = vadd.f32 %v13340_v27, %v13338_v24 }
 0x891   : > { %v13324_v28 = vadd.f32 %v7806_v61, %v7805_v21  ;;  %v3958_v21 = vsub.f32 %v16470_v39, %v12996_v16  ;;  %16474 = vst [vmem:[#allocation158_spill] sm:$0xff] %v13344_v26  ;;  %v3928_v16 = vmax.f32 %v13182_v51, %v13188_v52  ;;  %v13352_v50 = vpop.eup %9169  ;;  %v3961_v3 = vsub.f32 %v16478_v57, %v13014_v31 }
 0x892   : > { %v7808_v42 = vpop.f32.mrf.mxu0  ;;  %16476 = vst [vmem:[#allocation160_spill] sm:$0xff] %v13352_v50  ;;  %9181 = vpow2.f32 %v4043_v10  ;;  %v3960_v51 = vsub.f32 %v16481_v20, %v13028_v46 }
 0x893   : > { %16465 = vst [vmem:[#allocation76_spill] sm:$0xff] %v13324_v28  ;;  %v4049_v39 = vmul.f32 1.442695, %v3958_v21  ;;  %9183 = vpow2.f32 %v4045_v9 }
 0x894   : > { %v7809_v59 = vpop.f32.mrf.mxu0 }
 0x895   : > { %v13336_v61 = vadd.f32 %v7809_v59, %v7808_v42  ;;  %v13350_v42 = vpop.f32.mrf.mxu1  ;;  %9185 = vpow2.f32 %v4049_v39  ;;  %v4909_v39 = vmax.f32 %v13200_v11, %v13208_v34 }
 0x896   : > { %v7811_v54 = vpop.f32.mrf.mxu0  ;;  %16475 = vst [vmem:[#allocation159_spill] sm:$0xff] %v13350_v42 }
 0x897   : > { %16471 = vst [vmem:[#allocation78_spill] sm:$0xff] %v13336_v61  ;;  %v16479_v61 = vld [vmem:[#allocation81_spill] sm:$0xff]  ;;  %v13360_v52 = vpop.f32.mrf.mxu1 }
 0x898   : > { %v7812_v59 = vpop.f32.mrf.mxu0  ;;  %v3959_v7 = vsub.f32 %v16479_v61, %v13028_v46  ;;  %16480 = vst [vmem:[#allocation85_spill] sm:$0xff] %v13360_v52  ;;  %v13372_v61 = vpop.eup %9171 }
 0x899   : > { %v13354_v62 = vadd.f32 %v7812_v59, %v7811_v54  ;;  %v4147_v54 = vadd.f32 %v13352_v50, %v13344_v26  ;;  %16484 = vst [vmem:[#allocation123_spill] sm:$0xff] %v13372_v61  ;;  %v4055_v59 = vmul.f32 1.442695, %v3961_v3  ;;  %v13374_v46 = vpop.eup %9173  ;;  %v4053_v3 = vmul.f32 1.442695, %v3960_v51  ;;  %v16491_v51 = vld [vmem:[#allocation103_spill] sm:$0xff] }
 0x89a   : > { %v7814_v28 = vpop.f32.mrf.mxu0  ;;  %3926 = vmax.xlane.f32.xlu1 %v3925_v58  ;;  %3929 = vmax.xlane.f32.xlu0 %v3928_v16  ;;  %v16482_v58 = vld [vmem:[#allocation101_spill] sm:$0xff]  ;;  %v4051_v57 = vmul.f32 1.442695, %v3959_v7  ;;  %v13378_v26 = vpop.eup %9175  ;;  %v16488_v7 = vld [vmem:[#allocation104_spill] sm:$0xff]  ;;  %v3964_v50 = vsub.f32 %v16491_v51, %v13042_v36 }
 0x89b   : > { %16477 = vst [vmem:[#allocation161_spill] sm:$0xff] %v13354_v62  ;;  %v3962_v10 = vsub.f32 %v16482_v58, %v13014_v31  ;;  %16485 = vst [vmem:[#allocation101_spill] sm:$0xff] %v13374_v46  ;;  %v4912_v31 = vmax.f32 %v13212_v33, %v13214_v29  ;;  %9187 = vpow2.f32 %v4055_v59  ;;  %v3965_v20 = vsub.f32 %v16488_v7, %v13034_v13 }
 0x89c   : > { %v7815_v21 = vpop.f32.mrf.mxu0  ;;  %9189 = vpow2.f32 %v4051_v57 }
 0x89d   : > { %v13370_v16 = vadd.f32 %v7815_v21, %v7814_v28  ;;  %v13384_v28 = vpop.f32.mrf.mxu1  ;;  %9191 = vpow2.f32 %v4053_v3 }
 0x89e   : > { %v7817_v9 = vpop.f32.mrf.mxu0  ;;  %4148 = vadd.xlane.f32.xlu1 %v4147_v54  ;;  %4151 = vadd.xlane.f32.xlu0 %v4150_v1  ;;  %16486 = vst [vmem:[#allocation162_spill] sm:$0xff] %v13384_v28  ;;  %v13386_v54 = vpop.eup %9177  ;;  %v4057_v1 = vmul.f32 1.442695, %v3962_v10 }
 0x89f   : > { %16483 = vst [vmem:[#allocation81_spill] sm:$0xff] %v13370_v16  ;;  %v16489_v16 = vld [vmem:[#allocation90_spill] sm:$0xff]  ;;  %v13394_v27 = vpop.f32.mrf.mxu1  ;;  %v4153_v59 = vadd.f32 %v13386_v54, %v13378_v26  ;;  %v13406_v3 = vpop.eup %9179 }
 0x8a0   : > { %v7818_v21 = vpop.f32.mrf.mxu0  ;;  %v3963_v24 = vsub.f32 %v16489_v16, %v13042_v36  ;;  %16490 = vst [vmem:[#allocation104_spill] sm:$0xff] %v13394_v27  ;;  %9193 = vpow2.f32 %v4057_v1  ;;  %v4063_v16 = vmul.f32 1.442695, %v3965_v20  ;;  %16494 = vst [vmem:[#allocation103_spill] sm:$0xff] %v13406_v3  ;;  %v13410_v51 = vpop.eup %9181  ;;  %v4915_v1 = vmax.f32 %v13216_v40, %v13224_v5  ;;  %v16499_v5 = vld [vmem:[#allocation96_spill] sm:$0xff] }
 0x8a1   : > { %v13388_v58 = vadd.f32 %v7818_v21, %v7817_v9  ;;  %v4156_v9 = vadd.f32 %v13374_v46, %v13372_v61  ;;  %v13414_v61 = vpop.f32.mrf.mxu1  ;;  %v4918_v20 = vmax.f32 %v13230_v45, %v13236_v0  ;;  %v3967_v40 = vsub.f32 %v16499_v5, %v13074_v15 }
 0x8a2   : > { %v7820_v62 = vpop.f32.mrf.mxu0  ;;  %4910 = vmax.xlane.f32.xlu1 %v4909_v39  ;;  %4913 = vmax.xlane.f32.xlu0 %v4912_v31  ;;  %v16492_v39 = vld [vmem:[#allocation127_spill] sm:$0xff]  ;;  %v4059_v36 = vmul.f32 1.442695, %v3963_v24  ;;  %16496 = vst [vmem:[#allocation164_spill] sm:$0xff] %v13414_v61  ;;  %9195 = vpow2.f32 %v4063_v16 }
 0x8a3   : > { %16487 = vst [vmem:[#allocation163_spill] sm:$0xff] %v13388_v58  ;;  %v3966_v57 = vsub.f32 %v16492_v39, %v13034_v13  ;;  %16495 = vst [vmem:[#allocation127_spill] sm:$0xff] %v13410_v51  ;;  %v4061_v13 = vmul.f32 1.442695, %v3964_v50  ;;  %v16498_v58 = vld [vmem:[#allocation106_spill] sm:$0xff] }
 0x8a4   : > { %v7821_v10 = vpop.f32.mrf.mxu0  ;;  %9197 = vpow2.f32 %v4059_v36 }
 0x8a5   : > { %v13404_v31 = vadd.f32 %v7821_v10, %v7820_v62  ;;  %v13416_v10 = vpop.eup %9183  ;;  %9199 = vpow2.f32 %v4061_v13 }
 0x8a6   : > { %v7823_v21 = vpop.f32.mrf.mxu0  ;;  %4154 = vadd.xlane.f32.xlu1 %v4153_v59  ;;  %4157 = vadd.xlane.f32.xlu0 %v4156_v9  ;;  %v4065_v59 = vmul.f32 1.442695, %v3966_v57  ;;  %v13426_v7 = vpop.eup %9185  ;;  %v4159_v16 = vadd.f32 %v13416_v10, %v13410_v51 }
 0x8a7   : > { %16493 = vst [vmem:[#allocation90_spill] sm:$0xff] %v13404_v31  ;;  %v3969_v31 = vsub.f32 %v16498_v58, %v13064_v22  ;;  %v13432_v57 = vpop.f32.mrf.mxu1  ;;  %v16502_v58 = vld [vmem:[#allocation99_spill] sm:$0xff]  ;;  %v4162_v5 = vadd.f32 %v13426_v7, %v13406_v3 }
 0x8a8   : > { %v7824_v62 = vpop.f32.mrf.mxu0  ;;  %16500 = vst [vmem:[#allocation106_spill] sm:$0xff] %v13432_v57  ;;  %9201 = vpow2.f32 %v4065_v59  ;;  %v3970_v45 = vsub.f32 %v16502_v58, %v13064_v22  ;;  %v16506_v59 = vld [vmem:[#allocation130_spill] sm:$0xff] }
 0x8a9   : > { %v13420_v9 = vadd.f32 %v7824_v62, %v7823_v21  ;;  %v13422_v24 = vpop.xlane.xlu1 %3914  ;;  %v13424_v39 = vpop.xlane.xlu0 %3917  ;;  %v16501_v21 = vld [vmem:[#allocation27_spill] sm:$0xff]  ;;  %v4071_v13 = vmul.f32 1.442695, %v3969_v31  ;;  %v4924_v31 = vmax.f32 %v13254_v44, %v13264_v56 }
 0x8aa   : > { %v7826_v50 = vpop.f32.mrf.mxu0  ;;  %4916 = vmax.xlane.f32.xlu1 %v4915_v1  ;;  %4919 = vmax.xlane.f32.xlu0 %v4918_v20  ;;  %v3968_v62 = vsub.f32 %v16501_v21, %v13074_v15  ;;  %v13446_v15 = vpop.eup %9187  ;;  %v4067_v21 = vmul.f32 1.442695, %v3967_v40 }
 0x8ab   : > { %16497 = vst [vmem:[#allocation165_spill] sm:$0xff] %v13420_v9  ;;  %v13450_v22 = vpop.eup %9189  ;;  %9203 = vpow2.f32 %v4071_v13  ;;  %v3973_v9 = vsub.f32 %v16506_v59, %v13130_v43  ;;  %v16510_v59 = vld [vmem:[#allocation131_spill] sm:$0xff] }
 0x8ac   : > { %v7827_v0 = vpop.f32.mrf.mxu0  ;;  %v13454_v51 = vpop.eup %9191  ;;  %9205 = vpow2.f32 %v4067_v21 }
 0x8ad   : > { %v13440_v1 = vadd.f32 %v7827_v0, %v7826_v50  ;;  %v4370_v36 = vpop.permute.xlu1 %4369  ;;  %v13442_v46 = vpop.xlane.xlu0 %4136  ;;  %v4921_v0 = vmax.f32 %v13240_v32, %v13244_v2  ;;  %v4069_v50 = vmul.f32 1.442695, %v3968_v62  ;;  %v4165_v44 = vadd.f32 %v13454_v51, %v13450_v22 }
 0x8ae   : > { %v7829_v20 = vpop.f32.mrf.mxu0  ;;  %4160 = vadd.xlane.f32.xlu1 %v4159_v16  ;;  %7903 = vmatprep.subr.bf16.mxu0 %v4370_v36  ;;  %v13458_v16 = vpop.f32.mrf.mxu1  ;;  %v4073_v36 = vmul.f32 1.442695, %v3970_v45  ;;  %v16508_v45 = vld [vmem:[#allocation105_spill] sm:$0xff] }
 0x8af   : > { %16503 = vst [vmem:[#allocation96_spill] sm:$0xff] %v13440_v1  ;;  %4163 = vadd.xlane.f32.xlu0 %v4162_v5  ;;  %16504 = vst [vmem:[#allocation27_spill] sm:$0xff] %v13458_v16  ;;  %v13464_v5 = vpop.eup %9193  ;;  %v16507_v1 = vld [vmem:[#allocation40_spill] sm:$0xff]  ;;  %9207 = vpow2.f32 %v4069_v50  ;;  %v4079_v50 = vmul.f32 1.442695, %v3973_v9 }
 0x8b0   : > { %v7830_v58 = vpop.f32.mrf.mxu0  ;;  %v3971_v2 = vsub.f32 %v16507_v1, %v13134_v37  ;;  %v13474_v13 = vpop.f32.mrf.mxu1  ;;  %9209 = vpow2.f32 %v4073_v36  ;;  %v4168_v1 = vadd.f32 %v13464_v5, %v13446_v15 }
 0x8b1   : > { %v13460_v40 = vadd.f32 %v7830_v58, %v7829_v20  ;;  %v13462_v3 = vpop.xlane.xlu0 %4139  ;;  %v4368_v56 = vpop.permute.xlu1 %4367  ;;  %v3972_v20 = vsub.f32 %v16508_v45, %v13134_v37  ;;  %16509 = vst [vmem:[#allocation130_spill] sm:$0xff] %v13474_v13  ;;  %9211 = vpow2.f32 %v4079_v50  ;;  %v16517_v50 = vld [vmem:[#allocation41_spill] sm:$0xff] }
 0x8b2   : > { %v7832_v62 = vpop.f32.mrf.mxu0  ;;  %4922 = vmax.xlane.f32.xlu1 %v4921_v0  ;;  %v3974_v0 = vsub.f32 %v16510_v59, %v13130_v43  ;;  %v13482_v37 = vpop.eup %9195  ;;  %v4927_v43 = vmax.f32 %v13274_v38, %v13280_v12 }
 0x8b3   : > { %16505 = vst [vmem:[#allocation99_spill] sm:$0xff] %v13460_v40  ;;  %4925 = vmax.xlane.f32.xlu0 %v4924_v31  ;;  %v4075_v31 = vmul.f32 1.442695, %v3971_v2  ;;  %v13486_v36 = vpop.eup %9197  ;;  %v16515_v40 = vld [vmem:[#allocation21_spill] sm:$0xff] }
 0x8b4   : > { %v7833_v58 = vpop.f32.mrf.mxu0  ;;  %v4081_v9 = vmul.f32 1.442695, %v3974_v0 }
 0x8b5   : > { %v13478_v21 = vadd.f32 %v7833_v58, %v7832_v62  ;;  %v4354_v32 = vpop.permute.xlu0 %4353  ;;  %v4077_v62 = vmul.f32 1.442695, %v3972_v20  ;;  %v13490_v58 = vpop.eup %9199  ;;  %9213 = vpow2.f32 %v4075_v31  ;;  %v16514_v20 = vld [vmem:[#allocation92_spill] sm:$0xff] }
 0x8b6   : > { %4166 = vadd.xlane.f32.xlu1 %v4165_v44  ;;  %7904 = vmatpush3.bf16.msra.mxu0 %v4354_v32  ;;  %v4930_v44 = vmax.f32 %v13286_v17, %v13296_v30  ;;  %v13494_v32 = vpop.f32.mrf.mxu1  ;;  %v4352_v2 = vpop.permute.xlu1 %4351  ;;  %v3975_v45 = vsub.f32 %v16514_v20, %v13152_v63  ;;  %v4171_v0 = vadd.f32 %v13490_v58, %v13486_v36 }
 0x8b7   : > { %16511 = vst [vmem:[#allocation40_spill] sm:$0xff] %v13478_v21  ;;  %4169 = vadd.xlane.f32.xlu0 %v4168_v1  ;;  %7905 = vmatprep.subr.bf16.mxu0 %v4368_v56  ;;  %16512 = vst [vmem:[#allocation105_spill] sm:$0xff] %v13494_v32  ;;  %v13496_v59 = vpop.eup %9201  ;;  %v16513_v56 = vld [vmem:[#allocation91_spill] sm:$0xff]  ;;  %9215 = vpow2.f32 %v4077_v62  ;;  %v3976_v21 = vsub.f32 %v16515_v40, %v13152_v63  ;;  %v4933_v40 = vmax.f32 %v13304_v49, %v13314_v55 }
 0x8b8   : > { %v3977_v1 = vsub.f32 %v16513_v56, %v13148_v25  ;;  %v13506_v30 = vpop.f32.mrf.mxu1  ;;  %9217 = vpow2.f32 %v4081_v9  ;;  %v3978_v56 = vsub.f32 %v16517_v50, %v13148_v25  ;;  %v4174_v31 = vadd.f32 %v13496_v59, %v13482_v37  ;;  %v16550_v55 = vld [vmem:[#allocation63_spill] sm:$0xff] }
 0x8b9   : > { %16516 = vst [vmem:[#allocation131_spill] sm:$0xff] %v13506_v30  ;;  %v4083_v62 = vmul.f32 1.442695, %v3975_v45  ;;  %v4085_v20 = vmul.f32 1.442695, %v3976_v21  ;;  %v4936_v25 = vmax.f32 %v13322_v48, %v13330_v23  ;;  %v3979_v45 = vsub.f32 %v13040_v35, %v13246_v6 }
 0x8ba   : > { %4928 = vmax.xlane.f32.xlu1 %v4927_v43  ;;  %7906 = vmatpush3.bf16.msra.mxu0 %v4352_v2  ;;  %v4087_v43 = vmul.f32 1.442695, %v3977_v1  ;;  %v13522_v50 = vpop.f32.mrf.mxu1  ;;  %v4089_v1 = vmul.f32 1.442695, %v3978_v56  ;;  %v3980_v21 = vsub.f32 %v13044_v19, %v13246_v6  ;;  %v3981_v23 = vsub.f32 %v13050_v60, %v13250_v8 }
 0x8bb   : > { %4931 = vmax.xlane.f32.xlu0 %v4930_v44  ;;  %v13512_v44 = vpop.eup %9203  ;;  %16518 = vst [vmem:[#allocation91_spill] sm:$0xff] %v13522_v50  ;;  %v3982_v35 = vsub.f32 %v13052_v14, %v13250_v8  ;;  %v4091_v19 = vmul.f32 1.442695, %v3979_v45 }
 0x8bc   : > { %v13514_v63 = vpop.eup %9205  ;;  %9219 = vpow2.f32 %v4087_v43  ;;  %v4093_v60 = vmul.f32 1.442695, %v3980_v21  ;;  %v4095_v14 = vmul.f32 1.442695, %v3981_v23  ;;  %v3983_v21 = vsub.f32 %v13102_v41, %v13422_v24 }
 0x8bd   : > { %v13518_v17 = vpop.eup %9207  ;;  %9221 = vpow2.f32 %v4083_v62  ;;  %v3985_v23 = vsub.f32 %v13106_v47, %v13424_v39  ;;  %v4945_v47 = vmax.f32 %v13414_v61, %v13432_v57  ;;  %v16534_v57 = vld [vmem:[#allocation45_spill] sm:$0xff] }
 0x8be   : > { %4172 = vadd.xlane.f32.xlu1 %v4171_v0  ;;  %v7835_v2 = vpop.f32.mrf.mxu0  ;;  %v13526_v12 = vpop.eup %9209  ;;  %9223 = vpow2.f32 %v4085_v20 }
 0x8bf   : > { %4175 = vadd.xlane.f32.xlu0 %v4174_v31  ;;  %9225 = vpow2.f32 %v4089_v1  ;;  %v4180_v6 = vadd.f32 %v13526_v12, %v13512_v44  ;;  %v13544_v62 = vpop.eup %9211  ;;  %v4942_v1 = vmax.f32 %v13384_v28, %v13394_v27  ;;  %v16536_v27 = vld [vmem:[#allocation24_spill] sm:$0xff] }
 0x8c0   : > { %v7836_v9 = vpop.f32.mrf.mxu0  ;;  %9227 = vpow2.f32 %v4091_v19  ;;  %v16524_v19 = vld [vmem:[#allocation125_spill] sm:$0xff] }
 0x8c1   : > { %v13524_v0 = vadd.f32 %v7836_v9, %v7835_v2  ;;  %v4177_v2 = vadd.f32 %v13518_v17, %v13514_v63  ;;  %v13536_v9 = vpop.f32.mrf.mxu1  ;;  %9229 = vpow2.f32 %v4093_v60  ;;  %v4099_v60 = vmul.f32 1.442695, %v3983_v21 }
 0x8c2   : > { %4934 = vmax.xlane.f32.xlu1 %v4933_v40  ;;  %v7838_v31 = vpop.f32.mrf.mxu0  ;;  %16520 = vst [vmem:[#allocation21_spill] sm:$0xff] %v13536_v9  ;;  %v13548_v20 = vpop.eup %9213  ;;  %9231 = vpow2.f32 %v4095_v14  ;;  %v3986_v40 = vsub.f32 %v16524_v19, %v13424_v39  ;;  %v4103_v14 = vmul.f32 1.442695, %v3985_v23  ;;  %v4948_v39 = vmax.f32 %v13458_v16, %v13474_v13  ;;  %v16533_v13 = vld [vmem:[#allocation119_spill] sm:$0xff] }
 0x8c3   : > { %16519 = vst [vmem:[#allocation92_spill] sm:$0xff] %v13524_v0  ;;  %4937 = vmax.xlane.f32.xlu0 %v4936_v25  ;;  %v4939_v25 = vmax.f32 %v13350_v42, %v13360_v52  ;;  %v13556_v45 = vpop.f32.mrf.mxu1 }
 0x8c4   : > { %v7839_v56 = vpop.f32.mrf.mxu0  ;;  %v13552_v8 = vpop.eup %9215  ;;  %16522 = vst [vmem:[#allocation166_spill] sm:$0xff] %v13556_v45  ;;  %v4105_v19 = vmul.f32 1.442695, %v3986_v40 }
 0x8c5   : > { %v13540_v43 = vadd.f32 %v7839_v56, %v7838_v31  ;;  %v4097_v31 = vmul.f32 1.442695, %v3982_v35  ;;  %v13558_v56 = vpop.eup %9217  ;;  %v13568_v35 = vpop.f32.mrf.mxu1 }
 0x8c6   : > { %4178 = vadd.xlane.f32.xlu1 %v4177_v2  ;;  %v3984_v2 = vsub.f32 %v13104_v53, %v13422_v24  ;;  %16523 = vst [vmem:[#allocation167_spill] sm:$0xff] %v13568_v35  ;;  %v4186_v41 = vadd.f32 %v13558_v56, %v13544_v62 }
 0x8c7   : > { %16521 = vst [vmem:[#allocation41_spill] sm:$0xff] %v13540_v43  ;;  %4181 = vadd.xlane.f32.xlu0 %v4180_v6  ;;  %v4183_v6 = vadd.f32 %v13552_v8, %v13548_v20  ;;  %9233 = vpow2.f32 %v4097_v31  ;;  %v13584_v31 = vpop.f32.mrf.mxu1 }
 0x8c8   : > { %v4101_v24 = vmul.f32 1.442695, %v3984_v2  ;;  %16525 = vst [vmem:[#allocation125_spill] sm:$0xff] %v13584_v31  ;;  %9235 = vpow2.f32 %v4099_v60  ;;  %v4951_v60 = vmax.f32 %v13494_v32, %v13506_v30  ;;  %v16531_v32 = vld [vmem:[#allocation152_spill] sm:$0xff] }
 0x8c9   : > { %v13574_v53 = vpop.eup %9219 }
 0x8ca   : > { %4940 = vmax.xlane.f32.xlu1 %v4939_v25  ;;  %v13576_v25 = vpop.eup %9221  ;;  %9237 = vpow2.f32 %v4101_v24 }
 0x8cb   : > { %4943 = vmax.xlane.f32.xlu0 %v4942_v1  ;;  %v13580_v1 = vpop.eup %9223  ;;  %9239 = vpow2.f32 %v4103_v14 }
 0x8cc   : > { %v13586_v21 = vpop.eup %9225  ;;  %v4189_v2 = vadd.f32 %v13580_v1, %v13576_v25  ;;  %9241 = vpow2.f32 %v4105_v19 }
 0x8cd   : > { %v4192_v23 = vadd.f32 %v13586_v21, %v13574_v53  ;;  %9243 = vrcp.f32 %v16531_v32 }
 0x8ce   : > { %4184 = vadd.xlane.f32.xlu1 %v4183_v6  ;;  %v13590_v6 = vpop.f32.mrf.mxu1 }
 0x8cf   : > { %4187 = vadd.xlane.f32.xlu0 %v4186_v41  ;;  %16526 = vst [vmem:[#allocation168_spill] sm:$0xff] %v13590_v6  ;;  %v13594_v41 = vpop.eup %9227 }
 0x8d0   : > { %v13596_v40 = vpop.eup %9229  ;;  %v13604_v14 = vpop.f32.mrf.mxu1 }
 0x8d1   : > { %v13600_v24 = vpop.eup %9231  ;;  %16527 = vst [vmem:[#allocation169_spill] sm:$0xff] %v13604_v14  ;;  %v4195_v19 = vadd.f32 %v13596_v40, %v13594_v41 }
 0x8d2   : > { %4946 = vmax.xlane.f32.xlu1 %v4945_v47  ;;  %v4954_v47 = vmax.f32 %v13522_v50, %v13536_v9  ;;  %v4957_v9 = vmax.f32 %v13556_v45, %v13568_v35  ;;  %v16532_v45 = vld [vmem:[#allocation149_spill] sm:$0xff] }
 0x8d3   : > { %4949 = vmax.xlane.f32.xlu0 %v4948_v39  ;;  %9245 = vrcp.f32 %v16532_v45 }
 0x8d4   : > { %v13606_v39 = vpop.eup %9233  ;;  %9247 = vrcp.f32 %v13462_v3 }
 0x8d5   : > { %v13614_v0 = vpop.eup %9235 }
 0x8d6   : > { %4190 = vadd.xlane.f32.xlu1 %v4189_v2  ;;  %v13610_v2 = vpop.f32.mrf.mxu1 }
 0x8d7   : > { %4193 = vadd.xlane.f32.xlu0 %v4192_v23  ;;  %16528 = vst [vmem:[#allocation170_spill] sm:$0xff] %v13610_v2  ;;  %v4198_v23 = vadd.f32 %v13606_v39, %v13600_v24  ;;  %v13616_v43 = vpop.eup %9237  ;;  %v4963_v32 = vmax.f32 %v13604_v14, %v13610_v2 }
 0x8d8   : > { %v13620_v50 = vpop.eup %9239 }
 0x8d9   : > { %v13626_v30 = vpop.eup %9241 }
 0x8da   : > { %4952 = vmax.xlane.f32.xlu1 %v4951_v60  ;;  %v4960_v60 = vmax.f32 %v13584_v31, %v13590_v6  ;;  %v4204_v35 = vadd.f32 %v13626_v30, %v13620_v50 }
 0x8db   : > { %4955 = vmax.xlane.f32.xlu0 %v4954_v47  ;;  %v13624_v47 = vpop.f32.mrf.mxu1 }
 0x8dc   : > { %16529 = vst [vmem:[#allocation171_spill] sm:$0xff] %v13624_v47 }
 0x8de   : > { %4196 = vadd.xlane.f32.xlu1 %v4195_v19  ;;  %v4201_v19 = vadd.f32 %v13616_v43, %v13614_v0 }
 0x8df   : > { %4199 = vadd.xlane.f32.xlu0 %v4198_v23  ;;  %v13630_v23 = vpop.f32.mrf.mxu1 }
 0x8e0   : > { %16530 = vst [vmem:[#allocation172_spill] sm:$0xff] %v13630_v23  ;;  %v4966_v52 = vmax.f32 %v13624_v47, %v13630_v23  ;;  %v16546_v23 = vld [vmem:[#allocation64_spill] sm:$0xff] }
 0x8e2   : > { %4958 = vmax.xlane.f32.xlu1 %v4957_v9 }
 0x8e3   : > { %4961 = vmax.xlane.f32.xlu0 %v4960_v60  ;;  %v16535_v60 = vld [vmem:[#allocation88_spill] sm:$0xff] }
 0x8e6   : > { %4202 = vadd.xlane.f32.xlu1 %v4201_v19  ;;  %v3921_v6 = vpop.xlane.xlu1 %3920  ;;  %v3924_v31 = vpop.xlane.xlu0 %3923 }
 0x8e7   : > { %v3987_v16 = vsub.f32 %v16533_v13, %v3921_v6  ;;  %v3988_v9 = vsub.f32 %v16534_v57, %v3921_v6  ;;  %4205 = vadd.xlane.f32.xlu0 %v4204_v35  ;;  %v3989_v61 = vsub.f32 %v16535_v60, %v3924_v31  ;;  %v3990_v28 = vsub.f32 %v16536_v27, %v3924_v31  ;;  %v13646_v31 = vpop.f32.mrf.mxu1 }
 0x8e8   : > { %16537 = vst [vmem:[#allocation152_spill] sm:$0xff] %v13646_v31 }
 0x8e9   : > { %v4107_v42 = vmul.f32 1.442695, %v3987_v16  ;;  %v4109_v45 = vmul.f32 1.442695, %v3988_v9  ;;  %v4111_v19 = vmul.f32 1.442695, %v3989_v61  ;;  %v9244_v16 = vpop.eup %9243 }
 0x8ea   : > { %v4113_v48 = vmul.f32 1.442695, %v3990_v28  ;;  %4964 = vmax.xlane.f32.xlu1 %v4963_v32  ;;  %v4366_v13 = vpop.permute.xlu1 %4365  ;;  %v4143_v57 = vpop.xlane.xlu0 %4142  ;;  %v4257_v47 = vmul.f32 %v9244_v16, %v16546_v23 }
 0x8eb   : > { %9249 = vpow2.f32 %v4107_v42  ;;  %4967 = vmax.xlane.f32.xlu0 %v4966_v52  ;;  %7907 = vmatprep.subr.bf16.mxu0 %v4366_v13  ;;  %v9246_v6 = vpop.eup %9245  ;;  %v13648_v28 = vpop.f32.mrf.mxu1  ;;  %v16539_v42 = vld [vmem:[#allocation53_spill] sm:$0xff] }
 0x8ec   : > { %9251 = vpow2.f32 %v4109_v45  ;;  %16538 = vst [vmem:[#allocation149_spill] sm:$0xff] %v13648_v28  ;;  %v4258_v52 = vmul.f32 %v9244_v16, %v16539_v42  ;;  %v9248_v9 = vpop.eup %9247 }
 0x8ed   : > { %9253 = vpow2.f32 %v4111_v19  ;;  %v13656_v45 = vpop.f32.mrf.mxu1 }
 0x8ee   : > { %9255 = vpow2.f32 %v4113_v48  ;;  %v4146_v27 = vpop.xlane.xlu0 %4145  ;;  %v4364_v35 = vpop.permute.xlu1 %4363  ;;  %v16540_v48 = vld [vmem:[#allocation44_spill] sm:$0xff] }
 0x8ef   : > { %9257 = vrcp.f32 %v13442_v46  ;;  %v4256_v60 = vmul.f32 %v9246_v6, %v16540_v48 }
 0x8f0   : > { %9259 = vrcp.f32 %v4146_v27 }
 0x8f1   : > { %9261 = vrcp.f32 %v4143_v57  ;;  %v4318_v19 = vpack.c.bf16 %v4258_v52, %v4256_v60  ;;  %v13670_v52 = vpop.f32.mrf.mxu1  ;;  %v16548_v60 = vld [vmem:[#allocation124_spill] sm:$0xff] }
 0x8f2   : > { %v4350_v61 = vpop.permute.xlu0 %4349  ;;  %v4348_v3 = vpop.permute.xlu1 %4347  ;;  %16547 = vst [vmem:[#allocation88_spill] sm:$0xff] %v13670_v52  ;;  %v4262_v2 = vmul.f32 %v9248_v9, %v16548_v60 }
 0x8f3   : > { %7908 = vmatpush3.bf16.msra.mxu0 %v4350_v61  ;;  %v16543_v61 = vld [vmem:[#allocation74_spill] sm:$0xff] }
 0x8f4   : > { %7909 = vmatprep.subr.bf16.mxu0 %v4364_v35  ;;  %v16542_v35 = vld [vmem:[#allocation139_spill] sm:$0xff] }
 0x8f5   : > { %v16544_v27 = vpack.c.bf16 %v16542_v35, %v16543_v61  ;;  %v4969_v35 = vmax.f32 %v13646_v31, %v13648_v28  ;;  %v16549_v61 = vld [vmem:[#allocation118_spill] sm:$0xff]  ;;  %v16553_v31 = vld [vmem:[#allocation141_spill] sm:$0xff] }
 0x8f6   : > { %v16552_v28 = vld [vmem:[#allocation122_spill] sm:$0xff] }
 0x8f7   : > { %7910 = vmatpush3.bf16.msra.mxu0 %v4348_v3 }
 0x8f8   : > { %v13652_v46 = vpop.eup %9249 }
 0x8f9   : > { %v13654_v32 = vpop.eup %9251 }
 0x8fa   : > { %v13658_v13 = vpop.eup %9253  ;;  %4428 = vmatmul.mubr.bf16.vlgmr.msra.gmra.mxu0 %v16544_v27  ;;  %v4207_v42 = vadd.f32 %v13654_v32, %v13652_v46  ;;  %v4255_v27 = vmul.f32 %v9246_v6, %v16549_v61  ;;  %v4261_v6 = vmul.f32 %v9248_v9, %v16552_v28 }
 0x8fb   : > { %16541 = vst [vmem:[#allocation119_spill] sm:$0xff] %v13658_v13  ;;  %v13665_v57 = vpop.eup %9255  ;;  %4435 = vmatprep.mubr.bf16.mxu0 %v4318_v19 }
 0x8fc   : > { %16545 = vst [vmem:[#allocation45_spill] sm:$0xff] %v13665_v57  ;;  %v9258_v3 = vpop.eup %9257  ;;  %4208 = vadd.xlane.f32.xlu1 %v4207_v42  ;;  %v4210_v48 = vadd.f32 %v13665_v57, %v13658_v13  ;;  %v4972_v42 = vmax.f32 %v13656_v45, %v13670_v52  ;;  %v4317_v49 = vpack.c.bf16 %v4257_v47, %v4255_v27  ;;  %v16555_v52 = vld [vmem:[#allocation82_spill] sm:$0xff] }
 0x8fd   : > { %v4260_v19 = vmul.f32 %v9258_v3, %v16550_v55  ;;  %v9260_v16 = vpop.eup %9259  ;;  %v16556_v47 = vld [vmem:[#allocation34_spill] sm:$0xff] }
 0x8fe   : > { %4211 = vadd.xlane.f32.xlu0 %v4210_v48  ;;  %v9262_v48 = vpop.eup %9261  ;;  %v4266_v55 = vmul.f32 %v9260_v16, %v16553_v31 }
 0x8ff   : > { %v7841_v14 = vpop.f32.mrf.mxu0  ;;  %v4320_v23 = vpack.c.bf16 %v4262_v2, %v4260_v19  ;;  %v4264_v27 = vmul.f32 %v9262_v48, %v16556_v47  ;;  %v16560_v47 = vld [vmem:[#allocation138_spill] sm:$0xff] }
 0x900   : > { %4970 = vmax.xlane.f32.xlu1 %v4969_v35  ;;  %v4259_v35 = vmul.f32 %v9258_v3, %v16555_v52  ;;  %v16559_v52 = vld [vmem:[#allocation109_spill] sm:$0xff] }
 0x901   : > { %v7842_v38 = vpop.f32.mrf.mxu0 }
 0x902   : > { %4973 = vmax.xlane.f32.xlu0 %v4972_v42  ;;  %v13679_v13 = vadd.f32 %v7842_v38, %v7841_v14  ;;  %4436 = vmatmul.mubr.bf16.gmra.mxu0 %v4317_v49  ;;  %v4319_v38 = vpack.c.bf16 %v4261_v6, %v4259_v35  ;;  %v4322_v14 = vpack.c.bf16 %v4266_v55, %v4264_v27  ;;  %v16557_v49 = vld [vmem:[#allocation111_spill] sm:$0xff]  ;;  %v16558_v42 = vld [vmem:[#allocation58_spill] sm:$0xff] }
 0x903   : > { %v7844_v60 = vpop.f32.mrf.mxu0  ;;  %4443 = vmatprep.mubr.bf16.mxu0 %v4320_v23  ;;  %v4265_v19 = vmul.f32 %v9260_v16, %v16557_v49  ;;  %v4263_v28 = vmul.f32 %v9262_v48, %v16558_v42  ;;  %v13699_v42 = vpop.f32.mrf.mxu1 }
 0x904   : > { %16551 = vst [vmem:[#allocation24_spill] sm:$0xff] %v13679_v13  ;;  %16561 = vst [vmem:[#allocation44_spill] sm:$0xff] %v13699_v42 }
 0x905   : > { %v7845_v61 = vpop.f32.mrf.mxu0  ;;  %v4321_v9 = vpack.c.bf16 %v4265_v19, %v4263_v28 }
 0x906   : > { %v13683_v57 = vadd.f32 %v7845_v61, %v7844_v60 }
 0x908   : > { %16554 = vst [vmem:[#allocation53_spill] sm:$0xff] %v13683_v57 }
 0x90a   : > { %4444 = vmatmul.mubr.bf16.gmra.mxu0 %v4319_v38 }
 0x90b   : > { %4451 = vmatprep.mubr.bf16.mxu0 %v4322_v14 }
 0x912   : > { %4452 = vmatmul.mubr.bf16.gmra.mxu0 %v4321_v9 }
 0x923   : > { %v3927_v31 = vpop.xlane.xlu1 %3926  ;;  %v3930_v23 = vpop.xlane.xlu0 %3929 }
 0x924   : > { %v3991_v60 = vsub.f32 %v13164_v18, %v3927_v31  ;;  %v3992_v3 = vsub.f32 %v13176_v4, %v3927_v31  ;;  %v3993_v61 = vsub.f32 %v16559_v52, %v3930_v23  ;;  %v3994_v2 = vsub.f32 %v16560_v47, %v3930_v23 }
 0x926   : > { %v4115_v6 = vmul.f32 1.442695, %v3991_v60  ;;  %v4117_v55 = vmul.f32 1.442695, %v3992_v3  ;;  %v4119_v35 = vmul.f32 1.442695, %v3993_v61  ;;  %v13701_v3 = vpop.f32.mrf.mxu1 }
 0x927   : > { %v4121_v27 = vmul.f32 1.442695, %v3994_v2  ;;  %v4149_v38 = vpop.xlane.xlu1 %4148  ;;  %v4152_v16 = vpop.xlane.xlu0 %4151  ;;  %16562 = vst [vmem:[#allocation139_spill] sm:$0xff] %v13701_v3 }
 0x928   : > { %9263 = vpow2.f32 %v4115_v6  ;;  %v13711_v52 = vpop.f32.mrf.mxu1 }
 0x929   : > { %9265 = vpow2.f32 %v4117_v55  ;;  %16563 = vst [vmem:[#allocation74_spill] sm:$0xff] %v13711_v52 }
 0x92a   : > { %9267 = vpow2.f32 %v4119_v35 }
 0x92b   : > { %9269 = vpow2.f32 %v4121_v27  ;;  %v4911_v48 = vpop.xlane.xlu1 %4910  ;;  %v4914_v14 = vpop.xlane.xlu0 %4913 }
 0x92c   : > { %9271 = vrcp.f32 %v4149_v38  ;;  %v5005_v18 = vsub.f32 %v13200_v11, %v4911_v48  ;;  %v5006_v4 = vsub.f32 %v13208_v34, %v4911_v48  ;;  %v5007_v49 = vsub.f32 %v13212_v33, %v4914_v14  ;;  %v13721_v48 = vpop.f32.mrf.mxu1 }
 0x92d   : > { %9273 = vrcp.f32 %v4152_v16  ;;  %v5008_v19 = vsub.f32 %v13214_v29, %v4914_v14  ;;  %16564 = vst [vmem:[#allocation64_spill] sm:$0xff] %v13721_v48  ;;  %v16565_v14 = vld [vmem:[#allocation160_spill] sm:$0xff] }
 0x92e   : > { %v5069_v2 = vmul.f32 1.442695, %v5005_v18  ;;  %v5071_v28 = vmul.f32 1.442695, %v5006_v4  ;;  %v5073_v9 = vmul.f32 1.442695, %v5007_v49 }
 0x92f   : > { %v5075_v31 = vmul.f32 1.442695, %v5008_v19  ;;  %v4155_v23 = vpop.xlane.xlu1 %4154  ;;  %v4158_v60 = vpop.xlane.xlu0 %4157  ;;  %v16566_v4 = vld [vmem:[#allocation158_spill] sm:$0xff]  ;;  %v4975_v19 = vmax.f32 %v13699_v42, %v13701_v3  ;;  %v16571_v42 = vld [vmem:[#allocation127_spill] sm:$0xff] }
 0x930   : > { %9275 = vpow2.f32 %v5069_v2  ;;  %v16567_v2 = vld [vmem:[#allocation93_spill] sm:$0xff] }
 0x931   : > { %9277 = vpow2.f32 %v5071_v28 }
 0x932   : > { %9279 = vpow2.f32 %v5073_v9 }
 0x933   : > { %9281 = vpow2.f32 %v5075_v31  ;;  %v13703_v11 = vpop.xlane.xlu1 %4916  ;;  %v13705_v33 = vpop.xlane.xlu0 %4919  ;;  %v16568_v31 = vld [vmem:[#allocation83_spill] sm:$0xff] }
 0x934   : > { %9283 = vrcp.f32 %v4155_v23 }
 0x935   : > { %v13707_v34 = vpop.eup %9263  ;;  %9285 = vrcp.f32 %v4158_v60 }
 0x936   : > { %v13709_v29 = vpop.eup %9265 }
 0x937   : > { %v13713_v61 = vpop.eup %9267  ;;  %v4161_v47 = vpop.xlane.xlu1 %4160  ;;  %v4213_v6 = vadd.f32 %v13709_v29, %v13707_v34 }
 0x938   : > { %v13717_v55 = vpop.eup %9269  ;;  %v4164_v35 = vpop.xlane.xlu0 %4163  ;;  %9287 = vrcp.f32 %v4161_v47 }
 0x939   : > { %v9272_v27 = vpop.eup %9271  ;;  %4214 = vadd.xlane.f32.xlu1 %v4213_v6  ;;  %v4216_v38 = vadd.f32 %v13717_v55, %v13713_v61  ;;  %9289 = vrcp.f32 %v4164_v35 }
 0x93a   : > { %v9274_v16 = vpop.eup %9273  ;;  %v4268_v18 = vmul.f32 %v9272_v27, %v16565_v14  ;;  %v4267_v49 = vmul.f32 %v9272_v27, %v16566_v4  ;;  %v4978_v14 = vmax.f32 %v13711_v52, %v13721_v48 }
 0x93b   : > { %4217 = vadd.xlane.f32.xlu0 %v4216_v38  ;;  %v4270_v28 = vmul.f32 %v9274_v16, %v16567_v2  ;;  %v13728_v9 = vpop.xlane.xlu1 %4922  ;;  %v4269_v23 = vmul.f32 %v9274_v16, %v16568_v31 }
 0x93c   : > { %v13731_v60 = vpop.xlane.xlu0 %4925 }
 0x93d   : > { %v13733_v6 = vpop.eup %9275  ;;  %v4324_v27 = vpack.c.bf16 %v4270_v28, %v4268_v18  ;;  %v4323_v4 = vpack.c.bf16 %v4269_v23, %v4267_v49  ;;  %4976 = vmax.xlane.f32.xlu1 %v4975_v19  ;;  %v16569_v49 = vld [vmem:[#allocation101_spill] sm:$0xff]  ;;  %v16570_v23 = vld [vmem:[#allocation123_spill] sm:$0xff] }
 0x93e   : > { %v13737_v13 = vpop.eup %9277 }
 0x93f   : > { %v13739_v38 = vpop.eup %9279  ;;  %4459 = vmatprep.mubr.bf16.mxu0 %v4324_v27  ;;  %4979 = vmax.xlane.f32.xlu0 %v4978_v14  ;;  %v4167_v2 = vpop.xlane.xlu1 %4166  ;;  %v5197_v47 = vadd.f32 %v13737_v13, %v13733_v6 }
 0x940   : > { %v13743_v16 = vpop.eup %9281  ;;  %4460 = vmatmul.mubr.bf16.gmra.mxu0 %v4323_v4  ;;  %v4170_v31 = vpop.xlane.xlu0 %4169  ;;  %9291 = vrcp.f32 %v4167_v2 }
 0x941   : > { %v9284_v57 = vpop.eup %9283  ;;  %9293 = vrcp.f32 %v4170_v31  ;;  %v5200_v3 = vadd.f32 %v13743_v16, %v13739_v38  ;;  %v16572_v31 = vld [vmem:[#allocation103_spill] sm:$0xff] }
 0x942   : > { %v9286_v48 = vpop.eup %9285  ;;  %v4272_v35 = vmul.f32 %v9284_v57, %v13386_v54  ;;  %v4271_v18 = vmul.f32 %v9284_v57, %v13378_v26 }
 0x943   : > { %5198 = vadd.xlane.f32.xlu0 %v5197_v47  ;;  %v4274_v19 = vmul.f32 %v9286_v48, %v16569_v49  ;;  %v13748_v28 = vpop.xlane.xlu1 %4928  ;;  %v4273_v14 = vmul.f32 %v9286_v48, %v16570_v23 }
 0x944   : > { %v13751_v27 = vpop.xlane.xlu0 %4931 }
 0x945   : > { %v4326_v52 = vpack.c.bf16 %v4274_v19, %v4272_v35  ;;  %v4325_v4 = vpack.c.bf16 %v4273_v14, %v4271_v18  ;;  %v9288_v57 = vpop.eup %9287  ;;  %v16573_v19 = vld [vmem:[#allocation17_spill] sm:$0xff] }
 0x946   : > { %v9290_v47 = vpop.eup %9289  ;;  %v4276_v49 = vmul.f32 %v9288_v57, %v13416_v10  ;;  %v4275_v48 = vmul.f32 %v9288_v57, %v16571_v42 }
 0x947   : > { %4467 = vmatprep.mubr.bf16.mxu0 %v4326_v52  ;;  %5201 = vadd.xlane.f32.xlu0 %v5200_v3  ;;  %v4173_v54 = vpop.xlane.xlu1 %4172  ;;  %v4278_v2 = vmul.f32 %v9290_v47, %v13426_v7  ;;  %v4277_v35 = vmul.f32 %v9290_v47, %v16572_v31  ;;  %v16574_v7 = vld [vmem:[#allocation19_spill] sm:$0xff] }
 0x948   : > { %4468 = vmatmul.mubr.bf16.gmra.mxu0 %v4325_v4  ;;  %v4176_v26 = vpop.xlane.xlu0 %4175  ;;  %9295 = vrcp.f32 %v4173_v54 }
 0x949   : > { %9297 = vrcp.f32 %v4176_v26  ;;  %v4328_v3 = vpack.c.bf16 %v4278_v2, %v4276_v49  ;;  %v4327_v52 = vpack.c.bf16 %v4277_v35, %v4275_v48  ;;  %v16575_v35 = vld [vmem:[#allocation20_spill] sm:$0xff] }
 0x94b   : > { %v13758_v23 = vpop.xlane.xlu1 %4934  ;;  %4475 = vmatprep.mubr.bf16.mxu0 %v4328_v3 }
 0x94c   : > { %v13761_v18 = vpop.xlane.xlu0 %4937 }
 0x94d   : > { %v9292_v42 = vpop.eup %9291 }
 0x94e   : > { %5451 = vrot.lane.b32.xlu1 %v16573_v19, %s9799_s5  ;;  %v9294_v4 = vpop.eup %9293  ;;  %v4280_v57 = vmul.f32 %v9292_v42, %v13454_v51  ;;  %v4279_v54 = vmul.f32 %v9292_v42, %v13450_v22 }
 0x94f   : > { %v4179_v14 = vpop.xlane.xlu1 %4178  ;;  %v4282_v26 = vmul.f32 %v9294_v4, %v13464_v5  ;;  %v4281_v49 = vmul.f32 %v9294_v4, %v13446_v15  ;;  %v16576_v4 = vld [vmem:[#allocation18_spill] sm:$0xff] }
 0x950   : > { %4476 = vmatmul.mubr.bf16.gmra.mxu0 %v4327_v52  ;;  %v4182_v10 = vpop.xlane.xlu0 %4181  ;;  %9299 = vrcp.f32 %v4179_v14 }
 0x951   : > { %9301 = vrcp.f32 %v4182_v10  ;;  %v4330_v2 = vpack.c.bf16 %v4282_v26, %v4280_v57  ;;  %v4329_v31 = vpack.c.bf16 %v4281_v49, %v4279_v54 }
 0x952   : > { %5449 = vrot.lane.b32.xlu1 %v16574_v7, %s9799_s5 }
 0x953   : > { %v13770_v47 = vpop.xlane.xlu1 %4940  ;;  %4483 = vmatprep.mubr.bf16.mxu0 %v4330_v2 }
 0x954   : > { %v13773_v48 = vpop.xlane.xlu0 %4943 }
 0x955   : > { %v9296_v22 = vpop.eup %9295 }
 0x956   : > { %5433 = vrot.lane.b32.xlu1 %v16575_v35, %s9799_s5  ;;  %v9298_v52 = vpop.eup %9297  ;;  %v4284_v5 = vmul.f32 %v9296_v22, %v13490_v58  ;;  %v4283_v19 = vmul.f32 %v9296_v22, %v13486_v36 }
 0x957   : > { %v4185_v3 = vpop.xlane.xlu1 %4184  ;;  %v4286_v15 = vmul.f32 %v9298_v52, %v13496_v59  ;;  %v4285_v10 = vmul.f32 %v9298_v52, %v13482_v37  ;;  %v16577_v37 = vld [vmem:[#allocation75_spill] sm:$0xff] }
 0x958   : > { %4484 = vmatmul.mubr.bf16.gmra.mxu0 %v4329_v31  ;;  %v4188_v51 = vpop.xlane.xlu0 %4187  ;;  %9303 = vrcp.f32 %v4185_v3  ;;  %v5009_v2 = vsub.f32 %v16577_v37, %v13703_v11 }
 0x959   : > { %9305 = vrcp.f32 %v4188_v51  ;;  %v4332_v7 = vpack.c.bf16 %v4286_v15, %v4284_v5  ;;  %v4331_v57 = vpack.c.bf16 %v4285_v10, %v4283_v19  ;;  %v16578_v5 = vld [vmem:[#allocation60_spill] sm:$0xff] }
 0x95a   : > { %v5077_v19 = vmul.f32 1.442695, %v5009_v2 }
 0x95b   : > { %v13780_v14 = vpop.xlane.xlu1 %4946  ;;  %4491 = vmatprep.mubr.bf16.mxu0 %v4332_v7 }
 0x95c   : > { %v13783_v42 = vpop.xlane.xlu0 %4949 }
 0x95d   : > { %5435 = vrot.lane.b32.xlu0 %v16576_v4, %s9799_s5  ;;  %v9300_v36 = vpop.eup %9299 }
 0x95e   : > { %v9302_v26 = vpop.eup %9301  ;;  %v4288_v59 = vmul.f32 %v9300_v36, %v13518_v17  ;;  %v4287_v49 = vmul.f32 %v9300_v36, %v13514_v63  ;;  %v5010_v17 = vsub.f32 %v16578_v5, %v13703_v11 }
 0x95f   : > { %v4191_v54 = vpop.xlane.xlu1 %4190  ;;  %v4290_v31 = vmul.f32 %v9302_v26, %v13526_v12  ;;  %v4289_v3 = vmul.f32 %v9302_v26, %v13512_v44  ;;  %v16579_v12 = vld [vmem:[#allocation140_spill] sm:$0xff]  ;;  %v13805_v26 = vpop.f32.mrf.mxu1 }
 0x960   : > { %4492 = vmatmul.mubr.bf16.gmra.mxu0 %v4331_v57  ;;  %v4194_v58 = vpop.xlane.xlu0 %4193  ;;  %9307 = vrcp.f32 %v4191_v54  ;;  %v5011_v4 = vsub.f32 %v16579_v12, %v13705_v33  ;;  %v5079_v44 = vmul.f32 1.442695, %v5010_v17  ;;  %v16580_v57 = vld [vmem:[#allocation142_spill] sm:$0xff] }
 0x961   : > { %9309 = vrcp.f32 %v4194_v58  ;;  %v4334_v22 = vpack.c.bf16 %v4290_v31, %v4288_v59  ;;  %v4333_v52 = vpack.c.bf16 %v4289_v3, %v4287_v49  ;;  %v5012_v54 = vsub.f32 %v16580_v57, %v13705_v33  ;;  %v13813_v3 = vpop.f32.mrf.mxu1 }
 0x962   : > { %9311 = vpow2.f32 %v5077_v19  ;;  %v5081_v2 = vmul.f32 1.442695, %v5011_v4 }
 0x963   : > { %v13792_v35 = vpop.xlane.xlu1 %4952  ;;  %4499 = vmatprep.mubr.bf16.mxu0 %v4334_v22  ;;  %v13817_v17 = vpop.f32.mrf.mxu1 }
 0x964   : > { %v13795_v51 = vpop.xlane.xlu0 %4955 }
 0x965   : > { %v9304_v10 = vpop.eup %9303  ;;  %v13821_v12 = vpop.f32.mrf.mxu1 }
 0x966   : > { %v9306_v7 = vpop.eup %9305  ;;  %v4292_v58 = vmul.f32 %v9304_v10, %v13552_v8  ;;  %v4291_v36 = vmul.f32 %v9304_v10, %v13548_v20  ;;  %v5083_v8 = vmul.f32 1.442695, %v5012_v54 }
 0x967   : > { %v4197_v63 = vpop.xlane.xlu1 %4196  ;;  %v4294_v11 = vmul.f32 %v9306_v7, %v13558_v56  ;;  %v4293_v49 = vmul.f32 %v9306_v7, %v13544_v62 }
 0x968   : > { %4500 = vmatmul.mubr.bf16.gmra.mxu0 %v4333_v52  ;;  %v4200_v15 = vpop.xlane.xlu0 %4199  ;;  %9313 = vrcp.f32 %v4197_v63 }
 0x969   : > { %9315 = vrcp.f32 %v4200_v15  ;;  %v4336_v31 = vpack.c.bf16 %v4294_v11, %v4292_v58  ;;  %v4335_v33 = vpack.c.bf16 %v4293_v49, %v4291_v36 }
 0x96a   : > { %9317 = vpow2.f32 %v5079_v44 }
 0x96b   : > { %v13808_v59 = vpop.xlane.xlu1 %4958  ;;  %4507 = vmatprep.mubr.bf16.mxu0 %v4336_v31  ;;  %9319 = vpow2.f32 %v5081_v2 }
 0x96c   : > { %v13811_v37 = vpop.xlane.xlu0 %4961  ;;  %9321 = vpow2.f32 %v5083_v8 }
 0x96d   : > { %v9308_v20 = vpop.eup %9307 }
 0x96e   : > { %v9310_v22 = vpop.eup %9309  ;;  %v4296_v62 = vmul.f32 %v9308_v20, %v13580_v1  ;;  %v4295_v5 = vmul.f32 %v9308_v20, %v13576_v25  ;;  %v4981_v1 = vmax.f32 %v13805_v26, %v13813_v3 }
 0x96f   : > { %v4203_v56 = vpop.xlane.xlu1 %4202  ;;  %v4298_v19 = vmul.f32 %v9310_v22, %v13586_v21  ;;  %v4297_v63 = vmul.f32 %v9310_v22, %v13574_v53  ;;  %v13823_v4 = vpop.eup %9311  ;;  %v4984_v21 = vmax.f32 %v13817_v17, %v13821_v12 }
 0x970   : > { %4508 = vmatmul.mubr.bf16.gmra.mxu0 %v4335_v33  ;;  %v4206_v52 = vpop.xlane.xlu0 %4205  ;;  %9323 = vrcp.f32 %v4203_v56 }
 0x971   : > { %9325 = vrcp.f32 %v4206_v52  ;;  %v4338_v15 = vpack.c.bf16 %v4298_v19, %v4296_v62  ;;  %v4337_v10 = vpack.c.bf16 %v4297_v63, %v4295_v5  ;;  %v16581_v63 = vld [vmem:[#allocation22_spill] sm:$0xff] }
 0x973   : > { %4515 = vmatprep.mubr.bf16.mxu0 %v4338_v15 }
 0x974   : > { %v13847_v20 = vpop.xlane.xlu0 %4967 }
 0x975   : > { %v9314_v25 = vpop.eup %9313 }
 0x976   : > { %v9316_v7 = vpop.eup %9315  ;;  %v4300_v53 = vmul.f32 %v9314_v25, %v13596_v40  ;;  %v4299_v44 = vmul.f32 %v9314_v25, %v13594_v41  ;;  %v13841_v40 = vpop.xlane.xlu1 %4964 }
 0x977   : > { %v13831_v57 = vpop.eup %9317  ;;  %v4302_v54 = vmul.f32 %v9316_v7, %v13606_v39  ;;  %v4301_v58 = vmul.f32 %v9316_v7, %v13600_v24  ;;  %v16585_v7 = vld [vmem:[#allocation119_spill] sm:$0xff] }
 0x978   : > { %4516 = vmatmul.mubr.bf16.gmra.mxu0 %v4337_v10  ;;  %v13835_v49 = vpop.eup %9319  ;;  %v5203_v2 = vadd.f32 %v13831_v57, %v13823_v4 }
 0x979   : > { %v4340_v36 = vpack.c.bf16 %v4302_v54, %v4300_v53  ;;  %v4339_v11 = vpack.c.bf16 %v4301_v58, %v4299_v44  ;;  %v13839_v31 = vpop.eup %9321  ;;  %v16586_v54 = vld [vmem:[#allocation23_spill] sm:$0xff] }
 0x97a   : > { %4982 = vmax.xlane.f32.xlu1 %v4981_v1  ;;  %v5206_v24 = vadd.f32 %v13839_v31, %v13835_v49  ;;  %v16584_v1 = vld [vmem:[#allocation45_spill] sm:$0xff]  ;;  %v16587_v58 = vld [vmem:[#allocation143_spill] sm:$0xff] }
 0x97b   : > { %4523 = vmatprep.mubr.bf16.mxu0 %v4340_v36  ;;  %v5013_v36 = vsub.f32 %v16587_v58, %v13728_v9 }
 0x97c   : > { %4985 = vmax.xlane.f32.xlu0 %v4984_v21 }
 0x97d   : > { %v9324_v41 = vpop.eup %9323 }
 0x97e   : > { %v9326_v33 = vpop.eup %9325  ;;  %v4304_v39 = vmul.f32 %v9324_v41, %v13616_v43  ;;  %v4303_v8 = vmul.f32 %v9324_v41, %v13614_v0  ;;  %v16582_v0 = vld [vmem:[#allocation25_spill] sm:$0xff] }
 0x97f   : > { %v4306_v56 = vmul.f32 %v9326_v33, %v13626_v30  ;;  %v4305_v22 = vmul.f32 %v9326_v33, %v13620_v50  ;;  %v16583_v30 = vld [vmem:[#allocation26_spill] sm:$0xff] }
 0x980   : > { %4524 = vmatmul.mubr.bf16.gmra.mxu0 %v4339_v11  ;;  %5204 = vadd.xlane.f32.xlu0 %v5203_v2  ;;  %v16588_v11 = vld [vmem:[#allocation145_spill] sm:$0xff]  ;;  %v5085_v2 = vmul.f32 1.442695, %v5013_v36 }
 0x981   : > { %v4342_v52 = vpack.c.bf16 %v4306_v56, %v4304_v39  ;;  %v4341_v62 = vpack.c.bf16 %v4305_v22, %v4303_v8  ;;  %v13871_v8 = vpop.f32.mrf.mxu1 }
 0x983   : > { %4531 = vmatprep.mubr.bf16.mxu0 %v4342_v52  ;;  %v13873_v52 = vpop.f32.mrf.mxu1 }
 0x984   : > { %5207 = vadd.xlane.f32.xlu0 %v5206_v24  ;;  %v16590_v24 = vld [vmem:[#allocation150_spill] sm:$0xff] }
 0x985   : > { %v4209_v5 = vpop.xlane.xlu1 %4208  ;;  %v5016_v39 = vsub.f32 %v16590_v24, %v13731_v60 }
 0x986   : > { %9327 = vrcp.f32 %v4209_v5  ;;  %v4987_v5 = vmax.f32 %v13871_v8, %v13873_v52 }
 0x987   : > { %v4212_v19 = vpop.xlane.xlu0 %4211  ;;  %v5091_v22 = vmul.f32 1.442695, %v5016_v39  ;;  %v16600_v39 = vld [vmem:[#allocation31_spill] sm:$0xff] }
 0x988   : > { %4532 = vmatmul.mubr.bf16.gmra.mxu0 %v4341_v62  ;;  %9329 = vrcp.f32 %v4212_v19  ;;  %v13875_v62 = vpop.f32.mrf.mxu1 }
 0x989   : > { %9331 = vpow2.f32 %v5085_v2  ;;  %v16598_v2 = vld [vmem:[#allocation28_spill] sm:$0xff] }
 0x98b   : > { %5447 = vrot.lane.b32.xlu1 %v16581_v63, %s9799_s5 }
 0x98f   : > { %5445 = vrot.lane.b32.xlu1 %v16582_v0, %s9799_s5 }
 0x993   : > { %v9328_v43 = vpop.eup %9327  ;;  %5429 = vrot.lane.b32.xlu1 %v16583_v30, %s9799_s5 }
 0x994   : > { %v4308_v50 = vmul.f32 %v9328_v43, %v13654_v32  ;;  %v4307_v15 = vmul.f32 %v9328_v43, %v13652_v46  ;;  %v5014_v32 = vsub.f32 %v16588_v11, %v13728_v9  ;;  %v16589_v46 = vld [vmem:[#allocation147_spill] sm:$0xff]  ;;  %v13877_v9 = vpop.f32.mrf.mxu1 }
 0x995   : > { %v9330_v10 = vpop.eup %9329  ;;  %v5015_v41 = vsub.f32 %v16589_v46, %v13731_v60  ;;  %v4990_v60 = vmax.f32 %v13875_v62, %v13877_v9 }
 0x996   : > { %v4310_v25 = vmul.f32 %v9330_v10, %v16584_v1  ;;  %v4309_v21 = vmul.f32 %v9330_v10, %v16585_v7  ;;  %v5087_v33 = vmul.f32 1.442695, %v5014_v32  ;;  %v13881_v19 = vpop.eup %9331  ;;  %v13897_v10 = vpop.xlane.xlu1 %4970 }
 0x997   : > { %v5089_v56 = vmul.f32 1.442695, %v5015_v41  ;;  %v13903_v7 = vpop.xlane.xlu0 %4973 }
 0x998   : > { %v4344_v53 = vpack.c.bf16 %v4310_v25, %v4308_v50  ;;  %v4343_v44 = vpack.c.bf16 %v4309_v21, %v4307_v15  ;;  %9333 = vpow2.f32 %v5087_v33 }
 0x999   : > { %9335 = vpow2.f32 %v5089_v56 }
 0x99a   : > { %5431 = vrot.lane.b32.xlu0 %v16586_v54, %s9799_s5  ;;  %4539 = vmatprep.mubr.bf16.mxu0 %v4344_v53  ;;  %9337 = vpow2.f32 %v5091_v22 }
 0x99b   : > { %4540 = vmatmul.mubr.bf16.gmra.mxu0 %v4343_v44 }
 0x9a5   : > { %v13885_v63 = vpop.eup %9333 }
 0x9a6   : > { %v13889_v43 = vpop.eup %9335  ;;  %v5209_v30 = vadd.f32 %v13885_v63, %v13881_v19 }
 0x9a7   : > { %v13893_v50 = vpop.eup %9337 }
 0x9a8   : > { %v5212_v25 = vadd.f32 %v13893_v50, %v13889_v43 }
 0x9b7   : > { %4988 = vmax.xlane.f32.xlu1 %v4987_v5 }
 0x9b9   : > { %4991 = vmax.xlane.f32.xlu0 %v4990_v60 }
 0x9ba   : > { %v13887_v0 = vpop.f32.mrf.mxu0 }
 0x9bb   : > { %16591 = vst [vmem:[#allocation124_spill] sm:$0xff] %v13887_v0 }
 0x9bc   : > { %v13895_v15 = vpop.f32.mrf.mxu0 }
 0x9bd   : > { %16592 = vst [vmem:[#allocation118_spill] sm:$0xff] %v13895_v15  ;;  %5210 = vadd.xlane.f32.xlu0 %v5209_v30 }
 0x9be   : > { %v13899_v1 = vpop.f32.mrf.mxu0 }
 0x9bf   : > { %16593 = vst [vmem:[#allocation63_spill] sm:$0xff] %v13899_v1 }
 0x9c0   : > { %v13905_v21 = vpop.f32.mrf.mxu0 }
 0x9c1   : > { %16594 = vst [vmem:[#allocation122_spill] sm:$0xff] %v13905_v21  ;;  %5213 = vadd.xlane.f32.xlu0 %v5212_v25  ;;  %v16602_v25 = vld [vmem:[#allocation32_spill] sm:$0xff] }
 0x9c2   : > { %v4215_v53 = vpop.xlane.xlu1 %4214  ;;  %v13907_v44 = vpop.f32.mrf.mxu0 }
 0x9c3   : > { %16595 = vst [vmem:[#allocation141_spill] sm:$0xff] %v13907_v44  ;;  %9339 = vrcp.f32 %v4215_v53 }
 0x9c4   : > { %v4218_v54 = vpop.xlane.xlu0 %4217  ;;  %v13909_v58 = vpop.f32.mrf.mxu0 }
 0x9c5   : > { %16596 = vst [vmem:[#allocation82_spill] sm:$0xff] %v13909_v58  ;;  %9341 = vrcp.f32 %v4218_v54 }
 0x9c6   : > { %v13911_v36 = vpop.xlane.xlu1 %4976  ;;  %v13913_v11 = vpop.f32.mrf.mxu0 }
 0x9c7   : > { %16597 = vst [vmem:[#allocation34_spill] sm:$0xff] %v13913_v11 }
 0x9c8   : > { %v13915_v32 = vpop.xlane.xlu0 %4979  ;;  %5443 = vrot.lane.b32.xlu1 %v16598_v2, %s9799_s5  ;;  %v13919_v46 = vpop.f32.mrf.mxu0 }
 0x9c9   : > { %16599 = vst [vmem:[#allocation111_spill] sm:$0xff] %v13919_v46 }
 0x9ca   : > { %v5452_v41 = vpop.permute.xlu1 %5451  ;;  %v7923_v33 = vpop.f32.mrf.mxu0 }
 0x9cb   : > { %8055 = vmatprep.subr.bf16.mxu0 %v5452_v41 }
 0x9cc   : > { %v5199_v24 = vpop.xlane.xlu0 %5198  ;;  %5441 = vrot.lane.b32.xlu1 %v16600_v39, %s9799_s5  ;;  %v7924_v56 = vpop.f32.mrf.mxu0 }
 0x9cd   : > { %v13923_v22 = vadd.f32 %v7924_v56, %v7923_v33  ;;  %9343 = vrcp.f32 %v5199_v24 }
 0x9ce   : > { %v7926_v5 = vpop.f32.mrf.mxu0  ;;  %v5450_v39 = vpop.permute.xlu1 %5449 }
 0x9cf   : > { %16601 = vst [vmem:[#allocation58_spill] sm:$0xff] %v13923_v22 }
 0x9d0   : > { %v9340_v60 = vpop.eup %9339  ;;  %v5202_v30 = vpop.xlane.xlu0 %5201  ;;  %5425 = vrot.lane.b32.xlu1 %v16602_v25, %s9799_s5 }
 0x9d1   : > { %v7927_v53 = vpop.f32.mrf.mxu0  ;;  %9345 = vrcp.f32 %v5202_v30  ;;  %v4312_v2 = vmul.f32 %v9340_v60, %v13709_v29  ;;  %v4311_v41 = vmul.f32 %v9340_v60, %v13707_v34  ;;  %v16605_v34 = vld [vmem:[#allocation29_spill] sm:$0xff] }
 0x9d2   : > { %v13927_v54 = vadd.f32 %v7927_v53, %v7926_v5  ;;  %v9342_v58 = vpop.eup %9341  ;;  %v5434_v60 = vpop.permute.xlu1 %5433 }
 0x9d3   : > { %v7929_v44 = vpop.f32.mrf.mxu0  ;;  %v4314_v24 = vmul.f32 %v9342_v58, %v13717_v55  ;;  %v4313_v56 = vmul.f32 %v9342_v58, %v13713_v61  ;;  %v13961_v61 = vpop.f32.mrf.mxu1 }
 0x9d4   : > { %16603 = vst [vmem:[#allocation109_spill] sm:$0xff] %v13927_v54  ;;  %v5436_v46 = vpop.permute.xlu0 %5435 }
 0x9d5   : > { %v7930_v25 = vpop.f32.mrf.mxu0  ;;  %8056 = vmatpush3.bf16.msra.mxu0 %v5436_v46  ;;  %v4346_v5 = vpack.c.bf16 %v4314_v24, %v4312_v2  ;;  %v4345_v53 = vpack.c.bf16 %v4313_v56, %v4311_v41  ;;  %v16607_v46 = vld [vmem:[#allocation153_spill] sm:$0xff] }
 0x9d6   : > { %v13935_v30 = vadd.f32 %v7930_v25, %v7929_v44  ;;  %8057 = vmatprep.subr.bf16.mxu0 %v5450_v39  ;;  %v5017_v2 = vsub.f32 %v16607_v46, %v13748_v28 }
 0x9d7   : > { %v7932_v29 = vpop.f32.mrf.mxu0  ;;  %5427 = vrot.lane.b32.xlu0 %v16605_v34, %s9799_s5  ;;  %4547 = vmatprep.mubr.bf16.mxu0 %v4346_v5  ;;  %v16609_v34 = vld [vmem:[#allocation157_spill] sm:$0xff] }
 0x9d8   : > { %16604 = vst [vmem:[#allocation138_spill] sm:$0xff] %v13935_v30  ;;  %4548 = vmatmul.mubr.bf16.gmra.mxu0 %v4345_v53 }
 0x9d9   : > { %v7933_v33 = vpop.f32.mrf.mxu0  ;;  %8058 = vmatpush3.bf16.msra.mxu0 %v5434_v60  ;;  %v5019_v60 = vsub.f32 %v16609_v34, %v13751_v27 }
 0x9da   : > { %v13939_v55 = vadd.f32 %v7933_v33, %v7932_v29  ;;  %v9344_v58 = vpop.eup %9343  ;;  %v16608_v33 = vld [vmem:[#allocation155_spill] sm:$0xff]  ;;  %v5093_v29 = vmul.f32 1.442695, %v5017_v2 }
 0x9db   : > { %v13946_v41 = vmul.f32 %v9344_v58, %v13733_v6  ;;  %v5326_v24 = vmul.f32 %v9344_v58, %v13737_v13  ;;  %v5018_v25 = vsub.f32 %v16608_v33, %v13748_v28  ;;  %v5097_v13 = vmul.f32 1.442695, %v5019_v60  ;;  %v13963_v28 = vpop.f32.mrf.mxu1 }
 0x9dc   : > { %16606 = vst [vmem:[#allocation160_spill] sm:$0xff] %v13939_v55  ;;  %9347 = vpow2.f32 %v5093_v29  ;;  %v4993_v2 = vmax.f32 %v13961_v61, %v13963_v28 }
 0x9dd   : > { %v5095_v6 = vmul.f32 1.442695, %v5018_v25  ;;  %v13965_v58 = vpop.f32.mrf.mxu1 }
 0x9de   : > { %v9346_v44 = vpop.eup %9345 }
 0x9df   : > { %v13949_v39 = vmul.f32 %v9346_v44, %v13739_v38  ;;  %v5328_v56 = vmul.f32 %v9346_v44, %v13743_v16  ;;  %v16610_v38 = vld [vmem:[#allocation42_spill] sm:$0xff]  ;;  %9349 = vpow2.f32 %v5095_v6  ;;  %v13967_v44 = vpop.f32.mrf.mxu1 }
 0x9e0   : > { %v5020_v46 = vsub.f32 %v16610_v38, %v13751_v27  ;;  %9351 = vpow2.f32 %v5097_v13  ;;  %v4996_v27 = vmax.f32 %v13965_v58, %v13967_v44 }
 0x9e1   : > { %v5390_v5 = vpack.c.bf16 %v5328_v56, %v5326_v24 }
 0x9e2   : > { %v5099_v16 = vmul.f32 1.442695, %v5020_v46 }
 0x9e3   : > { %5501 = vmatprep.mubr.bf16.mxu0 %v5390_v5 }
 0x9e4   : > { %9353 = vpow2.f32 %v5099_v16  ;;  %v16615_v16 = vld [vmem:[#allocation33_spill] sm:$0xff] }
 0x9e9   : > { %v13971_v24 = vpop.eup %9347 }
 0x9ea   : > { %16611 = vst [vmem:[#allocation158_spill] sm:$0xff] %v13971_v24 }
 0x9ec   : > { %v13975_v56 = vpop.eup %9349 }
 0x9ed   : > { %16612 = vst [vmem:[#allocation93_spill] sm:$0xff] %v13975_v56  ;;  %v13977_v33 = vpop.eup %9351  ;;  %v5215_v25 = vadd.f32 %v13975_v56, %v13971_v24  ;;  %v16632_v56 = vld [vmem:[#allocation104_spill] sm:$0xff] }
 0x9ee   : > { %16613 = vst [vmem:[#allocation83_spill] sm:$0xff] %v13977_v33 }
 0x9f1   : > { %v13981_v5 = vpop.eup %9353 }
 0x9f2   : > { %v5218_v29 = vadd.f32 %v13981_v5, %v13977_v33 }
 0x9f4   : > { %4994 = vmax.xlane.f32.xlu1 %v4993_v2 }
 0x9f6   : > { %4997 = vmax.xlane.f32.xlu0 %v4996_v27 }
 0x9fa   : > { %5216 = vadd.xlane.f32.xlu0 %v5215_v25 }
 0x9fe   : > { %5219 = vadd.xlane.f32.xlu0 %v5218_v29  ;;  %v16625_v29 = vld [vmem:[#allocation117_spill] sm:$0xff] }
 0xa00   : > { %v7935_v34 = vpop.f32.mrf.mxu0 }
 0xa02   : > { %v7936_v60 = vpop.f32.mrf.mxu0 }
 0xa03   : > { %v13985_v6 = vadd.f32 %v7936_v60, %v7935_v34  ;;  %v13987_v38 = vpop.xlane.xlu1 %4982  ;;  %v16617_v34 = vld [vmem:[#allocation36_spill] sm:$0xff] }
 0xa04   : > { %v7938_v46 = vpop.f32.mrf.mxu0 }
 0xa05   : > { %16614 = vst [vmem:[#allocation101_spill] sm:$0xff] %v13985_v6  ;;  %v13989_v13 = vpop.xlane.xlu0 %4985  ;;  %5439 = vrot.lane.b32.xlu1 %v16615_v16, %s9799_s5 }
 0xa06   : > { %v7939_v2 = vpop.f32.mrf.mxu0 }
 0xa07   : > { %v13993_v27 = vadd.f32 %v7939_v2, %v7938_v46  ;;  %v5448_v25 = vpop.permute.xlu1 %5447  ;;  %v16619_v46 = vld [vmem:[#allocation37_spill] sm:$0xff] }
 0xa08   : > { %v7941_v53 = vpop.f32.mrf.mxu0  ;;  %8059 = vmatprep.subr.bf16.mxu0 %v5448_v25 }
 0xa09   : > { %16616 = vst [vmem:[#allocation123_spill] sm:$0xff] %v13993_v27  ;;  %v13997_v30 = vpop.xlane.xlu0 %5204  ;;  %5437 = vrot.lane.b32.xlu1 %v16617_v34, %s9799_s5 }
 0xa0a   : > { %v7942_v60 = vpop.f32.mrf.mxu0 }
 0xa0b   : > { %v14001_v55 = vadd.f32 %v7942_v60, %v7941_v53  ;;  %v5446_v25 = vpop.permute.xlu1 %5445  ;;  %v16622_v60 = vld [vmem:[#allocation35_spill] sm:$0xff] }
 0xa0c   : > { %v7944_v22 = vpop.f32.mrf.mxu0 }
 0xa0d   : > { %16618 = vst [vmem:[#allocation127_spill] sm:$0xff] %v14001_v55  ;;  %v14003_v54 = vpop.xlane.xlu0 %5207  ;;  %5421 = vrot.lane.b32.xlu1 %v16619_v46, %s9799_s5  ;;  %v5022_v55 = vsub.f32 %v16625_v29, %v13758_v23 }
 0xa0e   : > { %v7945_v16 = vpop.f32.mrf.mxu0 }
 0xa0f   : > { %v14007_v2 = vadd.f32 %v7945_v16, %v7944_v22  ;;  %v5430_v15 = vpop.permute.xlu1 %5429  ;;  %v16624_v16 = vld [vmem:[#allocation116_spill] sm:$0xff]  ;;  %v5103_v24 = vmul.f32 1.442695, %v5022_v55 }
 0xa10   : > { %v7947_v11 = vpop.f32.mrf.mxu0  ;;  %v5021_v0 = vsub.f32 %v16624_v16, %v13758_v23  ;;  %v16630_v23 = vld [vmem:[#allocation85_spill] sm:$0xff] }
 0xa11   : > { %16620 = vst [vmem:[#allocation103_spill] sm:$0xff] %v14007_v2  ;;  %v5432_v6 = vpop.permute.xlu0 %5431  ;;  %v5026_v29 = vsub.f32 %v16630_v23, %v13770_v47  ;;  %v16637_v23 = vld [vmem:[#allocation130_spill] sm:$0xff] }
 0xa12   : > { %v7948_v27 = vpop.f32.mrf.mxu0  ;;  %8060 = vmatpush3.bf16.msra.mxu0 %v5432_v6  ;;  %v16626_v6 = vld [vmem:[#allocation30_spill] sm:$0xff] }
 0xa13   : > { %v14011_v34 = vadd.f32 %v7948_v27, %v7947_v11  ;;  %8061 = vmatprep.subr.bf16.mxu0 %v5446_v25  ;;  %v5023_v27 = vsub.f32 %v16626_v6, %v13761_v18  ;;  %v16631_v11 = vld [vmem:[#allocation162_spill] sm:$0xff] }
 0xa14   : > { %v7950_v53 = vpop.f32.mrf.mxu0  ;;  %5423 = vrot.lane.b32.xlu0 %v16622_v60, %s9799_s5  ;;  %v16627_v60 = vld [vmem:[#allocation50_spill] sm:$0xff] }
 0xa15   : > { %16621 = vst [vmem:[#allocation17_spill] sm:$0xff] %v14011_v34  ;;  %v5024_v2 = vsub.f32 %v16627_v60, %v13761_v18  ;;  %v5105_v33 = vmul.f32 1.442695, %v5023_v27  ;;  %v5027_v34 = vsub.f32 %v16631_v11, %v13773_v48  ;;  %v5028_v18 = vsub.f32 %v16632_v56, %v13773_v48  ;;  %v16635_v27 = vld [vmem:[#allocation106_spill] sm:$0xff] }
 0xa16   : > { %v7951_v46 = vpop.f32.mrf.mxu0  ;;  %8062 = vmatpush3.bf16.msra.mxu0 %v5430_v15  ;;  %v5030_v11 = vsub.f32 %v16635_v27, %v13780_v14 }
 0xa17   : > { %v14015_v22 = vadd.f32 %v7951_v46, %v7950_v53  ;;  %v5101_v53 = vmul.f32 1.442695, %v5021_v0  ;;  %v16629_v46 = vld [vmem:[#allocation159_spill] sm:$0xff]  ;;  %v5113_v48 = vmul.f32 1.442695, %v5027_v34 }
 0xa18   : > { %v7953_v21 = vpop.f32.mrf.mxu0  ;;  %v5025_v16 = vsub.f32 %v16629_v46, %v13770_v47  ;;  %v14041_v46 = vpop.f32.mrf.mxu1  ;;  %v5111_v47 = vmul.f32 1.442695, %v5026_v29  ;;  %v16640_v34 = vld [vmem:[#allocation131_spill] sm:$0xff] }
 0xa19   : > { %16623 = vst [vmem:[#allocation19_spill] sm:$0xff] %v14015_v22  ;;  %v5107_v22 = vmul.f32 1.442695, %v5024_v2  ;;  %9355 = vpow2.f32 %v5101_v53 }
 0xa1a   : > { %v7954_v25 = vpop.f32.mrf.mxu0  ;;  %v5109_v0 = vmul.f32 1.442695, %v5025_v16  ;;  %9357 = vpow2.f32 %v5103_v24  ;;  %v5115_v16 = vmul.f32 1.442695, %v5028_v18  ;;  %v14055_v2 = vpop.f32.mrf.mxu1  ;;  %v16641_v18 = vld [vmem:[#allocation91_spill] sm:$0xff] }
 0xa1b   : > { %v14027_v15 = vadd.f32 %v7954_v25, %v7953_v21  ;;  %v16634_v25 = vld [vmem:[#allocation164_spill] sm:$0xff]  ;;  %9359 = vpow2.f32 %v5105_v33  ;;  %v5119_v33 = vmul.f32 1.442695, %v5030_v11 }
 0xa1c   : > { %v7956_v1 = vpop.f32.mrf.mxu0  ;;  %v5029_v60 = vsub.f32 %v16634_v25, %v13780_v14  ;;  %9361 = vpow2.f32 %v5107_v22  ;;  %v16639_v14 = vld [vmem:[#allocation105_spill] sm:$0xff] }
 0xa1d   : > { %16628 = vst [vmem:[#allocation20_spill] sm:$0xff] %v14027_v15  ;;  %9363 = vpow2.f32 %v5109_v0  ;;  %v5033_v29 = vsub.f32 %v16639_v14, %v13792_v35 }
 0xa1e   : > { %v7957_v6 = vpop.f32.mrf.mxu0  ;;  %v5117_v24 = vmul.f32 1.442695, %v5029_v60  ;;  %9365 = vpow2.f32 %v5111_v47  ;;  %v16642_v60 = vld [vmem:[#allocation21_spill] sm:$0xff]  ;;  %v16644_v47 = vld [vmem:[#allocation166_spill] sm:$0xff] }
 0xa1f   : > { %v14037_v21 = vadd.f32 %v7957_v6, %v7956_v1  ;;  %v16636_v1 = vld [vmem:[#allocation27_spill] sm:$0xff]  ;;  %v5032_v6 = vsub.f32 %v16637_v23, %v13783_v42  ;;  %9367 = vpow2.f32 %v5113_v48  ;;  %v5125_v14 = vmul.f32 1.442695, %v5033_v29 }
 0xa20   : > { %v7959_v55 = vpop.f32.mrf.mxu0  ;;  %v5031_v56 = vsub.f32 %v16636_v1, %v13783_v42  ;;  %v5034_v1 = vsub.f32 %v16640_v34, %v13792_v35  ;;  %v5035_v42 = vsub.f32 %v16641_v18, %v13795_v51  ;;  %9369 = vpow2.f32 %v5115_v16  ;;  %v14067_v35 = vpop.f32.mrf.mxu1  ;;  %v16647_v18 = vld [vmem:[#allocation168_spill] sm:$0xff] }
 0xa21   : > { %16633 = vst [vmem:[#allocation18_spill] sm:$0xff] %v14037_v21  ;;  %v5123_v0 = vmul.f32 1.442695, %v5032_v6  ;;  %9371 = vpow2.f32 %v5117_v24  ;;  %v5037_v11 = vsub.f32 %v16644_v47, %v13808_v59  ;;  %v16646_v6 = vld [vmem:[#allocation125_spill] sm:$0xff] }
 0xa22   : > { %v7960_v53 = vpop.f32.mrf.mxu0  ;;  %v5121_v22 = vmul.f32 1.442695, %v5031_v56  ;;  %9373 = vpow2.f32 %v5119_v33  ;;  %v5127_v48 = vmul.f32 1.442695, %v5034_v1  ;;  %v16645_v56 = vld [vmem:[#allocation167_spill] sm:$0xff]  ;;  %v5039_v24 = vsub.f32 %v16646_v6, %v13811_v37 }
 0xa23   : > { %v14051_v25 = vadd.f32 %v7960_v53, %v7959_v55  ;;  %v5036_v53 = vsub.f32 %v16642_v60, %v13795_v51  ;;  %v5038_v34 = vsub.f32 %v16645_v56, %v13808_v59  ;;  %v5129_v51 = vmul.f32 1.442695, %v5035_v42  ;;  %v16649_v59 = vld [vmem:[#allocation169_spill] sm:$0xff] }
 0xa24   : > { %v7962_v27 = vpop.f32.mrf.mxu0  ;;  %9375 = vpow2.f32 %v5121_v22  ;;  %v5133_v33 = vmul.f32 1.442695, %v5037_v11  ;;  %v5041_v1 = vsub.f32 %v16649_v59, %v13841_v40  ;;  %v14083_v22 = vpop.f32.mrf.mxu1 }
 0xa25   : > { %16638 = vst [vmem:[#allocation75_spill] sm:$0xff] %v14051_v25  ;;  %9377 = vpow2.f32 %v5123_v0  ;;  %v5135_v42 = vmul.f32 1.442695, %v5038_v34  ;;  %v16650_v0 = vld [vmem:[#allocation170_spill] sm:$0xff] }
 0xa26   : > { %v7963_v55 = vpop.f32.mrf.mxu0  ;;  %9379 = vpow2.f32 %v5125_v14  ;;  %v14081_v56 = vpop.eup %9355  ;;  %v16651_v14 = vld [vmem:[#allocation171_spill] sm:$0xff] }
 0xa27   : > { %v14063_v23 = vadd.f32 %v7963_v55, %v7962_v27  ;;  %v5131_v27 = vmul.f32 1.442695, %v5036_v53  ;;  %v5040_v55 = vsub.f32 %v16647_v18, %v13811_v37  ;;  %9381 = vpow2.f32 %v5127_v48  ;;  %v14087_v6 = vpop.eup %9357  ;;  %v16653_v48 = vld [vmem:[#allocation172_spill] sm:$0xff] }
 0xa28   : > { %v7965_v15 = vpop.f32.mrf.mxu0  ;;  %v5042_v53 = vsub.f32 %v16650_v0, %v13841_v40  ;;  %v4999_v37 = vmax.f32 %v14041_v46, %v14055_v2  ;;  %9383 = vpow2.f32 %v5129_v51  ;;  %v5043_v11 = vsub.f32 %v16651_v14, %v13847_v20  ;;  %v14093_v18 = vpop.eup %9359 }
 0xa29   : > { %16643 = vst [vmem:[#allocation60_spill] sm:$0xff] %v14063_v23  ;;  %16652 = vst [vmem:[#allocation142_spill] sm:$0xff] %v14093_v18  ;;  %9385 = vpow2.f32 %v5131_v27  ;;  %v5139_v59 = vmul.f32 1.442695, %v5040_v55  ;;  %v5044_v34 = vsub.f32 %v16653_v48, %v13847_v20  ;;  %v14099_v40 = vpop.eup %9361  ;;  %v5002_v0 = vmax.f32 %v14067_v35, %v14083_v22  ;;  %v16657_v55 = vld [vmem:[#allocation149_spill] sm:$0xff] }
 0xa2a   : > { %v7966_v29 = vpop.f32.mrf.mxu0  ;;  %9387 = vpow2.f32 %v5133_v33  ;;  %v5141_v51 = vmul.f32 1.442695, %v5041_v1  ;;  %v14105_v23 = vpop.eup %9363  ;;  %v5143_v27 = vmul.f32 1.442695, %v5042_v53  ;;  %v5046_v20 = vsub.f32 %v16657_v55, %v13897_v10 }
 0xa2b   : > { %v14077_v60 = vadd.f32 %v7966_v29, %v7965_v15  ;;  %v5137_v15 = vmul.f32 1.442695, %v5039_v24  ;;  %v16655_v24 = vld [vmem:[#allocation152_spill] sm:$0xff]  ;;  %16656 = vst [vmem:[#allocation25_spill] sm:$0xff] %v14105_v23  ;;  %9389 = vpow2.f32 %v5135_v42  ;;  %v5145_v33 = vmul.f32 1.442695, %v5043_v11 }
 0xa2c   : > { %v7968_v47 = vpop.f32.mrf.mxu0  ;;  %v5045_v14 = vsub.f32 %v16655_v24, %v13897_v10  ;;  %v5047_v1 = vsub.f32 %v13656_v45, %v13903_v7  ;;  %v5221_v24 = vadd.f32 %v14087_v6, %v14081_v56  ;;  %v5147_v53 = vmul.f32 1.442695, %v5044_v34  ;;  %v16658_v10 = vld [vmem:[#allocation88_spill] sm:$0xff] }
 0xa2d   : > { %16648 = vst [vmem:[#allocation140_spill] sm:$0xff] %v14077_v60  ;;  %9391 = vpow2.f32 %v5137_v15  ;;  %v5048_v55 = vsub.f32 %v16658_v10, %v13903_v7  ;;  %v16660_v45 = vld [vmem:[#allocation44_spill] sm:$0xff]  ;;  %v5151_v21 = vmul.f32 1.442695, %v5046_v20  ;;  %v5224_v7 = vadd.f32 %v14099_v40, %v14093_v18 }
 0xa2e   : > { %v7969_v29 = vpop.f32.mrf.mxu0  ;;  %9393 = vpow2.f32 %v5139_v59  ;;  %v5149_v15 = vmul.f32 1.442695, %v5045_v14  ;;  %v5049_v11 = vsub.f32 %v16660_v45, %v13911_v36  ;;  %v16661_v59 = vld [vmem:[#allocation139_spill] sm:$0xff] }
 0xa2f   : > { %v14097_v16 = vadd.f32 %v7969_v29, %v7968_v47  ;;  %v14111_v29 = vpop.eup %9365  ;;  %9395 = vpow2.f32 %v5141_v51  ;;  %v5050_v34 = vsub.f32 %v16661_v59, %v13911_v36  ;;  %v16662_v51 = vld [vmem:[#allocation74_spill] sm:$0xff]  ;;  %v5155_v20 = vmul.f32 1.442695, %v5048_v55  ;;  %v16663_v36 = vld [vmem:[#allocation64_spill] sm:$0xff] }
 0xa30   : > { %v7971_v25 = vpop.f32.mrf.mxu0  ;;  %v14117_v42 = vpop.eup %9367  ;;  %9397 = vpow2.f32 %v5143_v27  ;;  %v5051_v14 = vsub.f32 %v16662_v51, %v13915_v32  ;;  %v5227_v10 = vadd.f32 %v14111_v29, %v14105_v23 }
 0xa31   : > { %16654 = vst [vmem:[#allocation22_spill] sm:$0xff] %v14097_v16  ;;  %5000 = vmax.xlane.f32.xlu1 %v4999_v37  ;;  %v14123_v37 = vpop.eup %9369  ;;  %9399 = vpow2.f32 %v5145_v33  ;;  %v5157_v33 = vmul.f32 1.442695, %v5049_v11  ;;  %v5159_v23 = vmul.f32 1.442695, %v5050_v34 }
 0xa32   : > { %v7972_v48 = vpop.f32.mrf.mxu0  ;;  %v14127_v16 = vpop.eup %9371  ;;  %9401 = vpow2.f32 %v5147_v53  ;;  %v5161_v55 = vmul.f32 1.442695, %v5051_v14 }
 0xa33   : > { %v14121_v47 = vadd.f32 %v7972_v48, %v7971_v25  ;;  %5003 = vmax.xlane.f32.xlu0 %v5002_v0  ;;  %v14133_v25 = vpop.eup %9373  ;;  %v5153_v0 = vmul.f32 1.442695, %v5047_v1  ;;  %9403 = vpow2.f32 %v5149_v15  ;;  %v5053_v1 = vsub.f32 %v13805_v26, %v13987_v38 }
 0xa34   : > { %v7974_v60 = vpop.f32.mrf.mxu0  ;;  %v14139_v27 = vpop.eup %9375  ;;  %9405 = vpow2.f32 %v5151_v21  ;;  %v5054_v15 = vsub.f32 %v13813_v3, %v13987_v38  ;;  %v5056_v38 = vsub.f32 %v13821_v12, %v13989_v13 }
 0xa35   : > { %16659 = vst [vmem:[#allocation26_spill] sm:$0xff] %v14121_v47  ;;  %5222 = vadd.xlane.f32.xlu1 %v5221_v24  ;;  %v5052_v24 = vsub.f32 %v16663_v36, %v13915_v32  ;;  %v14145_v59 = vpop.eup %9377  ;;  %v5230_v32 = vadd.f32 %v14123_v37, %v14117_v42  ;;  %9407 = vpow2.f32 %v5153_v0  ;;  %v5055_v0 = vsub.f32 %v13817_v17, %v13989_v13 }
 0xa36   : > { %v7975_v48 = vpop.f32.mrf.mxu0  ;;  %v14149_v18 = vpop.eup %9379  ;;  %9409 = vpow2.f32 %v5155_v20  ;;  %v5236_v20 = vadd.f32 %v14145_v59, %v14139_v27 }
 0xa37   : > { %v14143_v45 = vadd.f32 %v7975_v48, %v7974_v60  ;;  %5225 = vadd.xlane.f32.xlu0 %v5224_v7  ;;  %v14155_v60 = vpop.eup %9381  ;;  %v5163_v21 = vmul.f32 1.442695, %v5052_v24  ;;  %v5233_v7 = vadd.f32 %v14133_v25, %v14127_v16  ;;  %9411 = vpow2.f32 %v5157_v33 }
 0xa38   : > { %v7977_v51 = vpop.f32.mrf.mxu0  ;;  %v14159_v11 = vpop.eup %9383  ;;  %9413 = vpow2.f32 %v5159_v23  ;;  %v5167_v24 = vmul.f32 1.442695, %v5054_v15  ;;  %v5239_v23 = vadd.f32 %v14155_v60, %v14149_v18  ;;  %v5169_v12 = vmul.f32 1.442695, %v5055_v0 }
 0xa39   : > { %16664 = vst [vmem:[#allocation45_spill] sm:$0xff] %v14143_v45  ;;  %5228 = vadd.xlane.f32.xlu1 %v5227_v10  ;;  %v14165_v48 = vpop.eup %9385  ;;  %v5165_v10 = vmul.f32 1.442695, %v5053_v1  ;;  %9415 = vpow2.f32 %v5161_v55 }
 0xa3a   : > { %v7978_v26 = vpop.f32.mrf.mxu0  ;;  %v14169_v3 = vpop.eup %9387  ;;  %9417 = vpow2.f32 %v5163_v21  ;;  %v5242_v55 = vadd.f32 %v14165_v48, %v14159_v11 }
 0xa3b   : > { %v14161_v34 = vadd.f32 %v7978_v26, %v7977_v51  ;;  %5231 = vadd.xlane.f32.xlu0 %v5230_v32  ;;  %v14175_v36 = vpop.eup %9389  ;;  %9419 = vpow2.f32 %v5165_v10  ;;  %v5171_v26 = vmul.f32 1.442695, %v5056_v38 }
 0xa3c   : > { %v7980_v14 = vpop.f32.mrf.mxu0  ;;  %v14177_v1 = vpop.eup %9391  ;;  %9421 = vpow2.f32 %v5167_v24 }
 0xa3d   : > { %16665 = vst [vmem:[#allocation119_spill] sm:$0xff] %v14161_v34  ;;  %5234 = vadd.xlane.f32.xlu1 %v5233_v7  ;;  %v14183_v51 = vpop.eup %9393  ;;  %9423 = vpow2.f32 %v5169_v12 }
 0xa3e   : > { %v7981_v33 = vpop.f32.mrf.mxu0  ;;  %v14187_v15 = vpop.eup %9395  ;;  %9425 = vpow2.f32 %v5171_v26 }
 0xa3f   : > { %v14179_v17 = vadd.f32 %v7981_v33, %v7980_v14  ;;  %5237 = vadd.xlane.f32.xlu0 %v5236_v20  ;;  %v14193_v20 = vpop.eup %9397  ;;  %v5245_v33 = vadd.f32 %v14175_v36, %v14169_v3 }
 0xa40   : > { %v7983_v13 = vpop.f32.mrf.mxu0  ;;  %v4989_v32 = vpop.xlane.xlu1 %4988  ;;  %v5251_v26 = vadd.f32 %v14193_v20, %v14187_v15 }
 0xa41   : > { %16666 = vst [vmem:[#allocation23_spill] sm:$0xff] %v14179_v17  ;;  %v5057_v7 = vsub.f32 %v13871_v8, %v4989_v32  ;;  %v5058_v14 = vsub.f32 %v13873_v52, %v4989_v32  ;;  %5240 = vadd.xlane.f32.xlu1 %v5239_v23  ;;  %v14197_v53 = vpop.eup %9399 }
 0xa42   : > { %v7984_v10 = vpop.f32.mrf.mxu0  ;;  %v4992_v0 = vpop.xlane.xlu0 %4991  ;;  %16667 = vst [vmem:[#allocation143_spill] sm:$0xff] %v14197_v53 }
 0xa43   : > { %v14199_v47 = vadd.f32 %v7984_v10, %v7983_v13  ;;  %v5173_v38 = vmul.f32 1.442695, %v5057_v7  ;;  %v5175_v45 = vmul.f32 1.442695, %v5058_v14  ;;  %v5059_v21 = vsub.f32 %v13875_v62, %v4992_v0  ;;  %5243 = vadd.xlane.f32.xlu0 %v5242_v55  ;;  %v14202_v8 = vpop.eup %9401 }
 0xa44   : > { %v7986_v52 = vpop.f32.mrf.mxu0  ;;  %v5060_v24 = vsub.f32 %v13877_v9, %v4992_v0  ;;  %v5444_v23 = vpop.permute.xlu1 %5443  ;;  %v5248_v13 = vadd.f32 %v14183_v51, %v14177_v1 }
 0xa45   : > { %16668 = vst [vmem:[#allocation145_spill] sm:$0xff] %v14199_v47  ;;  %v14205_v32 = vpop.eup %9403  ;;  %v5177_v34 = vmul.f32 1.442695, %v5059_v21  ;;  %5246 = vadd.xlane.f32.xlu1 %v5245_v33  ;;  %8063 = vmatprep.subr.bf16.mxu0 %v5444_v23  ;;  %9427 = vpow2.f32 %v5173_v38 }
 0xa46   : > { %16669 = vst [vmem:[#allocation147_spill] sm:$0xff] %v14205_v32  ;;  %v14209_v7 = vpop.eup %9405  ;;  %v5179_v62 = vmul.f32 1.442695, %v5060_v24  ;;  %v7987_v55 = vpop.f32.mrf.mxu0  ;;  %9429 = vpow2.f32 %v5175_v45  ;;  %v5254_v45 = vadd.f32 %v14202_v8, %v14197_v53 }
 0xa47   : > { %v14211_v14 = vpop.xlane.xlu0 %5210  ;;  %v14213_v12 = vpop.eup %9407  ;;  %v14215_v9 = vadd.f32 %v7987_v55, %v7986_v52  ;;  %5249 = vadd.xlane.f32.xlu0 %v5248_v13  ;;  %9431 = vpow2.f32 %v5177_v34  ;;  %v5257_v34 = vadd.f32 %v14209_v7, %v14205_v32 }
 0xa48   : > { %16670 = vst [vmem:[#allocation150_spill] sm:$0xff] %v14213_v12  ;;  %v14219_v21 = vpop.eup %9409  ;;  %v7989_v10 = vpop.f32.mrf.mxu0  ;;  %9433 = vpow2.f32 %v5179_v62 }
 0xa49   : > { %16671 = vst [vmem:[#allocation28_spill] sm:$0xff] %v14215_v9  ;;  %16672 = vst [vmem:[#allocation31_spill] sm:$0xff] %v14219_v21  ;;  %v14221_v0 = vpop.eup %9411  ;;  %5252 = vadd.xlane.f32.xlu1 %v5251_v26  ;;  %v5442_v55 = vpop.permute.xlu1 %5441  ;;  %v5260_v47 = vadd.f32 %v14219_v21, %v14213_v12  ;;  %9435 = vrcp.f32 %v14003_v54 }
 0xa4a   : > { %v14227_v38 = vpop.eup %9413  ;;  %v7990_v52 = vpop.f32.mrf.mxu0  ;;  %9437 = vrcp.f32 %v13997_v30 }
 0xa4b   : > { %v14229_v24 = vpop.xlane.xlu0 %5213  ;;  %v14231_v23 = vpop.eup %9415  ;;  %v14233_v13 = vadd.f32 %v7990_v52, %v7989_v10  ;;  %5255 = vadd.xlane.f32.xlu0 %v5254_v45  ;;  %v5263_v45 = vadd.f32 %v14227_v38, %v14221_v0 }
 0xa4c   : > { %v14237_v62 = vpop.eup %9417  ;;  %v7992_v26 = vpop.f32.mrf.mxu0 }
 0xa4d   : > { %16673 = vst [vmem:[#allocation32_spill] sm:$0xff] %v14233_v13  ;;  %v14239_v33 = vpop.eup %9419  ;;  %5258 = vadd.xlane.f32.xlu1 %v5257_v34  ;;  %v5266_v12 = vadd.f32 %v14237_v62, %v14231_v23  ;;  %v5426_v21 = vpop.permute.xlu1 %5425 }
 0xa4e   : > { %16674 = vst [vmem:[#allocation29_spill] sm:$0xff] %v14239_v33  ;;  %v7993_v9 = vpop.f32.mrf.mxu0  ;;  %v14243_v53 = vpop.eup %9421 }
 0xa4f   : > { %v5428_v17 = vpop.permute.xlu0 %5427  ;;  %16675 = vst [vmem:[#allocation153_spill] sm:$0xff] %v14243_v53  ;;  %v14245_v10 = vadd.f32 %v7993_v9, %v7992_v26  ;;  %5261 = vadd.xlane.f32.xlu0 %v5260_v47  ;;  %v14249_v52 = vpop.eup %9423  ;;  %v5269_v47 = vadd.f32 %v14243_v53, %v14239_v33 }
 0xa50   : > { %8064 = vmatpush3.bf16.msra.mxu0 %v5428_v17  ;;  %16677 = vst [vmem:[#allocation157_spill] sm:$0xff] %v14249_v52  ;;  %v14255_v32 = vpop.eup %9425 }
 0xa51   : > { %16676 = vst [vmem:[#allocation155_spill] sm:$0xff] %v14245_v10  ;;  %8065 = vmatprep.subr.bf16.mxu0 %v5442_v55  ;;  %5264 = vadd.xlane.f32.xlu1 %v5263_v45  ;;  %v5272_v26 = vadd.f32 %v14255_v32, %v14249_v52 }
 0xa52   : > { %v14257_v9 = vpop.eup %9427 }
 0xa53   : > { %16678 = vst [vmem:[#allocation42_spill] sm:$0xff] %v14257_v9  ;;  %5267 = vadd.xlane.f32.xlu0 %v5266_v12  ;;  %v14261_v17 = vpop.eup %9429 }
 0xa54   : > { %8066 = vmatpush3.bf16.msra.mxu0 %v5426_v21  ;;  %v14263_v55 = vpop.eup %9431  ;;  %v5275_v34 = vadd.f32 %v14261_v17, %v14257_v9 }
 0xa55   : > { %16679 = vst [vmem:[#allocation33_spill] sm:$0xff] %v14263_v55  ;;  %5270 = vadd.xlane.f32.xlu1 %v5269_v47  ;;  %v14267_v45 = vpop.eup %9433 }
 0xa56   : > { %16680 = vst [vmem:[#allocation36_spill] sm:$0xff] %v14267_v45  ;;  %v5278_v12 = vadd.f32 %v14267_v45, %v14263_v55 }
 0xa57   : > { %5273 = vadd.xlane.f32.xlu0 %v5272_v26 }
 0xa59   : > { %5276 = vadd.xlane.f32.xlu1 %v5275_v34 }
 0xa5b   : > { %v7995_v21 = vpop.f32.mrf.mxu0  ;;  %5279 = vadd.xlane.f32.xlu0 %v5278_v12 }
 0xa5d   : > { %v7996_v13 = vpop.f32.mrf.mxu0 }
 0xa5e   : > { %v14273_v10 = vadd.f32 %v7996_v13, %v7995_v21 }
 0xa5f   : > { %v7998_v33 = vpop.f32.mrf.mxu0 }
 0xa61   : > { %v7999_v47 = vpop.f32.mrf.mxu0 }
 0xa62   : > { %v14275_v53 = vadd.f32 %v7999_v47, %v7998_v33 }
 0xa7d   : > { %v4995_v26 = vpop.xlane.xlu1 %4994 }
 0xa7e   : > { %v5061_v34 = vsub.f32 %v13961_v61, %v4995_v26  ;;  %v5062_v9 = vsub.f32 %v13963_v28, %v4995_v26  ;;  %v9436_v28 = vpop.eup %9435 }
 0xa7f   : > { %v4998_v12 = vpop.xlane.xlu0 %4997 }
 0xa80   : > { %v5181_v55 = vmul.f32 1.442695, %v5061_v34  ;;  %v5183_v13 = vmul.f32 1.442695, %v5062_v9  ;;  %v5063_v21 = vsub.f32 %v13965_v58, %v4998_v12  ;;  %v5064_v33 = vsub.f32 %v13967_v44, %v4998_v12  ;;  %v9438_v58 = vpop.eup %9437 }
 0xa81   : > { %v5440_v47 = vpop.permute.xlu1 %5439  ;;  %v5332_v44 = vmul.f32 %v9436_v28, %v13839_v31  ;;  %v16681_v31 = vpack.c.bf16 %v13949_v39, %v13946_v41 }
 0xa82   : > { %9439 = vpow2.f32 %v5181_v55  ;;  %v5185_v45 = vmul.f32 1.442695, %v5063_v21  ;;  %v5187_v52 = vmul.f32 1.442695, %v5064_v33  ;;  %8067 = vmatprep.subr.bf16.mxu0 %v5440_v47 }
 0xa83   : > { %9441 = vpow2.f32 %v5183_v13  ;;  %v5217_v54 = vpop.xlane.xlu0 %5216 }
 0xa84   : > { %9443 = vpow2.f32 %v5185_v45 }
 0xa85   : > { %9445 = vpow2.f32 %v5187_v52  ;;  %v5438_v30 = vpop.permute.xlu1 %5437 }
 0xa86   : > { %9447 = vrcp.f32 %v14229_v24  ;;  %v5330_v24 = vmul.f32 %v9438_v58, %v13831_v57  ;;  %v5331_v57 = vmul.f32 %v9436_v28, %v13835_v49 }
 0xa87   : > { %v5220_v61 = vpop.xlane.xlu0 %5219  ;;  %9449 = vrcp.f32 %v14211_v14 }
 0xa88   : > { %9451 = vrcp.f32 %v5220_v61  ;;  %v5392_v12 = vpack.c.bf16 %v5332_v44, %v5330_v24 }
 0xa89   : > { %v5422_v26 = vpop.permute.xlu1 %5421  ;;  %9453 = vrcp.f32 %v5217_v54  ;;  %v5329_v54 = vmul.f32 %v9438_v58, %v13823_v4 }
 0xa8b   : > { %v5424_v9 = vpop.permute.xlu0 %5423 }
 0xa8c   : > { %8068 = vmatpush3.bf16.msra.mxu0 %v5424_v9  ;;  %v5391_v9 = vpack.c.bf16 %v5331_v57, %v5329_v54 }
 0xa8d   : > { %8069 = vmatprep.subr.bf16.mxu0 %v5438_v30 }
 0xa8f   : > { %v14288_v55 = vpop.eup %9439 }
 0xa90   : > { %v14290_v34 = vpop.eup %9441  ;;  %8070 = vmatpush3.bf16.msra.mxu0 %v5422_v26 }
 0xa91   : > { %v14293_v52 = vpop.eup %9443  ;;  %v5281_v14 = vadd.f32 %v14290_v34, %v14288_v55 }
 0xa92   : > { %v14297_v45 = vpop.eup %9445 }
 0xa93   : > { %v9448_v13 = vpop.eup %9447  ;;  %5502 = vmatmul.mubr.bf16.vlgmr.msra.gmra.mxu0 %v16681_v31  ;;  %5282 = vadd.xlane.f32.xlu1 %v5281_v14  ;;  %v5284_v21 = vadd.f32 %v14297_v45, %v14293_v52 }
 0xa94   : > { %5509 = vmatprep.mubr.bf16.mxu0 %v5392_v12  ;;  %v9450_v33 = vpop.eup %9449  ;;  %v5336_v47 = vmul.f32 %v9448_v13, %v13893_v50  ;;  %v5335_v12 = vmul.f32 %v9448_v13, %v13889_v43 }
 0xa95   : > { %5285 = vadd.xlane.f32.xlu0 %v5284_v21  ;;  %v5334_v30 = vmul.f32 %v9450_v33, %v13885_v63  ;;  %v9452_v39 = vpop.eup %9451  ;;  %v5333_v4 = vmul.f32 %v9450_v33, %v13881_v19  ;;  %v16682_v63 = vld [vmem:[#allocation93_spill] sm:$0xff] }
 0xa96   : > { %v9454_v14 = vpop.eup %9453  ;;  %v5340_v50 = vmul.f32 %v9452_v39, %v13981_v5 }
 0xa97   : > { %v5394_v41 = vpack.c.bf16 %v5336_v47, %v5334_v30  ;;  %v5338_v58 = vmul.f32 %v9454_v14, %v16682_v63  ;;  %v5393_v21 = vpack.c.bf16 %v5335_v12, %v5333_v4  ;;  %v16683_v47 = vld [vmem:[#allocation83_spill] sm:$0xff] }
 0xa98   : > { %v8001_v61 = vpop.f32.mrf.mxu0  ;;  %v5339_v54 = vmul.f32 %v9452_v39, %v16683_v47 }
 0xa99   : > { %v5396_v57 = vpack.c.bf16 %v5340_v50, %v5338_v58 }
 0xa9a   : > { %v8002_v44 = vpop.f32.mrf.mxu0 }
 0xa9b   : > { %v14308_v26 = vadd.f32 %v8002_v44, %v8001_v61  ;;  %5510 = vmatmul.mubr.bf16.gmra.mxu0 %v5391_v9  ;;  %v16684_v61 = vld [vmem:[#allocation158_spill] sm:$0xff] }
 0xa9c   : > { %v8004_v24 = vpop.f32.mrf.mxu0  ;;  %5517 = vmatprep.mubr.bf16.mxu0 %v5394_v41  ;;  %v5337_v43 = vmul.f32 %v9454_v14, %v16684_v61 }
 0xa9e   : > { %v8005_v49 = vpop.f32.mrf.mxu0  ;;  %v5395_v13 = vpack.c.bf16 %v5339_v54, %v5337_v43 }
 0xa9f   : > { %v14312_v28 = vadd.f32 %v8005_v49, %v8004_v24 }
 0xaa1   : > { %v8644_v31 = vpack.i.bf16 %v14312_v28, %v14308_v26 }
 0xaa3   : > { %5518 = vmatmul.mubr.bf16.gmra.mxu0 %v5393_v21 }
 0xaa4   : > { %5525 = vmatprep.mubr.bf16.mxu0 %v5396_v57 }
 0xaab   : > { %5526 = vmatmul.mubr.bf16.gmra.mxu0 %v5395_v13 }
 0xaba   : > { %v5001_v5 = vpop.xlane.xlu1 %5000 }
 0xabb   : > { %v5065_v30 = vsub.f32 %v14041_v46, %v5001_v5  ;;  %v5066_v19 = vsub.f32 %v14055_v2, %v5001_v5 }
 0xabc   : > { %v5004_v33 = vpop.xlane.xlu0 %5003 }
 0xabd   : > { %v5189_v9 = vmul.f32 1.442695, %v5065_v30  ;;  %v5191_v44 = vmul.f32 1.442695, %v5066_v19  ;;  %v5067_v41 = vsub.f32 %v14067_v35, %v5004_v33  ;;  %v5068_v24 = vsub.f32 %v14083_v22, %v5004_v33  ;;  %v16685_v33 = vld [vmem:[#allocation142_spill] sm:$0xff] }
 0xabe   : > { %v5223_v12 = vpop.xlane.xlu1 %5222 }
 0xabf   : > { %9455 = vpow2.f32 %v5189_v9  ;;  %v5193_v49 = vmul.f32 1.442695, %v5067_v41  ;;  %v5195_v39 = vmul.f32 1.442695, %v5068_v24 }
 0xac0   : > { %9457 = vpow2.f32 %v5191_v44  ;;  %v5226_v14 = vpop.xlane.xlu0 %5225 }
 0xac1   : > { %9459 = vpow2.f32 %v5193_v49 }
 0xac2   : > { %9461 = vpow2.f32 %v5195_v39  ;;  %v5229_v50 = vpop.xlane.xlu1 %5228 }
 0xac3   : > { %9463 = vrcp.f32 %v5223_v12 }
 0xac4   : > { %9465 = vrcp.f32 %v5226_v14  ;;  %v5232_v46 = vpop.xlane.xlu0 %5231 }
 0xac5   : > { %9467 = vrcp.f32 %v5229_v50 }
 0xac6   : > { %9469 = vrcp.f32 %v5232_v46  ;;  %v5235_v2 = vpop.xlane.xlu1 %5234  ;;  %v16686_v46 = vld [vmem:[#allocation25_spill] sm:$0xff] }
 0xac7   : > { %9471 = vrcp.f32 %v5235_v2 }
 0xac8   : > { %v5238_v4 = vpop.xlane.xlu0 %5237 }
 0xac9   : > { %9473 = vrcp.f32 %v5238_v4 }
 0xaca   : > { %v5241_v58 = vpop.xlane.xlu1 %5240 }
 0xacb   : > { %9475 = vrcp.f32 %v5241_v58 }
 0xacc   : > { %v14324_v35 = vpop.eup %9455  ;;  %v5244_v47 = vpop.xlane.xlu0 %5243 }
 0xacd   : > { %v14326_v22 = vpop.eup %9457  ;;  %9477 = vrcp.f32 %v5244_v47 }
 0xace   : > { %v14328_v63 = vpop.eup %9459  ;;  %v5287_v21 = vadd.f32 %v14326_v22, %v14324_v35  ;;  %v5247_v14 = vpop.xlane.xlu1 %5246 }
 0xacf   : > { %v14332_v57 = vpop.eup %9461  ;;  %9479 = vrcp.f32 %v5247_v14  ;;  %v16695_v14 = vld [vmem:[#allocation111_spill] sm:$0xff] }
 0xad0   : > { %v9464_v54 = vpop.eup %9463  ;;  %5288 = vadd.xlane.f32.xlu1 %v5287_v21  ;;  %v5290_v61 = vadd.f32 %v14332_v57, %v14328_v63 }
 0xad1   : > { %v9466_v43 = vpop.eup %9465  ;;  %v5342_v13 = vmul.f32 %v9464_v54, %v14087_v6  ;;  %v5341_v5 = vmul.f32 %v9464_v54, %v14081_v56  ;;  %v5250_v56 = vpop.xlane.xlu0 %5249 }
 0xad2   : > { %v9468_v30 = vpop.eup %9467  ;;  %5291 = vadd.xlane.f32.xlu0 %v5290_v61  ;;  %v5344_v19 = vmul.f32 %v9466_v43, %v14099_v40  ;;  %v5343_v9 = vmul.f32 %v9466_v43, %v16685_v33  ;;  %9481 = vrcp.f32 %v5250_v56  ;;  %v5253_v21 = vpop.xlane.xlu1 %5252  ;;  %v16687_v61 = vld [vmem:[#allocation63_spill] sm:$0xff]  ;;  %v16688_v43 = vld [vmem:[#allocation122_spill] sm:$0xff]  ;;  %v16696_v56 = vld [vmem:[#allocation141_spill] sm:$0xff] }
 0xad3   : > { %v9470_v44 = vpop.eup %9469  ;;  %v5346_v41 = vmul.f32 %v9468_v30, %v14111_v29  ;;  %v5345_v40 = vmul.f32 %v9468_v30, %v16686_v46  ;;  %v16690_v30 = vld [vmem:[#allocation118_spill] sm:$0xff]  ;;  %9483 = vrcp.f32 %v5253_v21 }
 0xad4   : > { %v5398_v24 = vpack.c.bf16 %v5344_v19, %v5342_v13  ;;  %v5397_v12 = vpack.c.bf16 %v5343_v9, %v5341_v5  ;;  %v5348_v49 = vmul.f32 %v9470_v44, %v14123_v37  ;;  %v9472_v39 = vpop.eup %9471  ;;  %v5347_v2 = vmul.f32 %v9470_v44, %v14117_v42  ;;  %v16689_v19 = vld [vmem:[#allocation124_spill] sm:$0xff]  ;;  %v16691_v42 = vld [vmem:[#allocation79_spill] sm:$0xff]  ;;  %v16697_v46 = vld [vmem:[#allocation82_spill] sm:$0xff] }
 0xad5   : > { %v5350_v29 = vmul.f32 %v9472_v39, %v14133_v25  ;;  %v7916_v13 = vadd.f32 %v16688_v43, %v16687_v61  ;;  %v5256_v5 = vpop.xlane.xlu0 %5255  ;;  %v7913_v33 = vadd.f32 %v16690_v30, %v16689_v19  ;;  %v16692_v25 = vld [vmem:[#allocation114_spill] sm:$0xff] }
 0xad6   : > { %5533 = vmatprep.mubr.bf16.mxu0 %v5398_v24  ;;  %v5400_v6 = vpack.c.bf16 %v5348_v49, %v5346_v41  ;;  %v9474_v50 = vpop.eup %9473  ;;  %v5399_v58 = vpack.c.bf16 %v5347_v2, %v5345_v40  ;;  %v16693_v9 = vpack.i.bf16 %v16691_v42, %v16692_v25  ;;  %9485 = vrcp.f32 %v5256_v5  ;;  %v16694_v49 = vld [vmem:[#allocation34_spill] sm:$0xff] }
 0xad7   : > { %5534 = vmatmul.mubr.bf16.gmra.mxu0 %v5397_v12  ;;  %v5352_v4 = vmul.f32 %v9474_v50, %v14145_v59  ;;  %v5349_v59 = vmul.f32 %v9472_v39, %v14127_v16  ;;  %v5351_v44 = vmul.f32 %v9474_v50, %v14139_v27  ;;  %v8429_v12 = vpack.i.bf16 %v7916_v13, %v7913_v33 }
 0xad8   : > { %5541 = vmatprep.mubr.bf16.mxu0 %v5400_v6  ;;  %v9476_v37 = vpop.eup %9475  ;;  %v7922_v6 = vadd.f32 %v16695_v14, %v16694_v49  ;;  %v7919_v40 = vadd.f32 %v16697_v46, %v16696_v56 }
 0xad9   : > { %v5402_v47 = vpack.c.bf16 %v5352_v4, %v5350_v29  ;;  %v5354_v41 = vmul.f32 %v9476_v37, %v14155_v60  ;;  %v5401_v2 = vpack.c.bf16 %v5351_v44, %v5349_v59  ;;  %v5259_v4 = vpop.xlane.xlu1 %5258  ;;  %v5262_v50 = vpop.xlane.xlu0 %5261  ;;  %v16698_v60 = vld [vmem:[#allocation14_spill] sm:$0xff]  ;;  %v5353_v21 = vmul.f32 %v9476_v37, %v14149_v18 }
 0xada   : > { %v9478_v54 = vpop.eup %9477  ;;  %v8434_v27 = vpack.i.bf16 %v7922_v6, %v7919_v40  ;;  %9487 = vrcp.f32 %v5259_v4  ;;  %v16703_v40 = vld [vmem:[#allocation147_spill] sm:$0xff] }
 0xadb   : > { %v5356_v24 = vmul.f32 %v9478_v54, %v14165_v48  ;;  %v16699_v48 = vld [vmem:[#allocation77_spill] sm:$0xff]  ;;  %9489 = vrcp.f32 %v5262_v50 }
 0xadc   : > { %v9480_v29 = vpop.eup %9479 }
 0xadd   : > { %v5404_v16 = vpack.c.bf16 %v5356_v24, %v5354_v41  ;;  %v5358_v61 = vmul.f32 %v9480_v29, %v14175_v36  ;;  %v5265_v19 = vpop.xlane.xlu1 %5264  ;;  %v5268_v42 = vpop.xlane.xlu0 %5267  ;;  %v5357_v25 = vmul.f32 %v9480_v29, %v14169_v3  ;;  %v16701_v24 = vld [vmem:[#allocation143_spill] sm:$0xff]  ;;  %v16704_v29 = vld [vmem:[#allocation150_spill] sm:$0xff] }
 0xade   : > { %9491 = vrcp.f32 %v5265_v19  ;;  %v16707_v19 = vld [vmem:[#allocation157_spill] sm:$0xff] }
 0xadf   : > { %5542 = vmatmul.mubr.bf16.gmra.mxu0 %v5399_v58  ;;  %v9482_v39 = vpop.eup %9481  ;;  %v16700_v58 = vpack.i.bf16 %v16698_v60, %v16699_v48  ;;  %9493 = vrcp.f32 %v5268_v42  ;;  %v16708_v42 = vld [vmem:[#allocation36_spill] sm:$0xff] }
 0xae0   : > { %5549 = vmatprep.mubr.bf16.mxu0 %v5402_v47  ;;  %v5355_v47 = vmul.f32 %v9478_v54, %v14159_v11  ;;  %v5360_v43 = vmul.f32 %v9482_v39, %v14183_v51  ;;  %v9484_v5 = vpop.eup %9483  ;;  %v5359_v18 = vmul.f32 %v9482_v39, %v14177_v1 }
 0xae1   : > { %8420 = vrot.lane.b32.xlu1 %v16693_v9, %s9798_s3  ;;  %v5362_v11 = vmul.f32 %v9484_v5, %v14193_v20  ;;  %v5271_v54 = vpop.xlane.xlu1 %5270  ;;  %v5274_v44 = vpop.xlane.xlu0 %5273  ;;  %v5361_v41 = vmul.f32 %v9484_v5, %v14187_v15 }
 0xae2   : > { %v5403_v13 = vpack.c.bf16 %v5355_v47, %v5353_v21  ;;  %v5406_v30 = vpack.c.bf16 %v5360_v43, %v5358_v61  ;;  %v5405_v37 = vpack.c.bf16 %v5359_v18, %v5357_v25  ;;  %9495 = vrcp.f32 %v5271_v54  ;;  %v16709_v18 = vld [vmem:[#allocation42_spill] sm:$0xff] }
 0xae3   : > { %v9486_v33 = vpop.eup %9485  ;;  %9497 = vrcp.f32 %v5274_v44 }
 0xae4   : > { %v5364_v36 = vmul.f32 %v9486_v33, %v14202_v8  ;;  %v5363_v3 = vmul.f32 %v9486_v33, %v16701_v24 }
 0xae5   : > { %8430 = vrot.lane.b32.xlu1 %v8429_v12, %s9796_s24  ;;  %v16702_v12 = vld [vmem:[#allocation31_spill] sm:$0xff]  ;;  %v5277_v14 = vpop.xlane.xlu1 %5276  ;;  %v5280_v46 = vpop.xlane.xlu0 %5279 }
 0xae6   : > { %v5408_v9 = vpack.c.bf16 %v5364_v36, %v5362_v11  ;;  %v5407_v49 = vpack.c.bf16 %v5363_v3, %v5361_v41  ;;  %9499 = vrcp.f32 %v5277_v14  ;;  %v16710_v11 = vld [vmem:[#allocation33_spill] sm:$0xff] }
 0xae7   : > { %5550 = vmatmul.mubr.bf16.gmra.mxu0 %v5401_v2  ;;  %v9488_v51 = vpop.eup %9487  ;;  %9501 = vrcp.f32 %v5280_v46 }
 0xae8   : > { %5557 = vmatprep.mubr.bf16.mxu0 %v5404_v16  ;;  %8425 = vrot.lane.b32.xlu0 %v16700_v58, %s9798_s3  ;;  %v9490_v59 = vpop.eup %9489  ;;  %v5366_v1 = vmul.f32 %v9488_v51, %v14209_v7  ;;  %v5365_v2 = vmul.f32 %v9488_v51, %v16703_v40  ;;  %v16705_v58 = vld [vmem:[#allocation153_spill] sm:$0xff] }
 0xae9   : > { %8435 = vrot.lane.b32.xlu1 %v8434_v27, %s9796_s24  ;;  %v5368_v20 = vmul.f32 %v9490_v59, %v16702_v12  ;;  %v5367_v15 = vmul.f32 %v9490_v59, %v16704_v29  ;;  %v8671_v12 = vld [vmem:[#allocation6 + $0x18] sm:$0xff]   ;;  %v8674_v40 = vld [vmem:[#allocation6] sm:$0xff]  }
 0xaea   : > { %8207 = vmatprep.subr.bf16.mxu0 %v8671_v12  ;;  %8287 = vmatprep.subr.bf16.mxu1 %v8671_v12 }
 0xaeb   : > { %v9492_v8 = vpop.eup %9491  ;;  %v5410_v6 = vpack.c.bf16 %v5368_v20, %v5366_v1  ;;  %v5409_v16 = vpack.c.bf16 %v5367_v15, %v5365_v2  ;;  %8208 = vmatpush3.bf16.msra.mxu0 %v8671_v12  ;;  %8291 = vmatpush3.bf16.msra.mxu1 %v8671_v12 }
 0xaec   : > { %v9494_v56 = vpop.eup %9493  ;;  %v5370_v4 = vmul.f32 %v9492_v8, %v14227_v38  ;;  %v5369_v60 = vmul.f32 %v9492_v8, %v14221_v0 }
 0xaed   : > { %v5372_v7 = vmul.f32 %v9494_v56, %v14237_v62  ;;  %v5371_v48 = vmul.f32 %v9494_v56, %v14231_v23  ;;  %v16706_v62 = vld [vmem:[#allocation29_spill] sm:$0xff] }
 0xaef   : > { %5558 = vmatmul.mubr.bf16.gmra.mxu0 %v5403_v13  ;;  %v9496_v39 = vpop.eup %9495  ;;  %v5412_v27 = vpack.c.bf16 %v5372_v7, %v5370_v4  ;;  %v5411_v61 = vpack.c.bf16 %v5371_v48, %v5369_v60 }
 0xaf0   : > { %5565 = vmatprep.mubr.bf16.mxu0 %v5406_v30  ;;  %v9498_v50 = vpop.eup %9497  ;;  %v5374_v21 = vmul.f32 %v9496_v39, %v16705_v58  ;;  %v5373_v5 = vmul.f32 %v9496_v39, %v16706_v62  ;;  %v16711_v39 = vld [vmem:[#allocation110_spill] sm:$0xff] }
 0xaf1   : > { %v5376_v47 = vmul.f32 %v9498_v50, %v14255_v32  ;;  %v5375_v30 = vmul.f32 %v9498_v50, %v16707_v19 }
 0xaf3   : > { %v9500_v43 = vpop.eup %9499  ;;  %v5414_v13 = vpack.c.bf16 %v5376_v47, %v5374_v21  ;;  %v5413_v25 = vpack.c.bf16 %v5375_v30, %v5373_v5  ;;  %v16714_v21 = vld [vmem:[#allocation109_spill] sm:$0xff]  ;;  %v16715_v47 = vld [vmem:[#allocation58_spill] sm:$0xff] }
 0xaf4   : > { %v9502_v38 = vpop.eup %9501  ;;  %v5378_v33 = vmul.f32 %v9500_v43, %v14261_v17  ;;  %v5377_v32 = vmul.f32 %v9500_v43, %v16709_v18 }
 0xaf5   : > { %v5380_v0 = vmul.f32 %v9502_v38, %v16708_v42  ;;  %v5379_v36 = vmul.f32 %v9502_v38, %v16710_v11  ;;  %v16717_v42 = vld [vmem:[#allocation57_spill] sm:$0xff] }
 0xaf7   : > { %5566 = vmatmul.mubr.bf16.gmra.mxu0 %v5405_v37  ;;  %v5416_v23 = vpack.c.bf16 %v5380_v0, %v5378_v33  ;;  %v5415_v51 = vpack.c.bf16 %v5379_v36, %v5377_v32  ;;  %v16718_v0 = vld [vmem:[#allocation52_spill] sm:$0xff] }
 0xaf8   : > { %5573 = vmatprep.mubr.bf16.mxu0 %v5408_v9 }
 0xaff   : > { %5574 = vmatmul.mubr.bf16.gmra.mxu0 %v5407_v49  ;;  %v8672_v49 = vld [vmem:[#allocation6 + $0x10] sm:$0xff]  }
 0xb00   : > { %5581 = vmatprep.mubr.bf16.mxu0 %v5410_v6  ;;  %8209 = vmatprep.subr.bf16.mxu0 %v8672_v49 }
 0xb01   : > { %8288 = vmatprep.subr.bf16.mxu1 %v8672_v49  ;;  %8210 = vmatpush3.bf16.msra.mxu0 %v8672_v49 }
 0xb02   : > { %8292 = vmatpush3.bf16.msra.mxu1 %v8672_v49  ;;  %v16730_v49 = vld [vmem:[#allocation148_spill] sm:$0xff] }
 0xb07   : > { %5582 = vmatmul.mubr.bf16.gmra.mxu0 %v5409_v16 }
 0xb08   : > { %5589 = vmatprep.mubr.bf16.mxu0 %v5412_v27  ;;  %v16712_v27 = vld [vmem:[#allocation51_spill] sm:$0xff] }
 0xb09   : > { %v16713_v50 = vpack.i.bf16 %v16711_v39, %v16712_v27  ;;  %v16735_v27 = vld [vmem:[#allocation156_spill] sm:$0xff] }
 0xb0f   : > { %5590 = vmatmul.mubr.bf16.gmra.mxu0 %v5411_v61  ;;  %v16716_v61 = vpack.i.bf16 %v16714_v21, %v16715_v47  ;;  %v16738_v47 = vld [vmem:[#allocation19_spill] sm:$0xff] }
 0xb10   : > { %5597 = vmatprep.mubr.bf16.mxu0 %v5414_v13 }
 0xb17   : > { %5598 = vmatmul.mubr.bf16.gmra.mxu0 %v5413_v25  ;;  %v16719_v25 = vpack.i.bf16 %v16717_v42, %v16718_v0 }
 0xb18   : > { %5605 = vmatprep.mubr.bf16.mxu0 %v5416_v23 }
 0xb1c   : > { %v5283_v37 = vpop.xlane.xlu1 %5282 }
 0xb1d   : > { %9503 = vrcp.f32 %v5283_v37 }
 0xb1e   : > { %v5286_v54 = vpop.xlane.xlu0 %5285 }
 0xb1f   : > { %5606 = vmatmul.mubr.bf16.gmra.mxu0 %v5415_v51  ;;  %9505 = vrcp.f32 %v5286_v54  ;;  %v16721_v51 = vld [vmem:[#allocation138_spill] sm:$0xff] }
 0xb2a   : > { %v9504_v9 = vpop.eup %9503 }
 0xb2b   : > { %v5382_v59 = vmul.f32 %v9504_v9, %v14290_v34  ;;  %v5381_v17 = vmul.f32 %v9504_v9, %v14288_v55  ;;  %v8673_v34 = vld [vmem:[#allocation6 + $0x8] sm:$0xff]  }
 0xb2c   : > { %v9506_v44 = vpop.eup %9505  ;;  %8211 = vmatprep.subr.bf16.mxu0 %v8673_v34  ;;  %8289 = vmatprep.subr.bf16.mxu1 %v8673_v34 }
 0xb2d   : > { %v5384_v41 = vmul.f32 %v9506_v44, %v14297_v45  ;;  %v5383_v24 = vmul.f32 %v9506_v44, %v14293_v52  ;;  %8212 = vmatpush3.bf16.msra.mxu0 %v8673_v34  ;;  %8293 = vmatpush3.bf16.msra.mxu1 %v8673_v34  ;;  %v16724_v44 = vld [vmem:[#allocation144_spill] sm:$0xff]  ;;  %v16733_v34 = vld [vmem:[#allocation127_spill] sm:$0xff] }
 0xb2e   : > { %8213 = vmatprep.subr.bf16.mxu0 %v8674_v40  ;;  %8290 = vmatprep.subr.bf16.mxu1 %v8674_v40 }
 0xb2f   : > { %v5418_v3 = vpack.c.bf16 %v5384_v41, %v5382_v59  ;;  %v5417_v1 = vpack.c.bf16 %v5383_v24, %v5381_v17 }
 0xb31   : > { %5613 = vmatprep.mubr.bf16.mxu0 %v5418_v3  ;;  %8214 = vmatpush3.bf16.msra.mxu0 %v8674_v40  ;;  %v16726_v3 = vld [vmem:[#allocation123_spill] sm:$0xff] }
 0xb32   : > { %5614 = vmatmul.mubr.bf16.gmra.mxu0 %v5417_v1  ;;  %8294 = vmatpush3.bf16.msra.mxu1 %v8674_v40  ;;  %v16727_v1 = vld [vmem:[#allocation101_spill] sm:$0xff] }
 0xb33   : > { %v16728_v12 = vpack.i.bf16 %v16726_v3, %v16727_v1 }
 0xb53   : > { %v8071_v20 = vpop.f32.mrf.mxu0 }
 0xb55   : > { %v8072_v8 = vpop.f32.mrf.mxu0 }
 0xb56   : > { %v8073_v14 = vadd.f32 %v8072_v8, %v8071_v20  ;;  %v16729_v20 = vld [vmem:[#allocation151_spill] sm:$0xff] }
 0xb57   : > { %v8074_v55 = vpop.f32.mrf.mxu0  ;;  %v16731_v8 = vpack.i.bf16 %v16729_v20, %v16730_v49  ;;  %v16754_v20 = vld [vmem:[#allocation76_spill] sm:$0xff] }
 0xb59   : > { %v8075_v45 = vpop.f32.mrf.mxu0  ;;  %v5289_v52 = vpop.xlane.xlu1 %5288 }
 0xb5a   : > { %v8076_v6 = vadd.f32 %v8075_v45, %v8074_v55  ;;  %9507 = vrcp.f32 %v5289_v52  ;;  %v16732_v55 = vld [vmem:[#allocation103_spill] sm:$0xff] }
 0xb5b   : > { %v5292_v56 = vpop.xlane.xlu0 %5291  ;;  %v8077_v46 = vpop.f32.mrf.mxu0  ;;  %v16734_v45 = vpack.i.bf16 %v16732_v55, %v16733_v34 }
 0xb5c   : > { %v8439_v2 = vpack.i.bf16 %v8076_v6, %v8073_v14  ;;  %9509 = vrcp.f32 %v5292_v56 }
 0xb5d   : > { %v8078_v29 = vpop.f32.mrf.mxu0 }
 0xb5e   : > { %8440 = vrot.lane.b32.xlu0 %v8439_v2, %s9794_s30  ;;  %v8079_v7 = vadd.f32 %v8078_v29, %v8077_v46 }
 0xb5f   : > { %v8080_v15 = vpop.f32.mrf.mxu0 }
 0xb61   : > { %v8081_v4 = vpop.f32.mrf.mxu0 }
 0xb62   : > { %v8082_v16 = vadd.f32 %v8081_v4, %v8080_v15  ;;  %8450 = vrot.lane.b32.xlu0 %v16713_v50, %s9798_s3  ;;  %v16736_v50 = vld [vmem:[#allocation154_spill] sm:$0xff] }
 0xb63   : > { %v8083_v60 = vpop.f32.mrf.mxu0 }
 0xb64   : > { %v8444_v48 = vpack.i.bf16 %v8082_v16, %v8079_v7 }
 0xb65   : > { %v8084_v58 = vpop.f32.mrf.mxu0 }
 0xb66   : > { %8445 = vrot.lane.b32.xlu1 %v8444_v48, %s9794_s30  ;;  %8460 = vrot.lane.b32.xlu0 %v16716_v61, %s9796_s24  ;;  %v8085_v30 = vadd.f32 %v8084_v58, %v8083_v60  ;;  %v16737_v60 = vpack.i.bf16 %v16735_v27, %v16736_v50  ;;  %v16739_v61 = vld [vmem:[#allocation17_spill] sm:$0xff]  ;;  %v16763_v50 = vld [vmem:[#allocation26_spill] sm:$0xff] }
 0xb67   : > { %v9508_v43 = vpop.eup %9507  ;;  %v8086_v13 = vpop.f32.mrf.mxu0  ;;  %v16762_v27 = vld [vmem:[#allocation45_spill] sm:$0xff] }
 0xb68   : > { %v5386_v38 = vmul.f32 %v9508_v43, %v14326_v22  ;;  %v5385_v62 = vmul.f32 %v9508_v43, %v14324_v35  ;;  %v16720_v35 = vld [vmem:[#allocation160_spill] sm:$0xff]  ;;  %v16740_v43 = vpack.i.bf16 %v16738_v47, %v16739_v61 }
 0xb69   : > { %v9510_v5 = vpop.eup %9509  ;;  %v8087_v19 = vpop.f32.mrf.mxu0  ;;  %v16722_v54 = vpack.i.bf16 %v16720_v35, %v16721_v51  ;;  %v16747_v35 = vld [vmem:[#allocation113_spill] sm:$0xff]  ;;  %v16748_v51 = vld [vmem:[#allocation15_spill] sm:$0xff] }
 0xb6a   : > { %v8088_v33 = vadd.f32 %v8087_v19, %v8086_v13  ;;  %8455 = vrot.lane.b32.xlu1 %v16719_v25, %s9798_s3  ;;  %v5388_v23 = vmul.f32 %v9510_v5, %v14332_v57  ;;  %v5387_v18 = vmul.f32 %v9510_v5, %v14328_v63  ;;  %v16723_v63 = vld [vmem:[#allocation146_spill] sm:$0xff]  ;;  %v16741_v19 = vld [vmem:[#allocation71_spill] sm:$0xff] }
 0xb6b   : > { %v8089_v32 = vpop.f32.mrf.mxu0  ;;  %v16725_v41 = vpack.i.bf16 %v16723_v63, %v16724_v44  ;;  %v16751_v63 = vld [vmem:[#allocation75_spill] sm:$0xff] }
 0xb6c   : > { %v8469_v11 = vpack.i.bf16 %v8088_v33, %v8085_v30  ;;  %v5420_v36 = vpack.c.bf16 %v5388_v23, %v5386_v38  ;;  %v5419_v37 = vpack.c.bf16 %v5387_v18, %v5385_v62  ;;  %v16742_v30 = vld [vmem:[#allocation62_spill] sm:$0xff]  ;;  %v16745_v18 = vld [vmem:[#allocation20_spill] sm:$0xff] }
 0xb6d   : > { %v8090_v22 = vpop.f32.mrf.mxu0  ;;  %v16743_v33 = vpack.i.bf16 %v16741_v19, %v16742_v30  ;;  %v16744_v23 = vld [vmem:[#allocation18_spill] sm:$0xff]  ;;  %v16766_v30 = vld [vmem:[#allocation163_spill] sm:$0xff] }
 0xb6e   : > { %5621 = vmatprep.mubr.bf16.mxu0 %v5420_v36  ;;  %8465 = vrot.lane.b32.xlu1 %v16722_v54, %s9796_s24  ;;  %v8091_v17 = vadd.f32 %v8090_v22, %v8089_v32  ;;  %v16746_v32 = vpack.i.bf16 %v16744_v23, %v16745_v18  ;;  %v16749_v54 = vpack.i.bf16 %v16747_v35, %v16748_v51  ;;  %v16765_v19 = vld [vmem:[#allocation90_spill] sm:$0xff] }
 0xb6f   : > { %8470 = vrot.lane.b32.xlu0 %v8469_v11, %s9794_s30  ;;  %5622 = vmatmul.mubr.bf16.gmra.mxu0 %v5419_v37  ;;  %v8092_v9 = vpop.f32.mrf.mxu0 }
 0xb71   : > { %v8093_v59 = vpop.f32.mrf.mxu0 }
 0xb72   : > { %v8094_v57 = vadd.f32 %v8093_v59, %v8092_v9 }
 0xb73   : > { %8480 = vrot.lane.b32.xlu0 %v16725_v41, %s9798_s3 }
 0xb74   : > { %v8474_v24 = vpack.i.bf16 %v8094_v57, %v8091_v17  ;;  %v16750_v57 = vld [vmem:[#allocation60_spill] sm:$0xff] }
 0xb75   : > { %v16752_v44 = vpack.i.bf16 %v16750_v57, %v16751_v63 }
 0xb76   : > { %8475 = vrot.lane.b32.xlu1 %v8474_v24, %s9794_s30 }
 0xb77   : > { %8490 = vrot.lane.b32.xlu0 %v16728_v12, %s9796_s24  ;;  %v16753_v12 = vld [vmem:[#allocation78_spill] sm:$0xff] }
 0xb78   : > { %v16755_v49 = vpack.i.bf16 %v16753_v12, %v16754_v20 }
 0xb7a   : > { %8485 = vrot.lane.b32.xlu1 %v16731_v8, %s9798_s3 }
 0xb7e   : > { %8495 = vrot.lane.b32.xlu1 %v16734_v45, %s9796_s24  ;;  %v16756_v45 = vld [vmem:[#allocation22_spill] sm:$0xff] }
 0xb97   : > { %v8095_v52 = vpop.f32.mrf.mxu0 }
 0xb99   : > { %v8096_v14 = vpop.f32.mrf.mxu0 }
 0xb9a   : > { %v8097_v46 = vadd.f32 %v8096_v14, %v8095_v52  ;;  %v16757_v52 = vld [vmem:[#allocation140_spill] sm:$0xff] }
 0xb9b   : > { %v8098_v6 = vpop.f32.mrf.mxu0  ;;  %v16758_v14 = vpack.i.bf16 %v16756_v45, %v16757_v52  ;;  %v16774_v45 = vld [vmem:[#allocation96_spill] sm:$0xff]  ;;  %v16775_v52 = vld [vmem:[#allocation165_spill] sm:$0xff] }
 0xb9d   : > { %v8099_v56 = vpop.f32.mrf.mxu0 }
 0xb9e   : > { %v8100_v40 = vadd.f32 %v8099_v56, %v8098_v6  ;;  %v8421_v56 = vpop.permute.xlu1 %8420 }
 0xb9f   : > { %v8101_v2 = vpop.f32.mrf.mxu0  ;;  %v8423_v47 = vunpack.i.h.bf16 %v8421_v56  ;;  %v8422_v61 = vunpack.i.l.bf16 %v8421_v56  ;;  %v16777_v56 = vld [vmem:[#allocation47_spill] sm:$0xff] }
 0xba0   : > { %v8499_v29 = vpack.i.bf16 %v8100_v40, %v8097_v46 }
 0xba1   : > { %v8102_v15 = vpop.f32.mrf.mxu0 }
 0xba2   : > { %8500 = vrot.lane.b32.xlu0 %v8499_v29, %s9794_s30  ;;  %v8103_v16 = vadd.f32 %v8102_v15, %v8101_v2  ;;  %v16759_v29 = vld [vmem:[#allocation81_spill] sm:$0xff] }
 0xba3   : > { %v8104_v4 = vpop.f32.mrf.mxu0  ;;  %v16760_v15 = vld [vmem:[#allocation161_spill] sm:$0xff] }
 0xba5   : > { %v8105_v7 = vpop.f32.mrf.mxu0 }
 0xba6   : > { %v8106_v39 = vadd.f32 %v8105_v7, %v8104_v4  ;;  %8510 = vrot.lane.b32.xlu0 %v16737_v60, %s9798_s3  ;;  %v16761_v4 = vpack.i.bf16 %v16759_v29, %v16760_v15  ;;  %v16764_v60 = vpack.i.bf16 %v16762_v27, %v16763_v50 }
 0xba7   : > { %v8107_v48 = vpop.f32.mrf.mxu0 }
 0xba8   : > { %v8504_v58 = vpack.i.bf16 %v8106_v39, %v8103_v16 }
 0xba9   : > { %v8108_v21 = vpop.f32.mrf.mxu0 }
 0xbaa   : > { %8520 = vrot.lane.b32.xlu0 %v16740_v43, %s9796_s24  ;;  %8505 = vrot.lane.b32.xlu1 %v8504_v58, %s9794_s30  ;;  %v8109_v62 = vadd.f32 %v8108_v21, %v8107_v48  ;;  %v8431_v48 = vpop.permute.xlu1 %8430  ;;  %v8426_v21 = vpop.permute.xlu0 %8425 }
 0xbab   : > { %v8110_v13 = vpop.f32.mrf.mxu0  ;;  %v8427_v12 = vunpack.i.l.bf16 %v8426_v21 }
 0xbad   : > { %v8111_v38 = vpop.f32.mrf.mxu0 }
 0xbae   : > { %v8112_v5 = vadd.f32 %v8111_v38, %v8110_v13  ;;  %8515 = vrot.lane.b32.xlu1 %v16743_v33, %s9798_s3  ;;  %v8433_v13 = vunpack.i.h.bf16 %v8431_v48  ;;  %v8432_v38 = vunpack.i.l.bf16 %v8431_v48  ;;  %v16767_v33 = vpack.i.bf16 %v16765_v19, %v16766_v30  ;;  %v8436_v63 = vpop.permute.xlu1 %8435 }
 0xbaf   : > { %v8113_v42 = vpop.f32.mrf.mxu0 }
 0xbb0   : > { %v8529_v0 = vpack.i.bf16 %v8112_v5, %v8109_v62 }
 0xbb1   : > { %v8114_v25 = vpop.f32.mrf.mxu0 }
 0xbb2   : > { %8525 = vrot.lane.b32.xlu1 %v16746_v32, %s9796_s24  ;;  %8530 = vrot.lane.b32.xlu0 %v8529_v0, %s9794_s30  ;;  %v8115_v37 = vadd.f32 %v8114_v25, %v8113_v42  ;;  %v16768_v42 = vld [vmem:[#allocation49_spill] sm:$0xff]  ;;  %v16769_v0 = vld [vmem:[#allocation67_spill] sm:$0xff] }
 0xbb3   : > { %v8116_v11 = vpop.f32.mrf.mxu0  ;;  %v7596_v25 = vadd.f32 %v16769_v0, %v16768_v42 }
 0xbb5   : > { %v8117_v36 = vpop.f32.mrf.mxu0 }
 0xbb6   : > { %v8118_v22 = vadd.f32 %v8117_v36, %v8116_v11  ;;  %8540 = vrot.lane.b32.xlu0 %v16749_v54, %s9798_s3  ;;  %v6015_v11 = vsel %vm1429_vm1, %v7596_v25, %v8423_v47  ;;  %v16770_v36 = vld [vmem:[#allocation54_spill] sm:$0xff]  ;;  %v16783_v25 = vld [vmem:[#allocation40_spill] sm:$0xff] }
 0xbb7   : > { %v8119_v9 = vpop.f32.mrf.mxu0  ;;  %v6048_v54 = vsel %vm6046_vm2, %v6015_v11, %v8433_v13 }
 0xbb8   : > { %v8534_v59 = vpack.i.bf16 %v8118_v22, %v8115_v37  ;;  %v6014_v37 = vsel %vm1429_vm1, %v16770_v36, %v8422_v61 }
 0xbb9   : > { %v8120_v17 = vpop.f32.mrf.mxu0 }
 0xbba   : > { %8550 = vrot.lane.b32.xlu0 %v16752_v44, %s9796_s24  ;;  %8535 = vrot.lane.b32.xlu1 %v8534_v59, %s9794_s30  ;;  %v8121_v3 = vadd.f32 %v8120_v17, %v8119_v9  ;;  %v6047_v9 = vsel %vm6046_vm2, %v6014_v37, %v8432_v38  ;;  %v16771_v59 = vld [vmem:[#allocation23_spill] sm:$0xff] }
 0xbbb   : > { %v8122_v41 = vpop.f32.mrf.mxu0  ;;  %v16772_v17 = vld [vmem:[#allocation119_spill] sm:$0xff] }
 0xbbc   : > { %v16773_v57 = vpack.i.bf16 %v16771_v59, %v16772_v17  ;;  %v16786_v37 = vld [vmem:[#allocation55_spill] sm:$0xff]  ;;  %v16788_v17 = vld [vmem:[#allocation70_spill] sm:$0xff] }
 0xbbd   : > { %v8123_v24 = vpop.f32.mrf.mxu0 }
 0xbbe   : > { %v8124_v1 = vadd.f32 %v8123_v24, %v8122_v41  ;;  %8545 = vrot.lane.b32.xlu1 %v16755_v49, %s9798_s3  ;;  %v8438_v49 = vunpack.i.h.bf16 %v8436_v63 }
 0xbbf   : > { %v8125_v8 = vpop.f32.mrf.mxu0 }
 0xbc0   : > { %v8559_v55 = vpack.i.bf16 %v8124_v1, %v8121_v3  ;;  %v8428_v1 = vunpack.i.h.bf16 %v8426_v21  ;;  %v16781_v21 = vld [vmem:[#allocation145_spill] sm:$0xff] }
 0xbc1   : > { %v8126_v34 = vpop.f32.mrf.mxu0 }
 0xbc2   : > { %8555 = vrot.lane.b32.xlu1 %v16758_v14, %s9796_s24  ;;  %8560 = vrot.lane.b32.xlu0 %v8559_v55, %s9794_s30  ;;  %v8127_v40 = vadd.f32 %v8126_v34, %v8125_v8  ;;  %v8437_v8 = vunpack.i.l.bf16 %v8436_v63  ;;  %v16776_v14 = vpack.i.bf16 %v16774_v45, %v16775_v52  ;;  %v16789_v63 = vld [vmem:[#allocation155_spill] sm:$0xff] }
 0xbc3   : > { %v8128_v6 = vpop.f32.mrf.mxu0 }
 0xbc5   : > { %v8129_v46 = vpop.f32.mrf.mxu0 }
 0xbc6   : > { %v8130_v2 = vadd.f32 %v8129_v46, %v8128_v6  ;;  %8570 = vrot.lane.b32.xlu0 %v16761_v4, %s9798_s3  ;;  %v16778_v46 = vld [vmem:[#allocation115_spill] sm:$0xff] }
 0xbc7   : > { %v8131_v7 = vpop.f32.mrf.mxu0 }
 0xbc8   : > { %v8564_v16 = vpack.i.bf16 %v8130_v2, %v8127_v40  ;;  %v7602_v40 = vadd.f32 %v16778_v46, %v16777_v56 }
 0xbc9   : > { %v8132_v39 = vpop.f32.mrf.mxu0 }
 0xbca   : > { %8580 = vrot.lane.b32.xlu0 %v16764_v60, %s9796_s24  ;;  %8565 = vrot.lane.b32.xlu1 %v8564_v16, %s9794_s30  ;;  %v8133_v62 = vadd.f32 %v8132_v39, %v8131_v7  ;;  %v6017_v4 = vsel %vm1429_vm1, %v7602_v40, %v8428_v1  ;;  %v16779_v7 = vld [vmem:[#allocation38_spill] sm:$0xff] }
 0xbcb   : > { %v8134_v58 = vpop.f32.mrf.mxu0  ;;  %v6016_v16 = vsel %vm1429_vm1, %v16779_v7, %v8427_v12  ;;  %v6050_v48 = vsel %vm6046_vm2, %v6017_v4, %v8438_v49  ;;  %v16795_v4 = vld [vmem:[#allocation120_spill] sm:$0xff]  ;;  %v16796_v7 = vld [vmem:[#allocation61_spill] sm:$0xff] }
 0xbcc   : > { %v6049_v60 = vsel %vm6046_vm2, %v6016_v16, %v8437_v8  ;;  %v7614_v16 = vadd.f32 %v16796_v7, %v16795_v4 }
 0xbcd   : > { %v8135_v43 = vpop.f32.mrf.mxu0 }
 0xbce   : > { %v8136_v5 = vadd.f32 %v8135_v43, %v8134_v58  ;;  %8575 = vrot.lane.b32.xlu1 %v16767_v33, %s9798_s3  ;;  %v16780_v58 = vld [vmem:[#allocation28_spill] sm:$0xff] }
 0xbcf   : > { %v8137_v23 = vpop.f32.mrf.mxu0  ;;  %v16782_v47 = vpack.i.bf16 %v16780_v58, %v16781_v21 }
 0xbd0   : > { %v8589_v18 = vpack.i.bf16 %v8136_v5, %v8133_v62  ;;  %v8441_v32 = vpop.permute.xlu0 %8440 }
 0xbd1   : > { %v8138_v22 = vpop.f32.mrf.mxu0  ;;  %v8443_v35 = vunpack.i.h.bf16 %v8441_v32  ;;  %v8442_v51 = vunpack.i.l.bf16 %v8441_v32 }
 0xbd2   : > { %8585 = vrot.lane.b32.xlu1 %v16773_v57, %s9796_s24  ;;  %8590 = vrot.lane.b32.xlu0 %v8589_v18, %s9794_s30  ;;  %v8139_v55 = vadd.f32 %v8138_v22, %v8137_v23  ;;  %v16784_v23 = vld [vmem:[#allocation99_spill] sm:$0xff] }
 0xbd3   : > { %v8140_v44 = vpop.f32.mrf.mxu0  ;;  %v6081_v41 = vsel %vm6079_vm3, %v6048_v54, %v8443_v35  ;;  %v6080_v24 = vsel %vm6079_vm3, %v6047_v9, %v8442_v51  ;;  %v16785_v18 = vpack.i.bf16 %v16783_v25, %v16784_v23  ;;  %v16787_v22 = vld [vmem:[#allocation39_spill] sm:$0xff] }
 0xbd4   : > { %v6112_v3 = vpack.c.bf16 %v6081_v41, %v6080_v24  ;;  %v8451_v6 = vpop.permute.xlu0 %8450  ;;  %v7608_v35 = vadd.f32 %v16787_v22, %v16786_v37 }
 0xbd5   : > { %v8141_v20 = vpop.f32.mrf.mxu0  ;;  %v8453_v30 = vunpack.i.h.bf16 %v8451_v6  ;;  %v8452_v33 = vunpack.i.l.bf16 %v8451_v6 }
 0xbd6   : > { %v8142_v34 = vadd.f32 %v8141_v20, %v8140_v44  ;;  %8600 = vrot.lane.b32.xlu0 %v16776_v14, %s9798_s3  ;;  %8215 = vmatprep.mubr.msk.bf16.mxu0 %vm536_vm0, %v6112_v3  ;;  %v16790_v44 = vld [vmem:[#allocation32_spill] sm:$0xff] }
 0xbd7   : > { %v8143_v2 = vpop.f32.mrf.mxu0  ;;  %v6019_v59 = vsel %vm1429_vm1, %v7608_v35, %v8453_v30  ;;  %v6018_v57 = vsel %vm1429_vm1, %v16788_v17, %v8452_v33  ;;  %v16791_v41 = vpack.i.bf16 %v16789_v63, %v16790_v44 }
 0xbd8   : > { %v8594_v29 = vpack.i.bf16 %v8142_v34, %v8139_v55  ;;  %v8446_v15 = vpop.permute.xlu1 %8445  ;;  %v8461_v62 = vpop.permute.xlu0 %8460 }
 0xbd9   : > { %v8144_v39 = vpop.f32.mrf.mxu0  ;;  %v8448_v27 = vunpack.i.h.bf16 %v8446_v15  ;;  %v8447_v50 = vunpack.i.l.bf16 %v8446_v15  ;;  %v8463_v32 = vunpack.i.h.bf16 %v8461_v62  ;;  %v8462_v11 = vunpack.i.l.bf16 %v8461_v62 }
 0xbda   : > { %8610 = vrot.lane.b32.xlu0 %v16782_v47, %s9796_s24  ;;  %8595 = vrot.lane.b32.xlu1 %v8594_v29, %s9794_s30  ;;  %v8145_v42 = vadd.f32 %v8144_v39, %v8143_v2  ;;  %v16792_v2 = vld [vmem:[#allocation41_spill] sm:$0xff]  ;;  %v16793_v29 = vld [vmem:[#allocation92_spill] sm:$0xff] }
 0xbdb   : > { %v6082_v61 = vsel %vm6079_vm3, %v6049_v60, %v8447_v50  ;;  %v6083_v43 = vsel %vm6079_vm3, %v6050_v48, %v8448_v27  ;;  %v8146_v13 = vpop.f32.mrf.mxu0  ;;  %v6051_v1 = vsel %vm6046_vm2, %v6018_v57, %v8462_v11  ;;  %v6052_v12 = vsel %vm6046_vm2, %v6019_v59, %v8463_v32  ;;  %v16797_v60 = vld [vmem:[#allocation73_spill] sm:$0xff] }
 0xbdc   : > { %v6113_v38 = vpack.c.bf16 %v6083_v43, %v6082_v61  ;;  %v8456_v19 = vpop.permute.xlu1 %8455  ;;  %v16794_v15 = vpack.i.bf16 %v16792_v2, %v16793_v29  ;;  %v16798_v43 = vpack.i.bf16 %v14275_v53, %v14273_v10 }
 0xbdd   : > { %v8147_v5 = vpop.f32.mrf.mxu0  ;;  %v8458_v34 = vunpack.i.h.bf16 %v8456_v19  ;;  %v8457_v45 = vunpack.i.l.bf16 %v8456_v19  ;;  %v16800_v19 = vld [vmem:[#allocation24_spill] sm:$0xff] }
 0xbde   : > { %v8148_v0 = vadd.f32 %v8147_v5, %v8146_v13  ;;  %8605 = vrot.lane.b32.xlu1 %v16785_v18, %s9798_s3  ;;  %8216 = vmatmul.mubr.msk.bf16.vlgmr.msra.gmra.mxu0 %vm536_vm0, %v6113_v38  ;;  %v16799_v5 = vld [vmem:[#allocation53_spill] sm:$0xff] }
 0xbdf   : > { %v8149_v36 = vpop.f32.mrf.mxu0  ;;  %v6021_v50 = vsel %vm1429_vm1, %v7614_v16, %v8458_v34  ;;  %v6020_v48 = vsel %vm1429_vm1, %v16797_v60, %v8457_v45  ;;  %v16801_v30 = vpack.i.bf16 %v16799_v5, %v16800_v19  ;;  %v16805_v34 = vld [vmem:[#allocation95_spill] sm:$0xff]  ;;  %v16806_v45 = vld [vmem:[#allocation80_spill] sm:$0xff] }
 0xbe0   : > { %v8619_v51 = vpack.i.bf16 %v8148_v0, %v8145_v42  ;;  %v8466_v20 = vpop.permute.xlu1 %8465 }
 0xbe1   : > { %v8150_v54 = vpop.f32.mrf.mxu0  ;;  %v8471_v9 = vpop.permute.xlu0 %8470  ;;  %v8468_v56 = vunpack.i.h.bf16 %v8466_v20  ;;  %v8467_v46 = vunpack.i.l.bf16 %v8466_v20 }
 0xbe2   : > { %8615 = vrot.lane.b32.xlu1 %v16791_v41, %s9796_s24  ;;  %8620 = vrot.lane.b32.xlu0 %v8619_v51, %s9794_s30  ;;  %v8473_v24 = vunpack.i.h.bf16 %v8471_v9  ;;  %v8472_v3 = vunpack.i.l.bf16 %v8471_v9  ;;  %v8151_v6 = vadd.f32 %v8150_v54, %v8149_v36  ;;  %v16802_v51 = vld [vmem:[#allocation121_spill] sm:$0xff]  ;;  %v16803_v54 = vld [vmem:[#allocation86_spill] sm:$0xff]  ;;  %v16804_v9 = vld [vmem:[#allocation16_spill] sm:$0xff] }
 0xbe3   : > { %v8152_v49 = vpop.f32.mrf.mxu0  ;;  %v6053_v47 = vsel %vm6046_vm2, %v6020_v48, %v8467_v46  ;;  %v6054_v61 = vsel %vm6046_vm2, %v6021_v50, %v8468_v56  ;;  %v7620_v26 = vadd.f32 %v16803_v54, %v16802_v51  ;;  %v16807_v56 = vld [vmem:[#allocation72_spill] sm:$0xff]  ;;  %v16813_v54 = vld [vmem:[#allocation126_spill] sm:$0xff] }
 0xbe4   : > { %v6084_v8 = vsel %vm6079_vm3, %v6051_v1, %v8472_v3  ;;  %v6085_v55 = vsel %vm6079_vm3, %v6052_v12, %v8473_v24 }
 0xbe5   : > { %v8153_v52 = vpop.f32.mrf.mxu0  ;;  %v6114_v14 = vpack.c.bf16 %v6085_v55, %v6084_v8  ;;  %v8481_v18 = vpop.permute.xlu0 %8480 }
 0xbe6   : > { %v8154_v40 = vadd.f32 %v8153_v52, %v8152_v49  ;;  %8630 = vrot.lane.b32.xlu0 %v16794_v15, %s9798_s3  ;;  %v8483_v11 = vunpack.i.h.bf16 %v8481_v18  ;;  %v8482_v36 = vunpack.i.l.bf16 %v8481_v18  ;;  %v7626_v52 = vadd.f32 %v16806_v45, %v16805_v34 }
 0xbe7   : > { %8219 = vmatprep.mubr.msk.bf16.mxu0 %vm536_vm0, %v6114_v14 }
 0xbe8   : > { %v8624_v39 = vpack.i.bf16 %v8154_v40, %v8151_v6  ;;  %v8476_v27 = vpop.permute.xlu1 %8475  ;;  %v6022_v59 = vsel %vm1429_vm1, %v16804_v9, %v8482_v36  ;;  %v16811_v36 = vld [vmem:[#allocation100_spill] sm:$0xff] }
 0xbe9   : > { %v8478_v58 = vunpack.i.h.bf16 %v8476_v27  ;;  %v8477_v21 = vunpack.i.l.bf16 %v8476_v27  ;;  %v8491_v32 = vpop.permute.xlu0 %8490 }
 0xbea   : > { %8640 = vrot.lane.b32.xlu0 %v16798_v43, %s9796_s24  ;;  %8625 = vrot.lane.b32.xlu1 %v8624_v39, %s9794_s30  ;;  %v8493_v22 = vunpack.i.h.bf16 %v8491_v32  ;;  %v8492_v35 = vunpack.i.l.bf16 %v8491_v32 }
 0xbeb   : > { %v6086_v13 = vsel %vm6079_vm3, %v6053_v47, %v8477_v21  ;;  %v6087_v38 = vsel %vm6079_vm3, %v6054_v61, %v8478_v58  ;;  %v16808_v21 = vld [vmem:[#allocation98_spill] sm:$0xff]  ;;  %v16809_v47 = vld [vmem:[#allocation84_spill] sm:$0xff] }
 0xbec   : > { %v6115_v62 = vpack.c.bf16 %v6087_v38, %v6086_v13  ;;  %v8486_v37 = vpop.permute.xlu1 %8485  ;;  %v6055_v63 = vsel %vm6046_vm2, %v6022_v59, %v8492_v35  ;;  %v7632_v61 = vadd.f32 %v16809_v47, %v16808_v21  ;;  %v16810_v38 = vld [vmem:[#allocation97_spill] sm:$0xff] }
 0xbed   : > { %v8488_v12 = vunpack.i.h.bf16 %v8486_v37  ;;  %v8487_v20 = vunpack.i.l.bf16 %v8486_v37  ;;  %v16812_v37 = vld [vmem:[#allocation87_spill] sm:$0xff] }
 0xbee   : > { %8635 = vrot.lane.b32.xlu1 %v16801_v30, %s9798_s3  ;;  %8220 = vmatmul.mubr.msk.bf16.gmra.mxu0 %vm536_vm0, %v6115_v62 }
 0xbef   : > { %v6025_v6 = vsel %vm1429_vm1, %v7626_v52, %v8488_v12  ;;  %v6024_v46 = vsel %vm1429_vm1, %v16807_v56, %v8487_v20 }
 0xbf0   : > { %v8496_v41 = vpop.permute.xlu1 %8495 }
 0xbf1   : > { %v8498_v8 = vunpack.i.h.bf16 %v8496_v41  ;;  %v8497_v55 = vunpack.i.l.bf16 %v8496_v41 }
 0xbf2   : > { %8645 = vrot.lane.b32.xlu1 %v8644_v31, %s9796_s24  ;;  %v8155_v53 = vpop.f32.mrf.mxu0  ;;  %v6023_v31 = vsel %vm1429_vm1, %v7620_v26, %v8483_v11 }
 0xbf3   : > { %v6056_v44 = vsel %vm6046_vm2, %v6023_v31, %v8493_v22  ;;  %v6057_v29 = vsel %vm6046_vm2, %v6024_v46, %v8497_v55  ;;  %v6058_v15 = vsel %vm6046_vm2, %v6025_v6, %v8498_v8  ;;  %v7638_v22 = vadd.f32 %v16812_v37, %v16811_v36  ;;  %v16814_v8 = vld [vmem:[#allocation107_spill] sm:$0xff]  ;;  %v16815_v55 = vld [vmem:[#allocation56_spill] sm:$0xff] }
 0xbf4   : > { %v8156_v10 = vpop.f32.mrf.mxu0  ;;  %v7644_v34 = vadd.f32 %v16815_v55, %v16814_v8  ;;  %v16816_v6 = vld [vmem:[#allocation43_spill] sm:$0xff]  ;;  %v16823_v55 = vld [vmem:[#allocation133_spill] sm:$0xff] }
 0xbf5   : > { %v8157_v0 = vadd.f32 %v8156_v10, %v8155_v53 }
 0xbf6   : > { %v8158_v33 = vpop.f32.mrf.mxu0 }
 0xbf8   : > { %v8159_v42 = vpop.f32.mrf.mxu0 }
 0xbf9   : > { %v8160_v25 = vadd.f32 %v8159_v42, %v8158_v33 }
 0xbfb   : > { %v8649_v23 = vpack.i.bf16 %v8160_v25, %v8157_v0 }
 0xbfd   : > { %8650 = vrot.lane.b32.xlu0 %v8649_v23, %s9794_s30 }
 0xc14   : > { %v8501_v28 = vpop.permute.xlu0 %8500 }
 0xc15   : > { %v8503_v17 = vunpack.i.h.bf16 %v8501_v28  ;;  %v8502_v57 = vunpack.i.l.bf16 %v8501_v28 }
 0xc17   : > { %v6088_v24 = vsel %vm6079_vm3, %v6055_v63, %v8502_v57  ;;  %v6089_v3 = vsel %vm6079_vm3, %v6056_v44, %v8503_v17 }
 0xc18   : > { %v6116_v1 = vpack.c.bf16 %v6089_v3, %v6088_v24  ;;  %v8511_v49 = vpop.permute.xlu0 %8510 }
 0xc19   : > { %v8513_v27 = vunpack.i.h.bf16 %v8511_v49  ;;  %v8512_v50 = vunpack.i.l.bf16 %v8511_v49 }
 0xc1a   : > { %8223 = vmatprep.mubr.msk.bf16.mxu0 %vm536_vm0, %v6116_v1 }
 0xc1b   : > { %v6027_v13 = vsel %vm1429_vm1, %v7632_v61, %v8513_v27  ;;  %v6026_v62 = vsel %vm1429_vm1, %v16810_v38, %v8512_v50 }
 0xc1c   : > { %v8506_v14 = vpop.permute.xlu1 %8505  ;;  %v8521_v16 = vpop.permute.xlu0 %8520 }
 0xc1d   : > { %v8508_v40 = vunpack.i.h.bf16 %v8506_v14  ;;  %v8507_v2 = vunpack.i.l.bf16 %v8506_v14  ;;  %v8523_v48 = vunpack.i.h.bf16 %v8521_v16  ;;  %v8522_v58 = vunpack.i.l.bf16 %v8521_v16 }
 0xc1f   : > { %v6091_v4 = vsel %vm6079_vm3, %v6058_v15, %v8508_v40  ;;  %v6090_v7 = vsel %vm6079_vm3, %v6057_v29, %v8507_v2  ;;  %v6059_v30 = vsel %vm6046_vm2, %v6026_v62, %v8522_v58  ;;  %v6060_v53 = vsel %vm6046_vm2, %v6027_v13, %v8523_v48  ;;  %v16818_v13 = vld [vmem:[#allocation102_spill] sm:$0xff] }
 0xc20   : > { %v6117_v39 = vpack.c.bf16 %v6091_v4, %v6090_v7  ;;  %v8516_v60 = vpop.permute.xlu1 %8515 }
 0xc21   : > { %v8518_v25 = vunpack.i.h.bf16 %v8516_v60  ;;  %v8517_v23 = vunpack.i.l.bf16 %v8516_v60 }
 0xc22   : > { %8224 = vmatmul.mubr.msk.bf16.gmra.mxu0 %vm536_vm0, %v6117_v39 }
 0xc23   : > { %v6029_v51 = vsel %vm1429_vm1, %v7638_v22, %v8518_v25  ;;  %v6028_v26 = vsel %vm1429_vm1, %v16813_v54, %v8517_v23 }
 0xc24   : > { %v8531_v43 = vpop.permute.xlu0 %8530  ;;  %v8526_v10 = vpop.permute.xlu1 %8525 }
 0xc25   : > { %v8533_v5 = vunpack.i.h.bf16 %v8531_v43  ;;  %v8532_v19 = vunpack.i.l.bf16 %v8531_v43  ;;  %v8528_v32 = vunpack.i.h.bf16 %v8526_v10  ;;  %v8527_v11 = vunpack.i.l.bf16 %v8526_v10  ;;  %v16817_v43 = vld [vmem:[#allocation108_spill] sm:$0xff] }
 0xc26   : > { %v7650_v38 = vadd.f32 %v16818_v13, %v16817_v43  ;;  %v16828_v13 = vld [vmem:[#allocation135_spill] sm:$0xff] }
 0xc27   : > { %v6092_v33 = vsel %vm6079_vm3, %v6059_v30, %v8532_v19  ;;  %v6093_v42 = vsel %vm6079_vm3, %v6060_v53, %v8533_v5  ;;  %v6061_v9 = vsel %vm6046_vm2, %v6028_v26, %v8527_v11  ;;  %v6062_v59 = vsel %vm6046_vm2, %v6029_v51, %v8528_v32  ;;  %v16819_v19 = vld [vmem:[#allocation46_spill] sm:$0xff]  ;;  %v16821_v51 = vld [vmem:[#allocation129_spill] sm:$0xff] }
 0xc28   : > { %v6118_v0 = vpack.c.bf16 %v6093_v42, %v6092_v33  ;;  %v8541_v18 = vpop.permute.xlu0 %8540 }
 0xc29   : > { %v8543_v24 = vunpack.i.h.bf16 %v8541_v18  ;;  %v8542_v3 = vunpack.i.l.bf16 %v8541_v18 }
 0xc2a   : > { %8227 = vmatprep.mubr.msk.bf16.mxu1 %vm536_vm0, %v6118_v0 }
 0xc2b   : > { %v6031_v14 = vsel %vm1429_vm1, %v7644_v34, %v8543_v24  ;;  %v6030_v56 = vsel %vm1429_vm1, %v16816_v6, %v8542_v3  ;;  %v16824_v34 = vld [vmem:[#allocation134_spill] sm:$0xff]  ;;  %v16825_v6 = vld [vmem:[#allocation132_spill] sm:$0xff] }
 0xc2c   : > { %v8536_v35 = vpop.permute.xlu1 %8535  ;;  %v8551_v63 = vpop.permute.xlu0 %8550 }
 0xc2d   : > { %v8538_v28 = vunpack.i.h.bf16 %v8536_v35  ;;  %v8537_v31 = vunpack.i.l.bf16 %v8536_v35  ;;  %v8553_v20 = vunpack.i.h.bf16 %v8551_v63  ;;  %v8552_v49 = vunpack.i.l.bf16 %v8551_v63  ;;  %v16820_v35 = vld [vmem:[#allocation128_spill] sm:$0xff] }
 0xc2e   : > { %v7656_v54 = vadd.f32 %v16821_v51, %v16820_v35  ;;  %v16831_v35 = vld [vmem:[#allocation65_spill] sm:$0xff] }
 0xc2f   : > { %v6095_v17 = vsel %vm6079_vm3, %v6062_v59, %v8538_v28  ;;  %v6094_v57 = vsel %vm6079_vm3, %v6061_v9, %v8537_v31  ;;  %v8161_v44 = vpop.f32.mrf.mxu0  ;;  %v6063_v29 = vsel %vm6046_vm2, %v6030_v56, %v8552_v49  ;;  %v6064_v15 = vsel %vm6046_vm2, %v6031_v14, %v8553_v20  ;;  %v16822_v31 = vld [vmem:[#allocation66_spill] sm:$0xff] }
 0xc30   : > { %v6119_v41 = vpack.c.bf16 %v6095_v17, %v6094_v57  ;;  %v8546_v1 = vpop.permute.xlu1 %8545 }
 0xc31   : > { %v8162_v12 = vpop.f32.mrf.mxu0  ;;  %v8548_v48 = vunpack.i.h.bf16 %v8546_v1  ;;  %v8547_v58 = vunpack.i.l.bf16 %v8546_v1 }
 0xc32   : > { %8228 = vmatmul.mubr.msk.bf16.vlgmr.msra.gmra.mxu1 %vm536_vm0, %v6119_v41  ;;  %v8163_v4 = vadd.f32 %v8162_v12, %v8161_v44 }
 0xc33   : > { %v8164_v45 = vpop.f32.mrf.mxu0  ;;  %v6033_v5 = vsel %vm1429_vm1, %v7650_v38, %v8548_v48  ;;  %v6032_v30 = vsel %vm1429_vm1, %v16819_v19, %v8547_v58  ;;  %v16826_v58 = vld [vmem:[#allocation136_spill] sm:$0xff] }
 0xc34   : > { %v8561_v52 = vpop.permute.xlu0 %8560  ;;  %v8556_v16 = vpop.permute.xlu1 %8555 }
 0xc35   : > { %v8563_v46 = vunpack.i.h.bf16 %v8561_v52  ;;  %v8562_v40 = vunpack.i.l.bf16 %v8561_v52  ;;  %v8165_v2 = vpop.f32.mrf.mxu0  ;;  %v8558_v47 = vunpack.i.h.bf16 %v8556_v16  ;;  %v8557_v61 = vunpack.i.l.bf16 %v8556_v16 }
 0xc36   : > { %v8166_v7 = vadd.f32 %v8165_v2, %v8164_v45  ;;  %v7662_v45 = vadd.f32 %v16824_v34, %v16823_v55  ;;  %v16834_v55 = vld [vmem:[#allocation69_spill] sm:$0xff] }
 0xc37   : > { %v6096_v39 = vsel %vm6079_vm3, %v6063_v29, %v8562_v40  ;;  %v6097_v27 = vsel %vm6079_vm3, %v6064_v15, %v8563_v46  ;;  %v6065_v33 = vsel %vm6046_vm2, %v6032_v30, %v8557_v61  ;;  %v6066_v42 = vsel %vm6046_vm2, %v6033_v5, %v8558_v47 }
 0xc38   : > { %v6120_v50 = vpack.c.bf16 %v6097_v27, %v6096_v39  ;;  %v8654_v60 = vpack.i.bf16 %v8166_v7, %v8163_v4  ;;  %v8571_v21 = vpop.permute.xlu0 %8570 }
 0xc39   : > { %v8573_v32 = vunpack.i.h.bf16 %v8571_v21  ;;  %v8572_v11 = vunpack.i.l.bf16 %v8571_v21  ;;  %v16827_v21 = vld [vmem:[#allocation137_spill] sm:$0xff] }
 0xc3a   : > { %8231 = vmatprep.mubr.msk.bf16.mxu1 %vm536_vm0, %v6120_v50  ;;  %8655 = vrot.lane.b32.xlu1 %v8654_v60, %s9794_s30  ;;  %v7668_v47 = vadd.f32 %v16827_v21, %v16826_v58 }
 0xc3b   : > { %v6035_v28 = vsel %vm1429_vm1, %v7656_v54, %v8573_v32  ;;  %v6034_v9 = vsel %vm1429_vm1, %v16822_v31, %v8572_v11  ;;  %v16829_v32 = vld [vmem:[#allocation112_spill] sm:$0xff]  ;;  %v16830_v11 = vld [vmem:[#allocation13_spill] sm:$0xff] }
 0xc3c   : > { %v8566_v62 = vpop.permute.xlu1 %8565  ;;  %v8581_v23 = vpop.permute.xlu0 %8580 }
 0xc3d   : > { %v8568_v53 = vunpack.i.h.bf16 %v8566_v62  ;;  %v8567_v10 = vunpack.i.l.bf16 %v8566_v62  ;;  %v8583_v37 = vunpack.i.h.bf16 %v8581_v23  ;;  %v8582_v22 = vunpack.i.l.bf16 %v8581_v23 }
 0xc3f   : > { %v6099_v0 = vsel %vm6079_vm3, %v6066_v42, %v8568_v53  ;;  %v6098_v25 = vsel %vm6079_vm3, %v6065_v33, %v8567_v10  ;;  %v6067_v57 = vsel %vm6046_vm2, %v6034_v9, %v8582_v22  ;;  %v6068_v63 = vsel %vm6046_vm2, %v6035_v28, %v8583_v37 }
 0xc40   : > { %v6121_v18 = vpack.c.bf16 %v6099_v0, %v6098_v25  ;;  %v8576_v36 = vpop.permute.xlu1 %8575 }
 0xc41   : > { %v8578_v1 = vunpack.i.h.bf16 %v8576_v36  ;;  %v8577_v12 = vunpack.i.l.bf16 %v8576_v36  ;;  %v7674_v36 = vadd.f32 %v16830_v11, %v16829_v32  ;;  %v16837_v11 = vld [vmem:[#allocation48_spill] sm:$0xff] }
 0xc42   : > { %8232 = vmatmul.mubr.msk.bf16.gmra.mxu1 %vm536_vm0, %v6121_v18 }
 0xc43   : > { %v6037_v14 = vsel %vm1429_vm1, %v7662_v45, %v8578_v1  ;;  %v6036_v56 = vsel %vm1429_vm1, %v16825_v6, %v8577_v12  ;;  %v16832_v1 = vld [vmem:[#allocation89_spill] sm:$0xff]  ;;  %v16833_v12 = vld [vmem:[#allocation59_spill] sm:$0xff] }
 0xc44   : > { %v8591_v26 = vpop.permute.xlu0 %8590  ;;  %v8586_v44 = vpop.permute.xlu1 %8585 }
 0xc45   : > { %v8593_v59 = vunpack.i.h.bf16 %v8591_v26  ;;  %v8592_v17 = vunpack.i.l.bf16 %v8591_v26  ;;  %v8588_v49 = vunpack.i.h.bf16 %v8586_v44  ;;  %v8587_v8 = vunpack.i.l.bf16 %v8586_v44 }
 0xc47   : > { %v6100_v41 = vsel %vm6079_vm3, %v6067_v57, %v8592_v17  ;;  %v6101_v24 = vsel %vm6079_vm3, %v6068_v63, %v8593_v59  ;;  %v6069_v2 = vsel %vm6046_vm2, %v6036_v56, %v8587_v8  ;;  %v6070_v29 = vsel %vm6046_vm2, %v6037_v14, %v8588_v49 }
 0xc48   : > { %v6122_v3 = vpack.c.bf16 %v6101_v24, %v6100_v41  ;;  %v8601_v20 = vpop.permute.xlu0 %8600 }
 0xc49   : > { %v8603_v39 = vunpack.i.h.bf16 %v8601_v20  ;;  %v8602_v27 = vunpack.i.l.bf16 %v8601_v20  ;;  %v7680_v20 = vadd.f32 %v16833_v12, %v16832_v1 }
 0xc4a   : > { %8235 = vmatprep.mubr.msk.bf16.mxu1 %vm536_vm0, %v6122_v3 }
 0xc4b   : > { %v6039_v43 = vsel %vm1429_vm1, %v7668_v47, %v8603_v39  ;;  %v6038_v38 = vsel %vm1429_vm1, %v16828_v13, %v8602_v27  ;;  %v9577_v47 = vld [vmem:[%s9998_s28 + $0x18] sm:$0xff] }
 0xc4c   : > { %v8596_v52 = vpop.permute.xlu1 %8595  ;;  %v8611_v7 = vpop.permute.xlu0 %8610 }
 0xc4d   : > { %v8598_v46 = vunpack.i.h.bf16 %v8596_v52  ;;  %v8597_v40 = vunpack.i.l.bf16 %v8596_v52  ;;  %v8613_v60 = vunpack.i.h.bf16 %v8611_v7  ;;  %v8612_v48 = vunpack.i.l.bf16 %v8611_v7 }
 0xc4f   : > { %v6103_v15 = vsel %vm6079_vm3, %v6070_v29, %v8598_v46  ;;  %v6102_v4 = vsel %vm6079_vm3, %v6069_v2, %v8597_v40  ;;  %v6071_v19 = vsel %vm6046_vm2, %v6038_v38, %v8612_v48  ;;  %v6072_v30 = vsel %vm6046_vm2, %v6039_v43, %v8613_v60  ;;  %v14687_v2 = vld [vmem:[%s15433_s6] ss:$0 sm:$0xff] }
 0xc50   : > { %v6123_v16 = vpack.c.bf16 %v6103_v15, %v6102_v4  ;;  %v8606_v50 = vpop.permute.xlu1 %8605  ;;  %v9576_v60 = vld [vmem:[%s9998_s28] sm:$0xff] }
 0xc51   : > { %v8608_v0 = vunpack.i.h.bf16 %v8606_v50  ;;  %v8607_v25 = vunpack.i.l.bf16 %v8606_v50 }
 0xc52   : > { %8236 = vmatmul.mubr.msk.bf16.gmra.mxu1 %vm536_vm0, %v6123_v16  ;;  %v9575_v16 = vld [vmem:[%s9998_s28 + $0x10] sm:$0xff] }
 0xc53   : > { %v6041_v22 = vsel %vm1429_vm1, %v7674_v36, %v8608_v0  ;;  %v6040_v51 = vsel %vm1429_vm1, %v16831_v35, %v8607_v25 }
 0xc54   : > { %v8621_v61 = vpop.permute.xlu0 %8620  ;;  %v8616_v53 = vpop.permute.xlu1 %8615 }
 0xc55   : > { %v8623_v62 = vunpack.i.h.bf16 %v8621_v61  ;;  %v8622_v5 = vunpack.i.l.bf16 %v8621_v61  ;;  %v8618_v23 = vunpack.i.h.bf16 %v8616_v53  ;;  %v8617_v18 = vunpack.i.l.bf16 %v8616_v53 }
 0xc57   : > { %v6104_v10 = vsel %vm6079_vm3, %v6071_v19, %v8622_v5  ;;  %v6105_v33 = vsel %vm6079_vm3, %v6072_v30, %v8623_v62  ;;  %v6073_v28 = vsel %vm6046_vm2, %v6040_v51, %v8617_v18  ;;  %v6074_v31 = vsel %vm6046_vm2, %v6041_v22, %v8618_v23  ;;  %v9578_v62 = vld [vmem:[%s9998_s28 + $0x8] sm:$0xff] }
 0xc58   : > { %v6124_v42 = vpack.c.bf16 %v6105_v33, %v6104_v10  ;;  %v8631_v57 = vpop.permute.xlu0 %8630  ;;  %v16835_v33 = vld [vmem:[#allocation94_spill] sm:$0xff] }
 0xc59   : > { %v8633_v44 = vunpack.i.h.bf16 %v8631_v57  ;;  %v8632_v41 = vunpack.i.l.bf16 %v8631_v57  ;;  %v9579_v57 = vld [vmem:[%s9998_s28 + $0x30] sm:$0xff] }
 0xc5a   : > { %8239 = vmatprep.mubr.msk.bf16.mxu1 %vm536_vm0, %v6124_v42  ;;  %v16836_v42 = vld [vmem:[#allocation68_spill] sm:$0xff] }
 0xc5b   : > { %v6043_v8 = vsel %vm1429_vm1, %v7680_v20, %v8633_v44  ;;  %v6042_v34 = vsel %vm1429_vm1, %v16834_v55, %v8632_v41  ;;  %v7686_v0 = vadd.f32 %v16836_v42, %v16835_v33  ;;  %v9581_v20 = vld [vmem:[%s9998_s28 + $0x38] sm:$0xff]  ;;  %v9587_v42 = vld [vmem:[%s9998_s28 + $0x70] sm:$0xff] }
 0xc5c   : > { %v8626_v37 = vpop.permute.xlu1 %8625  ;;  %v8641_v63 = vpop.permute.xlu0 %8640 }
 0xc5d   : > { %v8628_v54 = vunpack.i.h.bf16 %v8626_v37  ;;  %v8627_v26 = vunpack.i.l.bf16 %v8626_v37  ;;  %v8643_v24 = vunpack.i.h.bf16 %v8641_v63  ;;  %v8642_v3 = vunpack.i.l.bf16 %v8641_v63 }
 0xc5f   : > { %v6107_v9 = vsel %vm6079_vm3, %v6074_v31, %v8628_v54  ;;  %v6106_v59 = vsel %vm6079_vm3, %v6073_v28, %v8627_v26  ;;  %v6075_v14 = vsel %vm6046_vm2, %v6042_v34, %v8642_v3  ;;  %v6076_v6 = vsel %vm6046_vm2, %v6043_v8, %v8643_v24  ;;  %v9580_v24 = vld [vmem:[%s9998_s28 + $0x20] sm:$0xff]  ;;  %v9582_v34 = vld [vmem:[%s9998_s28 + $0x28] sm:$0xff] }
 0xc60   : > { %v6125_v17 = vpack.c.bf16 %v6107_v9, %v6106_v59  ;;  %v8636_v7 = vpop.permute.xlu1 %8635 }
 0xc61   : > { %v8638_v19 = vunpack.i.h.bf16 %v8636_v7  ;;  %v8637_v30 = vunpack.i.l.bf16 %v8636_v7 }
 0xc62   : > { %8240 = vmatmul.mubr.msk.bf16.gmra.mxu1 %vm536_vm0, %v6125_v17 }
 0xc63   : > { %v6045_v18 = vsel %vm1429_vm1, %v7686_v0, %v8638_v19  ;;  %v6044_v36 = vsel %vm1429_vm1, %v16837_v11, %v8637_v30 }
 0xc64   : > { %v8646_v38 = vpop.permute.xlu1 %8645 }
 0xc65   : > { %v8648_v25 = vunpack.i.h.bf16 %v8646_v38  ;;  %v8647_v23 = vunpack.i.l.bf16 %v8646_v38 }
 0xc67   : > { %v6077_v51 = vsel %vm6046_vm2, %v6044_v36, %v8647_v23  ;;  %v6078_v54 = vsel %vm6046_vm2, %v6045_v18, %v8648_v25  ;;  %v9588_v18 = vld [vmem:[%s9998_s28 + $0x60] sm:$0xff] }
 0xc6f   : > { %v8651_v49 = vpop.permute.xlu0 %8650 }
 0xc70   : > { %v8653_v45 = vunpack.i.h.bf16 %v8651_v49  ;;  %v8652_v52 = vunpack.i.l.bf16 %v8651_v49 }
 0xc72   : > { %v6108_v56 = vsel %vm6079_vm3, %v6075_v14, %v8652_v52  ;;  %v6109_v46 = vsel %vm6079_vm3, %v6076_v6, %v8653_v45 }
 0xc73   : > { %v6126_v40 = vpack.c.bf16 %v6109_v46, %v6108_v56 }
 0xc75   : > { %8243 = vmatprep.mubr.msk.bf16.mxu1 %vm536_vm0, %v6126_v40 }
 0xc9e   : > { %v8217_v29 = vpop.f32.mrf.mxu0 }
 0xc9f   : > { %v6258_v15 = vadd.f32 %v8217_v29, %v14687_v2  ;;  %v9583_v29 = vld [vmem:[%s9998_s28 + $0x50] sm:$0xff] }
 0xca0   : > { %v6249_v4 = vpop.f32.mrf.mxu0 }
 0xca1   : > { %v14699_v39 = vadd.f32 %v9575_v16, %v6258_v15  ;;  %v6250_v27 = vadd.f32 %v14687_v2, %v6249_v4  ;;  %v9584_v16 = vld [vmem:[%s9998_s28 + $0x40] sm:$0xff] }
 0xca2   : > { %v8218_v50 = vpop.f32.mrf.mxu0 }
 0xca3   : > { %6410 = vst.msk [vmem:[%s14696_s15 + $0x10] sm:$0xff] %vm536_vm0, %v14699_v39  ;;  %v14706_v48 = vadd.f32 %v9576_v60, %v6250_v27  ;;  %v6261_v58 = vadd.f32 %v8218_v50, %v14687_v2  ;;  %v6446_v10 = vsel %vm536_vm0, %v14699_v39, 0.0 }
 0xca4   : > { %v6252_v21 = vpop.f32.mrf.mxu0 }
 0xca5   : > { %6408 = vst.msk [vmem:[%s14696_s15] sm:$0xff] %vm536_vm0, %v14706_v48  ;;  %v14713_v61 = vadd.f32 %v9577_v47, %v6261_v58  ;;  %v6253_v43 = vadd.f32 %v14687_v2, %v6252_v21  ;;  %v6440_v13 = vsel %vm536_vm0, %v14706_v48, 0.0  ;;  %v9585_v58 = vld [vmem:[%s9998_s28 + $0x58] sm:$0xff] }
 0xca6   : > { %6441 = vadd.xlane.f32.xlu0 %v6440_v13  ;;  %v9586_v13 = vld [vmem:[%s9998_s28 + $0x48] sm:$0xff] }
 0xca7   : > { %6411 = vst.msk [vmem:[%s14696_s15 + $0x18] sm:$0xff] %vm536_vm0, %v14713_v61  ;;  %v14722_v5 = vadd.f32 %v9578_v62, %v6253_v43  ;;  %v6449_v35 = vsel %vm536_vm0, %v14713_v61, 0.0 }
 0xca9   : > { %6409 = vst.msk [vmem:[%s14696_s15 + $0x8] sm:$0xff] %vm536_vm0, %v14722_v5  ;;  %v6443_v53 = vsel %vm536_vm0, %v14722_v5, 0.0 }
 0xcaa   : > { %6444 = vadd.xlane.f32.xlu1 %v6443_v53  ;;  %6447 = vadd.xlane.f32.xlu0 %v6446_v10 }
 0xcac   : > { %v8656_v32 = vpop.permute.xlu1 %8655 }
 0xcad   : > { %v8658_v37 = vunpack.i.h.bf16 %v8656_v32  ;;  %v8657_v22 = vunpack.i.l.bf16 %v8656_v32 }
 0xcae   : > { %v8221_v26 = vpop.f32.mrf.mxu0  ;;  %6450 = vadd.xlane.f32.xlu0 %v6449_v35 }
 0xcaf   : > { %v6111_v28 = vsel %vm6079_vm3, %v6078_v54, %v8658_v37  ;;  %v6110_v31 = vsel %vm6079_vm3, %v6077_v51, %v8657_v22  ;;  %v6274_v9 = vadd.f32 %v8221_v26, %v14687_v2  ;;  %v9589_v37 = vld [vmem:[%s9998_s28 + $0x78] sm:$0xff]  ;;  %v9590_v54 = vld [vmem:[%s9998_s28 + $0x68] sm:$0xff] }
 0xcb0   : > { %v6127_v59 = vpack.c.bf16 %v6111_v28, %v6110_v31  ;;  %v6265_v17 = vpop.f32.mrf.mxu0 }
 0xcb1   : > { %v14744_v63 = vadd.f32 %v9579_v57, %v6274_v9  ;;  %v6266_v44 = vadd.f32 %v14687_v2, %v6265_v17 }
 0xcb2   : > { %8244 = vmatmul.mubr.msk.bf16.gmra.mxu1 %vm536_vm0, %v6127_v59  ;;  %v8222_v41 = vpop.f32.mrf.mxu0 }
 0xcb3   : > { %6414 = vst.msk [vmem:[%s14696_s15 + $0x30] sm:$0xff] %vm536_vm0, %v14744_v63  ;;  %v14752_v3 = vadd.f32 %v9580_v24, %v6266_v44  ;;  %v6277_v1 = vadd.f32 %v8222_v41, %v14687_v2  ;;  %v6458_v52 = vsel %vm536_vm0, %v14744_v63, 0.0  ;;  %v9591_v44 = vld [vmem:[%s9998_s28 + $0x90] sm:$0xff] }
 0xcb4   : > { %v6268_v12 = vpop.f32.mrf.mxu0 }
 0xcb5   : > { %6412 = vst.msk [vmem:[%s14696_s15 + $0x20] sm:$0xff] %vm536_vm0, %v14752_v3  ;;  %v14759_v49 = vadd.f32 %v9581_v20, %v6277_v1  ;;  %v6269_v8 = vadd.f32 %v14687_v2, %v6268_v12  ;;  %v6452_v55 = vsel %vm536_vm0, %v14752_v3, 0.0  ;;  %v9592_v12 = vld [vmem:[%s9998_s28 + $0x80] sm:$0xff] }
 0xcb6   : > { %6453 = vadd.xlane.f32.xlu1 %v6452_v55 }
 0xcb7   : > { %6415 = vst.msk [vmem:[%s14696_s15 + $0x38] sm:$0xff] %vm536_vm0, %v14759_v49  ;;  %v14768_v45 = vadd.f32 %v9582_v34, %v6269_v8  ;;  %v6461_v6 = vsel %vm536_vm0, %v14759_v49, 0.0  ;;  %v9593_v34 = vld [vmem:[%s9998_s28 + $0x98] sm:$0xff] }
 0xcb9   : > { %6413 = vst.msk [vmem:[%s14696_s15 + $0x28] sm:$0xff] %vm536_vm0, %v14768_v45  ;;  %v6455_v14 = vsel %vm536_vm0, %v14768_v45, 0.0 }
 0xcba   : > { %6459 = vadd.xlane.f32.xlu1 %v6458_v52  ;;  %6456 = vadd.xlane.f32.xlu0 %v6455_v14 }
 0xcbe   : > { %6462 = vadd.xlane.f32.xlu0 %v6461_v6 }
 0xce2   : > { %v8225_v56 = vpop.f32.mrf.mxu0 }
 0xce3   : > { %v6290_v46 = vadd.f32 %v8225_v56, %v14687_v2  ;;  %v9594_v56 = vld [vmem:[%s9998_s28 + $0x88] sm:$0xff] }
 0xce4   : > { %v6281_v40 = vpop.f32.mrf.mxu0 }
 0xce5   : > { %v14781_v15 = vadd.f32 %v9583_v29, %v6290_v46  ;;  %v6282_v4 = vadd.f32 %v14687_v2, %v6281_v40 }
 0xce6   : > { %v8226_v7 = vpop.f32.mrf.mxu0 }
 0xce7   : > { %6418 = vst.msk [vmem:[%s14696_s15 + $0x50] sm:$0xff] %vm536_vm0, %v14781_v15  ;;  %v14788_v27 = vadd.f32 %v9584_v16, %v6282_v4  ;;  %v6293_v50 = vadd.f32 %v8226_v7, %v14687_v2  ;;  %v6470_v62 = vsel %vm536_vm0, %v14781_v15, 0.0 }
 0xce8   : > { %v6284_v60 = vpop.f32.mrf.mxu0 }
 0xce9   : > { %6416 = vst.msk [vmem:[%s14696_s15 + $0x40] sm:$0xff] %vm536_vm0, %v14788_v27  ;;  %v14795_v21 = vadd.f32 %v9585_v58, %v6293_v50  ;;  %v6285_v47 = vadd.f32 %v14687_v2, %v6284_v60  ;;  %v6464_v43 = vsel %vm536_vm0, %v14788_v27, 0.0  ;;  %v9595_v60 = vld [vmem:[%s9998_s28 + $0xb0] sm:$0xff] }
 0xcea   : > { %6465 = vadd.xlane.f32.xlu1 %v6464_v43 }
 0xceb   : > { %6419 = vst.msk [vmem:[%s14696_s15 + $0x58] sm:$0xff] %vm536_vm0, %v14795_v21  ;;  %v14804_v38 = vadd.f32 %v9586_v13, %v6285_v47  ;;  %v6473_v30 = vsel %vm536_vm0, %v14795_v21, 0.0  ;;  %v9596_v13 = vld [vmem:[%s9998_s28 + $0xa0] sm:$0xff] }
 0xced   : > { %6417 = vst.msk [vmem:[%s14696_s15 + $0x48] sm:$0xff] %vm536_vm0, %v14804_v38  ;;  %v6467_v19 = vsel %vm536_vm0, %v14804_v38, 0.0 }
 0xcee   : > { %6471 = vadd.xlane.f32.xlu1 %v6470_v62  ;;  %6468 = vadd.xlane.f32.xlu0 %v6467_v19 }
 0xcf2   : > { %v8229_v53 = vpop.f32.mrf.mxu1  ;;  %6474 = vadd.xlane.f32.xlu0 %v6473_v30 }
 0xcf3   : > { %v6306_v10 = vadd.f32 %v8229_v53, %v14687_v2  ;;  %v9597_v53 = vld [vmem:[%s9998_s28 + $0xb8] sm:$0xff] }
 0xcf4   : > { %v6297_v33 = vpop.f32.mrf.mxu1 }
 0xcf5   : > { %v14817_v0 = vadd.f32 %v9587_v42, %v6306_v10  ;;  %v6298_v25 = vadd.f32 %v14687_v2, %v6297_v33 }
 0xcf6   : > { %v8230_v23 = vpop.f32.mrf.mxu1 }
 0xcf7   : > { %6422 = vst.msk [vmem:[%s14696_s15 + $0x70] sm:$0xff] %vm536_vm0, %v14817_v0  ;;  %v14824_v32 = vadd.f32 %v9588_v18, %v6298_v25  ;;  %v6309_v11 = vadd.f32 %v8230_v23, %v14687_v2  ;;  %v6482_v28 = vsel %vm536_vm0, %v14817_v0, 0.0  ;;  %v9598_v25 = vld [vmem:[%s9998_s28 + $0xa8] sm:$0xff] }
 0xcf8   : > { %v6300_v36 = vpop.f32.mrf.mxu1 }
 0xcf9   : > { %6420 = vst.msk [vmem:[%s14696_s15 + $0x60] sm:$0xff] %vm536_vm0, %v14824_v32  ;;  %v14831_v22 = vadd.f32 %v9589_v37, %v6309_v11  ;;  %v6301_v35 = vadd.f32 %v14687_v2, %v6300_v36  ;;  %v6476_v51 = vsel %vm536_vm0, %v14824_v32, 0.0 }
 0xcfa   : > { %6477 = vadd.xlane.f32.xlu1 %v6476_v51 }
 0xcfb   : > { %6423 = vst.msk [vmem:[%s14696_s15 + $0x78] sm:$0xff] %vm536_vm0, %v14831_v22  ;;  %v14840_v26 = vadd.f32 %v9590_v54, %v6301_v35  ;;  %v6485_v9 = vsel %vm536_vm0, %v14831_v22, 0.0  ;;  %v9599_v54 = vld [vmem:[%s9998_s28 + $0xd0] sm:$0xff] }
 0xcfd   : > { %6421 = vst.msk [vmem:[%s14696_s15 + $0x68] sm:$0xff] %vm536_vm0, %v14840_v26  ;;  %v6479_v31 = vsel %vm536_vm0, %v14840_v26, 0.0 }
 0xcfe   : > { %6483 = vadd.xlane.f32.xlu1 %v6482_v28  ;;  %6480 = vadd.xlane.f32.xlu0 %v6479_v31 }
 0xd02   : > { %v8233_v59 = vpop.f32.mrf.mxu1  ;;  %6486 = vadd.xlane.f32.xlu0 %v6485_v9 }
 0xd03   : > { %v6322_v17 = vadd.f32 %v8233_v59, %v14687_v2  ;;  %v9600_v59 = vld [vmem:[%s9998_s28 + $0xc0] sm:$0xff] }
 0xd04   : > { %v6313_v57 = vpop.f32.mrf.mxu1 }
 0xd05   : > { %v14853_v41 = vadd.f32 %v9591_v44, %v6322_v17  ;;  %v6314_v24 = vadd.f32 %v14687_v2, %v6313_v57 }
 0xd06   : > { %v8234_v1 = vpop.f32.mrf.mxu1 }
 0xd07   : > { %6426 = vst.msk [vmem:[%s14696_s15 + $0x90] sm:$0xff] %vm536_vm0, %v14853_v41  ;;  %v14860_v20 = vadd.f32 %v9592_v12, %v6314_v24  ;;  %v6325_v8 = vadd.f32 %v8234_v1, %v14687_v2  ;;  %v6494_v40 = vsel %vm536_vm0, %v14853_v41, 0.0  ;;  %v9601_v24 = vld [vmem:[%s9998_s28 + $0xd8] sm:$0xff] }
 0xd08   : > { %v6316_v55 = vpop.f32.mrf.mxu1 }
 0xd09   : > { %6424 = vst.msk [vmem:[%s14696_s15 + $0x80] sm:$0xff] %vm536_vm0, %v14860_v20  ;;  %v14867_v52 = vadd.f32 %v9593_v34, %v6325_v8  ;;  %v6317_v14 = vadd.f32 %v14687_v2, %v6316_v55  ;;  %v6488_v6 = vsel %vm536_vm0, %v14860_v20, 0.0  ;;  %v9602_v55 = vld [vmem:[%s9998_s28 + $0xc8] sm:$0xff] }
 0xd0a   : > { %6489 = vadd.xlane.f32.xlu1 %v6488_v6 }
 0xd0b   : > { %6427 = vst.msk [vmem:[%s14696_s15 + $0x98] sm:$0xff] %vm536_vm0, %v14867_v52  ;;  %v14876_v46 = vadd.f32 %v9594_v56, %v6317_v14  ;;  %v6497_v4 = vsel %vm536_vm0, %v14867_v52, 0.0 }
 0xd0d   : > { %6425 = vst.msk [vmem:[%s14696_s15 + $0x88] sm:$0xff] %vm536_vm0, %v14876_v46  ;;  %v6491_v29 = vsel %vm536_vm0, %v14876_v46, 0.0 }
 0xd0e   : > { %6495 = vadd.xlane.f32.xlu1 %v6494_v40  ;;  %6492 = vadd.xlane.f32.xlu0 %v6491_v29 }
 0xd12   : > { %v8237_v7 = vpop.f32.mrf.mxu1  ;;  %6498 = vadd.xlane.f32.xlu0 %v6497_v4 }
 0xd13   : > { %v6338_v16 = vadd.f32 %v8237_v7, %v14687_v2 }
 0xd14   : > { %v6329_v50 = vpop.f32.mrf.mxu1 }
 0xd15   : > { %v14889_v58 = vadd.f32 %v9595_v60, %v6338_v16  ;;  %v6330_v47 = vadd.f32 %v14687_v2, %v6329_v50 }
 0xd16   : > { %v8238_v43 = vpop.f32.mrf.mxu1 }
 0xd17   : > { %6430 = vst.msk [vmem:[%s14696_s15 + $0xb0] sm:$0xff] %vm536_vm0, %v14889_v58  ;;  %v14896_v62 = vadd.f32 %v9596_v13, %v6330_v47  ;;  %v6341_v19 = vadd.f32 %v8238_v43, %v14687_v2  ;;  %v6506_v18 = vsel %vm536_vm0, %v14889_v58, 0.0  ;;  %v9603_v13 = vld [vmem:[%s9998_s28 + $0xf0] sm:$0xff] }
 0xd18   : > { %v6332_v30 = vpop.f32.mrf.mxu1 }
 0xd19   : > { %6428 = vst.msk [vmem:[%s14696_s15 + $0xa0] sm:$0xff] %vm536_vm0, %v14896_v62  ;;  %v14903_v10 = vadd.f32 %v9597_v53, %v6341_v19  ;;  %v6333_v33 = vadd.f32 %v14687_v2, %v6332_v30  ;;  %v6500_v42 = vsel %vm536_vm0, %v14896_v62, 0.0 }
 0xd1a   : > { %6501 = vadd.xlane.f32.xlu1 %v6500_v42  ;;  %v9604_v42 = vld [vmem:[%s9998_s28 + $0xe0] sm:$0xff] }
 0xd1b   : > { %6431 = vst.msk [vmem:[%s14696_s15 + $0xb8] sm:$0xff] %vm536_vm0, %v14903_v10  ;;  %v14912_v23 = vadd.f32 %v9598_v25, %v6333_v33  ;;  %v6509_v36 = vsel %vm536_vm0, %v14903_v10, 0.0 }
 0xd1d   : > { %6429 = vst.msk [vmem:[%s14696_s15 + $0xa8] sm:$0xff] %vm536_vm0, %v14912_v23  ;;  %v6503_v11 = vsel %vm536_vm0, %v14912_v23, 0.0 }
 0xd1e   : > { %6507 = vadd.xlane.f32.xlu1 %v6506_v18  ;;  %6504 = vadd.xlane.f32.xlu0 %v6503_v11 }
 0xd22   : > { %v8241_v37 = vpop.f32.mrf.mxu1  ;;  %6510 = vadd.xlane.f32.xlu0 %v6509_v36 }
 0xd23   : > { %v6354_v35 = vadd.f32 %v8241_v37, %v14687_v2 }
 0xd24   : > { %v6345_v51 = vpop.f32.mrf.mxu1 }
 0xd25   : > { %v14925_v28 = vadd.f32 %v9599_v54, %v6354_v35  ;;  %v6346_v31 = vadd.f32 %v14687_v2, %v6345_v51  ;;  %v9605_v54 = vld [vmem:[%s9998_s28 + $0xf8] sm:$0xff] }
 0xd26   : > { %v8242_v9 = vpop.f32.mrf.mxu1 }
 0xd27   : > { %6434 = vst.msk [vmem:[%s14696_s15 + $0xd0] sm:$0xff] %vm536_vm0, %v14925_v28  ;;  %v14932_v17 = vadd.f32 %v9600_v59, %v6346_v31  ;;  %v6357_v57 = vadd.f32 %v8242_v9, %v14687_v2  ;;  %v6518_v14 = vsel %vm536_vm0, %v14925_v28, 0.0 }
 0xd28   : > { %v6348_v44 = vpop.f32.mrf.mxu1 }
 0xd29   : > { %6432 = vst.msk [vmem:[%s14696_s15 + $0xc0] sm:$0xff] %vm536_vm0, %v14932_v17  ;;  %v14939_v1 = vadd.f32 %v9601_v24, %v6357_v57  ;;  %v6349_v12 = vadd.f32 %v14687_v2, %v6348_v44  ;;  %v6512_v8 = vsel %vm536_vm0, %v14932_v17, 0.0 }
 0xd2a   : > { %6513 = vadd.xlane.f32.xlu1 %v6512_v8 }
 0xd2b   : > { %6435 = vst.msk [vmem:[%s14696_s15 + $0xd8] sm:$0xff] %vm536_vm0, %v14939_v1  ;;  %v14948_v34 = vadd.f32 %v9602_v55, %v6349_v12  ;;  %v6521_v56 = vsel %vm536_vm0, %v14939_v1, 0.0 }
 0xd2d   : > { %6433 = vst.msk [vmem:[%s14696_s15 + $0xc8] sm:$0xff] %vm536_vm0, %v14948_v34  ;;  %v6515_v6 = vsel %vm536_vm0, %v14948_v34, 0.0 }
 0xd2e   : > { %6519 = vadd.xlane.f32.xlu1 %v6518_v14  ;;  %6516 = vadd.xlane.f32.xlu0 %v6515_v6 }
 0xd2f   : > { %v6442_v40 = vpop.xlane.xlu0 %6441 }
 0xd30   : > { %v6536_v47 = vmul.f32 0.015625, %v6442_v40 }
 0xd32   : > { %6522 = vadd.xlane.f32.xlu0 %v6521_v56  ;;  %v14972_v11 = vsub.f32 %v14706_v48, %v6536_v47  ;;  %v9606_v48 = vld [vmem:[%s9998_s28 + $0xe8] sm:$0xff] }
 0xd33   : > { %v6448_v29 = vpop.xlane.xlu0 %6447  ;;  %v6445_v4 = vpop.xlane.xlu1 %6444 }
 0xd34   : > { %v6537_v36 = vmul.f32 0.015625, %v6445_v4  ;;  %v6538_v35 = vmul.f32 0.015625, %v6448_v29  ;;  %v6600_v12 = vmul.f32 %v14972_v11, %v14972_v11 }
 0xd36   : > { %v14990_v44 = vsub.f32 %v14722_v5, %v6537_v36  ;;  %v14995_v8 = vsub.f32 %v14699_v39, %v6538_v35  ;;  %v6632_v29 = vsel %vm536_vm0, %v6600_v12, 0.0 }
 0xd37   : > { %v6451_v16 = vpop.xlane.xlu0 %6450 }
 0xd38   : > { %v6539_v24 = vmul.f32 0.015625, %v6451_v16 }
 0xd3a   : > { %v15005_v56 = vsub.f32 %v14713_v61, %v6539_v24 }
 0xd3f   : > { %v6454_v50 = vpop.xlane.xlu1 %6453 }
 0xd43   : > { %v6457_v33 = vpop.xlane.xlu0 %6456  ;;  %v6460_v51 = vpop.xlane.xlu1 %6459 }
 0xd44   : > { %v6542_v40 = vmul.f32 0.015625, %v6460_v51  ;;  %v6541_v39 = vmul.f32 0.015625, %v6457_v33 }
 0xd46   : > { %v15018_v47 = vsub.f32 %v14744_v63, %v6542_v40 }
 0xd47   : > { %v6463_v55 = vpop.xlane.xlu0 %6462 }
 0xd72   : > { %v8245_v7 = vpop.f32.mrf.mxu1 }
 0xd73   : > { %v6370_v60 = vadd.f32 %v8245_v7, %v14687_v2  ;;  %v6466_v14 = vpop.xlane.xlu1 %6465 }
 0xd74   : > { %v6361_v43 = vpop.f32.mrf.mxu1 }
 0xd75   : > { %v14961_v19 = vadd.f32 %v9603_v13, %v6370_v60  ;;  %v6362_v30 = vadd.f32 %v14687_v2, %v6361_v43  ;;  %v6602_v60 = vmul.f32 %v14995_v8, %v14995_v8  ;;  %v15021_v43 = vsub.f32 %v14768_v45, %v6541_v39 }
 0xd76   : > { %v8246_v53 = vpop.f32.mrf.mxu1  ;;  %v6603_v13 = vmul.f32 %v15005_v56, %v15005_v56 }
 0xd77   : > { %6438 = vst.msk [vmem:[%s14696_s15 + $0xf0] sm:$0xff] %vm536_vm0, %v14961_v19  ;;  %v14968_v25 = vadd.f32 %v9604_v42, %v6362_v30  ;;  %v6373_v18 = vadd.f32 %v8246_v53, %v14687_v2  ;;  %v6530_v6 = vsel %vm536_vm0, %v14961_v19, 0.0  ;;  %v6469_v7 = vpop.xlane.xlu0 %6468  ;;  %v6472_v61 = vpop.xlane.xlu1 %6471  ;;  %v6544_v30 = vmul.f32 0.015625, %v6466_v14 }
 0xd78   : > { %v6364_v37 = vpop.f32.mrf.mxu1  ;;  %v6638_v33 = vsel %vm536_vm0, %v6602_v60, 0.0  ;;  %v6641_v45 = vsel %vm536_vm0, %v6603_v13, 0.0  ;;  %v6605_v35 = vmul.f32 %v15021_v43, %v15021_v43 }
 0xd79   : > { %6436 = vst.msk [vmem:[%s14696_s15 + $0xe0] sm:$0xff] %vm536_vm0, %v14968_v25  ;;  %v14978_v31 = vadd.f32 %v9605_v54, %v6373_v18  ;;  %v6365_v9 = vadd.f32 %v14687_v2, %v6364_v37  ;;  %v6524_v59 = vsel %vm536_vm0, %v14968_v25, 0.0  ;;  %v6540_v2 = vmul.f32 0.015625, %v6454_v50 }
 0xd7a   : > { %6525 = vadd.xlane.f32.xlu1 %v6524_v59  ;;  %v6601_v50 = vmul.f32 %v14990_v44, %v14990_v44  ;;  %v6606_v37 = vmul.f32 %v15018_v47, %v15018_v47  ;;  %v15038_v51 = vsub.f32 %v14788_v27, %v6544_v30  ;;  %v6546_v54 = vmul.f32 0.015625, %v6472_v61 }
 0xd7b   : > { %6439 = vst.msk [vmem:[%s14696_s15 + $0xf8] sm:$0xff] %vm536_vm0, %v14978_v31  ;;  %v14987_v57 = vadd.f32 %v9606_v48, %v6365_v9  ;;  %v15009_v4 = vsub.f32 %v14752_v3, %v6540_v2  ;;  %v6533_v16 = vsel %vm536_vm0, %v14978_v31, 0.0  ;;  %v6543_v3 = vmul.f32 0.015625, %v6463_v55  ;;  %v6475_v18 = vpop.xlane.xlu0 %6474 }
 0xd7c   : > { %v6635_v53 = vsel %vm536_vm0, %v6601_v50, 0.0  ;;  %v6545_v9 = vmul.f32 0.015625, %v6469_v7  ;;  %v6650_v24 = vsel %vm536_vm0, %v6606_v37, 0.0  ;;  %v6647_v12 = vsel %vm536_vm0, %v6605_v35, 0.0 }
 0xd7d   : > { %6437 = vst.msk [vmem:[%s14696_s15 + $0xe8] sm:$0xff] %vm536_vm0, %v14987_v57  ;;  %v6527_v5 = vsel %vm536_vm0, %v14987_v57, 0.0  ;;  %v6604_v42 = vmul.f32 %v15009_v4, %v15009_v4  ;;  %v15030_v36 = vsub.f32 %v14759_v49, %v6543_v3  ;;  %v6547_v49 = vmul.f32 0.015625, %v6475_v18 }
 0xd7e   : > { %6531 = vadd.xlane.f32.xlu1 %v6530_v6  ;;  %6528 = vadd.xlane.f32.xlu0 %v6527_v5  ;;  %v15046_v55 = vsub.f32 %v14781_v15, %v6546_v54  ;;  %v15049_v27 = vsub.f32 %v14804_v38, %v6545_v9  ;;  %v6608_v5 = vmul.f32 %v15038_v51, %v15038_v51 }
 0xd7f   : > { %v6644_v59 = vsel %vm536_vm0, %v6604_v42, 0.0  ;;  %v6607_v2 = vmul.f32 %v15030_v36, %v15030_v36  ;;  %v15054_v40 = vsub.f32 %v14795_v21, %v6547_v49 }
 0xd80   : > { %v6656_v38 = vsel %vm536_vm0, %v6608_v5, 0.0  ;;  %v6610_v50 = vmul.f32 %v15046_v55, %v15046_v55  ;;  %v6609_v60 = vmul.f32 %v15049_v27, %v15049_v27 }
 0xd81   : > { %v6653_v7 = vsel %vm536_vm0, %v6607_v2, 0.0  ;;  %v6611_v13 = vmul.f32 %v15054_v40, %v15054_v40 }
 0xd82   : > { %6534 = vadd.xlane.f32.xlu0 %v6533_v16  ;;  %6633 = vadd.xlane.f32.xlu1 %v6632_v29 }
 0xd83   : > { %v6478_v63 = vpop.xlane.xlu1 %6477 }
 0xd84   : > { %v6548_v14 = vmul.f32 0.015625, %v6478_v63 }
 0xd86   : > { %6636 = vadd.xlane.f32.xlu0 %v6635_v53  ;;  %6639 = vadd.xlane.f32.xlu1 %v6638_v33  ;;  %v15058_v15 = vsub.f32 %v14824_v32, %v6548_v14  ;;  %v6662_v53 = vsel %vm536_vm0, %v6610_v50, 0.0  ;;  %v6659_v33 = vsel %vm536_vm0, %v6609_v60, 0.0 }
 0xd87   : > { %v6481_v48 = vpop.xlane.xlu0 %6480  ;;  %v6484_v6 = vpop.xlane.xlu1 %6483 }
 0xd88   : > { %v6550_v39 = vmul.f32 0.015625, %v6484_v6  ;;  %v6549_v29 = vmul.f32 0.015625, %v6481_v48  ;;  %v6612_v42 = vmul.f32 %v15058_v15, %v15058_v15  ;;  %v8675_v6 = vld [vmem:[#allocation7 + $0x18] sm:$0xff]  }
 0xd89   : > { %8247 = vmatprep.subr.bf16.mxu1 %v8675_v6 }
 0xd8a   : > { %6645 = vadd.xlane.f32.xlu1 %v6644_v59  ;;  %6642 = vadd.xlane.f32.xlu0 %v6641_v45  ;;  %v15066_v61 = vsub.f32 %v14817_v0, %v6550_v39  ;;  %v15069_v3 = vsub.f32 %v14840_v26, %v6549_v29  ;;  %v6665_v26 = vsel %vm536_vm0, %v6611_v13, 0.0  ;;  %v6668_v59 = vsel %vm536_vm0, %v6612_v42, 0.0 }
 0xd8b   : > { %v6487_v16 = vpop.xlane.xlu0 %6486  ;;  %8248 = vmatpush3.bf16.msra.mxu1 %v8675_v6 }
 0xd8c   : > { %v6551_v32 = vmul.f32 0.015625, %v6487_v16  ;;  %v6614_v45 = vmul.f32 %v15066_v61, %v15066_v61  ;;  %v6613_v37 = vmul.f32 %v15069_v3, %v15069_v3 }
 0xd8e   : > { %6651 = vadd.xlane.f32.xlu1 %v6650_v24  ;;  %6648 = vadd.xlane.f32.xlu0 %v6647_v12  ;;  %v15078_v63 = vsub.f32 %v14831_v22, %v6551_v32  ;;  %v6674_v22 = vsel %vm536_vm0, %v6614_v45, 0.0  ;;  %v6671_v49 = vsel %vm536_vm0, %v6613_v37, 0.0  ;;  %v8677_v32 = vld [vmem:[#allocation7 + $0x8] sm:$0xff]   ;;  %v8678_v45 = vld [vmem:[#allocation7] sm:$0xff]  }
 0xd90   : > { %v6615_v24 = vmul.f32 %v15078_v63, %v15078_v63 }
 0xd92   : > { %6657 = vadd.xlane.f32.xlu1 %v6656_v38  ;;  %6654 = vadd.xlane.f32.xlu0 %v6653_v7  ;;  %v6677_v5 = vsel %vm536_vm0, %v6615_v24, 0.0  ;;  %v8676_v7 = vld [vmem:[#allocation7 + $0x10] sm:$0xff]  }
 0xd93   : > { %v6490_v21 = vpop.xlane.xlu1 %6489  ;;  %8249 = vmatprep.subr.bf16.mxu1 %v8676_v7 }
 0xd94   : > { %v6552_v30 = vmul.f32 0.015625, %v6490_v21  ;;  %8250 = vmatpush3.bf16.msra.mxu1 %v8676_v7 }
 0xd95   : > { %8251 = vmatprep.subr.bf16.mxu1 %v8677_v32 }
 0xd96   : > { %6663 = vadd.xlane.f32.xlu1 %v6662_v53  ;;  %6660 = vadd.xlane.f32.xlu0 %v6659_v33  ;;  %v15086_v35 = vsub.f32 %v14860_v20, %v6552_v30 }
 0xd97   : > { %v6496_v18 = vpop.xlane.xlu1 %6495  ;;  %v6493_v0 = vpop.xlane.xlu0 %6492 }
 0xd98   : > { %v6554_v54 = vmul.f32 0.015625, %v6496_v18  ;;  %v6553_v9 = vmul.f32 0.015625, %v6493_v0  ;;  %v6616_v14 = vmul.f32 %v15086_v35, %v15086_v35  ;;  %8252 = vmatpush3.bf16.msra.mxu1 %v8677_v32 }
 0xd99   : > { %8253 = vmatprep.subr.bf16.mxu1 %v8678_v45 }
 0xd9a   : > { %6669 = vadd.xlane.f32.xlu1 %v6668_v59  ;;  %6666 = vadd.xlane.f32.xlu0 %v6665_v26  ;;  %v15094_v12 = vsub.f32 %v14853_v41, %v6554_v54  ;;  %v15097_v20 = vsub.f32 %v14876_v46, %v6553_v9  ;;  %v6680_v29 = vsel %vm536_vm0, %v6616_v14, 0.0 }
 0xd9b   : > { %v6499_v48 = vpop.xlane.xlu0 %6498 }
 0xd9c   : > { %v6555_v2 = vmul.f32 0.015625, %v6499_v48  ;;  %v6618_v41 = vmul.f32 %v15094_v12, %v15094_v12  ;;  %v6617_v46 = vmul.f32 %v15097_v20, %v15097_v20  ;;  %8254 = vmatpush3.bf16.msra.mxu1 %v8678_v45 }
 0xd9e   : > { %6675 = vadd.xlane.f32.xlu1 %v6674_v22  ;;  %6672 = vadd.xlane.f32.xlu0 %v6671_v49  ;;  %v15103_v39 = vsub.f32 %v14867_v52, %v6555_v2  ;;  %v6686_v50 = vsel %vm536_vm0, %v6618_v41, 0.0  ;;  %v6683_v52 = vsel %vm536_vm0, %v6617_v46, 0.0 }
 0xda0   : > { %v6619_v60 = vmul.f32 %v15103_v39, %v15103_v39 }
 0xda2   : > { %6681 = vadd.xlane.f32.xlu1 %v6680_v29  ;;  %6678 = vadd.xlane.f32.xlu0 %v6677_v5  ;;  %v6689_v18 = vsel %vm536_vm0, %v6619_v60, 0.0 }
 0xda3   : > { %v6502_v16 = vpop.xlane.xlu1 %6501 }
 0xda4   : > { %v6556_v38 = vmul.f32 0.015625, %v6502_v16 }
 0xda6   : > { %v15115_v21 = vsub.f32 %v14896_v62, %v6556_v38  ;;  %6687 = vadd.xlane.f32.xlu1 %v6686_v50  ;;  %6684 = vadd.xlane.f32.xlu0 %v6683_v52 }
 0xda7   : > { %v6508_v13 = vpop.xlane.xlu1 %6507  ;;  %v6505_v30 = vpop.xlane.xlu0 %6504 }
 0xda8   : > { %v6558_v53 = vmul.f32 0.015625, %v6508_v13  ;;  %v6557_v33 = vmul.f32 0.015625, %v6505_v30  ;;  %v6620_v42 = vmul.f32 %v15115_v21, %v15115_v21 }
 0xdaa   : > { %v15121_v0 = vsub.f32 %v14889_v58, %v6558_v53  ;;  %v15124_v62 = vsub.f32 %v14912_v23, %v6557_v33  ;;  %v6692_v26 = vsel %vm536_vm0, %v6620_v42, 0.0  ;;  %6690 = vadd.xlane.f32.xlu0 %v6689_v18 }
 0xdab   : > { %v6511_v37 = vpop.xlane.xlu0 %6510  ;;  %6693 = vadd.xlane.f32.xlu1 %v6692_v26 }
 0xdac   : > { %v6559_v54 = vmul.f32 0.015625, %v6511_v37  ;;  %v6622_v9 = vmul.f32 %v15121_v0, %v15121_v0  ;;  %v6621_v59 = vmul.f32 %v15124_v62, %v15124_v62 }
 0xdae   : > { %v15132_v58 = vsub.f32 %v14903_v10, %v6559_v54  ;;  %v6698_v23 = vsel %vm536_vm0, %v6622_v9, 0.0  ;;  %v6695_v48 = vsel %vm536_vm0, %v6621_v59, 0.0 }
 0xdaf   : > { %6699 = vadd.xlane.f32.xlu1 %v6698_v23  ;;  %6696 = vadd.xlane.f32.xlu0 %v6695_v48 }
 0xdb0   : > { %v6623_v22 = vmul.f32 %v15132_v58, %v15132_v58 }
 0xdb2   : > { %v6701_v49 = vsel %vm536_vm0, %v6623_v22, 0.0 }
 0xdb3   : > { %v6514_v24 = vpop.xlane.xlu1 %6513  ;;  %6702 = vadd.xlane.f32.xlu0 %v6701_v49 }
 0xdb4   : > { %v6560_v2 = vmul.f32 0.015625, %v6514_v24 }
 0xdb6   : > { %v15140_v14 = vsub.f32 %v14932_v17, %v6560_v2 }
 0xdb7   : > { %v6520_v6 = vpop.xlane.xlu1 %6519  ;;  %v6517_v10 = vpop.xlane.xlu0 %6516 }
 0xdb8   : > { %v6562_v5 = vmul.f32 0.015625, %v6520_v6  ;;  %v6561_v29 = vmul.f32 0.015625, %v6517_v10  ;;  %v6624_v41 = vmul.f32 %v15140_v14, %v15140_v14 }
 0xdba   : > { %v15145_v46 = vsub.f32 %v14925_v28, %v6562_v5  ;;  %v15148_v7 = vsub.f32 %v14948_v34, %v6561_v29  ;;  %v6704_v16 = vsel %vm536_vm0, %v6624_v41, 0.0 }
 0xdbb   : > { %6705 = vadd.xlane.f32.xlu1 %v6704_v16  ;;  %v6523_v38 = vpop.xlane.xlu0 %6522 }
 0xdbc   : > { %v6563_v50 = vmul.f32 0.015625, %v6523_v38  ;;  %v6626_v17 = vmul.f32 %v15145_v46, %v15145_v46  ;;  %v6625_v52 = vmul.f32 %v15148_v7, %v15148_v7 }
 0xdbe   : > { %v15156_v60 = vsub.f32 %v14939_v1, %v6563_v50  ;;  %v6710_v28 = vsel %vm536_vm0, %v6626_v17, 0.0  ;;  %v6707_v32 = vsel %vm536_vm0, %v6625_v52, 0.0 }
 0xdbf   : > { %6711 = vadd.xlane.f32.xlu1 %v6710_v28  ;;  %6708 = vadd.xlane.f32.xlu0 %v6707_v32 }
 0xdc0   : > { %v6627_v34 = vmul.f32 %v15156_v60, %v15156_v60 }
 0xdc2   : > { %v6713_v13 = vsel %vm536_vm0, %v6627_v34, 0.0 }
 0xdc3   : > { %6714 = vadd.xlane.f32.xlu0 %v6713_v13 }
 0xe03   : > { %v6526_v30 = vpop.xlane.xlu1 %6525 }
 0xe04   : > { %v6564_v53 = vmul.f32 0.015625, %v6526_v30 }
 0xe06   : > { %v15164_v33 = vsub.f32 %v14968_v25, %v6564_v53 }
 0xe07   : > { %v6532_v42 = vpop.xlane.xlu1 %6531  ;;  %v6529_v1 = vpop.xlane.xlu0 %6528 }
 0xe08   : > { %v6566_v18 = vmul.f32 0.015625, %v6532_v42  ;;  %v6565_v26 = vmul.f32 0.015625, %v6529_v1  ;;  %v6628_v45 = vmul.f32 %v15164_v33, %v15164_v33 }
 0xe0a   : > { %v15169_v37 = vsub.f32 %v14961_v19, %v6566_v18  ;;  %v15172_v54 = vsub.f32 %v14987_v57, %v6565_v26  ;;  %v6716_v9 = vsel %vm536_vm0, %v6628_v45, 0.0 }
 0xe0b   : > { %v6634_v59 = vpop.xlane.xlu1 %6633  ;;  %6717 = vadd.xlane.f32.xlu1 %v6716_v9  ;;  %v6535_v23 = vpop.xlane.xlu0 %6534 }
 0xe0c   : > { %v6728_v25 = vmul.f32 0.015625, %v6634_v59  ;;  %v6567_v48 = vmul.f32 0.015625, %v6535_v23  ;;  %v6630_v22 = vmul.f32 %v15169_v37, %v15169_v37  ;;  %v6629_v49 = vmul.f32 %v15172_v54, %v15172_v54 }
 0xe0e   : > { %v6760_v24 = vadd.f32 1e-05, %v6728_v25  ;;  %v15180_v19 = vsub.f32 %v14978_v31, %v6567_v48  ;;  %v6722_v57 = vsel %vm536_vm0, %v6630_v22, 0.0  ;;  %v6719_v2 = vsel %vm536_vm0, %v6629_v49, 0.0 }
 0xe0f   : > { %6723 = vadd.xlane.f32.xlu1 %v6722_v57  ;;  %v6640_v6 = vpop.xlane.xlu1 %6639  ;;  %6720 = vadd.xlane.f32.xlu0 %v6719_v2  ;;  %v6637_v10 = vpop.xlane.xlu0 %6636  ;;  %v15191_v57 = vld [vmem:[%s15434_s7] ss:$0 sm:$0xff] }
 0xe10   : > { %9511 = vrsqrt.f32 %v6760_v24  ;;  %v6730_v5 = vmul.f32 0.015625, %v6640_v6  ;;  %v6729_v29 = vmul.f32 0.015625, %v6637_v10  ;;  %v6631_v41 = vmul.f32 %v15180_v19, %v15180_v19 }
 0xe12   : > { %v6762_v16 = vadd.f32 1e-05, %v6730_v5  ;;  %v6761_v38 = vadd.f32 1e-05, %v6729_v29  ;;  %v6725_v50 = vsel %vm536_vm0, %v6631_v41, 0.0 }
 0xe13   : > { %v6646_v31 = vpop.xlane.xlu1 %6645  ;;  %6726 = vadd.xlane.f32.xlu0 %v6725_v50  ;;  %v6643_v17 = vpop.xlane.xlu0 %6642 }
 0xe14   : > { %9513 = vrsqrt.f32 %v6762_v16  ;;  %v6732_v52 = vmul.f32 0.015625, %v6646_v31  ;;  %v6731_v28 = vmul.f32 0.015625, %v6643_v17  ;;  %v15199_v17 = vld [vmem:[%s15435_s8] ss:$0 sm:$0xff] }
 0xe15   : > { %9515 = vrsqrt.f32 %v6761_v38 }
 0xe16   : > { %v6764_v32 = vadd.f32 1e-05, %v6732_v52  ;;  %v6763_v34 = vadd.f32 1e-05, %v6731_v28 }
 0xe17   : > { %v6652_v13 = vpop.xlane.xlu1 %6651  ;;  %v6649_v30 = vpop.xlane.xlu0 %6648 }
 0xe18   : > { %9517 = vrsqrt.f32 %v6764_v32  ;;  %v6734_v53 = vmul.f32 0.015625, %v6652_v13  ;;  %v6733_v42 = vmul.f32 0.015625, %v6649_v30 }
 0xe19   : > { %9519 = vrsqrt.f32 %v6763_v34 }
 0xe1a   : > { %v6766_v1 = vadd.f32 1e-05, %v6734_v53  ;;  %v6765_v18 = vadd.f32 1e-05, %v6733_v42 }
 0xe1b   : > { %v6658_v26 = vpop.xlane.xlu1 %6657  ;;  %v6655_v45 = vpop.xlane.xlu0 %6654 }
 0xe1c   : > { %9521 = vrsqrt.f32 %v6766_v1  ;;  %v6736_v9 = vmul.f32 0.015625, %v6658_v26  ;;  %v6735_v59 = vmul.f32 0.015625, %v6655_v45 }
 0xe1d   : > { %v9512_v23 = vpop.eup %9511  ;;  %9523 = vrsqrt.f32 %v6765_v18 }
 0xe1e   : > { %v6768_v25 = vadd.f32 1e-05, %v6736_v9  ;;  %v6767_v48 = vadd.f32 1e-05, %v6735_v59  ;;  %v6824_v24 = vmul.f32 %v9512_v23, %v14972_v11 }
 0xe1f   : > { %v6664_v22 = vpop.xlane.xlu1 %6663  ;;  %v6661_v49 = vpop.xlane.xlu0 %6660 }
 0xe20   : > { %9525 = vrsqrt.f32 %v6768_v25  ;;  %v6738_v2 = vmul.f32 0.015625, %v6664_v22  ;;  %v6737_v6 = vmul.f32 0.015625, %v6661_v49  ;;  %v6863_v11 = vmul.f32 %v15191_v57, %v6824_v24 }
 0xe21   : > { %v9514_v10 = vpop.eup %9513  ;;  %9527 = vrsqrt.f32 %v6767_v48 }
 0xe22   : > { %v9516_v5 = vpop.eup %9515  ;;  %v6770_v29 = vadd.f32 1e-05, %v6738_v2  ;;  %v6769_v41 = vadd.f32 1e-05, %v6737_v6  ;;  %v6826_v16 = vmul.f32 %v9514_v10, %v14995_v8  ;;  %v6902_v26 = vadd.f32 %v15199_v17, %v6863_v11 }
 0xe23   : > { %v6670_v38 = vpop.xlane.xlu1 %6669  ;;  %v6667_v50 = vpop.xlane.xlu0 %6666  ;;  %v6825_v31 = vmul.f32 %v9516_v5, %v14990_v44 }
 0xe24   : > { %9529 = vrsqrt.f32 %v6770_v29  ;;  %v6740_v52 = vmul.f32 0.015625, %v6670_v38  ;;  %v6739_v28 = vmul.f32 0.015625, %v6667_v50  ;;  %v6865_v44 = vmul.f32 %v15191_v57, %v6826_v16 }
 0xe25   : > { %v9518_v32 = vpop.eup %9517  ;;  %9531 = vrsqrt.f32 %v6769_v41  ;;  %v6864_v34 = vmul.f32 %v15191_v57, %v6825_v31 }
 0xe26   : > { %v9520_v13 = vpop.eup %9519  ;;  %v6772_v8 = vadd.f32 1e-05, %v6740_v52  ;;  %v6771_v30 = vadd.f32 1e-05, %v6739_v28  ;;  %v6828_v53 = vmul.f32 %v9518_v32, %v15009_v4 }
 0xe27   : > { %v6827_v42 = vmul.f32 %v9520_v13, %v15005_v56  ;;  %v6676_v1 = vpop.xlane.xlu1 %6675  ;;  %v6673_v18 = vpop.xlane.xlu0 %6672  ;;  %v6903_v45 = vadd.f32 %v15199_v17, %v6864_v34  ;;  %v6904_v56 = vadd.f32 %v15199_v17, %v6865_v44 }
 0xe28   : > { %9533 = vrsqrt.f32 %v6772_v8  ;;  %v6742_v9 = vmul.f32 0.015625, %v6676_v1  ;;  %v6741_v59 = vmul.f32 0.015625, %v6673_v18  ;;  %v6867_v24 = vmul.f32 %v15191_v57, %v6828_v53 }
 0xe29   : > { %v9522_v23 = vpop.eup %9521  ;;  %v6866_v25 = vmul.f32 %v15191_v57, %v6827_v42  ;;  %9535 = vrsqrt.f32 %v6771_v30  ;;  %v6934_v48 = vpack.c.bf16 %v6903_v45, %v6902_v26 }
 0xe2a   : > { %v9524_v22 = vpop.eup %9523  ;;  %v6774_v4 = vadd.f32 1e-05, %v6742_v9  ;;  %v6773_v49 = vadd.f32 1e-05, %v6741_v59  ;;  %v6830_v6 = vmul.f32 %v9522_v23, %v15018_v47  ;;  %v6906_v32 = vadd.f32 %v15199_v17, %v6867_v24 }
 0xe2b   : > { %v6905_v2 = vadd.f32 %v15199_v17, %v6866_v25  ;;  %8255 = vmatprep.mubr.msk.bf16.mxu1 %vm536_vm0, %v6934_v48  ;;  %v6682_v10 = vpop.xlane.xlu1 %6681  ;;  %v6679_v5 = vpop.xlane.xlu0 %6678  ;;  %v6829_v29 = vmul.f32 %v9524_v22, %v15021_v43 }
 0xe2c   : > { %9537 = vrsqrt.f32 %v6774_v4  ;;  %v6744_v41 = vmul.f32 0.015625, %v6682_v10  ;;  %v6743_v16 = vmul.f32 0.015625, %v6679_v5  ;;  %v6869_v8 = vmul.f32 %v15191_v57, %v6830_v6 }
 0xe2d   : > { %v9526_v38 = vpop.eup %9525  ;;  %v6935_v50 = vpack.c.bf16 %v6905_v2, %v6904_v56  ;;  %9539 = vrsqrt.f32 %v6773_v49  ;;  %v6868_v31 = vmul.f32 %v15191_v57, %v6829_v29 }
 0xe2e   : > { %v9528_v11 = vpop.eup %9527  ;;  %v6776_v52 = vadd.f32 1e-05, %v6744_v41  ;;  %v6775_v28 = vadd.f32 1e-05, %v6743_v16  ;;  %v6832_v30 = vmul.f32 %v9526_v38, %v15038_v51  ;;  %v6908_v59 = vadd.f32 %v15199_v17, %v6869_v8 }
 0xe2f   : > { %v6831_v47 = vmul.f32 %v9528_v11, %v15030_v36  ;;  %8256 = vmatmul.mubr.msk.bf16.vlgmr.msra.gmra.mxu1 %vm536_vm0, %v6935_v50  ;;  %v6688_v34 = vpop.xlane.xlu1 %6687  ;;  %v6685_v13 = vpop.xlane.xlu0 %6684  ;;  %v6907_v43 = vadd.f32 %v15199_v17, %v6868_v31 }
 0xe30   : > { %9541 = vrsqrt.f32 %v6776_v52  ;;  %v6746_v53 = vmul.f32 0.015625, %v6688_v34  ;;  %v6745_v44 = vmul.f32 0.015625, %v6685_v13  ;;  %v6871_v25 = vmul.f32 %v15191_v57, %v6832_v30 }
 0xe31   : > { %v9530_v42 = vpop.eup %9529  ;;  %9543 = vrsqrt.f32 %v6775_v28  ;;  %v6936_v1 = vpack.c.bf16 %v6907_v43, %v6906_v32  ;;  %v6870_v18 = vmul.f32 %v15191_v57, %v6831_v47 }
 0xe32   : > { %v9532_v26 = vpop.eup %9531  ;;  %v6778_v36 = vadd.f32 1e-05, %v6746_v53  ;;  %v6777_v45 = vadd.f32 1e-05, %v6745_v44  ;;  %v6834_v48 = vmul.f32 %v9530_v42, %v15046_v55  ;;  %v6910_v55 = vadd.f32 %v15199_v17, %v6871_v25 }
 0xe33   : > { %8259 = vmatprep.mubr.msk.bf16.mxu1 %vm536_vm0, %v6936_v1  ;;  %v6691_v9 = vpop.xlane.xlu0 %6690  ;;  %v6909_v23 = vadd.f32 %v15199_v17, %v6870_v18  ;;  %v6833_v51 = vmul.f32 %v9532_v26, %v15049_v27 }
 0xe34   : > { %9545 = vrsqrt.f32 %v6778_v36  ;;  %v6694_v22 = vpop.xlane.xlu1 %6693  ;;  %v6747_v4 = vmul.f32 0.015625, %v6691_v9  ;;  %v6873_v50 = vmul.f32 %v15191_v57, %v6834_v48 }
 0xe35   : > { %v9534_v49 = vpop.eup %9533  ;;  %9547 = vrsqrt.f32 %v6777_v45  ;;  %v6748_v24 = vmul.f32 0.015625, %v6694_v22  ;;  %v6937_v56 = vpack.c.bf16 %v6909_v23, %v6908_v59  ;;  %v6872_v2 = vmul.f32 %v15191_v57, %v6833_v51 }
 0xe36   : > { %v9536_v6 = vpop.eup %9535  ;;  %v6779_v10 = vadd.f32 1e-05, %v6747_v4  ;;  %v6836_v5 = vmul.f32 %v9534_v49, %v15058_v15  ;;  %v6912_v30 = vadd.f32 %v15199_v17, %v6873_v50 }
 0xe37   : > { %v6835_v29 = vmul.f32 %v9536_v6, %v15054_v40  ;;  %v6780_v27 = vadd.f32 1e-05, %v6748_v24  ;;  %8260 = vmatmul.mubr.msk.bf16.gmra.mxu1 %vm536_vm0, %v6937_v56  ;;  %v6911_v41 = vadd.f32 %v15199_v17, %v6872_v2 }
 0xe38   : > { %9549 = vrsqrt.f32 %v6779_v10  ;;  %v6700_v16 = vpop.xlane.xlu1 %6699  ;;  %v6697_v38 = vpop.xlane.xlu0 %6696  ;;  %v6875_v47 = vmul.f32 %v15191_v57, %v6836_v5 }
 0xe39   : > { %v9538_v31 = vpop.eup %9537  ;;  %9551 = vrsqrt.f32 %v6780_v27  ;;  %v6750_v11 = vmul.f32 0.015625, %v6700_v16  ;;  %v6749_v52 = vmul.f32 0.015625, %v6697_v38  ;;  %v6938_v28 = vpack.c.bf16 %v6911_v41, %v6910_v55 }
 0xe3a   : > { %v9540_v15 = vpop.eup %9539  ;;  %v6838_v40 = vmul.f32 %v9538_v31, %v15066_v61  ;;  %v6874_v32 = vmul.f32 %v15191_v57, %v6835_v29  ;;  %v6914_v26 = vadd.f32 %v15199_v17, %v6875_v47 }
 0xe3b   : > { %v6782_v34 = vadd.f32 1e-05, %v6750_v11  ;;  %v6781_v13 = vadd.f32 1e-05, %v6749_v52  ;;  %8263 = vmatprep.mubr.msk.bf16.mxu1 %vm536_vm0, %v6938_v28  ;;  %v6837_v43 = vmul.f32 %v9540_v15, %v15069_v3 }
 0xe3c   : > { %v6703_v8 = vpop.xlane.xlu0 %6702  ;;  %v6913_v53 = vadd.f32 %v15199_v17, %v6874_v32  ;;  %v6877_v36 = vmul.f32 %v15191_v57, %v6838_v40 }
 0xe3d   : > { %v9542_v44 = vpop.eup %9541  ;;  %9553 = vrsqrt.f32 %v6782_v34  ;;  %v6751_v42 = vmul.f32 0.015625, %v6703_v8  ;;  %v6876_v61 = vmul.f32 %v15191_v57, %v6837_v43 }
 0xe3e   : > { %v9544_v1 = vpop.eup %9543  ;;  %9555 = vrsqrt.f32 %v6781_v13  ;;  %v6939_v18 = vpack.c.bf16 %v6913_v53, %v6912_v30  ;;  %v6840_v59 = vmul.f32 %v9542_v44, %v15086_v35  ;;  %v6916_v4 = vadd.f32 %v15199_v17, %v6877_v36 }
 0xe3f   : > { %v6839_v45 = vmul.f32 %v9544_v1, %v15078_v63  ;;  %v6783_v3 = vadd.f32 1e-05, %v6751_v42  ;;  %v6915_v9 = vadd.f32 %v15199_v17, %v6876_v61 }
 0xe40   : > { %8264 = vmatmul.mubr.msk.bf16.gmra.mxu1 %vm536_vm0, %v6939_v18  ;;  %v6879_v35 = vmul.f32 %v15191_v57, %v6840_v59 }
 0xe41   : > { %v9546_v23 = vpop.eup %9545  ;;  %9557 = vrsqrt.f32 %v6783_v3  ;;  %v6940_v51 = vpack.c.bf16 %v6915_v9, %v6914_v26  ;;  %v6878_v25 = vmul.f32 %v15191_v57, %v6839_v45 }
 0xe42   : > { %v9548_v48 = vpop.eup %9547  ;;  %v6842_v22 = vmul.f32 %v9546_v23, %v15094_v12  ;;  %v6918_v55 = vadd.f32 %v15199_v17, %v6879_v35 }
 0xe43   : > { %8267 = vmatprep.mubr.msk.bf16.mxu1 %vm536_vm0, %v6940_v51  ;;  %v6917_v63 = vadd.f32 %v15199_v17, %v6878_v25  ;;  %v6841_v49 = vmul.f32 %v9548_v48, %v15097_v20 }
 0xe44   : > { %v6706_v24 = vpop.xlane.xlu1 %6705  ;;  %v6881_v12 = vmul.f32 %v15191_v57, %v6842_v22 }
 0xe45   : > { %v9550_v56 = vpop.eup %9549  ;;  %v6752_v2 = vmul.f32 0.015625, %v6706_v24  ;;  %v6941_v6 = vpack.c.bf16 %v6917_v63, %v6916_v4  ;;  %v6880_v10 = vmul.f32 %v15191_v57, %v6841_v49 }
 0xe46   : > { %v9552_v5 = vpop.eup %9551  ;;  %v6843_v29 = vmul.f32 %v9550_v56, %v15103_v39  ;;  %v6920_v28 = vadd.f32 %v15199_v17, %v6881_v12 }
 0xe47   : > { %v6784_v27 = vadd.f32 1e-05, %v6752_v2  ;;  %v6919_v41 = vadd.f32 %v15199_v17, %v6880_v10  ;;  %v6844_v50 = vmul.f32 %v9552_v5, %v15115_v21 }
 0xe48   : > { %v6712_v16 = vpop.xlane.xlu1 %6711  ;;  %8268 = vmatmul.mubr.msk.bf16.gmra.mxu1 %vm536_vm0, %v6941_v6  ;;  %v6709_v20 = vpop.xlane.xlu0 %6708  ;;  %v6882_v38 = vmul.f32 %v15191_v57, %v6843_v29 }
 0xe49   : > { %9559 = vrsqrt.f32 %v6784_v27  ;;  %v6754_v31 = vmul.f32 0.015625, %v6712_v16  ;;  %v6753_v11 = vmul.f32 0.015625, %v6709_v20  ;;  %v6942_v52 = vpack.c.bf16 %v6919_v41, %v6918_v55 }
 0xe4a   : > { %v9554_v39 = vpop.eup %9553  ;;  %v6921_v15 = vadd.f32 %v15199_v17, %v6882_v38  ;;  %v6883_v8 = vmul.f32 %v15191_v57, %v6844_v50 }
 0xe4b   : > { %v9556_v40 = vpop.eup %9555  ;;  %v6846_v32 = vmul.f32 %v9554_v39, %v15121_v0  ;;  %v6786_v47 = vadd.f32 1e-05, %v6754_v31  ;;  %v6785_v34 = vadd.f32 1e-05, %v6753_v11  ;;  %8271 = vmatprep.mubr.msk.bf16.mxu1 %vm536_vm0, %v6942_v52 }
 0xe4c   : > { %v6715_v13 = vpop.xlane.xlu0 %6714  ;;  %v6943_v43 = vpack.c.bf16 %v6921_v15, %v6920_v28  ;;  %v6845_v21 = vmul.f32 %v9556_v40, %v15124_v62  ;;  %v6922_v1 = vadd.f32 %v15199_v17, %v6883_v8 }
 0xe4d   : > { %9561 = vrsqrt.f32 %v6786_v47  ;;  %v6755_v30 = vmul.f32 0.015625, %v6715_v13  ;;  %v6885_v0 = vmul.f32 %v15191_v57, %v6846_v32 }
 0xe4e   : > { %v9558_v53 = vpop.eup %9557  ;;  %9563 = vrsqrt.f32 %v6785_v34  ;;  %v6884_v44 = vmul.f32 %v15191_v57, %v6845_v21 }
 0xe4f   : > { %v6847_v42 = vmul.f32 %v9558_v53, %v15132_v58  ;;  %v6787_v61 = vadd.f32 1e-05, %v6755_v30  ;;  %v6924_v36 = vadd.f32 %v15199_v17, %v6885_v0  ;;  %v15309_v30 = vld [vmem:[#allocation9] ss:$0 sm:$0xff] }
 0xe50   : > { %8272 = vmatmul.mubr.msk.bf16.gmra.mxu1 %vm536_vm0, %v6943_v43  ;;  %v6923_v18 = vadd.f32 %v15199_v17, %v6884_v44 }
 0xe51   : > { %9565 = vrsqrt.f32 %v6787_v61  ;;  %v6886_v62 = vmul.f32 %v15191_v57, %v6847_v42 }
 0xe52   : > { %v6944_v26 = vpack.c.bf16 %v6923_v18, %v6922_v1 }
 0xe53   : > { %v6925_v45 = vadd.f32 %v15199_v17, %v6886_v62 }
 0xe54   : > { %8275 = vmatprep.mubr.msk.bf16.mxu1 %vm536_vm0, %v6944_v26 }
 0xe55   : > { %v6945_v58 = vpack.c.bf16 %v6925_v45, %v6924_v36 }
 0xe56   : > { %v9560_v3 = vpop.eup %9559 }
 0xe57   : > { %v6848_v9 = vmul.f32 %v9560_v3, %v15140_v14 }
 0xe58   : > { %8276 = vmatmul.mubr.msk.bf16.gmra.mxu1 %vm536_vm0, %v6945_v58 }
 0xe59   : > { %v6887_v48 = vmul.f32 %v15191_v57, %v6848_v9 }
 0xe5a   : > { %v9562_v59 = vpop.eup %9561 }
 0xe5b   : > { %v9564_v23 = vpop.eup %9563  ;;  %v6850_v51 = vmul.f32 %v9562_v59, %v15145_v46  ;;  %v6926_v35 = vadd.f32 %v15199_v17, %v6887_v48 }
 0xe5c   : > { %v6849_v25 = vmul.f32 %v9564_v23, %v15148_v7 }
 0xe5d   : > { %v6889_v49 = vmul.f32 %v15191_v57, %v6850_v51 }
 0xe5e   : > { %v9566_v22 = vpop.eup %9565  ;;  %v6888_v4 = vmul.f32 %v15191_v57, %v6849_v25 }
 0xe5f   : > { %v6851_v63 = vmul.f32 %v9566_v22, %v15156_v60  ;;  %v6928_v46 = vadd.f32 %v15199_v17, %v6889_v49 }
 0xe60   : > { %v6927_v24 = vadd.f32 %v15199_v17, %v6888_v4 }
 0xe61   : > { %v6890_v14 = vmul.f32 %v15191_v57, %v6851_v63 }
 0xe62   : > { %v6946_v56 = vpack.c.bf16 %v6927_v24, %v6926_v35 }
 0xe63   : > { %v6929_v7 = vadd.f32 %v15199_v17, %v6890_v14 }
 0xe64   : > { %8279 = vmatprep.mubr.msk.bf16.mxu1 %vm536_vm0, %v6946_v56 }
 0xe65   : > { %v6947_v2 = vpack.c.bf16 %v6929_v7, %v6928_v46 }
 0xe67   : > { %8280 = vmatmul.mubr.msk.bf16.gmra.mxu1 %vm536_vm0, %v6947_v2 }
 0xe94   : > { %v6718_v6 = vpop.xlane.xlu1 %6717 }
 0xe95   : > { %v6756_v60 = vmul.f32 0.015625, %v6718_v6 }
 0xe97   : > { %v6788_v10 = vadd.f32 1e-05, %v6756_v60 }
 0xe98   : > { %v6724_v5 = vpop.xlane.xlu1 %6723  ;;  %v6721_v29 = vpop.xlane.xlu0 %6720 }
 0xe99   : > { %9567 = vrsqrt.f32 %v6788_v10  ;;  %v6758_v12 = vmul.f32 0.015625, %v6724_v5  ;;  %v6757_v27 = vmul.f32 0.015625, %v6721_v29 }
 0xe9b   : > { %v6790_v55 = vadd.f32 1e-05, %v6758_v12  ;;  %v6789_v41 = vadd.f32 1e-05, %v6757_v27 }
 0xe9c   : > { %v6727_v16 = vpop.xlane.xlu0 %6726 }
 0xe9d   : > { %9569 = vrsqrt.f32 %v6790_v55  ;;  %v6759_v20 = vmul.f32 0.015625, %v6727_v16 }
 0xe9e   : > { %9571 = vrsqrt.f32 %v6789_v41 }
 0xe9f   : > { %v6791_v38 = vadd.f32 1e-05, %v6759_v20 }
 0xea1   : > { %9573 = vrsqrt.f32 %v6791_v38 }
 0xea6   : > { %v9568_v50 = vpop.eup %9567 }
 0xea7   : > { %v6852_v31 = vmul.f32 %v9568_v50, %v15164_v33 }
 0xea9   : > { %v6891_v15 = vmul.f32 %v15191_v57, %v6852_v31 }
 0xeaa   : > { %v9570_v11 = vpop.eup %9569 }
 0xeab   : > { %v9572_v52 = vpop.eup %9571  ;;  %v6854_v39 = vmul.f32 %v9570_v11, %v15169_v37  ;;  %v6930_v13 = vadd.f32 %v15199_v17, %v6891_v15 }
 0xeac   : > { %v6853_v28 = vmul.f32 %v9572_v52, %v15172_v54 }
 0xead   : > { %v6893_v34 = vmul.f32 %v15191_v57, %v6854_v39 }
 0xeae   : > { %v9574_v40 = vpop.eup %9573  ;;  %v6892_v32 = vmul.f32 %v15191_v57, %v6853_v28 }
 0xeaf   : > { %v6855_v47 = vmul.f32 %v9574_v40, %v15180_v19  ;;  %v6932_v37 = vadd.f32 %v15199_v17, %v6893_v34 }
 0xeb0   : > { %v6931_v33 = vadd.f32 %v15199_v17, %v6892_v32 }
 0xeb1   : > { %v6894_v43 = vmul.f32 %v15191_v57, %v6855_v47 }
 0xeb2   : > { %v6948_v21 = vpack.c.bf16 %v6931_v33, %v6930_v13 }
 0xeb3   : > { %v6933_v54 = vadd.f32 %v15199_v17, %v6894_v43 }
 0xeb4   : > { %8283 = vmatprep.mubr.msk.bf16.mxu1 %vm536_vm0, %v6948_v21 }
 0xeb5   : > { %v6949_v8 = vpack.c.bf16 %v6933_v54, %v6932_v37 }
 0xeb7   : > { %8284 = vmatmul.mubr.msk.bf16.gmra.mxu1 %vm536_vm0, %v6949_v8 }
 0xeef   : > { %v8257_v19 = vpop.f32.mrf.mxu1 }
 0xef0   : > { %v7080_v57 = vadd.f32 %v8257_v19, %v15309_v30 }
 0xef1   : > { %v7071_v17 = vpop.f32.mrf.mxu1 }
 0xef2   : > { %7200 = vst.msk [vmem:[%s15316_s20 + $0x10] sm:$0xff] %vm536_vm0, %v7080_v57  ;;  %v7072_v53 = vadd.f32 %v15309_v30, %v7071_v17 }
 0xef3   : > { %v8258_v44 = vpop.f32.mrf.mxu1 }
 0xef4   : > { %7198 = vst.msk [vmem:[%s15316_s20] sm:$0xff] %vm536_vm0, %v7072_v53  ;;  %v7083_v42 = vadd.f32 %v8258_v44, %v15309_v30 }
 0xef5   : > { %v7074_v61 = vpop.f32.mrf.mxu1 }
 0xef6   : > { %7201 = vst.msk [vmem:[%s15316_s20 + $0x18] sm:$0xff] %vm536_vm0, %v7083_v42  ;;  %v7075_v0 = vadd.f32 %v15309_v30, %v7074_v61 }
 0xef7   : > { %v8261_v1 = vpop.f32.mrf.mxu1 }
 0xef8   : > { %7199 = vst.msk [vmem:[%s15316_s20 + $0x8] sm:$0xff] %vm536_vm0, %v7075_v0  ;;  %v7096_v18 = vadd.f32 %v8261_v1, %v15309_v30 }
 0xef9   : > { %v7087_v62 = vpop.f32.mrf.mxu1 }
 0xefa   : > { %7204 = vst.msk [vmem:[%s15316_s20 + $0x30] sm:$0xff] %vm536_vm0, %v7096_v18  ;;  %v7088_v26 = vadd.f32 %v15309_v30, %v7087_v62 }
 0xefb   : > { %v8262_v36 = vpop.f32.mrf.mxu1 }
 0xefc   : > { %7202 = vst.msk [vmem:[%s15316_s20 + $0x20] sm:$0xff] %vm536_vm0, %v7088_v26  ;;  %v7099_v45 = vadd.f32 %v8262_v36, %v15309_v30 }
 0xefd   : > { %v7090_v58 = vpop.f32.mrf.mxu1 }
 0xefe   : > { %7205 = vst.msk [vmem:[%s15316_s20 + $0x38] sm:$0xff] %vm536_vm0, %v7099_v45  ;;  %v7091_v3 = vadd.f32 %v15309_v30, %v7090_v58 }
 0xf00   : > { %7203 = vst.msk [vmem:[%s15316_s20 + $0x28] sm:$0xff] %vm536_vm0, %v7091_v3  ;;  %v8265_v9 = vpop.f32.mrf.mxu1 }
 0xf01   : > { %v7112_v59 = vadd.f32 %v8265_v9, %v15309_v30 }
 0xf02   : > { %v7103_v23 = vpop.f32.mrf.mxu1 }
 0xf03   : > { %7208 = vst.msk [vmem:[%s15316_s20 + $0x50] sm:$0xff] %vm536_vm0, %v7112_v59  ;;  %v7104_v51 = vadd.f32 %v15309_v30, %v7103_v23 }
 0xf04   : > { %v8266_v25 = vpop.f32.mrf.mxu1 }
 0xf05   : > { %7206 = vst.msk [vmem:[%s15316_s20 + $0x40] sm:$0xff] %vm536_vm0, %v7104_v51  ;;  %v7115_v48 = vadd.f32 %v8266_v25, %v15309_v30 }
 0xf06   : > { %v7106_v22 = vpop.f32.mrf.mxu1 }
 0xf07   : > { %7209 = vst.msk [vmem:[%s15316_s20 + $0x58] sm:$0xff] %vm536_vm0, %v7115_v48  ;;  %v7107_v4 = vadd.f32 %v15309_v30, %v7106_v22 }
 0xf08   : > { %v8269_v63 = vpop.f32.mrf.mxu1 }
 0xf09   : > { %7207 = vst.msk [vmem:[%s15316_s20 + $0x48] sm:$0xff] %vm536_vm0, %v7107_v4  ;;  %v7128_v49 = vadd.f32 %v8269_v63, %v15309_v30 }
 0xf0a   : > { %v7119_v35 = vpop.f32.mrf.mxu1 }
 0xf0b   : > { %7212 = vst.msk [vmem:[%s15316_s20 + $0x70] sm:$0xff] %vm536_vm0, %v7128_v49  ;;  %v7120_v24 = vadd.f32 %v15309_v30, %v7119_v35 }
 0xf0c   : > { %v8270_v14 = vpop.f32.mrf.mxu1 }
 0xf0d   : > { %7210 = vst.msk [vmem:[%s15316_s20 + $0x60] sm:$0xff] %vm536_vm0, %v7120_v24  ;;  %v7131_v56 = vadd.f32 %v8270_v14, %v15309_v30 }
 0xf0e   : > { %v7122_v46 = vpop.f32.mrf.mxu1 }
 0xf0f   : > { %7213 = vst.msk [vmem:[%s15316_s20 + $0x78] sm:$0xff] %vm536_vm0, %v7131_v56  ;;  %v7123_v7 = vadd.f32 %v15309_v30, %v7122_v46 }
 0xf10   : > { %v8273_v2 = vpop.f32.mrf.mxu1 }
 0xf11   : > { %7211 = vst.msk [vmem:[%s15316_s20 + $0x68] sm:$0xff] %vm536_vm0, %v7123_v7  ;;  %v7144_v6 = vadd.f32 %v8273_v2, %v15309_v30 }
 0xf12   : > { %v7135_v60 = vpop.f32.mrf.mxu1 }
 0xf13   : > { %7216 = vst.msk [vmem:[%s15316_s20 + $0x90] sm:$0xff] %vm536_vm0, %v7144_v6  ;;  %v7136_v10 = vadd.f32 %v15309_v30, %v7135_v60 }
 0xf14   : > { %v8274_v5 = vpop.f32.mrf.mxu1 }
 0xf15   : > { %7214 = vst.msk [vmem:[%s15316_s20 + $0x80] sm:$0xff] %vm536_vm0, %v7136_v10  ;;  %v7147_v29 = vadd.f32 %v8274_v5, %v15309_v30 }
 0xf16   : > { %v7138_v12 = vpop.f32.mrf.mxu1 }
 0xf17   : > { %7217 = vst.msk [vmem:[%s15316_s20 + $0x98] sm:$0xff] %vm536_vm0, %v7147_v29  ;;  %v7139_v27 = vadd.f32 %v15309_v30, %v7138_v12 }
 0xf18   : > { %v8277_v55 = vpop.f32.mrf.mxu1 }
 0xf19   : > { %7215 = vst.msk [vmem:[%s15316_s20 + $0x88] sm:$0xff] %vm536_vm0, %v7139_v27  ;;  %v7160_v41 = vadd.f32 %v8277_v55, %v15309_v30 }
 0xf1a   : > { %v7151_v16 = vpop.f32.mrf.mxu1 }
 0xf1b   : > { %7220 = vst.msk [vmem:[%s15316_s20 + $0xb0] sm:$0xff] %vm536_vm0, %v7160_v41  ;;  %v7152_v20 = vadd.f32 %v15309_v30, %v7151_v16 }
 0xf1c   : > { %v8278_v38 = vpop.f32.mrf.mxu1 }
 0xf1d   : > { %7218 = vst.msk [vmem:[%s15316_s20 + $0xa0] sm:$0xff] %vm536_vm0, %v7152_v20  ;;  %v7163_v50 = vadd.f32 %v8278_v38, %v15309_v30 }
 0xf1e   : > { %v7154_v31 = vpop.f32.mrf.mxu1 }
 0xf1f   : > { %7221 = vst.msk [vmem:[%s15316_s20 + $0xb8] sm:$0xff] %vm536_vm0, %v7163_v50  ;;  %v7155_v11 = vadd.f32 %v15309_v30, %v7154_v31 }
 0xf21   : > { %7219 = vst.msk [vmem:[%s15316_s20 + $0xa8] sm:$0xff] %vm536_vm0, %v7155_v11 }
 0xf27   : > { %v8281_v52 = vpop.f32.mrf.mxu1 }
 0xf28   : > { %v7176_v39 = vadd.f32 %v8281_v52, %v15309_v30 }
 0xf29   : > { %v7167_v28 = vpop.f32.mrf.mxu1 }
 0xf2a   : > { %7224 = vst.msk [vmem:[%s15316_s20 + $0xd0] sm:$0xff] %vm536_vm0, %v7176_v39  ;;  %v7168_v15 = vadd.f32 %v15309_v30, %v7167_v28 }
 0xf2b   : > { %v8282_v40 = vpop.f32.mrf.mxu1 }
 0xf2c   : > { %7222 = vst.msk [vmem:[%s15316_s20 + $0xc0] sm:$0xff] %vm536_vm0, %v7168_v15  ;;  %v7179_v32 = vadd.f32 %v8282_v40, %v15309_v30 }
 0xf2d   : > { %v7170_v47 = vpop.f32.mrf.mxu1 }
 0xf2e   : > { %7225 = vst.msk [vmem:[%s15316_s20 + $0xd8] sm:$0xff] %vm536_vm0, %v7179_v32  ;;  %v7171_v34 = vadd.f32 %v15309_v30, %v7170_v47 }
 0xf30   : > { %7223 = vst.msk [vmem:[%s15316_s20 + $0xc8] sm:$0xff] %vm536_vm0, %v7171_v34 }
 0xf77   : > { %v8285_v13 = vpop.f32.mrf.mxu1 }
 0xf78   : > { %v7192_v33 = vadd.f32 %v8285_v13, %v15309_v30 }
 0xf79   : > { %v7183_v43 = vpop.f32.mrf.mxu1 }
 0xf7a   : > { %7228 = vst.msk [vmem:[%s15316_s20 + $0xf0] sm:$0xff] %vm536_vm0, %v7192_v33  ;;  %v7184_v21 = vadd.f32 %v15309_v30, %v7183_v43 }
 0xf7b   : > { %v8286_v37 = vpop.f32.mrf.mxu1 }
 0xf7c   : > { %7226 = vst.msk [vmem:[%s15316_s20 + $0xe0] sm:$0xff] %vm536_vm0, %v7184_v21  ;;  %v7195_v54 = vadd.f32 %v8286_v37, %v15309_v30 }
 0xf7d   : > { %v7186_v8 = vpop.f32.mrf.mxu1 }
 0xf7e   : > { %7229 = vst.msk [vmem:[%s15316_s20 + $0xf8] sm:$0xff] %vm536_vm0, %v7195_v54  ;;  %v7187_v19 = vadd.f32 %v15309_v30, %v7186_v8 }
 0xf80   : > { %7227 = vst.msk [vmem:[%s15316_s20 + $0xe8] sm:$0xff] %vm536_vm0, %v7187_v19 }
 0xf81 PF: > { %s16838_s25 = smov %s9946_s21  ;;  %p25_p8 = scmp.ge.s32.totalorder %s9946_s21, 4  }
 0xf82   : > { %s16839_s21 = smov %s9773_s22  ;;  %s16840_s22 = smov %s9777_s23 }
 0xf83   : > { %s16841_s23 = smov %s9957_s14  ;;  %s16842_s24 = smov %s16838_s25 }
 0xf84   :  { %27 = sbr.rel (!%p25_p8) target bundleno = 8 (0x8), region = 132 }
 0xf89   :  { %7267 = vsyncpa [#allocation3], 1 }
 0xf8a   :  { %7269 = vsyncpa [#allocation3 + $0x1], 1 }
 0xf8b   :  { %7270 = vsyncpa [#allocation5], 1 }
 0xf8c   :  { %7271 = vsyncpa [#allocation8], 1 }

</bundles_post_ra>
